<compile_context>
chip_gen: v7x
topology: tpu7x:2x2x1
jax: 0.10.0
libtpu: 0.0.40
codegen_flags: <defaults>
</compile_context>

<pallas_src>
import functools

import numpy as np
import jax
import jax.numpy as jnp
from jax import lax
from jax.experimental import pallas as pl
from jax.experimental.pallas import tpu as pltpu

_VMEM_LIMIT = 32 * 1024 * 1024
_HALO = 8  # zero-slack rows on each side of the flattened padded buffer (mult of 8)


# ------------------------------- fused kernel ------------------------------- #

def _decoder_kernel(
        # per-image activations
        f5_ref, r1_ref, r2_ref, r3_ref, x_ref,
        # stage 1 params / placement constants
        w1_ref, b1_ref, w31_ref, b31_ref, s1_ref, t1_ref,
        # stage 2
        w2_ref, b2_ref, w32_ref, b32_ref, s2_ref, t2_ref,
        # stage 3
        w3_ref, b3_ref, w33_ref, b33_ref, s3_ref, t3_ref,
        # head
        g3_ref, w4t_ref, b4_ref, w6_ref, b6_ref,
        # outputs
        out4_ref, fin_ref,
        *, cfgs):
    """Whole Feature_Decoder forward for one image (grid iterates the batch).

    Every activation is a 2-D (rows, channels) slab with channels on lanes.
    Upsample / zero-pad / residual placement are constant 0/1 matmuls, so no
    in-kernel reshape or transpose is needed and nothing touches HBM between
    stages.  Garbage only ever lands in padding rows, which constant gather
    matrices (folded into the next stage's scatter) discard.
    """

    def conv3x3(pre_bf, w9_ref, b_ref, P, Lout):
        # 3x3 conv on the flattened zero-padded layout: nine statically
        # unrolled matmuls on shifted row slices.  Row-band tiled so each band
        # accumulator stays register-resident (no VMEM scratch RMW).
        band = Lout
        if band > 128:
            for b in range(128, 7, -8):
                if Lout % b == 0:
                    band = b
                    break
        outs = []
        for bi in range(Lout // band):
            acc = None
            for t in range(9):
                dy, dx = divmod(t, 3)
                st = _HALO + dy * P + (dx - 1) + bi * band  # dx==1 taps 8-aligned
                d = jnp.dot(pre_bf[st:st + band, :], w9_ref[t],
                            preferred_element_type=jnp.float32)
                acc = d if acc is None else acc + d
            outs.append((acc + b_ref[...]).astype(jnp.bfloat16))
        return outs[0] if len(outs) == 1 else jnp.concatenate(outs, axis=0)

    def stage(z_bf, res_ref, wp_ref, bp_ref, s_ref, t_ref, w9_ref, b9_ref, cfg):
        P, Lout = cfg
        # 1x1 conv commuted past the nearest upsample -> runs at LOW resolution.
        low = (jnp.dot(z_bf, wp_ref[...], preferred_element_type=jnp.float32)
               + bp_ref[...]).astype(jnp.bfloat16)
        # 2x nearest upsample + zero-pad + residual add as two placement matmuls.
        pre = (jnp.dot(s_ref[...], low, preferred_element_type=jnp.float32)
               + jnp.dot(t_ref[...], res_ref[0], preferred_element_type=jnp.float32)
               ).astype(jnp.bfloat16)
        # TODO(synk): tap-pairing to K=128 / Cout padding for the 64-channel
        # stage would raise MXU occupancy; irrelevant at these (tiny) sizes.
        return conv3x3(pre, w9_ref, b9_ref, P, Lout)

    o1 = stage(f5_ref[0], r1_ref, w1_ref, b1_ref, s1_ref, t1_ref,
               w31_ref, b31_ref, cfgs[0])                      # (Lout1, 256) bf16
    o2 = stage(o1, r2_ref, w2_ref, b2_ref, s2_ref, t2_ref,
               w32_ref, b32_ref, cfgs[1])                      # (Lout2, 128) bf16
    o3 = stage(o2, r3_ref, w3_ref, b3_ref, s3_ref, t3_ref,
               w33_ref, b33_ref, cfgs[2])                      # (Lout3, 64)  bf16

    # ---- fused head: out_ = conv4(feat); final = tanh(conv6(x + out_)) -----
    # feat gathered to real-pixel order; outputs are channel-major (3, HW):
    # already NCHW and lane-dense (HW = 256 lanes), single unmasked-lane stores.
    feat = jnp.dot(g3_ref[...], o3,
                   preferred_element_type=jnp.float32).astype(jnp.bfloat16)  # (HW, 64)
    out4p = lax.dot_general(w4t_ref[...], feat,
                            dimension_numbers=(((1,), (1,)), ((), ())),
                            preferred_element_type=jnp.float32) + b4_ref[...]  # (8, HW)
    out4 = out4p[0:3, :]
    out4_ref[0] = out4
    s = x_ref[0] + out4                                        # (3, HW) f32
    s0, s1v, s2v = s[0:1, :], s[1:2, :], s[2:3, :]
    rows = [w6_ref[c, 0] * s0 + w6_ref[c, 1] * s1v + w6_ref[c, 2] * s2v + b6_ref[c]
            for c in range(3)]
    fin_ref[0] = jnp.tanh(jnp.concatenate(rows, axis=0))       # single store


# -------------------------- placement constants ----------------------------- #

def _stage_consts(h, w):
    """Constant matrices for one stage whose LOW-res grid is (h, w).

    S: scatters the low-res (upsampled-by-2) pixels into the flattened padded
       buffer;  T: places the residual;  G: gathers real output pixels back out
       of the conv-output rows.  All positions are sublane-friendly: the padded
       row length P and halo are multiples of 8.
    """
    H2, W2 = 2 * h, 2 * w
    P = ((W2 + 2 + 7) // 8) * 8
    Lp = (H2 + 2) * P
    Lh = Lp + 2 * _HALO
    Lout = H2 * P
    S = np.zeros((Lh, h * w), np.float32)
    T = np.zeros((Lh, H2 * W2), np.float32)
    G = np.zeros((H2 * W2, Lout), np.float32)
    for y in range(H2):
        for x in range(W2):
            u = _HALO + (y + 1) * P + (x + 1)
            S[u, (y // 2) * w + (x // 2)] = 1.0
            T[u, y * W2 + x] = 1.0
            G[y * W2 + x, y * P + x + 1] = 1.0
    return S, T, G, P, Lout


# ------------------------------ plain-JAX glue ------------------------------ #

def apply_sparsity(t, topK):
    # TODO(synk): exact global top-k (XLA sort) kept for semantic fidelity;
    # switch to jax.lax.approx_max_k at production sizes.
    flat = t.reshape(-1)
    total = flat.shape[0]
    k = min(int(topK * total), total)
    _, idx = jax.lax.top_k(flat, k)
    mask = jnp.zeros_like(flat).at[idx].set(1.0)
    return t * mask.reshape(t.shape)


def init_params(key):
    """Deterministic synthetic params, PyTorch Conv2d shapes (Cout, Cin, kh, kw)."""
    def conv_init(k, cout, cin, ksz):
        kw_, kb_ = jax.random.split(k)
        bound = 1.0 / jnp.sqrt(cin * ksz * ksz)
        w = jax.random.uniform(kw_, (cout, cin, ksz, ksz), jnp.float32, -bound, bound)
        b = jax.random.uniform(kb_, (cout,), jnp.float32, -bound, bound)
        return w, b

    keys = jax.random.split(key, 10)
    return {
        "conv1":   conv_init(keys[0], 256, 512, 1),
        "conv2":   conv_init(keys[1], 128, 256, 1),
        "conv3":   conv_init(keys[2], 64, 128, 1),
        "conv4":   conv_init(keys[3], 3, 64, 1),
        "conv5":   conv_init(keys[4], 3, 64, 1),   # defined but unused in forward
        "conv6":   conv_init(keys[5], 3, 3, 1),
        "conv_31": conv_init(keys[6], 256, 256, 3),
        "conv_32": conv_init(keys[7], 128, 128, 3),
        "conv_33": conv_init(keys[8], 64, 64, 3),
        "conv_34": conv_init(keys[9], 3, 3, 3),    # defined but unused in forward
    }


def feature_decoder_forward(params, topK, x, f1, f2, f3, f4, f5):
    """Matches Feature_Decoder.forward.  Inputs/outputs are NCHW.  f1 is unused."""
    del f1
    N, _, H, W = x.shape
    HW = H * W

    # ---------------- XLA-side input prep (one cheap pass per input) ---------
    to_rows = lambda a: jnp.transpose(a, (0, 2, 3, 1)).reshape(
        a.shape[0], a.shape[2] * a.shape[3], a.shape[1]).astype(jnp.bfloat16)
    z0 = to_rows(apply_sparsity(f5, topK))          # (N, h5*w5, 512)
    r1 = to_rows(f4)                                # (N, 16,  256)
    r2 = to_rows(f3)                                # (N, 64,  128)
    r3 = to_rows(f2)                                # (N, 256,  64)
    k0 = z0.shape[1]
    k0p = ((k0 + 15) // 16) * 16                    # bf16-tile-friendly K
    z0 = jnp.pad(z0, ((0, 0), (0, k0p - k0), (0, 0)))
    x_cm = x.reshape(N, 3, HW).astype(jnp.float32)  # NCHW is already channel-major

    # ---------------- weights ------------------------------------------------
    def pw(name):
        w, b = params[name]
        return (jnp.transpose(w[:, :, 0, 0], (1, 0)).astype(jnp.bfloat16),  # (Cin,Cout)
                b.reshape(1, -1).astype(jnp.float32))

    def c3(name):
        w, b = params[name]                                # (Cout, Cin, 3, 3)
        cout, cin = w.shape[0], w.shape[1]
        w9 = jnp.transpose(w, (2, 3, 1, 0)).reshape(9, cin, cout).astype(jnp.bfloat16)
        return w9, b.reshape(1, -1).astype(jnp.float32)

    w1, b1 = pw("conv1"); w2, b2 = pw("conv2"); w3, b3 = pw("conv3")
    w31, b31 = c3("conv_31"); w32, b32 = c3("conv_32"); w33, b33 = c3("conv_33")

    w4c = params["conv4"][0][:, :, 0, 0]                    # (3, 64)
    b4v = params["conv4"][1]
    w4t = jnp.zeros((8, w4c.shape[1]), jnp.bfloat16).at[:3].set(w4c.astype(jnp.bfloat16))
    b4c = jnp.zeros((8, 1), jnp.float32).at[:3, 0].set(b4v.astype(jnp.float32))
    w6 = params["conv6"][0][:, :, 0, 0].astype(jnp.float32)  # (3, 3)  -> SMEM scalars
    b6 = params["conv6"][1].astype(jnp.float32)               # (3,)    -> SMEM scalars

    # ---------------- placement constants (trace-time numpy) -----------------
    h5, w5s = f5.shape[2], f5.shape[3]
    h4, w4s = f4.shape[2], f4.shape[3]
    h3, w3s = f3.shape[2], f3.shape[3]
    assert (h4, w4s) == (2 * h5, 2 * w5s) and (h3, w3s) == (2 * h4, 2 * w4s)
    assert (H, W) == (2 * h3, 2 * w3s)
    S1, T1, G1, P1, L1 = _stage_consts(h5, w5s)
    S2, T2, G2, P2, L2 = _stage_consts(h4, w4s)
    S3, T3, G3, P3, L3 = _stage_consts(h3, w3s)
    S1 = np.pad(S1, ((0, 0), (0, k0p - k0)))     # match padded f5 rows
    S2p = S2 @ G1                                # fold prev-stage real-pixel gather
    S3p = S3 @ G2
    bf = lambda a: jnp.asarray(a, jnp.bfloat16)
    S1, T1, S2p, T2, S3p, T3, G3 = map(bf, (S1, T1, S2p, T2, S3p, T3, G3))

    # ---------------- single fused pallas call -------------------------------
    def img_spec(a):
        nd = a.ndim
        return pl.BlockSpec((1,) + tuple(a.shape[1:]),
                            lambda n, _nd=nd: (n,) + (0,) * (_nd - 1))

    def cst_spec(a):
        nd = a.ndim
        return pl.BlockSpec(tuple(a.shape), lambda n, _nd=nd: (0,) * _nd)

    smem_spec = pl.BlockSpec(memory_space=pltpu.MemorySpace.SMEM)

    kernel = functools.partial(_decoder_kernel,
                               cfgs=((P1, L1), (P2, L2), (P3, L3)))

    # TODO(synk): for N==1 on v7x, re-grid over row-bands (overlapping halos)
    # so both TensorCores stay busy; at N>=2 the batch grid already shards.
    out4_cm, fin_cm = pl.pallas_call(
        kernel,
        out_shape=(jax.ShapeDtypeStruct((N, 3, HW), jnp.float32),
                   jax.ShapeDtypeStruct((N, 3, HW), jnp.float32)),
        grid=(N,),
        in_specs=[img_spec(z0), img_spec(r1), img_spec(r2), img_spec(r3),
                  img_spec(x_cm),
                  cst_spec(w1), cst_spec(b1), cst_spec(w31), cst_spec(b31),
                  cst_spec(S1), cst_spec(T1),
                  cst_spec(w2), cst_spec(b2), cst_spec(w32), cst_spec(b32),
                  cst_spec(S2p), cst_spec(T2),
                  cst_spec(w3), cst_spec(b3), cst_spec(w33), cst_spec(b33),
                  cst_spec(S3p), cst_spec(T3),
                  cst_spec(G3), cst_spec(w4t), cst_spec(b4c),
                  smem_spec, smem_spec],
        out_specs=[pl.BlockSpec((1, 3, HW), lambda n: (n, 0, 0)),
                   pl.BlockSpec((1, 3, HW), lambda n: (n, 0, 0))],
        compiler_params=pltpu.CompilerParams(
            dimension_semantics=("parallel",),
            vmem_limit_bytes=_VMEM_LIMIT),
    )(z0, r1, r2, r3, x_cm,
      w1, b1, w31, b31, S1, T1,
      w2, b2, w32, b32, S2p, T2,
      w3, b3, w33, b33, S3p, T3,
      G3, w4t, b4c, w6, b6)

    # (N, 3, HW) is already NCHW order -> reshapes are free (no data movement).
    return fin_cm.reshape(N, 3, H, W), out4_cm.reshape(N, 3, H, W)


# ----------------------------------- main ----------------------------------- #

if __name__ == "__main__":
    key = jax.random.PRNGKey(0)
    kp, kx, k1, k2, k3, k4, k5 = jax.random.split(key, 7)
    params = init_params(kp)

    N = 2
    x = jax.random.normal(kx, (N, 3, 16, 16), jnp.float32)
    f1 = jax.random.normal(k1, (N, 64, 16, 16), jnp.float32)   # unused by forward
    f2 = jax.random.normal(k2, (N, 64, 16, 16), jnp.float32)
    f3 = jax.random.normal(k3, (N, 128, 8, 8), jnp.float32)
    f4 = jax.random.normal(k4, (N, 256, 4, 4), jnp.float32)
    f5 = jax.random.normal(k5, (N, 512, 2, 2), jnp.float32)

    topK = 0.5
    fwd = jax.jit(functools.partial(feature_decoder_forward, params, topK))
    out, out_ = fwd(x, f1, f2, f3, f4, f5)
    jax.block_until_ready((out, out_))
    assert out.shape == (N, 3, 16, 16) and out_.shape == (N, 3, 16, 16)
    assert bool(jnp.all(jnp.isfinite(out))) and bool(jnp.all(jnp.isfinite(out_)))
    assert bool(jnp.all(jnp.abs(out) <= 1.0))  # tanh range sanity
    print("KERNEL_OK")
</pallas_src>

<mosaic_0001>
module attributes {stable_mosaic.version = 11 : i64} {
  func.func @_decoder_kernel(%arg0: i32, %arg1: memref<1x16x512xbf16, #tpu.memory_space<vmem>>, %arg2: memref<1x16x256xbf16, #tpu.memory_space<vmem>>, %arg3: memref<1x64x128xbf16, #tpu.memory_space<vmem>>, %arg4: memref<1x256x64xbf16, #tpu.memory_space<vmem>>, %arg5: memref<1x3x256xf32, #tpu.memory_space<vmem>>, %arg6: memref<512x256xbf16, #tpu.memory_space<vmem>>, %arg7: memref<1x256xf32, #tpu.memory_space<vmem>>, %arg8: memref<9x256x256xbf16, #tpu.memory_space<vmem>>, %arg9: memref<1x256xf32, #tpu.memory_space<vmem>>, %arg10: memref<64x16xbf16, #tpu.memory_space<vmem>>, %arg11: memref<64x16xbf16, #tpu.memory_space<vmem>>, %arg12: memref<256x128xbf16, #tpu.memory_space<vmem>>, %arg13: memref<1x128xf32, #tpu.memory_space<vmem>>, %arg14: memref<9x128x128xbf16, #tpu.memory_space<vmem>>, %arg15: memref<1x128xf32, #tpu.memory_space<vmem>>, %arg16: memref<176x32xbf16, #tpu.memory_space<vmem>>, %arg17: memref<176x64xbf16, #tpu.memory_space<vmem>>, %arg18: memref<128x64xbf16, #tpu.memory_space<vmem>>, %arg19: memref<1x64xf32, #tpu.memory_space<vmem>>, %arg20: memref<9x64x64xbf16, #tpu.memory_space<vmem>>, %arg21: memref<1x64xf32, #tpu.memory_space<vmem>>, %arg22: memref<448x128xbf16, #tpu.memory_space<vmem>>, %arg23: memref<448x256xbf16, #tpu.memory_space<vmem>>, %arg24: memref<256x384xbf16, #tpu.memory_space<vmem>>, %arg25: memref<8x64xbf16, #tpu.memory_space<vmem>>, %arg26: memref<8x1xf32, #tpu.memory_space<vmem>>, %arg27: memref<3x3xf32, #tpu.memory_space<smem>>, %arg28: memref<3xf32, #tpu.memory_space<smem>>, %arg29: memref<1x3x256xf32, #tpu.memory_space<vmem>>, %arg30: memref<1x3x256xf32, #tpu.memory_space<vmem>>) attributes {dimension_semantics = [#tpu.dimension_semantics<parallel>], iteration_bounds = array<i64: 2>, scalar_prefetch = 0 : i64, scratch_operands = 0 : i64, tpu.core_type = #tpu.core_type<tc>, window_params = [{transform_indices = @transform_0, window_bounds = array<i64: 1, 16, 512>}, {transform_indices = @transform_1, window_bounds = array<i64: 1, 16, 256>}, {transform_indices = @transform_2, window_bounds = array<i64: 1, 64, 128>}, {transform_indices = @transform_3, window_bounds = array<i64: 1, 256, 64>}, {transform_indices = @transform_4, window_bounds = array<i64: 1, 3, 256>}, {pipeline_mode = #tpu.pipeline_mode<synchronous>, transform_indices = @transform_5, window_bounds = array<i64: 512, 256>}, {pipeline_mode = #tpu.pipeline_mode<synchronous>, transform_indices = @transform_6, window_bounds = array<i64: 1, 256>}, {pipeline_mode = #tpu.pipeline_mode<synchronous>, transform_indices = @transform_7, window_bounds = array<i64: 9, 256, 256>}, {pipeline_mode = #tpu.pipeline_mode<synchronous>, transform_indices = @transform_8, window_bounds = array<i64: 1, 256>}, {pipeline_mode = #tpu.pipeline_mode<synchronous>, transform_indices = @transform_9, window_bounds = array<i64: 64, 16>}, {pipeline_mode = #tpu.pipeline_mode<synchronous>, transform_indices = @transform_10, window_bounds = array<i64: 64, 16>}, {pipeline_mode = #tpu.pipeline_mode<synchronous>, transform_indices = @transform_11, window_bounds = array<i64: 256, 128>}, {pipeline_mode = #tpu.pipeline_mode<synchronous>, transform_indices = @transform_12, window_bounds = array<i64: 1, 128>}, {pipeline_mode = #tpu.pipeline_mode<synchronous>, transform_indices = @transform_13, window_bounds = array<i64: 9, 128, 128>}, {pipeline_mode = #tpu.pipeline_mode<synchronous>, transform_indices = @transform_14, window_bounds = array<i64: 1, 128>}, {pipeline_mode = #tpu.pipeline_mode<synchronous>, transform_indices = @transform_15, window_bounds = array<i64: 176, 32>}, {pipeline_mode = #tpu.pipeline_mode<synchronous>, transform_indices = @transform_16, window_bounds = array<i64: 176, 64>}, {pipeline_mode = #tpu.pipeline_mode<synchronous>, transform_indices = @transform_17, window_bounds = array<i64: 128, 64>}, {pipeline_mode = #tpu.pipeline_mode<synchronous>, transform_indices = @transform_18, window_bounds = array<i64: 1, 64>}, {pipeline_mode = #tpu.pipeline_mode<synchronous>, transform_indices = @transform_19, window_bounds = array<i64: 9, 64, 64>}, {pipeline_mode = #tpu.pipeline_mode<synchronous>, transform_indices = @transform_20, window_bounds = array<i64: 1, 64>}, {pipeline_mode = #tpu.pipeline_mode<synchronous>, transform_indices = @transform_21, window_bounds = array<i64: 448, 128>}, {pipeline_mode = #tpu.pipeline_mode<synchronous>, transform_indices = @transform_22, window_bounds = array<i64: 448, 256>}, {pipeline_mode = #tpu.pipeline_mode<synchronous>, transform_indices = @transform_23, window_bounds = array<i64: 256, 384>}, {pipeline_mode = #tpu.pipeline_mode<synchronous>, transform_indices = @transform_24, window_bounds = array<i64: 8, 64>}, {pipeline_mode = #tpu.pipeline_mode<synchronous>, transform_indices = @transform_25, window_bounds = array<i64: 8, 1>}, {transform_indices = @transform_26, window_bounds = array<i64: 3, 3>}, {transform_indices = @transform_27, window_bounds = array<i64: 3>}, {transform_indices = @transform_28, window_bounds = array<i64: 1, 3, 256>}, {transform_indices = @transform_29, window_bounds = array<i64: 1, 3, 256>}]} {
    %c0 = arith.constant 0 : index
    %c0_0 = arith.constant 0 : index
    %c0_1 = arith.constant 0 : index
    %0 = vector.load %arg1[%c0, %c0_0, %c0_1] : memref<1x16x512xbf16, #tpu.memory_space<vmem>>, vector<1x16x512xbf16>
    %1 = vector.shape_cast %0 : vector<1x16x512xbf16> to vector<16x512xbf16>
    %c0_2 = arith.constant 0 : index
    %c0_3 = arith.constant 0 : index
    %2 = vector.load %arg6[%c0_2, %c0_3] : memref<512x256xbf16, #tpu.memory_space<vmem>>, vector<512x256xbf16>
    %cst = arith.constant dense<0.000000e+00> : vector<16x256xf32>
    %3 = tpu.matmul %1, %2, %cst {dimension_numbers = #tpu.dot_dimension_numbers<[1], [0], [0], [1], [0, 0, 1, 1], [], []>} : vector<16x512xbf16>, vector<512x256xbf16>, vector<16x256xf32> -> vector<16x256xf32>
    %c0_4 = arith.constant 0 : index
    %c0_5 = arith.constant 0 : index
    %4 = vector.load %arg7[%c0_4, %c0_5] : memref<1x256xf32, #tpu.memory_space<vmem>>, vector<1x256xf32>
    %5 = vector.broadcast %4 : vector<1x256xf32> to vector<16x256xf32>
    %6 = arith.addf %3, %5 : vector<16x256xf32>
    %7 = arith.truncf %6 : vector<16x256xf32> to vector<16x256xbf16>
    %c0_6 = arith.constant 0 : index
    %c0_7 = arith.constant 0 : index
    %8 = vector.load %arg10[%c0_6, %c0_7] : memref<64x16xbf16, #tpu.memory_space<vmem>>, vector<64x16xbf16>
    %cst_8 = arith.constant dense<0.000000e+00> : vector<64x256xf32>
    %9 = tpu.matmul %8, %7, %cst_8 {dimension_numbers = #tpu.dot_dimension_numbers<[1], [0], [0], [1], [0, 0, 1, 1], [], []>} : vector<64x16xbf16>, vector<16x256xbf16>, vector<64x256xf32> -> vector<64x256xf32>
    %c0_9 = arith.constant 0 : index
    %c0_10 = arith.constant 0 : index
    %10 = vector.load %arg11[%c0_9, %c0_10] : memref<64x16xbf16, #tpu.memory_space<vmem>>, vector<64x16xbf16>
    %c0_11 = arith.constant 0 : index
    %c0_12 = arith.constant 0 : index
    %c0_13 = arith.constant 0 : index
    %11 = vector.load %arg2[%c0_11, %c0_12, %c0_13] : memref<1x16x256xbf16, #tpu.memory_space<vmem>>, vector<1x16x256xbf16>
    %12 = vector.shape_cast %11 : vector<1x16x256xbf16> to vector<16x256xbf16>
    %cst_14 = arith.constant dense<0.000000e+00> : vector<64x256xf32>
    %13 = tpu.matmul %10, %12, %cst_14 {dimension_numbers = #tpu.dot_dimension_numbers<[1], [0], [0], [1], [0, 0, 1, 1], [], []>} : vector<64x16xbf16>, vector<16x256xbf16>, vector<64x256xf32> -> vector<64x256xf32>
    %14 = arith.addf %9, %13 : vector<64x256xf32>
    %15 = arith.truncf %14 : vector<64x256xf32> to vector<64x256xbf16>
    %16 = vector.extract_strided_slice %15 {offsets = [7, 0], sizes = [32, 256], strides = [1, 1]} : vector<64x256xbf16> to vector<32x256xbf16>
    %c0_15 = arith.constant 0 : index
    %c0_16 = arith.constant 0 : index
    %c0_17 = arith.constant 0 : index
    %17 = vector.load %arg8[%c0_15, %c0_16, %c0_17] : memref<9x256x256xbf16, #tpu.memory_space<vmem>>, vector<1x256x256xbf16>
    %18 = vector.shape_cast %17 : vector<1x256x256xbf16> to vector<256x256xbf16>
    %cst_18 = arith.constant dense<0.000000e+00> : vector<32x256xf32>
    %19 = tpu.matmul %16, %18, %cst_18 {dimension_numbers = #tpu.dot_dimension_numbers<[1], [0], [0], [1], [0, 0, 1, 1], [], []>} : vector<32x256xbf16>, vector<256x256xbf16>, vector<32x256xf32> -> vector<32x256xf32>
    %20 = vector.extract_strided_slice %15 {offsets = [8, 0], sizes = [32, 256], strides = [1, 1]} : vector<64x256xbf16> to vector<32x256xbf16>
    %c1 = arith.constant 1 : index
    %c0_19 = arith.constant 0 : index
    %c0_20 = arith.constant 0 : index
    %21 = vector.load %arg8[%c1, %c0_19, %c0_20] : memref<9x256x256xbf16, #tpu.memory_space<vmem>>, vector<1x256x256xbf16>
    %22 = vector.shape_cast %21 : vector<1x256x256xbf16> to vector<256x256xbf16>
    %cst_21 = arith.constant dense<0.000000e+00> : vector<32x256xf32>
    %23 = tpu.matmul %20, %22, %cst_21 {dimension_numbers = #tpu.dot_dimension_numbers<[1], [0], [0], [1], [0, 0, 1, 1], [], []>} : vector<32x256xbf16>, vector<256x256xbf16>, vector<32x256xf32> -> vector<32x256xf32>
    %24 = arith.addf %19, %23 : vector<32x256xf32>
    %25 = vector.extract_strided_slice %15 {offsets = [9, 0], sizes = [32, 256], strides = [1, 1]} : vector<64x256xbf16> to vector<32x256xbf16>
    %c2 = arith.constant 2 : index
    %c0_22 = arith.constant 0 : index
    %c0_23 = arith.constant 0 : index
    %26 = vector.load %arg8[%c2, %c0_22, %c0_23] : memref<9x256x256xbf16, #tpu.memory_space<vmem>>, vector<1x256x256xbf16>
    %27 = vector.shape_cast %26 : vector<1x256x256xbf16> to vector<256x256xbf16>
    %cst_24 = arith.constant dense<0.000000e+00> : vector<32x256xf32>
    %28 = tpu.matmul %25, %27, %cst_24 {dimension_numbers = #tpu.dot_dimension_numbers<[1], [0], [0], [1], [0, 0, 1, 1], [], []>} : vector<32x256xbf16>, vector<256x256xbf16>, vector<32x256xf32> -> vector<32x256xf32>
    %29 = arith.addf %24, %28 : vector<32x256xf32>
    %30 = vector.extract_strided_slice %15 {offsets = [15, 0], sizes = [32, 256], strides = [1, 1]} : vector<64x256xbf16> to vector<32x256xbf16>
    %c3 = arith.constant 3 : index
    %c0_25 = arith.constant 0 : index
    %c0_26 = arith.constant 0 : index
    %31 = vector.load %arg8[%c3, %c0_25, %c0_26] : memref<9x256x256xbf16, #tpu.memory_space<vmem>>, vector<1x256x256xbf16>
    %32 = vector.shape_cast %31 : vector<1x256x256xbf16> to vector<256x256xbf16>
    %cst_27 = arith.constant dense<0.000000e+00> : vector<32x256xf32>
    %33 = tpu.matmul %30, %32, %cst_27 {dimension_numbers = #tpu.dot_dimension_numbers<[1], [0], [0], [1], [0, 0, 1, 1], [], []>} : vector<32x256xbf16>, vector<256x256xbf16>, vector<32x256xf32> -> vector<32x256xf32>
    %34 = arith.addf %29, %33 : vector<32x256xf32>
    %35 = vector.extract_strided_slice %15 {offsets = [16, 0], sizes = [32, 256], strides = [1, 1]} : vector<64x256xbf16> to vector<32x256xbf16>
    %c4 = arith.constant 4 : index
    %c0_28 = arith.constant 0 : index
    %c0_29 = arith.constant 0 : index
    %36 = vector.load %arg8[%c4, %c0_28, %c0_29] : memref<9x256x256xbf16, #tpu.memory_space<vmem>>, vector<1x256x256xbf16>
    %37 = vector.shape_cast %36 : vector<1x256x256xbf16> to vector<256x256xbf16>
    %cst_30 = arith.constant dense<0.000000e+00> : vector<32x256xf32>
    %38 = tpu.matmul %35, %37, %cst_30 {dimension_numbers = #tpu.dot_dimension_numbers<[1], [0], [0], [1], [0, 0, 1, 1], [], []>} : vector<32x256xbf16>, vector<256x256xbf16>, vector<32x256xf32> -> vector<32x256xf32>
    %39 = arith.addf %34, %38 : vector<32x256xf32>
    %40 = vector.extract_strided_slice %15 {offsets = [17, 0], sizes = [32, 256], strides = [1, 1]} : vector<64x256xbf16> to vector<32x256xbf16>
    %c5 = arith.constant 5 : index
    %c0_31 = arith.constant 0 : index
    %c0_32 = arith.constant 0 : index
    %41 = vector.load %arg8[%c5, %c0_31, %c0_32] : memref<9x256x256xbf16, #tpu.memory_space<vmem>>, vector<1x256x256xbf16>
    %42 = vector.shape_cast %41 : vector<1x256x256xbf16> to vector<256x256xbf16>
    %cst_33 = arith.constant dense<0.000000e+00> : vector<32x256xf32>
    %43 = tpu.matmul %40, %42, %cst_33 {dimension_numbers = #tpu.dot_dimension_numbers<[1], [0], [0], [1], [0, 0, 1, 1], [], []>} : vector<32x256xbf16>, vector<256x256xbf16>, vector<32x256xf32> -> vector<32x256xf32>
    %44 = arith.addf %39, %43 : vector<32x256xf32>
    %45 = vector.extract_strided_slice %15 {offsets = [23, 0], sizes = [32, 256], strides = [1, 1]} : vector<64x256xbf16> to vector<32x256xbf16>
    %c6 = arith.constant 6 : index
    %c0_34 = arith.constant 0 : index
    %c0_35 = arith.constant 0 : index
    %46 = vector.load %arg8[%c6, %c0_34, %c0_35] : memref<9x256x256xbf16, #tpu.memory_space<vmem>>, vector<1x256x256xbf16>
    %47 = vector.shape_cast %46 : vector<1x256x256xbf16> to vector<256x256xbf16>
    %cst_36 = arith.constant dense<0.000000e+00> : vector<32x256xf32>
    %48 = tpu.matmul %45, %47, %cst_36 {dimension_numbers = #tpu.dot_dimension_numbers<[1], [0], [0], [1], [0, 0, 1, 1], [], []>} : vector<32x256xbf16>, vector<256x256xbf16>, vector<32x256xf32> -> vector<32x256xf32>
    %49 = arith.addf %44, %48 : vector<32x256xf32>
    %50 = vector.extract_strided_slice %15 {offsets = [24, 0], sizes = [32, 256], strides = [1, 1]} : vector<64x256xbf16> to vector<32x256xbf16>
    %c7 = arith.constant 7 : index
    %c0_37 = arith.constant 0 : index
    %c0_38 = arith.constant 0 : index
    %51 = vector.load %arg8[%c7, %c0_37, %c0_38] : memref<9x256x256xbf16, #tpu.memory_space<vmem>>, vector<1x256x256xbf16>
    %52 = vector.shape_cast %51 : vector<1x256x256xbf16> to vector<256x256xbf16>
    %cst_39 = arith.constant dense<0.000000e+00> : vector<32x256xf32>
    %53 = tpu.matmul %50, %52, %cst_39 {dimension_numbers = #tpu.dot_dimension_numbers<[1], [0], [0], [1], [0, 0, 1, 1], [], []>} : vector<32x256xbf16>, vector<256x256xbf16>, vector<32x256xf32> -> vector<32x256xf32>
    %54 = arith.addf %49, %53 : vector<32x256xf32>
    %55 = vector.extract_strided_slice %15 {offsets = [25, 0], sizes = [32, 256], strides = [1, 1]} : vector<64x256xbf16> to vector<32x256xbf16>
    %c8 = arith.constant 8 : index
    %c0_40 = arith.constant 0 : index
    %c0_41 = arith.constant 0 : index
    %56 = vector.load %arg8[%c8, %c0_40, %c0_41] : memref<9x256x256xbf16, #tpu.memory_space<vmem>>, vector<1x256x256xbf16>
    %57 = vector.shape_cast %56 : vector<1x256x256xbf16> to vector<256x256xbf16>
    %cst_42 = arith.constant dense<0.000000e+00> : vector<32x256xf32>
    %58 = tpu.matmul %55, %57, %cst_42 {dimension_numbers = #tpu.dot_dimension_numbers<[1], [0], [0], [1], [0, 0, 1, 1], [], []>} : vector<32x256xbf16>, vector<256x256xbf16>, vector<32x256xf32> -> vector<32x256xf32>
    %59 = arith.addf %54, %58 : vector<32x256xf32>
    %c0_43 = arith.constant 0 : index
    %c0_44 = arith.constant 0 : index
    %60 = vector.load %arg9[%c0_43, %c0_44] : memref<1x256xf32, #tpu.memory_space<vmem>>, vector<1x256xf32>
    %61 = vector.broadcast %60 : vector<1x256xf32> to vector<32x256xf32>
    %62 = arith.addf %59, %61 : vector<32x256xf32>
    %63 = arith.truncf %62 : vector<32x256xf32> to vector<32x256xbf16>
    %c0_45 = arith.constant 0 : index
    %c0_46 = arith.constant 0 : index
    %64 = vector.load %arg12[%c0_45, %c0_46] : memref<256x128xbf16, #tpu.memory_space<vmem>>, vector<256x128xbf16>
    %cst_47 = arith.constant dense<0.000000e+00> : vector<32x128xf32>
    %65 = tpu.matmul %63, %64, %cst_47 {dimension_numbers = #tpu.dot_dimension_numbers<[1], [0], [0], [1], [0, 0, 1, 1], [], []>} : vector<32x256xbf16>, vector<256x128xbf16>, vector<32x128xf32> -> vector<32x128xf32>
    %c0_48 = arith.constant 0 : index
    %c0_49 = arith.constant 0 : index
    %66 = vector.load %arg13[%c0_48, %c0_49] : memref<1x128xf32, #tpu.memory_space<vmem>>, vector<1x128xf32>
    %67 = vector.broadcast %66 : vector<1x128xf32> to vector<32x128xf32>
    %68 = arith.addf %65, %67 : vector<32x128xf32>
    %69 = arith.truncf %68 : vector<32x128xf32> to vector<32x128xbf16>
    %c0_50 = arith.constant 0 : index
    %c0_51 = arith.constant 0 : index
    %70 = vector.load %arg16[%c0_50, %c0_51] : memref<176x32xbf16, #tpu.memory_space<vmem>>, vector<176x32xbf16>
    %cst_52 = arith.constant dense<0.000000e+00> : vector<176x128xf32>
    %71 = tpu.matmul %70, %69, %cst_52 {dimension_numbers = #tpu.dot_dimension_numbers<[1], [0], [0], [1], [0, 0, 1, 1], [], []>} : vector<176x32xbf16>, vector<32x128xbf16>, vector<176x128xf32> -> vector<176x128xf32>
    %c0_53 = arith.constant 0 : index
    %c0_54 = arith.constant 0 : index
    %72 = vector.load %arg17[%c0_53, %c0_54] : memref<176x64xbf16, #tpu.memory_space<vmem>>, vector<176x64xbf16>
    %c0_55 = arith.constant 0 : index
    %c0_56 = arith.constant 0 : index
    %c0_57 = arith.constant 0 : index
    %73 = vector.load %arg3[%c0_55, %c0_56, %c0_57] : memref<1x64x128xbf16, #tpu.memory_space<vmem>>, vector<1x64x128xbf16>
    %74 = vector.shape_cast %73 : vector<1x64x128xbf16> to vector<64x128xbf16>
    %cst_58 = arith.constant dense<0.000000e+00> : vector<176x128xf32>
    %75 = tpu.matmul %72, %74, %cst_58 {dimension_numbers = #tpu.dot_dimension_numbers<[1], [0], [0], [1], [0, 0, 1, 1], [], []>} : vector<176x64xbf16>, vector<64x128xbf16>, vector<176x128xf32> -> vector<176x128xf32>
    %76 = arith.addf %71, %75 : vector<176x128xf32>
    %77 = arith.truncf %76 : vector<176x128xf32> to vector<176x128xbf16>
    %78 = vector.extract_strided_slice %77 {offsets = [7, 0], sizes = [128, 128], strides = [1, 1]} : vector<176x128xbf16> to vector<128x128xbf16>
    %c0_59 = arith.constant 0 : index
    %c0_60 = arith.constant 0 : index
    %c0_61 = arith.constant 0 : index
    %79 = vector.load %arg14[%c0_59, %c0_60, %c0_61] : memref<9x128x128xbf16, #tpu.memory_space<vmem>>, vector<1x128x128xbf16>
    %80 = vector.shape_cast %79 : vector<1x128x128xbf16> to vector<128x128xbf16>
    %cst_62 = arith.constant dense<0.000000e+00> : vector<128x128xf32>
    %81 = tpu.matmul %78, %80, %cst_62 {dimension_numbers = #tpu.dot_dimension_numbers<[1], [0], [0], [1], [0, 0, 1, 1], [], []>} : vector<128x128xbf16>, vector<128x128xbf16>, vector<128x128xf32> -> vector<128x128xf32>
    %82 = vector.extract_strided_slice %77 {offsets = [8, 0], sizes = [128, 128], strides = [1, 1]} : vector<176x128xbf16> to vector<128x128xbf16>
    %c1_63 = arith.constant 1 : index
    %c0_64 = arith.constant 0 : index
    %c0_65 = arith.constant 0 : index
    %83 = vector.load %arg14[%c1_63, %c0_64, %c0_65] : memref<9x128x128xbf16, #tpu.memory_space<vmem>>, vector<1x128x128xbf16>
    %84 = vector.shape_cast %83 : vector<1x128x128xbf16> to vector<128x128xbf16>
    %cst_66 = arith.constant dense<0.000000e+00> : vector<128x128xf32>
    %85 = tpu.matmul %82, %84, %cst_66 {dimension_numbers = #tpu.dot_dimension_numbers<[1], [0], [0], [1], [0, 0, 1, 1], [], []>} : vector<128x128xbf16>, vector<128x128xbf16>, vector<128x128xf32> -> vector<128x128xf32>
    %86 = arith.addf %81, %85 : vector<128x128xf32>
    %87 = vector.extract_strided_slice %77 {offsets = [9, 0], sizes = [128, 128], strides = [1, 1]} : vector<176x128xbf16> to vector<128x128xbf16>
    %c2_67 = arith.constant 2 : index
    %c0_68 = arith.constant 0 : index
    %c0_69 = arith.constant 0 : index
    %88 = vector.load %arg14[%c2_67, %c0_68, %c0_69] : memref<9x128x128xbf16, #tpu.memory_space<vmem>>, vector<1x128x128xbf16>
    %89 = vector.shape_cast %88 : vector<1x128x128xbf16> to vector<128x128xbf16>
    %cst_70 = arith.constant dense<0.000000e+00> : vector<128x128xf32>
    %90 = tpu.matmul %87, %89, %cst_70 {dimension_numbers = #tpu.dot_dimension_numbers<[1], [0], [0], [1], [0, 0, 1, 1], [], []>} : vector<128x128xbf16>, vector<128x128xbf16>, vector<128x128xf32> -> vector<128x128xf32>
    %91 = arith.addf %86, %90 : vector<128x128xf32>
    %92 = vector.extract_strided_slice %77 {offsets = [23, 0], sizes = [128, 128], strides = [1, 1]} : vector<176x128xbf16> to vector<128x128xbf16>
    %c3_71 = arith.constant 3 : index
    %c0_72 = arith.constant 0 : index
    %c0_73 = arith.constant 0 : index
    %93 = vector.load %arg14[%c3_71, %c0_72, %c0_73] : memref<9x128x128xbf16, #tpu.memory_space<vmem>>, vector<1x128x128xbf16>
    %94 = vector.shape_cast %93 : vector<1x128x128xbf16> to vector<128x128xbf16>
    %cst_74 = arith.constant dense<0.000000e+00> : vector<128x128xf32>
    %95 = tpu.matmul %92, %94, %cst_74 {dimension_numbers = #tpu.dot_dimension_numbers<[1], [0], [0], [1], [0, 0, 1, 1], [], []>} : vector<128x128xbf16>, vector<128x128xbf16>, vector<128x128xf32> -> vector<128x128xf32>
    %96 = arith.addf %91, %95 : vector<128x128xf32>
    %97 = vector.extract_strided_slice %77 {offsets = [24, 0], sizes = [128, 128], strides = [1, 1]} : vector<176x128xbf16> to vector<128x128xbf16>
    %c4_75 = arith.constant 4 : index
    %c0_76 = arith.constant 0 : index
    %c0_77 = arith.constant 0 : index
    %98 = vector.load %arg14[%c4_75, %c0_76, %c0_77] : memref<9x128x128xbf16, #tpu.memory_space<vmem>>, vector<1x128x128xbf16>
    %99 = vector.shape_cast %98 : vector<1x128x128xbf16> to vector<128x128xbf16>
    %cst_78 = arith.constant dense<0.000000e+00> : vector<128x128xf32>
    %100 = tpu.matmul %97, %99, %cst_78 {dimension_numbers = #tpu.dot_dimension_numbers<[1], [0], [0], [1], [0, 0, 1, 1], [], []>} : vector<128x128xbf16>, vector<128x128xbf16>, vector<128x128xf32> -> vector<128x128xf32>
    %101 = arith.addf %96, %100 : vector<128x128xf32>
    %102 = vector.extract_strided_slice %77 {offsets = [25, 0], sizes = [128, 128], strides = [1, 1]} : vector<176x128xbf16> to vector<128x128xbf16>
    %c5_79 = arith.constant 5 : index
    %c0_80 = arith.constant 0 : index
    %c0_81 = arith.constant 0 : index
    %103 = vector.load %arg14[%c5_79, %c0_80, %c0_81] : memref<9x128x128xbf16, #tpu.memory_space<vmem>>, vector<1x128x128xbf16>
    %104 = vector.shape_cast %103 : vector<1x128x128xbf16> to vector<128x128xbf16>
    %cst_82 = arith.constant dense<0.000000e+00> : vector<128x128xf32>
    %105 = tpu.matmul %102, %104, %cst_82 {dimension_numbers = #tpu.dot_dimension_numbers<[1], [0], [0], [1], [0, 0, 1, 1], [], []>} : vector<128x128xbf16>, vector<128x128xbf16>, vector<128x128xf32> -> vector<128x128xf32>
    %106 = arith.addf %101, %105 : vector<128x128xf32>
    %107 = vector.extract_strided_slice %77 {offsets = [39, 0], sizes = [128, 128], strides = [1, 1]} : vector<176x128xbf16> to vector<128x128xbf16>
    %c6_83 = arith.constant 6 : index
    %c0_84 = arith.constant 0 : index
    %c0_85 = arith.constant 0 : index
    %108 = vector.load %arg14[%c6_83, %c0_84, %c0_85] : memref<9x128x128xbf16, #tpu.memory_space<vmem>>, vector<1x128x128xbf16>
    %109 = vector.shape_cast %108 : vector<1x128x128xbf16> to vector<128x128xbf16>
    %cst_86 = arith.constant dense<0.000000e+00> : vector<128x128xf32>
    %110 = tpu.matmul %107, %109, %cst_86 {dimension_numbers = #tpu.dot_dimension_numbers<[1], [0], [0], [1], [0, 0, 1, 1], [], []>} : vector<128x128xbf16>, vector<128x128xbf16>, vector<128x128xf32> -> vector<128x128xf32>
    %111 = arith.addf %106, %110 : vector<128x128xf32>
    %112 = vector.extract_strided_slice %77 {offsets = [40, 0], sizes = [128, 128], strides = [1, 1]} : vector<176x128xbf16> to vector<128x128xbf16>
    %c7_87 = arith.constant 7 : index
    %c0_88 = arith.constant 0 : index
    %c0_89 = arith.constant 0 : index
    %113 = vector.load %arg14[%c7_87, %c0_88, %c0_89] : memref<9x128x128xbf16, #tpu.memory_space<vmem>>, vector<1x128x128xbf16>
    %114 = vector.shape_cast %113 : vector<1x128x128xbf16> to vector<128x128xbf16>
    %cst_90 = arith.constant dense<0.000000e+00> : vector<128x128xf32>
    %115 = tpu.matmul %112, %114, %cst_90 {dimension_numbers = #tpu.dot_dimension_numbers<[1], [0], [0], [1], [0, 0, 1, 1], [], []>} : vector<128x128xbf16>, vector<128x128xbf16>, vector<128x128xf32> -> vector<128x128xf32>
    %116 = arith.addf %111, %115 : vector<128x128xf32>
    %117 = vector.extract_strided_slice %77 {offsets = [41, 0], sizes = [128, 128], strides = [1, 1]} : vector<176x128xbf16> to vector<128x128xbf16>
    %c8_91 = arith.constant 8 : index
    %c0_92 = arith.constant 0 : index
    %c0_93 = arith.constant 0 : index
    %118 = vector.load %arg14[%c8_91, %c0_92, %c0_93] : memref<9x128x128xbf16, #tpu.memory_space<vmem>>, vector<1x128x128xbf16>
    %119 = vector.shape_cast %118 : vector<1x128x128xbf16> to vector<128x128xbf16>
    %cst_94 = arith.constant dense<0.000000e+00> : vector<128x128xf32>
    %120 = tpu.matmul %117, %119, %cst_94 {dimension_numbers = #tpu.dot_dimension_numbers<[1], [0], [0], [1], [0, 0, 1, 1], [], []>} : vector<128x128xbf16>, vector<128x128xbf16>, vector<128x128xf32> -> vector<128x128xf32>
    %121 = arith.addf %116, %120 : vector<128x128xf32>
    %c0_95 = arith.constant 0 : index
    %c0_96 = arith.constant 0 : index
    %122 = vector.load %arg15[%c0_95, %c0_96] : memref<1x128xf32, #tpu.memory_space<vmem>>, vector<1x128xf32>
    %123 = vector.broadcast %122 : vector<1x128xf32> to vector<128x128xf32>
    %124 = arith.addf %121, %123 : vector<128x128xf32>
    %125 = arith.truncf %124 : vector<128x128xf32> to vector<128x128xbf16>
    %c0_97 = arith.constant 0 : index
    %c0_98 = arith.constant 0 : index
    %126 = vector.load %arg18[%c0_97, %c0_98] : memref<128x64xbf16, #tpu.memory_space<vmem>>, vector<128x64xbf16>
    %cst_99 = arith.constant dense<0.000000e+00> : vector<128x64xf32>
    %127 = tpu.matmul %125, %126, %cst_99 {dimension_numbers = #tpu.dot_dimension_numbers<[1], [0], [0], [1], [0, 0, 1, 1], [], []>} : vector<128x128xbf16>, vector<128x64xbf16>, vector<128x64xf32> -> vector<128x64xf32>
    %c0_100 = arith.constant 0 : index
    %c0_101 = arith.constant 0 : index
    %128 = vector.load %arg19[%c0_100, %c0_101] : memref<1x64xf32, #tpu.memory_space<vmem>>, vector<1x64xf32>
    %129 = vector.broadcast %128 : vector<1x64xf32> to vector<128x64xf32>
    %130 = arith.addf %127, %129 : vector<128x64xf32>
    %131 = arith.truncf %130 : vector<128x64xf32> to vector<128x64xbf16>
    %c0_102 = arith.constant 0 : index
    %c0_103 = arith.constant 0 : index
    %132 = vector.load %arg22[%c0_102, %c0_103] : memref<448x128xbf16, #tpu.memory_space<vmem>>, vector<448x128xbf16>
    %cst_104 = arith.constant dense<0.000000e+00> : vector<448x64xf32>
    %133 = tpu.matmul %132, %131, %cst_104 {dimension_numbers = #tpu.dot_dimension_numbers<[1], [0], [0], [1], [0, 0, 1, 1], [], []>} : vector<448x128xbf16>, vector<128x64xbf16>, vector<448x64xf32> -> vector<448x64xf32>
    %c0_105 = arith.constant 0 : index
    %c0_106 = arith.constant 0 : index
    %134 = vector.load %arg23[%c0_105, %c0_106] : memref<448x256xbf16, #tpu.memory_space<vmem>>, vector<448x256xbf16>
    %c0_107 = arith.constant 0 : index
    %c0_108 = arith.constant 0 : index
    %c0_109 = arith.constant 0 : index
    %135 = vector.load %arg4[%c0_107, %c0_108, %c0_109] : memref<1x256x64xbf16, #tpu.memory_space<vmem>>, vector<1x256x64xbf16>
    %136 = vector.shape_cast %135 : vector<1x256x64xbf16> to vector<256x64xbf16>
    %cst_110 = arith.constant dense<0.000000e+00> : vector<448x64xf32>
    %137 = tpu.matmul %134, %136, %cst_110 {dimension_numbers = #tpu.dot_dimension_numbers<[1], [0], [0], [1], [0, 0, 1, 1], [], []>} : vector<448x256xbf16>, vector<256x64xbf16>, vector<448x64xf32> -> vector<448x64xf32>
    %138 = arith.addf %133, %137 : vector<448x64xf32>
    %139 = arith.truncf %138 : vector<448x64xf32> to vector<448x64xbf16>
    %140 = vector.extract_strided_slice %139 {offsets = [7, 0], sizes = [128, 64], strides = [1, 1]} : vector<448x64xbf16> to vector<128x64xbf16>
    %c0_111 = arith.constant 0 : index
    %c0_112 = arith.constant 0 : index
    %c0_113 = arith.constant 0 : index
    %141 = vector.load %arg20[%c0_111, %c0_112, %c0_113] : memref<9x64x64xbf16, #tpu.memory_space<vmem>>, vector<1x64x64xbf16>
    %142 = vector.shape_cast %141 : vector<1x64x64xbf16> to vector<64x64xbf16>
    %cst_114 = arith.constant dense<0.000000e+00> : vector<128x64xf32>
    %143 = tpu.matmul %140, %142, %cst_114 {dimension_numbers = #tpu.dot_dimension_numbers<[1], [0], [0], [1], [0, 0, 1, 1], [], []>} : vector<128x64xbf16>, vector<64x64xbf16>, vector<128x64xf32> -> vector<128x64xf32>
    %144 = vector.extract_strided_slice %139 {offsets = [8, 0], sizes = [128, 64], strides = [1, 1]} : vector<448x64xbf16> to vector<128x64xbf16>
    %c1_115 = arith.constant 1 : index
    %c0_116 = arith.constant 0 : index
    %c0_117 = arith.constant 0 : index
    %145 = vector.load %arg20[%c1_115, %c0_116, %c0_117] : memref<9x64x64xbf16, #tpu.memory_space<vmem>>, vector<1x64x64xbf16>
    %146 = vector.shape_cast %145 : vector<1x64x64xbf16> to vector<64x64xbf16>
    %cst_118 = arith.constant dense<0.000000e+00> : vector<128x64xf32>
    %147 = tpu.matmul %144, %146, %cst_118 {dimension_numbers = #tpu.dot_dimension_numbers<[1], [0], [0], [1], [0, 0, 1, 1], [], []>} : vector<128x64xbf16>, vector<64x64xbf16>, vector<128x64xf32> -> vector<128x64xf32>
    %148 = arith.addf %143, %147 : vector<128x64xf32>
    %149 = vector.extract_strided_slice %139 {offsets = [9, 0], sizes = [128, 64], strides = [1, 1]} : vector<448x64xbf16> to vector<128x64xbf16>
    %c2_119 = arith.constant 2 : index
    %c0_120 = arith.constant 0 : index
    %c0_121 = arith.constant 0 : index
    %150 = vector.load %arg20[%c2_119, %c0_120, %c0_121] : memref<9x64x64xbf16, #tpu.memory_space<vmem>>, vector<1x64x64xbf16>
    %151 = vector.shape_cast %150 : vector<1x64x64xbf16> to vector<64x64xbf16>
    %cst_122 = arith.constant dense<0.000000e+00> : vector<128x64xf32>
    %152 = tpu.matmul %149, %151, %cst_122 {dimension_numbers = #tpu.dot_dimension_numbers<[1], [0], [0], [1], [0, 0, 1, 1], [], []>} : vector<128x64xbf16>, vector<64x64xbf16>, vector<128x64xf32> -> vector<128x64xf32>
    %153 = arith.addf %148, %152 : vector<128x64xf32>
    %154 = vector.extract_strided_slice %139 {offsets = [31, 0], sizes = [128, 64], strides = [1, 1]} : vector<448x64xbf16> to vector<128x64xbf16>
    %c3_123 = arith.constant 3 : index
    %c0_124 = arith.constant 0 : index
    %c0_125 = arith.constant 0 : index
    %155 = vector.load %arg20[%c3_123, %c0_124, %c0_125] : memref<9x64x64xbf16, #tpu.memory_space<vmem>>, vector<1x64x64xbf16>
    %156 = vector.shape_cast %155 : vector<1x64x64xbf16> to vector<64x64xbf16>
    %cst_126 = arith.constant dense<0.000000e+00> : vector<128x64xf32>
    %157 = tpu.matmul %154, %156, %cst_126 {dimension_numbers = #tpu.dot_dimension_numbers<[1], [0], [0], [1], [0, 0, 1, 1], [], []>} : vector<128x64xbf16>, vector<64x64xbf16>, vector<128x64xf32> -> vector<128x64xf32>
    %158 = arith.addf %153, %157 : vector<128x64xf32>
    %159 = vector.extract_strided_slice %139 {offsets = [32, 0], sizes = [128, 64], strides = [1, 1]} : vector<448x64xbf16> to vector<128x64xbf16>
    %c4_127 = arith.constant 4 : index
    %c0_128 = arith.constant 0 : index
    %c0_129 = arith.constant 0 : index
    %160 = vector.load %arg20[%c4_127, %c0_128, %c0_129] : memref<9x64x64xbf16, #tpu.memory_space<vmem>>, vector<1x64x64xbf16>
    %161 = vector.shape_cast %160 : vector<1x64x64xbf16> to vector<64x64xbf16>
    %cst_130 = arith.constant dense<0.000000e+00> : vector<128x64xf32>
    %162 = tpu.matmul %159, %161, %cst_130 {dimension_numbers = #tpu.dot_dimension_numbers<[1], [0], [0], [1], [0, 0, 1, 1], [], []>} : vector<128x64xbf16>, vector<64x64xbf16>, vector<128x64xf32> -> vector<128x64xf32>
    %163 = arith.addf %158, %162 : vector<128x64xf32>
    %164 = vector.extract_strided_slice %139 {offsets = [33, 0], sizes = [128, 64], strides = [1, 1]} : vector<448x64xbf16> to vector<128x64xbf16>
    %c5_131 = arith.constant 5 : index
    %c0_132 = arith.constant 0 : index
    %c0_133 = arith.constant 0 : index
    %165 = vector.load %arg20[%c5_131, %c0_132, %c0_133] : memref<9x64x64xbf16, #tpu.memory_space<vmem>>, vector<1x64x64xbf16>
    %166 = vector.shape_cast %165 : vector<1x64x64xbf16> to vector<64x64xbf16>
    %cst_134 = arith.constant dense<0.000000e+00> : vector<128x64xf32>
    %167 = tpu.matmul %164, %166, %cst_134 {dimension_numbers = #tpu.dot_dimension_numbers<[1], [0], [0], [1], [0, 0, 1, 1], [], []>} : vector<128x64xbf16>, vector<64x64xbf16>, vector<128x64xf32> -> vector<128x64xf32>
    %168 = arith.addf %163, %167 : vector<128x64xf32>
    %169 = vector.extract_strided_slice %139 {offsets = [55, 0], sizes = [128, 64], strides = [1, 1]} : vector<448x64xbf16> to vector<128x64xbf16>
    %c6_135 = arith.constant 6 : index
    %c0_136 = arith.constant 0 : index
    %c0_137 = arith.constant 0 : index
    %170 = vector.load %arg20[%c6_135, %c0_136, %c0_137] : memref<9x64x64xbf16, #tpu.memory_space<vmem>>, vector<1x64x64xbf16>
    %171 = vector.shape_cast %170 : vector<1x64x64xbf16> to vector<64x64xbf16>
    %cst_138 = arith.constant dense<0.000000e+00> : vector<128x64xf32>
    %172 = tpu.matmul %169, %171, %cst_138 {dimension_numbers = #tpu.dot_dimension_numbers<[1], [0], [0], [1], [0, 0, 1, 1], [], []>} : vector<128x64xbf16>, vector<64x64xbf16>, vector<128x64xf32> -> vector<128x64xf32>
    %173 = arith.addf %168, %172 : vector<128x64xf32>
    %174 = vector.extract_strided_slice %139 {offsets = [56, 0], sizes = [128, 64], strides = [1, 1]} : vector<448x64xbf16> to vector<128x64xbf16>
    %c7_139 = arith.constant 7 : index
    %c0_140 = arith.constant 0 : index
    %c0_141 = arith.constant 0 : index
    %175 = vector.load %arg20[%c7_139, %c0_140, %c0_141] : memref<9x64x64xbf16, #tpu.memory_space<vmem>>, vector<1x64x64xbf16>
    %176 = vector.shape_cast %175 : vector<1x64x64xbf16> to vector<64x64xbf16>
    %cst_142 = arith.constant dense<0.000000e+00> : vector<128x64xf32>
    %177 = tpu.matmul %174, %176, %cst_142 {dimension_numbers = #tpu.dot_dimension_numbers<[1], [0], [0], [1], [0, 0, 1, 1], [], []>} : vector<128x64xbf16>, vector<64x64xbf16>, vector<128x64xf32> -> vector<128x64xf32>
    %178 = arith.addf %173, %177 : vector<128x64xf32>
    %179 = vector.extract_strided_slice %139 {offsets = [57, 0], sizes = [128, 64], strides = [1, 1]} : vector<448x64xbf16> to vector<128x64xbf16>
    %c8_143 = arith.constant 8 : index
    %c0_144 = arith.constant 0 : index
    %c0_145 = arith.constant 0 : index
    %180 = vector.load %arg20[%c8_143, %c0_144, %c0_145] : memref<9x64x64xbf16, #tpu.memory_space<vmem>>, vector<1x64x64xbf16>
    %181 = vector.shape_cast %180 : vector<1x64x64xbf16> to vector<64x64xbf16>
    %cst_146 = arith.constant dense<0.000000e+00> : vector<128x64xf32>
    %182 = tpu.matmul %179, %181, %cst_146 {dimension_numbers = #tpu.dot_dimension_numbers<[1], [0], [0], [1], [0, 0, 1, 1], [], []>} : vector<128x64xbf16>, vector<64x64xbf16>, vector<128x64xf32> -> vector<128x64xf32>
    %183 = arith.addf %178, %182 : vector<128x64xf32>
    %c0_147 = arith.constant 0 : index
    %c0_148 = arith.constant 0 : index
    %184 = vector.load %arg21[%c0_147, %c0_148] : memref<1x64xf32, #tpu.memory_space<vmem>>, vector<1x64xf32>
    %185 = vector.broadcast %184 : vector<1x64xf32> to vector<128x64xf32>
    %186 = arith.addf %183, %185 : vector<128x64xf32>
    %187 = arith.truncf %186 : vector<128x64xf32> to vector<128x64xbf16>
    %188 = vector.extract_strided_slice %139 {offsets = [135, 0], sizes = [128, 64], strides = [1, 1]} : vector<448x64xbf16> to vector<128x64xbf16>
    %c0_149 = arith.constant 0 : index
    %c0_150 = arith.constant 0 : index
    %c0_151 = arith.constant 0 : index
    %189 = vector.load %arg20[%c0_149, %c0_150, %c0_151] : memref<9x64x64xbf16, #tpu.memory_space<vmem>>, vector<1x64x64xbf16>
    %190 = vector.shape_cast %189 : vector<1x64x64xbf16> to vector<64x64xbf16>
    %cst_152 = arith.constant dense<0.000000e+00> : vector<128x64xf32>
    %191 = tpu.matmul %188, %190, %cst_152 {dimension_numbers = #tpu.dot_dimension_numbers<[1], [0], [0], [1], [0, 0, 1, 1], [], []>} : vector<128x64xbf16>, vector<64x64xbf16>, vector<128x64xf32> -> vector<128x64xf32>
    %192 = vector.extract_strided_slice %139 {offsets = [136, 0], sizes = [128, 64], strides = [1, 1]} : vector<448x64xbf16> to vector<128x64xbf16>
    %c1_153 = arith.constant 1 : index
    %c0_154 = arith.constant 0 : index
    %c0_155 = arith.constant 0 : index
    %193 = vector.load %arg20[%c1_153, %c0_154, %c0_155] : memref<9x64x64xbf16, #tpu.memory_space<vmem>>, vector<1x64x64xbf16>
    %194 = vector.shape_cast %193 : vector<1x64x64xbf16> to vector<64x64xbf16>
    %cst_156 = arith.constant dense<0.000000e+00> : vector<128x64xf32>
    %195 = tpu.matmul %192, %194, %cst_156 {dimension_numbers = #tpu.dot_dimension_numbers<[1], [0], [0], [1], [0, 0, 1, 1], [], []>} : vector<128x64xbf16>, vector<64x64xbf16>, vector<128x64xf32> -> vector<128x64xf32>
    %196 = arith.addf %191, %195 : vector<128x64xf32>
    %197 = vector.extract_strided_slice %139 {offsets = [137, 0], sizes = [128, 64], strides = [1, 1]} : vector<448x64xbf16> to vector<128x64xbf16>
    %c2_157 = arith.constant 2 : index
    %c0_158 = arith.constant 0 : index
    %c0_159 = arith.constant 0 : index
    %198 = vector.load %arg20[%c2_157, %c0_158, %c0_159] : memref<9x64x64xbf16, #tpu.memory_space<vmem>>, vector<1x64x64xbf16>
    %199 = vector.shape_cast %198 : vector<1x64x64xbf16> to vector<64x64xbf16>
    %cst_160 = arith.constant dense<0.000000e+00> : vector<128x64xf32>
    %200 = tpu.matmul %197, %199, %cst_160 {dimension_numbers = #tpu.dot_dimension_numbers<[1], [0], [0], [1], [0, 0, 1, 1], [], []>} : vector<128x64xbf16>, vector<64x64xbf16>, vector<128x64xf32> -> vector<128x64xf32>
    %201 = arith.addf %196, %200 : vector<128x64xf32>
    %202 = vector.extract_strided_slice %139 {offsets = [159, 0], sizes = [128, 64], strides = [1, 1]} : vector<448x64xbf16> to vector<128x64xbf16>
    %c3_161 = arith.constant 3 : index
    %c0_162 = arith.constant 0 : index
    %c0_163 = arith.constant 0 : index
    %203 = vector.load %arg20[%c3_161, %c0_162, %c0_163] : memref<9x64x64xbf16, #tpu.memory_space<vmem>>, vector<1x64x64xbf16>
    %204 = vector.shape_cast %203 : vector<1x64x64xbf16> to vector<64x64xbf16>
    %cst_164 = arith.constant dense<0.000000e+00> : vector<128x64xf32>
    %205 = tpu.matmul %202, %204, %cst_164 {dimension_numbers = #tpu.dot_dimension_numbers<[1], [0], [0], [1], [0, 0, 1, 1], [], []>} : vector<128x64xbf16>, vector<64x64xbf16>, vector<128x64xf32> -> vector<128x64xf32>
    %206 = arith.addf %201, %205 : vector<128x64xf32>
    %207 = vector.extract_strided_slice %139 {offsets = [160, 0], sizes = [128, 64], strides = [1, 1]} : vector<448x64xbf16> to vector<128x64xbf16>
    %c4_165 = arith.constant 4 : index
    %c0_166 = arith.constant 0 : index
    %c0_167 = arith.constant 0 : index
    %208 = vector.load %arg20[%c4_165, %c0_166, %c0_167] : memref<9x64x64xbf16, #tpu.memory_space<vmem>>, vector<1x64x64xbf16>
    %209 = vector.shape_cast %208 : vector<1x64x64xbf16> to vector<64x64xbf16>
    %cst_168 = arith.constant dense<0.000000e+00> : vector<128x64xf32>
    %210 = tpu.matmul %207, %209, %cst_168 {dimension_numbers = #tpu.dot_dimension_numbers<[1], [0], [0], [1], [0, 0, 1, 1], [], []>} : vector<128x64xbf16>, vector<64x64xbf16>, vector<128x64xf32> -> vector<128x64xf32>
    %211 = arith.addf %206, %210 : vector<128x64xf32>
    %212 = vector.extract_strided_slice %139 {offsets = [161, 0], sizes = [128, 64], strides = [1, 1]} : vector<448x64xbf16> to vector<128x64xbf16>
    %c5_169 = arith.constant 5 : index
    %c0_170 = arith.constant 0 : index
    %c0_171 = arith.constant 0 : index
    %213 = vector.load %arg20[%c5_169, %c0_170, %c0_171] : memref<9x64x64xbf16, #tpu.memory_space<vmem>>, vector<1x64x64xbf16>
    %214 = vector.shape_cast %213 : vector<1x64x64xbf16> to vector<64x64xbf16>
    %cst_172 = arith.constant dense<0.000000e+00> : vector<128x64xf32>
    %215 = tpu.matmul %212, %214, %cst_172 {dimension_numbers = #tpu.dot_dimension_numbers<[1], [0], [0], [1], [0, 0, 1, 1], [], []>} : vector<128x64xbf16>, vector<64x64xbf16>, vector<128x64xf32> -> vector<128x64xf32>
    %216 = arith.addf %211, %215 : vector<128x64xf32>
    %217 = vector.extract_strided_slice %139 {offsets = [183, 0], sizes = [128, 64], strides = [1, 1]} : vector<448x64xbf16> to vector<128x64xbf16>
    %c6_173 = arith.constant 6 : index
    %c0_174 = arith.constant 0 : index
    %c0_175 = arith.constant 0 : index
    %218 = vector.load %arg20[%c6_173, %c0_174, %c0_175] : memref<9x64x64xbf16, #tpu.memory_space<vmem>>, vector<1x64x64xbf16>
    %219 = vector.shape_cast %218 : vector<1x64x64xbf16> to vector<64x64xbf16>
    %cst_176 = arith.constant dense<0.000000e+00> : vector<128x64xf32>
    %220 = tpu.matmul %217, %219, %cst_176 {dimension_numbers = #tpu.dot_dimension_numbers<[1], [0], [0], [1], [0, 0, 1, 1], [], []>} : vector<128x64xbf16>, vector<64x64xbf16>, vector<128x64xf32> -> vector<128x64xf32>
    %221 = arith.addf %216, %220 : vector<128x64xf32>
    %222 = vector.extract_strided_slice %139 {offsets = [184, 0], sizes = [128, 64], strides = [1, 1]} : vector<448x64xbf16> to vector<128x64xbf16>
    %c7_177 = arith.constant 7 : index
    %c0_178 = arith.constant 0 : index
    %c0_179 = arith.constant 0 : index
    %223 = vector.load %arg20[%c7_177, %c0_178, %c0_179] : memref<9x64x64xbf16, #tpu.memory_space<vmem>>, vector<1x64x64xbf16>
    %224 = vector.shape_cast %223 : vector<1x64x64xbf16> to vector<64x64xbf16>
    %cst_180 = arith.constant dense<0.000000e+00> : vector<128x64xf32>
    %225 = tpu.matmul %222, %224, %cst_180 {dimension_numbers = #tpu.dot_dimension_numbers<[1], [0], [0], [1], [0, 0, 1, 1], [], []>} : vector<128x64xbf16>, vector<64x64xbf16>, vector<128x64xf32> -> vector<128x64xf32>
    %226 = arith.addf %221, %225 : vector<128x64xf32>
    %227 = vector.extract_strided_slice %139 {offsets = [185, 0], sizes = [128, 64], strides = [1, 1]} : vector<448x64xbf16> to vector<128x64xbf16>
    %c8_181 = arith.constant 8 : index
    %c0_182 = arith.constant 0 : index
    %c0_183 = arith.constant 0 : index
    %228 = vector.load %arg20[%c8_181, %c0_182, %c0_183] : memref<9x64x64xbf16, #tpu.memory_space<vmem>>, vector<1x64x64xbf16>
    %229 = vector.shape_cast %228 : vector<1x64x64xbf16> to vector<64x64xbf16>
    %cst_184 = arith.constant dense<0.000000e+00> : vector<128x64xf32>
    %230 = tpu.matmul %227, %229, %cst_184 {dimension_numbers = #tpu.dot_dimension_numbers<[1], [0], [0], [1], [0, 0, 1, 1], [], []>} : vector<128x64xbf16>, vector<64x64xbf16>, vector<128x64xf32> -> vector<128x64xf32>
    %231 = arith.addf %226, %230 : vector<128x64xf32>
    %c0_185 = arith.constant 0 : index
    %c0_186 = arith.constant 0 : index
    %232 = vector.load %arg21[%c0_185, %c0_186] : memref<1x64xf32, #tpu.memory_space<vmem>>, vector<1x64xf32>
    %233 = vector.broadcast %232 : vector<1x64xf32> to vector<128x64xf32>
    %234 = arith.addf %231, %233 : vector<128x64xf32>
    %235 = arith.truncf %234 : vector<128x64xf32> to vector<128x64xbf16>
    %236 = vector.extract_strided_slice %139 {offsets = [263, 0], sizes = [128, 64], strides = [1, 1]} : vector<448x64xbf16> to vector<128x64xbf16>
    %c0_187 = arith.constant 0 : index
    %c0_188 = arith.constant 0 : index
    %c0_189 = arith.constant 0 : index
    %237 = vector.load %arg20[%c0_187, %c0_188, %c0_189] : memref<9x64x64xbf16, #tpu.memory_space<vmem>>, vector<1x64x64xbf16>
    %238 = vector.shape_cast %237 : vector<1x64x64xbf16> to vector<64x64xbf16>
    %cst_190 = arith.constant dense<0.000000e+00> : vector<128x64xf32>
    %239 = tpu.matmul %236, %238, %cst_190 {dimension_numbers = #tpu.dot_dimension_numbers<[1], [0], [0], [1], [0, 0, 1, 1], [], []>} : vector<128x64xbf16>, vector<64x64xbf16>, vector<128x64xf32> -> vector<128x64xf32>
    %240 = vector.extract_strided_slice %139 {offsets = [264, 0], sizes = [128, 64], strides = [1, 1]} : vector<448x64xbf16> to vector<128x64xbf16>
    %c1_191 = arith.constant 1 : index
    %c0_192 = arith.constant 0 : index
    %c0_193 = arith.constant 0 : index
    %241 = vector.load %arg20[%c1_191, %c0_192, %c0_193] : memref<9x64x64xbf16, #tpu.memory_space<vmem>>, vector<1x64x64xbf16>
    %242 = vector.shape_cast %241 : vector<1x64x64xbf16> to vector<64x64xbf16>
    %cst_194 = arith.constant dense<0.000000e+00> : vector<128x64xf32>
    %243 = tpu.matmul %240, %242, %cst_194 {dimension_numbers = #tpu.dot_dimension_numbers<[1], [0], [0], [1], [0, 0, 1, 1], [], []>} : vector<128x64xbf16>, vector<64x64xbf16>, vector<128x64xf32> -> vector<128x64xf32>
    %244 = arith.addf %239, %243 : vector<128x64xf32>
    %245 = vector.extract_strided_slice %139 {offsets = [265, 0], sizes = [128, 64], strides = [1, 1]} : vector<448x64xbf16> to vector<128x64xbf16>
    %c2_195 = arith.constant 2 : index
    %c0_196 = arith.constant 0 : index
    %c0_197 = arith.constant 0 : index
    %246 = vector.load %arg20[%c2_195, %c0_196, %c0_197] : memref<9x64x64xbf16, #tpu.memory_space<vmem>>, vector<1x64x64xbf16>
    %247 = vector.shape_cast %246 : vector<1x64x64xbf16> to vector<64x64xbf16>
    %cst_198 = arith.constant dense<0.000000e+00> : vector<128x64xf32>
    %248 = tpu.matmul %245, %247, %cst_198 {dimension_numbers = #tpu.dot_dimension_numbers<[1], [0], [0], [1], [0, 0, 1, 1], [], []>} : vector<128x64xbf16>, vector<64x64xbf16>, vector<128x64xf32> -> vector<128x64xf32>
    %249 = arith.addf %244, %248 : vector<128x64xf32>
    %250 = vector.extract_strided_slice %139 {offsets = [287, 0], sizes = [128, 64], strides = [1, 1]} : vector<448x64xbf16> to vector<128x64xbf16>
    %c3_199 = arith.constant 3 : index
    %c0_200 = arith.constant 0 : index
    %c0_201 = arith.constant 0 : index
    %251 = vector.load %arg20[%c3_199, %c0_200, %c0_201] : memref<9x64x64xbf16, #tpu.memory_space<vmem>>, vector<1x64x64xbf16>
    %252 = vector.shape_cast %251 : vector<1x64x64xbf16> to vector<64x64xbf16>
    %cst_202 = arith.constant dense<0.000000e+00> : vector<128x64xf32>
    %253 = tpu.matmul %250, %252, %cst_202 {dimension_numbers = #tpu.dot_dimension_numbers<[1], [0], [0], [1], [0, 0, 1, 1], [], []>} : vector<128x64xbf16>, vector<64x64xbf16>, vector<128x64xf32> -> vector<128x64xf32>
    %254 = arith.addf %249, %253 : vector<128x64xf32>
    %255 = vector.extract_strided_slice %139 {offsets = [288, 0], sizes = [128, 64], strides = [1, 1]} : vector<448x64xbf16> to vector<128x64xbf16>
    %c4_203 = arith.constant 4 : index
    %c0_204 = arith.constant 0 : index
    %c0_205 = arith.constant 0 : index
    %256 = vector.load %arg20[%c4_203, %c0_204, %c0_205] : memref<9x64x64xbf16, #tpu.memory_space<vmem>>, vector<1x64x64xbf16>
    %257 = vector.shape_cast %256 : vector<1x64x64xbf16> to vector<64x64xbf16>
    %cst_206 = arith.constant dense<0.000000e+00> : vector<128x64xf32>
    %258 = tpu.matmul %255, %257, %cst_206 {dimension_numbers = #tpu.dot_dimension_numbers<[1], [0], [0], [1], [0, 0, 1, 1], [], []>} : vector<128x64xbf16>, vector<64x64xbf16>, vector<128x64xf32> -> vector<128x64xf32>
    %259 = arith.addf %254, %258 : vector<128x64xf32>
    %260 = vector.extract_strided_slice %139 {offsets = [289, 0], sizes = [128, 64], strides = [1, 1]} : vector<448x64xbf16> to vector<128x64xbf16>
    %c5_207 = arith.constant 5 : index
    %c0_208 = arith.constant 0 : index
    %c0_209 = arith.constant 0 : index
    %261 = vector.load %arg20[%c5_207, %c0_208, %c0_209] : memref<9x64x64xbf16, #tpu.memory_space<vmem>>, vector<1x64x64xbf16>
    %262 = vector.shape_cast %261 : vector<1x64x64xbf16> to vector<64x64xbf16>
    %cst_210 = arith.constant dense<0.000000e+00> : vector<128x64xf32>
    %263 = tpu.matmul %260, %262, %cst_210 {dimension_numbers = #tpu.dot_dimension_numbers<[1], [0], [0], [1], [0, 0, 1, 1], [], []>} : vector<128x64xbf16>, vector<64x64xbf16>, vector<128x64xf32> -> vector<128x64xf32>
    %264 = arith.addf %259, %263 : vector<128x64xf32>
    %265 = vector.extract_strided_slice %139 {offsets = [311, 0], sizes = [128, 64], strides = [1, 1]} : vector<448x64xbf16> to vector<128x64xbf16>
    %c6_211 = arith.constant 6 : index
    %c0_212 = arith.constant 0 : index
    %c0_213 = arith.constant 0 : index
    %266 = vector.load %arg20[%c6_211, %c0_212, %c0_213] : memref<9x64x64xbf16, #tpu.memory_space<vmem>>, vector<1x64x64xbf16>
    %267 = vector.shape_cast %266 : vector<1x64x64xbf16> to vector<64x64xbf16>
    %cst_214 = arith.constant dense<0.000000e+00> : vector<128x64xf32>
    %268 = tpu.matmul %265, %267, %cst_214 {dimension_numbers = #tpu.dot_dimension_numbers<[1], [0], [0], [1], [0, 0, 1, 1], [], []>} : vector<128x64xbf16>, vector<64x64xbf16>, vector<128x64xf32> -> vector<128x64xf32>
    %269 = arith.addf %264, %268 : vector<128x64xf32>
    %270 = vector.extract_strided_slice %139 {offsets = [312, 0], sizes = [128, 64], strides = [1, 1]} : vector<448x64xbf16> to vector<128x64xbf16>
    %c7_215 = arith.constant 7 : index
    %c0_216 = arith.constant 0 : index
    %c0_217 = arith.constant 0 : index
    %271 = vector.load %arg20[%c7_215, %c0_216, %c0_217] : memref<9x64x64xbf16, #tpu.memory_space<vmem>>, vector<1x64x64xbf16>
    %272 = vector.shape_cast %271 : vector<1x64x64xbf16> to vector<64x64xbf16>
    %cst_218 = arith.constant dense<0.000000e+00> : vector<128x64xf32>
    %273 = tpu.matmul %270, %272, %cst_218 {dimension_numbers = #tpu.dot_dimension_numbers<[1], [0], [0], [1], [0, 0, 1, 1], [], []>} : vector<128x64xbf16>, vector<64x64xbf16>, vector<128x64xf32> -> vector<128x64xf32>
    %274 = arith.addf %269, %273 : vector<128x64xf32>
    %275 = vector.extract_strided_slice %139 {offsets = [313, 0], sizes = [128, 64], strides = [1, 1]} : vector<448x64xbf16> to vector<128x64xbf16>
    %c8_219 = arith.constant 8 : index
    %c0_220 = arith.constant 0 : index
    %c0_221 = arith.constant 0 : index
    %276 = vector.load %arg20[%c8_219, %c0_220, %c0_221] : memref<9x64x64xbf16, #tpu.memory_space<vmem>>, vector<1x64x64xbf16>
    %277 = vector.shape_cast %276 : vector<1x64x64xbf16> to vector<64x64xbf16>
    %cst_222 = arith.constant dense<0.000000e+00> : vector<128x64xf32>
    %278 = tpu.matmul %275, %277, %cst_222 {dimension_numbers = #tpu.dot_dimension_numbers<[1], [0], [0], [1], [0, 0, 1, 1], [], []>} : vector<128x64xbf16>, vector<64x64xbf16>, vector<128x64xf32> -> vector<128x64xf32>
    %279 = arith.addf %274, %278 : vector<128x64xf32>
    %c0_223 = arith.constant 0 : index
    %c0_224 = arith.constant 0 : index
    %280 = vector.load %arg21[%c0_223, %c0_224] : memref<1x64xf32, #tpu.memory_space<vmem>>, vector<1x64xf32>
    %281 = vector.broadcast %280 : vector<1x64xf32> to vector<128x64xf32>
    %282 = arith.addf %279, %281 : vector<128x64xf32>
    %283 = arith.truncf %282 : vector<128x64xf32> to vector<128x64xbf16>
    %284 = tpu.concatenate %187, %235, %283 in 0 : vector<128x64xbf16>, vector<128x64xbf16>, vector<128x64xbf16> -> vector<384x64xbf16>
    %c0_225 = arith.constant 0 : index
    %c0_226 = arith.constant 0 : index
    %285 = vector.load %arg24[%c0_225, %c0_226] : memref<256x384xbf16, #tpu.memory_space<vmem>>, vector<256x384xbf16>
    %cst_227 = arith.constant dense<0.000000e+00> : vector<256x64xf32>
    %286 = tpu.matmul %285, %284, %cst_227 {dimension_numbers = #tpu.dot_dimension_numbers<[1], [0], [0], [1], [0, 0, 1, 1], [], []>} : vector<256x384xbf16>, vector<384x64xbf16>, vector<256x64xf32> -> vector<256x64xf32>
    %287 = arith.truncf %286 : vector<256x64xf32> to vector<256x64xbf16>
    %c0_228 = arith.constant 0 : index
    %c0_229 = arith.constant 0 : index
    %288 = vector.load %arg25[%c0_228, %c0_229] : memref<8x64xbf16, #tpu.memory_space<vmem>>, vector<8x64xbf16>
    %cst_230 = arith.constant dense<0.000000e+00> : vector<8x256xf32>
    %289 = tpu.matmul %288, %287, %cst_230 {dimension_numbers = #tpu.dot_dimension_numbers<[1], [1], [0], [0], [0, 0, 1, 0], [], []>} : vector<8x64xbf16>, vector<256x64xbf16>, vector<8x256xf32> -> vector<8x256xf32>
    %c0_231 = arith.constant 0 : index
    %c0_232 = arith.constant 0 : index
    %290 = vector.load %arg26[%c0_231, %c0_232] : memref<8x1xf32, #tpu.memory_space<vmem>>, vector<8x1xf32>
    %291 = vector.broadcast %290 : vector<8x1xf32> to vector<8x256xf32>
    %292 = arith.addf %289, %291 : vector<8x256xf32>
    %293 = vector.extract_strided_slice %292 {offsets = [0, 0], sizes = [3, 256], strides = [1, 1]} : vector<8x256xf32> to vector<3x256xf32>
    %c0_233 = arith.constant 0 : index
    %c0_234 = arith.constant 0 : index
    %c0_235 = arith.constant 0 : index
    %294 = vector.load %arg29[%c0_233, %c0_234, %c0_235] : memref<1x3x256xf32, #tpu.memory_space<vmem>>, vector<1x3x256xf32>
    %295 = vector.shape_cast %294 : vector<1x3x256xf32> to vector<3x256xf32>
    %296 = vector.shape_cast %293 : vector<3x256xf32> to vector<1x3x256xf32>
    tpu.vector_store %arg29[%c0_233, %c0_234, %c0_235], %296 {strides = array<i32>} : memref<1x3x256xf32, #tpu.memory_space<vmem>>, vector<1x3x256xf32>,
    %c0_236 = arith.constant 0 : index
    %c0_237 = arith.constant 0 : index
    %c0_238 = arith.constant 0 : index
    %297 = vector.load %arg5[%c0_236, %c0_237, %c0_238] : memref<1x3x256xf32, #tpu.memory_space<vmem>>, vector<1x3x256xf32>
    %298 = vector.shape_cast %297 : vector<1x3x256xf32> to vector<3x256xf32>
    %299 = arith.addf %298, %293 : vector<3x256xf32>
    %300 = vector.extract_strided_slice %299 {offsets = [0, 0], sizes = [1, 256], strides = [1, 1]} : vector<3x256xf32> to vector<1x256xf32>
    %301 = vector.extract_strided_slice %299 {offsets = [1, 0], sizes = [1, 256], strides = [1, 1]} : vector<3x256xf32> to vector<1x256xf32>
    %302 = vector.extract_strided_slice %299 {offsets = [2, 0], sizes = [1, 256], strides = [1, 1]} : vector<3x256xf32> to vector<1x256xf32>
    %c0_239 = arith.constant 0 : index
    %c0_240 = arith.constant 0 : index
    %303 = memref.load %arg27[%c0_239, %c0_240] : memref<3x3xf32, #tpu.memory_space<smem>>
    %304 = vector.broadcast %303 : f32 to vector<1x256xf32>
    %305 = arith.mulf %304, %300 : vector<1x256xf32>
    %c0_241 = arith.constant 0 : index
    %c1_242 = arith.constant 1 : index
    %306 = memref.load %arg27[%c0_241, %c1_242] : memref<3x3xf32, #tpu.memory_space<smem>>
    %307 = vector.broadcast %306 : f32 to vector<1x256xf32>
    %308 = arith.mulf %307, %301 : vector<1x256xf32>
    %309 = arith.addf %305, %308 : vector<1x256xf32>
    %c0_243 = arith.constant 0 : index
    %c2_244 = arith.constant 2 : index
    %310 = memref.load %arg27[%c0_243, %c2_244] : memref<3x3xf32, #tpu.memory_space<smem>>
    %311 = vector.broadcast %310 : f32 to vector<1x256xf32>
    %312 = arith.mulf %311, %302 : vector<1x256xf32>
    %313 = arith.addf %309, %312 : vector<1x256xf32>
    %c0_245 = arith.constant 0 : index
    %314 = memref.load %arg28[%c0_245] : memref<3xf32, #tpu.memory_space<smem>>
    %315 = vector.broadcast %314 : f32 to vector<1x256xf32>
    %316 = arith.addf %313, %315 : vector<1x256xf32>
    %c1_246 = arith.constant 1 : index
    %c0_247 = arith.constant 0 : index
    %317 = memref.load %arg27[%c1_246, %c0_247] : memref<3x3xf32, #tpu.memory_space<smem>>
    %318 = vector.broadcast %317 : f32 to vector<1x256xf32>
    %319 = arith.mulf %318, %300 : vector<1x256xf32>
    %c1_248 = arith.constant 1 : index
    %c1_249 = arith.constant 1 : index
    %320 = memref.load %arg27[%c1_248, %c1_249] : memref<3x3xf32, #tpu.memory_space<smem>>
    %321 = vector.broadcast %320 : f32 to vector<1x256xf32>
    %322 = arith.mulf %321, %301 : vector<1x256xf32>
    %323 = arith.addf %319, %322 : vector<1x256xf32>
    %c1_250 = arith.constant 1 : index
    %c2_251 = arith.constant 2 : index
    %324 = memref.load %arg27[%c1_250, %c2_251] : memref<3x3xf32, #tpu.memory_space<smem>>
    %325 = vector.broadcast %324 : f32 to vector<1x256xf32>
    %326 = arith.mulf %325, %302 : vector<1x256xf32>
    %327 = arith.addf %323, %326 : vector<1x256xf32>
    %c1_252 = arith.constant 1 : index
    %328 = memref.load %arg28[%c1_252] : memref<3xf32, #tpu.memory_space<smem>>
    %329 = vector.broadcast %328 : f32 to vector<1x256xf32>
    %330 = arith.addf %327, %329 : vector<1x256xf32>
    %c2_253 = arith.constant 2 : index
    %c0_254 = arith.constant 0 : index
    %331 = memref.load %arg27[%c2_253, %c0_254] : memref<3x3xf32, #tpu.memory_space<smem>>
    %332 = vector.broadcast %331 : f32 to vector<1x256xf32>
    %333 = arith.mulf %332, %300 : vector<1x256xf32>
    %c2_255 = arith.constant 2 : index
    %c1_256 = arith.constant 1 : index
    %334 = memref.load %arg27[%c2_255, %c1_256] : memref<3x3xf32, #tpu.memory_space<smem>>
    %335 = vector.broadcast %334 : f32 to vector<1x256xf32>
    %336 = arith.mulf %335, %301 : vector<1x256xf32>
    %337 = arith.addf %333, %336 : vector<1x256xf32>
    %c2_257 = arith.constant 2 : index
    %c2_258 = arith.constant 2 : index
    %338 = memref.load %arg27[%c2_257, %c2_258] : memref<3x3xf32, #tpu.memory_space<smem>>
    %339 = vector.broadcast %338 : f32 to vector<1x256xf32>
    %340 = arith.mulf %339, %302 : vector<1x256xf32>
    %341 = arith.addf %337, %340 : vector<1x256xf32>
    %c2_259 = arith.constant 2 : index
    %342 = memref.load %arg28[%c2_259] : memref<3xf32, #tpu.memory_space<smem>>
    %343 = vector.broadcast %342 : f32 to vector<1x256xf32>
    %344 = arith.addf %341, %343 : vector<1x256xf32>
    %345 = tpu.concatenate %316, %330, %344 in 0 : vector<1x256xf32>, vector<1x256xf32>, vector<1x256xf32> -> vector<3x256xf32>
    %346 = math.tanh %345 : vector<3x256xf32>
    %c0_260 = arith.constant 0 : index
    %c0_261 = arith.constant 0 : index
    %c0_262 = arith.constant 0 : index
    %347 = vector.load %arg30[%c0_260, %c0_261, %c0_262] : memref<1x3x256xf32, #tpu.memory_space<vmem>>, vector<1x3x256xf32>
    %348 = vector.shape_cast %347 : vector<1x3x256xf32> to vector<3x256xf32>
    %349 = vector.shape_cast %346 : vector<3x256xf32> to vector<1x3x256xf32>
    tpu.vector_store %arg30[%c0_260, %c0_261, %c0_262], %349 {strides = array<i32>} : memref<1x3x256xf32, #tpu.memory_space<vmem>>, vector<1x3x256xf32>,
    return
  }
  func.func @transform_0(%arg0: i32) -> (i32, i32, i32) {
    %c0_i32 = arith.constant 0 : i32
    %c0_i32_0 = arith.constant 0 : i32
    %c0_i32_1 = arith.constant 0 : i32
    return %arg0, %c0_i32, %c0_i32_0 : i32, i32, i32
  }
  func.func @transform_1(%arg0: i32) -> (i32, i32, i32) {
    %c0_i32 = arith.constant 0 : i32
    %c0_i32_0 = arith.constant 0 : i32
    %c0_i32_1 = arith.constant 0 : i32
    return %arg0, %c0_i32, %c0_i32_0 : i32, i32, i32
  }
  func.func @transform_2(%arg0: i32) -> (i32, i32, i32) {
    %c0_i32 = arith.constant 0 : i32
    %c0_i32_0 = arith.constant 0 : i32
    %c0_i32_1 = arith.constant 0 : i32
    return %arg0, %c0_i32, %c0_i32_0 : i32, i32, i32
  }
  func.func @transform_3(%arg0: i32) -> (i32, i32, i32) {
    %c0_i32 = arith.constant 0 : i32
    %c0_i32_0 = arith.constant 0 : i32
    %c0_i32_1 = arith.constant 0 : i32
    return %arg0, %c0_i32, %c0_i32_0 : i32, i32, i32
  }
  func.func @transform_4(%arg0: i32) -> (i32, i32, i32) {
    %c0_i32 = arith.constant 0 : i32
    %c0_i32_0 = arith.constant 0 : i32
    %c0_i32_1 = arith.constant 0 : i32
    return %arg0, %c0_i32, %c0_i32_0 : i32, i32, i32
  }
  func.func @transform_5(%arg0: i32) -> (i32, i32) {
    %c0_i32 = arith.constant 0 : i32
    %c0_i32_0 = arith.constant 0 : i32
    %c0_i32_1 = arith.constant 0 : i32
    return %c0_i32, %c0_i32_0 : i32, i32
  }
  func.func @transform_6(%arg0: i32) -> (i32, i32) {
    %c0_i32 = arith.constant 0 : i32
    %c0_i32_0 = arith.constant 0 : i32
    %c0_i32_1 = arith.constant 0 : i32
    return %c0_i32, %c0_i32_0 : i32, i32
  }
  func.func @transform_7(%arg0: i32) -> (i32, i32, i32) {
    %c0_i32 = arith.constant 0 : i32
    %c0_i32_0 = arith.constant 0 : i32
    %c0_i32_1 = arith.constant 0 : i32
    %c0_i32_2 = arith.constant 0 : i32
    return %c0_i32, %c0_i32_0, %c0_i32_1 : i32, i32, i32
  }
  func.func @transform_8(%arg0: i32) -> (i32, i32) {
    %c0_i32 = arith.constant 0 : i32
    %c0_i32_0 = arith.constant 0 : i32
    %c0_i32_1 = arith.constant 0 : i32
    return %c0_i32, %c0_i32_0 : i32, i32
  }
  func.func @transform_9(%arg0: i32) -> (i32, i32) {
    %c0_i32 = arith.constant 0 : i32
    %c0_i32_0 = arith.constant 0 : i32
    %c0_i32_1 = arith.constant 0 : i32
    return %c0_i32, %c0_i32_0 : i32, i32
  }
  func.func @transform_10(%arg0: i32) -> (i32, i32) {
    %c0_i32 = arith.constant 0 : i32
    %c0_i32_0 = arith.constant 0 : i32
    %c0_i32_1 = arith.constant 0 : i32
    return %c0_i32, %c0_i32_0 : i32, i32
  }
  func.func @transform_11(%arg0: i32) -> (i32, i32) {
    %c0_i32 = arith.constant 0 : i32
    %c0_i32_0 = arith.constant 0 : i32
    %c0_i32_1 = arith.constant 0 : i32
    return %c0_i32, %c0_i32_0 : i32, i32
  }
  func.func @transform_12(%arg0: i32) -> (i32, i32) {
    %c0_i32 = arith.constant 0 : i32
    %c0_i32_0 = arith.constant 0 : i32
    %c0_i32_1 = arith.constant 0 : i32
    return %c0_i32, %c0_i32_0 : i32, i32
  }
  func.func @transform_13(%arg0: i32) -> (i32, i32, i32) {
    %c0_i32 = arith.constant 0 : i32
    %c0_i32_0 = arith.constant 0 : i32
    %c0_i32_1 = arith.constant 0 : i32
    %c0_i32_2 = arith.constant 0 : i32
    return %c0_i32, %c0_i32_0, %c0_i32_1 : i32, i32, i32
  }
  func.func @transform_14(%arg0: i32) -> (i32, i32) {
    %c0_i32 = arith.constant 0 : i32
    %c0_i32_0 = arith.constant 0 : i32
    %c0_i32_1 = arith.constant 0 : i32
    return %c0_i32, %c0_i32_0 : i32, i32
  }
  func.func @transform_15(%arg0: i32) -> (i32, i32) {
    %c0_i32 = arith.constant 0 : i32
    %c0_i32_0 = arith.constant 0 : i32
    %c0_i32_1 = arith.constant 0 : i32
    return %c0_i32, %c0_i32_0 : i32, i32
  }
  func.func @transform_16(%arg0: i32) -> (i32, i32) {
    %c0_i32 = arith.constant 0 : i32
    %c0_i32_0 = arith.constant 0 : i32
    %c0_i32_1 = arith.constant 0 : i32
    return %c0_i32, %c0_i32_0 : i32, i32
  }
  func.func @transform_17(%arg0: i32) -> (i32, i32) {
    %c0_i32 = arith.constant 0 : i32
    %c0_i32_0 = arith.constant 0 : i32
    %c0_i32_1 = arith.constant 0 : i32
    return %c0_i32, %c0_i32_0 : i32, i32
  }
  func.func @transform_18(%arg0: i32) -> (i32, i32) {
    %c0_i32 = arith.constant 0 : i32
    %c0_i32_0 = arith.constant 0 : i32
    %c0_i32_1 = arith.constant 0 : i32
    return %c0_i32, %c0_i32_0 : i32, i32
  }
  func.func @transform_19(%arg0: i32) -> (i32, i32, i32) {
    %c0_i32 = arith.constant 0 : i32
    %c0_i32_0 = arith.constant 0 : i32
    %c0_i32_1 = arith.constant 0 : i32
    %c0_i32_2 = arith.constant 0 : i32
    return %c0_i32, %c0_i32_0, %c0_i32_1 : i32, i32, i32
  }
  func.func @transform_20(%arg0: i32) -> (i32, i32) {
    %c0_i32 = arith.constant 0 : i32
    %c0_i32_0 = arith.constant 0 : i32
    %c0_i32_1 = arith.constant 0 : i32
    return %c0_i32, %c0_i32_0 : i32, i32
  }
  func.func @transform_21(%arg0: i32) -> (i32, i32) {
    %c0_i32 = arith.constant 0 : i32
    %c0_i32_0 = arith.constant 0 : i32
    %c0_i32_1 = arith.constant 0 : i32
    return %c0_i32, %c0_i32_0 : i32, i32
  }
  func.func @transform_22(%arg0: i32) -> (i32, i32) {
    %c0_i32 = arith.constant 0 : i32
    %c0_i32_0 = arith.constant 0 : i32
    %c0_i32_1 = arith.constant 0 : i32
    return %c0_i32, %c0_i32_0 : i32, i32
  }
  func.func @transform_23(%arg0: i32) -> (i32, i32) {
    %c0_i32 = arith.constant 0 : i32
    %c0_i32_0 = arith.constant 0 : i32
    %c0_i32_1 = arith.constant 0 : i32
    return %c0_i32, %c0_i32_0 : i32, i32
  }
  func.func @transform_24(%arg0: i32) -> (i32, i32) {
    %c0_i32 = arith.constant 0 : i32
    %c0_i32_0 = arith.constant 0 : i32
    %c0_i32_1 = arith.constant 0 : i32
    return %c0_i32, %c0_i32_0 : i32, i32
  }
  func.func @transform_25(%arg0: i32) -> (i32, i32) {
    %c0_i32 = arith.constant 0 : i32
    %c0_i32_0 = arith.constant 0 : i32
    %c0_i32_1 = arith.constant 0 : i32
    return %c0_i32, %c0_i32_0 : i32, i32
  }
  func.func @transform_26(%arg0: i32) -> (i32, i32) {
    %c0_i32 = arith.constant 0 : i32
    %c0_i32_0 = arith.constant 0 : i32
    %c0_i32_1 = arith.constant 0 : i32
    return %c0_i32, %c0_i32_0 : i32, i32
  }
  func.func @transform_27(%arg0: i32) -> i32 {
    %c0_i32 = arith.constant 0 : i32
    %c0_i32_0 = arith.constant 0 : i32
    return %c0_i32 : i32
  }
  func.func @transform_28(%arg0: i32) -> (i32, i32, i32) {
    %c0_i32 = arith.constant 0 : i32
    %c0_i32_0 = arith.constant 0 : i32
    %c0_i32_1 = arith.constant 0 : i32
    return %arg0, %c0_i32, %c0_i32_0 : i32, i32, i32
  }
  func.func @transform_29(%arg0: i32) -> (i32, i32, i32) {
    %c0_i32 = arith.constant 0 : i32
    %c0_i32_0 = arith.constant 0 : i32
    %c0_i32_1 = arith.constant 0 : i32
    return %arg0, %c0_i32, %c0_i32_0 : i32, i32, i32
  }
}

</mosaic_0001>

<bundles_post_ra>
// kernel: feature_decoder_forward.1
= control target key start
LH: loop header
LB: loop body
LE: loop exit
PB: predicated region body
PF: predicated region fallthrough
CT: control target
= control target key end

     0   :  { %s18587_s6 = smov 1   ;;  %s18588_s10 = smov 2   ;;  %s22138_s0 = inlined_call_operand.smem [shape: u32[30], index: -1, kind: input, shape index: {}] }
   0x1   :  { %s18629_s5 = sld [smem:[%s22138_s0]]   ;;  %s18589_s14 = smov 3  }
   0x2   :  { %s18634_s9 = sld [smem:[%s22138_s0 + %s18587_s6]]   ;;  %s18590_s18 = smov 4  }
   0x3   :  { %s18639_s13 = sld [smem:[%s22138_s0 + %s18588_s10]]   ;;  %s18591_s22 = smov 5  }
   0x4   :  { %s18644_s17 = sld [smem:[%s22138_s0 + %s18589_s14]]   ;;  %s18592_s26 = smov 6  }
   0x5   :  { %s18649_s21 = sld [smem:[%s22138_s0 + %s18590_s18]]   ;;  %s18593_s30 = smov 7  }
   0x6   :  { %s18654_s25 = sld [smem:[%s22138_s0 + %s18591_s22]]   ;;  %s18594_s4 = smov 8  }
   0x7   :  { %22270 = sst [smem:[#allocation8_spill]] %s18629_s5  ;;  %s18595_s10 = smov 9  }
   0x8   :  { %22271 = sst [smem:[#allocation9_spill]] %s18634_s9  ;;  %s18596_s15 = smov 10  }
   0x9   :  { %22272 = sst [smem:[#allocation10_spill]] %s18639_s13  ;;  %s18597_s20 = smov 11  }
   0xa   :  { %s18659_s29 = sld [smem:[%s22138_s0 + %s18592_s26]]   ;;  %s18598_s26 = smov 12  }
   0xb   :  { %22273 = sst [smem:[#allocation11_spill]] %s18649_s21  ;;  %s18599_s1 = smov 13  }
   0xc   :  { %s18664_s3 = sld [smem:[%s22138_s0 + %s18593_s30]]   ;;  %s18600_s7 = smov 14  }
   0xd   :  { %s18669_s8 = sld [smem:[%s22138_s0 + %s18594_s4]]   ;;  %s18602_s22 = smov 16  }
   0xe   :  { %s18674_s14 = sld [smem:[%s22138_s0 + %s18595_s10]]   ;;  %s18603_s28 = smov 17  }
   0xf   :  { %s18679_s19 = sld [smem:[%s22138_s0 + %s18596_s15]]   ;;  %s18601_s15 = smov 15  }
  0x10   :  { %s18684_s24 = sld [smem:[%s22138_s0 + %s18597_s20]]  }
  0x11   :  { %s18689_s30 = sld [smem:[%s22138_s0 + %s18598_s26]]  }
  0x12   :  { %22274 = sst [smem:[#allocation12_spill]] %s18664_s3 }
  0x13   :  { %22275 = sst [smem:[#allocation13_spill]] %s18669_s8 }
  0x14   :  { %s18694_s6 = sld [smem:[%s22138_s0 + %s18599_s1]]  }
  0x15   :  { %s18699_s12 = sld [smem:[%s22138_s0 + %s18600_s7]]   ;;  %s18604_s7 = smov 18  }
  0x16   :  { %s18704_s20 = sld [smem:[%s22138_s0 + %s18601_s15]]   ;;  %s18605_s15 = smov 19  }
  0x17   :  { %s18709_s27 = sld [smem:[%s22138_s0 + %s18602_s22]]   ;;  %s18606_s22 = smov 20  }
  0x18   :  { %s18714_s4 = sld [smem:[%s22138_s0 + %s18603_s28]]   ;;  %s18607_s28 = smov 21  }
  0x19   :  { %s18719_s21 = sld [smem:[%s22138_s0 + %s18604_s7]]   ;;  %s18608_s7 = smov 22  }
  0x1a   :  { %22276 = sst [smem:[#allocation14_spill]] %s18694_s6 }
  0x1b   :  { %22277 = sst [smem:[#allocation15_spill]] %s18699_s12 }
  0x1c   :  { %22278 = sst [smem:[#allocation16_spill]] %s18704_s20 }
  0x1d   :  { %s18724_s12 = sld [smem:[%s22138_s0 + %s18605_s15]]   ;;  %s18609_s15 = smov 23  }
  0x1e   :  { %22279 = sst [smem:[#allocation17_spill]] %s18714_s4 }
  0x1f   :  { %22280 = sst [smem:[#allocation18_spill]] %s18719_s21 }
  0x20   :  { %s18729_s20 = sld [smem:[%s22138_s0 + %s18606_s22]]   ;;  %s18610_s22 = smov 24  }
  0x21   :  { %s18734_s4 = sld [smem:[%s22138_s0 + %s18607_s28]]   ;;  %s18611_s28 = smov 25  }
  0x22   :  { %s18739_s21 = sld [smem:[%s22138_s0 + %s18608_s7]]   ;;  %s18612_s7 = smov 26  }
  0x23   :  { %22281 = sst [smem:[#allocation19_spill]] %s18724_s12 }
  0x24   :  { %s18744_s12 = sld [smem:[%s22138_s0 + %s18609_s15]]   ;;  %s18613_s15 = smov 27  }
  0x26   :  { %22282 = sst [smem:[#allocation20_spill]] %s18729_s20 }
  0x27   :  { %22283 = sst [smem:[#allocation21_spill]] %s18734_s4 }
  0x28   :  { %22284 = sst [smem:[#allocation22_spill]] %s18739_s21 }
  0x29   :  { %s18749_s20 = sld [smem:[%s22138_s0 + %s18610_s22]]   ;;  %s18614_s22 = smov 28  }
  0x2a   :  { %22285 = sst [smem:[#allocation23_spill]] %s18744_s12 }
  0x2b   :  { %s18754_s4 = sld [smem:[%s22138_s0 + %s18611_s28]]   ;;  %s18615_s28 = smov 29  }
  0x2c   :  { %s18759_s21 = sld [smem:[%s22138_s0 + %s18612_s7]]  }
  0x2d   :  { %s18764_s12 = sld [smem:[%s22138_s0 + %s18613_s15]]  }
  0x2f   :  { %22286 = sst [smem:[#allocation24_spill]] %s18749_s20 }
  0x30   :  { %s18769_s20 = sld [smem:[%s22138_s0 + %s18614_s22]]  }
  0x31   :  { %22287 = sst [smem:[#allocation25_spill]] %s18754_s4 }
  0x32   :  { %s18774_s4 = sld [smem:[%s22138_s0 + %s18615_s28]]  }
  0x33   :  { %22288 = sst [smem:[#allocation26_spill]] %s18764_s12 }
  0x34   :  { %65 = vsyncpa [#allocation3], 0 }
  0x35   :  { %66 = vsyncpa [#allocation5], 0  ;;  %s18776_s7 = smov 0  }
  0x36 LB: > { %s22289_s6 = sld [smem:[#allocation14_spill]]  ;;  %s22290_s3 = sld [smem:[#allocation12_spill]]  ;;  %s18585_s7 = sphi %s18776_s7, %s72_s7  }
  0x37   : > { %s22291_s12 = sld [smem:[#allocation26_spill]]  ;;  %s18782_s10 = sadd.s32 4294967295, %s18585_s7  }
  0x38   : > { %p13576_p0 = scmp.ge.s32.totalorder %s18585_s7, 1  ;;  %p742_p1 = scmp.lt.s32.totalorder %s18585_s7, 3 }
  0x39   : > { %s818_s0 = sshll.u32 %s18759_s21, 4  ;;  %p22145_p3 = scmp.eq.s32.totalorder %s18782_s10, 0  ;;  %s819_s0 = int_to_ptr.vmem [resolvable:$true] %s818_s0 }
  0x3a   : > { %p18787_p2 = pnand %p13576_p0, %p742_p1  ;;  %s18541_s18 = scalar_lea.vmem %s819_s0, 64 }
  0x3b   : > { %p18542_p6 = scmp.ne.s32.totalorder %s819_s0, %s18541_s18  ;;  %p18549_p10 = scmp.lt.s32.totalorder %s819_s0, %s819_s0 }
  0x3c   : > { %s22292_s11 = scalar_select %p18787_p2, 1, 0 }
  0x3d   : > { %p17571_p4 = pneg %p18787_p2  ;;  %s829_s15 = sshll.u32 %s22291_s12, 4  ;;  %s830_s15 = int_to_ptr.vmem [resolvable:$true] %s829_s15 }
  0x3e   : > { %p18550_p11 = scmp.lt.s32.totalorder %s18541_s18, %s18541_s18 }
  0x3f   : > { %p18797_p5 = pnand %p22145_p3, %p17571_p4 }
  0x40   : > { %p18551_p12 = por %p18550_p11, %p18549_p10 }
  0x41   : > { %p18543_p7 = pneg %p18797_p5 }
  0x43   : > { %p18544_p8 = pnand %p18543_p7, %p18542_p6 }
  0x45   : > { %p18545_p9 = pneg %p18544_p8 }
  0x47   : > { %p18552_p13 = pnand %p18551_p12, %p18545_p9 }
  0x49   : > { %18555 = shalt.err (!%p18552_p13)
}
  0x4a   : > { %s18616_s22 = smov [#allocation2]   ;;  %s18556_s23 = scalar_lea.vmem %s830_s15, 16 }
  0x4b   : > { %17574 = dma.vmem_to_smem (!%p18797_p5), %s819_s0, 64, %s18616_s22, [#allocation3]  }
  0x4c   : > { %p18557_p0 = scmp.ne.s32.totalorder %s830_s15, %s18556_s23  ;;  %p18564_p3 = scmp.lt.s32.totalorder %s830_s15, %s830_s15 }
  0x4d   : > { %p18565_p2 = scmp.lt.s32.totalorder %s18556_s23, %s18556_s23 }
  0x4e   : > { %p18559_p1 = pnand %p18557_p0, %p18543_p7 }
  0x4f   : > { %p18566_p6 = por %p18565_p2, %p18564_p3 }
  0x50   : > { %p18560_p4 = pneg %p18559_p1 }
  0x52   : > { %p18567_p8 = pnand %p18566_p6, %p18560_p4 }
  0x54   : > { %18570 = shalt.err (!%p18567_p8)
}
  0x55   : > { %s18617_s26 = smov [#allocation4]   ;;  %p22294_p9 = scmp.ne.s32.totalorder %s22292_s11, 0 }
  0x56   : > { %17577 = dma.vmem_to_smem (!%p18797_p5), %s830_s15, 16, %s18617_s26, [#allocation5]  }
  0x57   : > { %882 = sbr.rel (%p22294_p9) target bundleno = 4228 (0x1084), region = 132 }
  0x5e   : > { %p22295_p10 = scmp.eq.s32.totalorder %s18782_s10, 0 }
  0x60   : > { %18576 = dma.done.wait (%p22295_p10), [#allocation3], 64   ;;  %p22296_p11 = pmov %p22295_p10 }
  0x61   : > { %p22297_p7 = pmov %p22295_p10 }
  0x62   : > { %18578 = vsyncadd (%p22296_p11), [#allocation3], 4294967232 }
  0x63   : > { %18580 = dma.done.wait (%p22297_p7), [#allocation5], 16   ;;  %p22298_p2 = pmov %p22297_p7 }
  0x65   : > { %18582 = vsyncadd (%p22298_p2), [#allocation5], 4294967280 }
  0x66   : > { %892 = sfence }
  0x67   : > { %v17625_v0 = vld [vmem:[%s18654_s25 + $0x4] ss:$8 sps:$4 sm:$0xff]   ;;  %v17627_v1 = vld [vmem:[%s18654_s25] ss:$8 sps:$4 sm:$0xff]   ;;  %v17628_v2 = vld [vmem:[%s18654_s25 + $0x14] ss:$8 sps:$4 sm:$0xff]  }
  0x68   : > { %1444 = vmatprep.subr.bf16.mxu0 %v17625_v0  ;;  %v17630_v3 = vld [vmem:[%s18654_s25 + $0x10] ss:$8 sps:$4 sm:$0xff]   ;;  %v17631_v4 = vld [vmem:[%s18654_s25 + $0x24] ss:$8 sps:$4 sm:$0xff]   ;;  %v17633_v5 = vld [vmem:[%s18654_s25 + $0x20] ss:$8 sps:$4 sm:$0xff]  }
  0x69   : > { %1445 = vmatpush1.bf16.msra.mxu0 %v17627_v1  ;;  %s22299_s5 = sld [smem:[#allocation8_spill]]  ;;  %v17634_v6 = vld [vmem:[%s18654_s25 + $0x34] ss:$8 sps:$4 sm:$0xff]   ;;  %p988_p3 = scmp.lt.s32.totalorder %s18782_s10, 1  ;;  %v17636_v7 = vld [vmem:[%s18654_s25 + $0x30] ss:$8 sps:$4 sm:$0xff]  }
  0x6a   : > { %1446 = vmatprep.subr.bf16.mxu0 %v17628_v2  ;;  %v17637_v8 = vld [vmem:[%s18654_s25 + $0x44] ss:$8 sps:$4 sm:$0xff]   ;;  %v17639_v9 = vld [vmem:[%s18654_s25 + $0x40] ss:$8 sps:$4 sm:$0xff]   ;;  %v17640_v10 = vld [vmem:[%s18654_s25 + $0x54] ss:$8 sps:$4 sm:$0xff]  }
  0x6b   : > { %s22594_s10 = smov (!%p988_p3, %s18782_s10), 1  ;;  %v17642_v11 = vld [vmem:[%s18654_s25 + $0x50] ss:$8 sps:$4 sm:$0xff]   ;;  %v17643_v12 = vld [vmem:[%s18654_s25 + $0x64] ss:$8 sps:$4 sm:$0xff]   ;;  %s22300_s13 = sld [smem:[#allocation10_spill]] }
  0x6c   : > { %s14986_s28 = sshll.u32 %s22594_s10, 5  ;;  %v17645_v14 = vld [vmem:[%s18654_s25 + $0x60] ss:$8 sps:$4 sm:$0xff]   ;;  %v17646_v15 = vld [vmem:[%s18654_s25 + $0x74] ss:$8 sps:$4 sm:$0xff]   ;;  %s22301_s9 = sld [smem:[#allocation9_spill]] }
  0x6d   : > { %1447 = vmatpush1.bf16.msra.mxu0 %v17630_v3  ;;  %v17648_v16 = vld [vmem:[%s18654_s25 + $0x70] ss:$8 sps:$4 sm:$0xff]   ;;  %v17649_v17 = vld [vmem:[%s18654_s25 + $0x84] ss:$8 sps:$4 sm:$0xff]   ;;  %v17651_v18 = vld [vmem:[%s18654_s25 + $0x80] ss:$8 sps:$4 sm:$0xff]  }
  0x6e   : > { %1448 = vmatprep.subr.bf16.mxu0 %v17631_v4  ;;  %v17652_v19 = vld [vmem:[%s18654_s25 + $0x94] ss:$8 sps:$4 sm:$0xff]   ;;  %v17654_v20 = vld [vmem:[%s18654_s25 + $0x90] ss:$8 sps:$4 sm:$0xff]   ;;  %v17655_v21 = vld [vmem:[%s18654_s25 + $0xa4] ss:$8 sps:$4 sm:$0xff]  }
  0x6f   : > { %s18837_s1 = scalar_lea.vmem %s22299_s5, %s14986_s28  ;;  %v17657_v22 = vld [vmem:[%s18654_s25 + $0xa0] ss:$8 sps:$4 sm:$0xff]   ;;  %v17658_v23 = vld [vmem:[%s18654_s25 + $0xb4] ss:$8 sps:$4 sm:$0xff]   ;;  %v17660_v24 = vld [vmem:[%s18654_s25 + $0xb0] ss:$8 sps:$4 sm:$0xff]  }
  0x70   : > { %v17675_v13 = vld [vmem:[%s18837_s1 + $0x4] ss:$16 sps:$4 sm:$0xff]   ;;  %v17663_v26 = vld [vmem:[%s18654_s25 + $0xc0] ss:$8 sps:$4 sm:$0xff]   ;;  %v17666_v28 = vld [vmem:[%s18654_s25 + $0xd0] ss:$8 sps:$4 sm:$0xff]  }
  0x71   : > { %1449 = vmatpush1.bf16.msra.mxu0 %v17633_v5  ;;  %1476 = vmatprep.mubr.bf16.mxu0 %v17675_v13  ;;  %v17661_v25 = vld [vmem:[%s18654_s25 + $0xc4] ss:$8 sps:$4 sm:$0xff]   ;;  %v17664_v27 = vld [vmem:[%s18654_s25 + $0xd4] ss:$8 sps:$4 sm:$0xff]   ;;  %v17669_v30 = vld [vmem:[%s18654_s25 + $0xe0] ss:$8 sps:$4 sm:$0xff]   ;;  %s18898_s2 = scalar_lea.vmem %s22300_s13, %s14986_s28 }
  0x72   : > { %1450 = vmatprep.subr.bf16.mxu0 %v17634_v6  ;;  %v17667_v29 = vld [vmem:[%s18654_s25 + $0xe4] ss:$8 sps:$4 sm:$0xff]   ;;  %v17670_v31 = vld [vmem:[%s18654_s25 + $0xf4] ss:$8 sps:$4 sm:$0xff]   ;;  %v17672_v32 = vld [vmem:[%s18654_s25 + $0xf0] ss:$8 sps:$4 sm:$0xff]  }
  0x73   : > { %v17678_v33 = vld [vmem:[%s18654_s25 + $0x104] ss:$8 sps:$4 sm:$0xff]   ;;  %v17673_v34 = vld [vmem:[%s18837_s1] ss:$16 sps:$4 sm:$0xff]   ;;  %v17681_v37 = vld [vmem:[%s18654_s25 + $0x114] ss:$8 sps:$4 sm:$0xff]  }
  0x74   : > { %v17676_v35 = vld [vmem:[%s18654_s25 + $0x100] ss:$8 sps:$4 sm:$0xff]   ;;  %v17726_v36 = vld [vmem:[%s18837_s1 + $0xc] ss:$16 sps:$4 sm:$0xff]   ;;  %v17679_v38 = vld [vmem:[%s18654_s25 + $0x110] ss:$8 sps:$4 sm:$0xff]  }
  0x75   : > { %1451 = vmatpush1.bf16.msra.mxu0 %v17636_v7  ;;  %v17684_v39 = vld [vmem:[%s18654_s25 + $0x124] ss:$8 sps:$4 sm:$0xff]   ;;  %v17682_v40 = vld [vmem:[%s18654_s25 + $0x120] ss:$8 sps:$4 sm:$0xff]   ;;  %v17687_v41 = vld [vmem:[%s18654_s25 + $0x134] ss:$8 sps:$4 sm:$0xff]  }
  0x76   : > { %1452 = vmatprep.subr.bf16.mxu0 %v17637_v8  ;;  %v17685_v42 = vld [vmem:[%s18654_s25 + $0x130] ss:$8 sps:$4 sm:$0xff]   ;;  %v17690_v43 = vld [vmem:[%s18654_s25 + $0x144] ss:$8 sps:$4 sm:$0xff]   ;;  %v17688_v44 = vld [vmem:[%s18654_s25 + $0x140] ss:$8 sps:$4 sm:$0xff]  }
  0x77   : > { %v17693_v45 = vld [vmem:[%s18654_s25 + $0x154] ss:$8 sps:$4 sm:$0xff]   ;;  %v17691_v46 = vld [vmem:[%s18654_s25 + $0x150] ss:$8 sps:$4 sm:$0xff]   ;;  %v17696_v47 = vld [vmem:[%s18654_s25 + $0x164] ss:$8 sps:$4 sm:$0xff]  }
  0x78   : > { %v17694_v48 = vld [vmem:[%s18654_s25 + $0x160] ss:$8 sps:$4 sm:$0xff]   ;;  %v17699_v49 = vld [vmem:[%s18654_s25 + $0x174] ss:$8 sps:$4 sm:$0xff]   ;;  %v17697_v50 = vld [vmem:[%s18654_s25 + $0x170] ss:$8 sps:$4 sm:$0xff]  }
  0x79   : > { %1453 = vmatpush1.bf16.msra.mxu0 %v17639_v9  ;;  %v17702_v51 = vld [vmem:[%s18654_s25 + $0x184] ss:$8 sps:$4 sm:$0xff]   ;;  %v17700_v52 = vld [vmem:[%s18654_s25 + $0x180] ss:$8 sps:$4 sm:$0xff]   ;;  %v17705_v53 = vld [vmem:[%s18654_s25 + $0x194] ss:$8 sps:$4 sm:$0xff]  }
  0x7a   : > { %1454 = vmatprep.subr.bf16.mxu0 %v17640_v10  ;;  %v17703_v54 = vld [vmem:[%s18654_s25 + $0x190] ss:$8 sps:$4 sm:$0xff]   ;;  %v17708_v55 = vld [vmem:[%s18654_s25 + $0x1a4] ss:$8 sps:$4 sm:$0xff]   ;;  %v17706_v56 = vld [vmem:[%s18654_s25 + $0x1a0] ss:$8 sps:$4 sm:$0xff]  }
  0x7b   : > { %v17711_v57 = vld [vmem:[%s18654_s25 + $0x1b4] ss:$8 sps:$4 sm:$0xff]   ;;  %v17709_v58 = vld [vmem:[%s18654_s25 + $0x1b0] ss:$8 sps:$4 sm:$0xff]   ;;  %v17714_v59 = vld [vmem:[%s18654_s25 + $0x1c4] ss:$8 sps:$4 sm:$0xff]  }
  0x7c   : > { %v17712_v60 = vld [vmem:[%s18654_s25 + $0x1c0] ss:$8 sps:$4 sm:$0xff]   ;;  %v17717_v61 = vld [vmem:[%s18654_s25 + $0x1d4] ss:$8 sps:$4 sm:$0xff]   ;;  %v17715_v62 = vld [vmem:[%s18654_s25 + $0x1d0] ss:$8 sps:$4 sm:$0xff]  }
  0x7d   : > { %1455 = vmatpush1.bf16.msra.mxu0 %v17642_v11  ;;  %v17720_v63 = vld [vmem:[%s18654_s25 + $0x1e4] ss:$8 sps:$4 sm:$0xff]   ;;  %v17718_v0 = vld [vmem:[%s18654_s25 + $0x1e0] ss:$8 sps:$4 sm:$0xff]   ;;  %v17723_v1 = vld [vmem:[%s18654_s25 + $0x1f4] ss:$8 sps:$4 sm:$0xff]   ;;  %v1094_v11 = vlaneseq }
  0x7e   : > { %1456 = vmatprep.subr.bf16.mxu0 %v17643_v12  ;;  %v17721_v2 = vld [vmem:[%s18654_s25 + $0x1f0] ss:$8 sps:$4 sm:$0xff]   ;;  %s14987_s0 = sshll.u32 %s22594_s10, 4  ;;  %v18618_v6 = vmov 0   ;;  %v17730_v7 = vld [vmem:[%s18679_s19] sm:$0xff]   ;;  %vm1580_vm0 = vcmask 130048  }
  0x7f   : > { %v17724_v3 = vld [vmem:[%s18837_s1 + $0x8] ss:$16 sps:$4 sm:$0xff]   ;;  %s997_s11 = scalar_lea.vmem %s22301_s9, %s14987_s0  ;;  %1730 = vmatprep.mubr.bf16.mxu1 %v18618_v6  ;;  %17624 = vset.pattern.permute.xlu0 %v18618_v6  ;;  %s14989_s15 = sshll.u32 %s22594_s10, 7  ;;  %v17734_v9 = vld [vmem:[%s18679_s19 + $0x10] sm:$0xff]   ;;  %v18920_v12 = vshrl.u32 %v1094_v11, 7  ;;  %vm1850_vm1 = vcmask 1043456  }
  0x80   : > { %v17729_v4 = vld [vmem:[%s997_s11 + $0x4] ss:$8 sps:$4 sm:$0xff]   ;;  %v17727_v5 = vld [vmem:[%s997_s11] ss:$8 sps:$4 sm:$0xff]   ;;  %s18912_s16 = scalar_lea.vmem %s18644_s17, %s14989_s15  ;;  %v17736_v10 = vld [vmem:[%s18679_s19 + $0x18] sm:$0xff]   ;;  %s22304_s8 = sld [smem:[#allocation13_spill]] }
  0x81   : > { %1457 = vmatpush1.bf16.msra.mxu0 %v17645_v14  ;;  %v17732_v8 = vld [vmem:[%s18679_s19 + $0x8] sm:$0xff]   ;;  %22302 = vst [vmem:[#allocation27_spill] sm:$0xff] %v18920_v12  ;;  %v18923_v13 = vsub.s32 0, %v18920_v12  ;;  %v1092_v14 = vld [vmem:[%s18659_s29] sm:$0x3]  ;;  %vm18620_vm6 = vmmov 0  }
  0x82   : > { %1458 = vmatprep.subr.bf16.mxu0 %v17646_v15  ;;  %v1100_v15 = vsub.s32 1, %v18920_v12  ;;  %vm2078_vm2 = vsmask.f32 4352  ;;  %vm2381_vm3 = vsmask.f32 3328  ;;  %vm4570_vm7 = vcmask 523264  }
  0x83   : > { %22303 = vst [vmem:[#allocation28_spill] sm:$0xff] %v18923_v13  ;;  %vm2662_vm4 = vsmask.f32 256  ;;  %vm3189_vm5 = vsmask.f32 7424  ;;  %s22305_s18 = sld [smem:[#allocation16_spill]] }
  0x84   : > { %vm4780_vm8 = vcmask 261120   ;;  %s22306_s22 = sld [smem:[#allocation17_spill]]  ;;  %s22307_s23 = sld [smem:[#allocation22_spill]]  ;;  %vm13374_vm9 = vcmask 1040384   ;;  %vm13377_vm10 = vcmask 1041408  }
  0x85   : > { %1459 = vmatpush1.bf16.msra.mxu0 %v17648_v16  ;;  %v1097_v16 = vrot.slane %v1092_v14, %v18923_v13  ;;  %s22308_s26 = sld [smem:[#allocation15_spill]]  ;;  %s22309_s28 = sld [smem:[#allocation21_spill]] }
  0x86   : > { %1460 = vmatprep.subr.bf16.mxu0 %v17649_v17  ;;  %s22310_s1 = sld [smem:[#allocation18_spill]]  ;;  %s22570_s0 = sld [smem:[#allocation23_spill]] }
  0x87   : > { %s22575_s11 = sld [smem:[#allocation20_spill]]  ;;  %s22588_s15 = sld [smem:[#allocation24_spill]] }
  0x88   : > { %s22101_s5 = sld [smem:[#allocation2]]  ;;  %s22117_s12 = sld [smem:[#allocation4 + $0x1]] }
  0x89   : > { %1461 = vmatpush1.bf16.msra.mxu0 %v17651_v18  ;;  %v1101_v18 = vrot.slane %v1092_v14, %v1100_v15  ;;  %v17788_v14 = vld [vmem:[%s22290_s3 + $0x4] ss:$8 sps:$4 sm:$0xff]   ;;  %s22111_s9 = sld [smem:[#allocation4]]  ;;  %s22120_s13 = sld [smem:[#allocation4 + $0x2]] }
  0x8a   : > { %1462 = vmatprep.subr.bf16.mxu0 %v17652_v19 }
  0x8d   : > { %1463 = vmatpush1.bf16.msra.mxu0 %v17654_v20 }
  0x8e   : > { %1464 = vmatprep.subr.bf16.mxu0 %v17655_v21 }
  0x91   : > { %1465 = vmatpush1.bf16.msra.mxu0 %v17657_v22 }
  0x92   : > { %1466 = vmatprep.subr.bf16.mxu0 %v17658_v23 }
  0x95   : > { %1467 = vmatpush1.bf16.msra.mxu0 %v17660_v24 }
  0x96   : > { %1468 = vmatprep.subr.bf16.mxu0 %v17661_v25 }
  0x99   : > { %1469 = vmatpush1.bf16.msra.mxu0 %v17663_v26 }
  0x9a   : > { %1470 = vmatprep.subr.bf16.mxu0 %v17664_v27 }
  0x9d   : > { %1471 = vmatpush1.bf16.msra.mxu0 %v17666_v28  ;;  %v17740_v28 = vld [vmem:[%s22290_s3 + $0x104] ss:$8 sps:$4 sm:$0xff]  }
  0x9e   : > { %1472 = vmatprep.subr.bf16.mxu0 %v17667_v29  ;;  %v17731_v29 = vld [vmem:[%s18674_s14] sm:$0xff]  }
  0xa1   : > { %1473 = vmatpush1.bf16.msra.mxu0 %v17669_v30  ;;  %v17738_v30 = vld [vmem:[%s22290_s3 + $0x100] ss:$8 sps:$4 sm:$0xff]  }
  0xa2   : > { %1474 = vmatprep.subr.bf16.mxu0 %v17670_v31  ;;  %v17743_v31 = vld [vmem:[%s22290_s3 + $0x114] ss:$8 sps:$4 sm:$0xff]  }
  0xa5   : > { %1475 = vmatpush1.bf16.msra.mxu0 %v17672_v32  ;;  %v17741_v32 = vld [vmem:[%s22290_s3 + $0x110] ss:$8 sps:$4 sm:$0xff]  }
  0xa6   : > { %1487 = vmatprep.subr.bf16.mxu0 %v17678_v33  ;;  %v17746_v33 = vld [vmem:[%s22290_s3 + $0x124] ss:$8 sps:$4 sm:$0xff]  }
  0xa8   : > { %1477 = vmatmul.mubr.bf16.vlgmr.msra.gmra.mrb[0].mxu0 %v17673_v34  ;;  %v17733_v34 = vld [vmem:[%s18674_s14 + $0x8] sm:$0xff]  }
  0xa9   : > { %1488 = vmatpush1.bf16.msra.mxu0 %v17676_v35  ;;  %1519 = vmatprep.mubr.bf16.mxu0 %v17726_v36  ;;  %v17744_v35 = vld [vmem:[%s22290_s3 + $0x120] ss:$8 sps:$4 sm:$0xff]   ;;  %v17749_v36 = vld [vmem:[%s22290_s3 + $0x134] ss:$8 sps:$4 sm:$0xff]  }
  0xaa   : > { %1489 = vmatprep.subr.bf16.mxu0 %v17681_v37  ;;  %v17747_v37 = vld [vmem:[%s22290_s3 + $0x130] ss:$8 sps:$4 sm:$0xff]  }
  0xad   : > { %1490 = vmatpush1.bf16.msra.mxu0 %v17679_v38  ;;  %v17752_v38 = vld [vmem:[%s22290_s3 + $0x144] ss:$8 sps:$4 sm:$0xff]  }
  0xae   : > { %1491 = vmatprep.subr.bf16.mxu0 %v17684_v39  ;;  %v17735_v39 = vld [vmem:[%s18674_s14 + $0x10] sm:$0xff]  }
  0xb1   : > { %1492 = vmatpush1.bf16.msra.mxu0 %v17682_v40  ;;  %v17750_v40 = vld [vmem:[%s22290_s3 + $0x140] ss:$8 sps:$4 sm:$0xff]  }
  0xb2   : > { %1493 = vmatprep.subr.bf16.mxu0 %v17687_v41  ;;  %v17755_v41 = vld [vmem:[%s22290_s3 + $0x154] ss:$8 sps:$4 sm:$0xff]  }
  0xb5   : > { %1494 = vmatpush1.bf16.msra.mxu0 %v17685_v42  ;;  %v17753_v42 = vld [vmem:[%s22290_s3 + $0x150] ss:$8 sps:$4 sm:$0xff]  }
  0xb6   : > { %1495 = vmatprep.subr.bf16.mxu0 %v17690_v43  ;;  %v17758_v43 = vld [vmem:[%s22290_s3 + $0x164] ss:$8 sps:$4 sm:$0xff]  }
  0xb9   : > { %1496 = vmatpush1.bf16.msra.mxu0 %v17688_v44  ;;  %v17737_v44 = vld [vmem:[%s18674_s14 + $0x18] sm:$0xff]  }
  0xba   : > { %1497 = vmatprep.subr.bf16.mxu0 %v17693_v45  ;;  %v17756_v45 = vld [vmem:[%s22290_s3 + $0x160] ss:$8 sps:$4 sm:$0xff]  }
  0xbd   : > { %1498 = vmatpush1.bf16.msra.mxu0 %v17691_v46  ;;  %v17761_v46 = vld [vmem:[%s22290_s3 + $0x174] ss:$8 sps:$4 sm:$0xff]  }
  0xbe   : > { %1499 = vmatprep.subr.bf16.mxu0 %v17696_v47  ;;  %v17759_v47 = vld [vmem:[%s22290_s3 + $0x170] ss:$8 sps:$4 sm:$0xff]  }
  0xc1   : > { %1500 = vmatpush1.bf16.msra.mxu0 %v17694_v48  ;;  %v17764_v48 = vld [vmem:[%s22290_s3 + $0x184] ss:$8 sps:$4 sm:$0xff]  }
  0xc2   : > { %1501 = vmatprep.subr.bf16.mxu0 %v17699_v49  ;;  %v17762_v49 = vld [vmem:[%s22290_s3 + $0x180] ss:$8 sps:$4 sm:$0xff]  }
  0xc5   : > { %1502 = vmatpush1.bf16.msra.mxu0 %v17697_v50  ;;  %v17767_v50 = vld [vmem:[%s22290_s3 + $0x194] ss:$8 sps:$4 sm:$0xff]  }
  0xc6   : > { %1503 = vmatprep.subr.bf16.mxu0 %v17702_v51  ;;  %v17765_v51 = vld [vmem:[%s22290_s3 + $0x190] ss:$8 sps:$4 sm:$0xff]  }
  0xc9   : > { %1504 = vmatpush1.bf16.msra.mxu0 %v17700_v52  ;;  %v17770_v52 = vld [vmem:[%s22290_s3 + $0x1a4] ss:$8 sps:$4 sm:$0xff]  }
  0xca   : > { %1505 = vmatprep.subr.bf16.mxu0 %v17705_v53  ;;  %v17768_v53 = vld [vmem:[%s22290_s3 + $0x1a0] ss:$8 sps:$4 sm:$0xff]  }
  0xcd   : > { %1506 = vmatpush1.bf16.msra.mxu0 %v17703_v54  ;;  %v17773_v54 = vld [vmem:[%s22290_s3 + $0x1b4] ss:$8 sps:$4 sm:$0xff]  }
  0xce   : > { %1507 = vmatprep.subr.bf16.mxu0 %v17708_v55  ;;  %v17771_v55 = vld [vmem:[%s22290_s3 + $0x1b0] ss:$8 sps:$4 sm:$0xff]  }
  0xd1   : > { %1508 = vmatpush1.bf16.msra.mxu0 %v17706_v56 }
  0xd2   : > { %1509 = vmatprep.subr.bf16.mxu0 %v17711_v57 }
  0xd5   : > { %1510 = vmatpush1.bf16.msra.mxu0 %v17709_v58 }
  0xd6   : > { %1511 = vmatprep.subr.bf16.mxu0 %v17714_v59 }
  0xd9   : > { %1512 = vmatpush1.bf16.msra.mxu0 %v17712_v60  ;;  %v17776_v60 = vld [vmem:[%s22290_s3 + $0x1c4] ss:$8 sps:$4 sm:$0xff]  }
  0xda   : > { %1513 = vmatprep.subr.bf16.mxu0 %v17717_v61  ;;  %v17774_v61 = vld [vmem:[%s22290_s3 + $0x1c0] ss:$8 sps:$4 sm:$0xff]  }
  0xdd   : > { %1514 = vmatpush1.bf16.msra.mxu0 %v17715_v62 }
  0xde   : > { %1515 = vmatprep.subr.bf16.mxu0 %v17720_v63  ;;  %v17779_v63 = vld [vmem:[%s22290_s3 + $0x1d4] ss:$8 sps:$4 sm:$0xff]  }
  0xe1   : > { %1516 = vmatpush1.bf16.msra.mxu0 %v17718_v0 }
  0xe2   : > { %1517 = vmatprep.subr.bf16.mxu0 %v17723_v1  ;;  %v17777_v1 = vld [vmem:[%s22290_s3 + $0x1d0] ss:$8 sps:$4 sm:$0xff]  }
  0xe5   : > { %1518 = vmatpush1.bf16.msra.mxu0 %v17721_v2 }
  0xe6   : > { %1593 = vmatprep.subr.bf16.mxu0 %v17729_v4  ;;  %v17782_v4 = vld [vmem:[%s22290_s3 + $0x1e4] ss:$8 sps:$4 sm:$0xff]  }
  0xe8   : > { %1520 = vmatmul.mubr.bf16.vlgmr.msra.gmra.mrb[0].mxu0 %v17724_v3 }
  0xe9   : > { %1625 = vmatprep.mubr.bf16.mxu0 %v18618_v6  ;;  %1594 = vmatpush1.bf16.msra.mxu0 %v17727_v5  ;;  %v17780_v5 = vld [vmem:[%s22290_s3 + $0x1e0] ss:$8 sps:$4 sm:$0xff]  }
  0xf0   : > { %13671 = vmatmul.mubr.msk.bf16.vlgmr.msra.gmra.mrb[4].mxu0 %vm1580_vm0, %v17730_v7  ;;  %v17785_v7 = vld [vmem:[%s22290_s3 + $0x1f4] ss:$8 sps:$4 sm:$0xff]  }
  0xf1   : > { %1635 = vmatprep.mubr.bf16.mxu0 %v18618_v6 }
  0xf8   : > { %13672 = vmatmul.mubr.msk.bf16.gmra.mrb[8].mxu0 %vm1580_vm0, %v17732_v8  ;;  %v17783_v8 = vld [vmem:[%s22290_s3 + $0x1f0] ss:$8 sps:$4 sm:$0xff]  }
  0xf9   : > { %1645 = vmatprep.mubr.bf16.mxu0 %v18618_v6 }
 0x100   : > { %13673 = vmatmul.mubr.msk.bf16.gmra.mrb[12].mxu0 %vm1580_vm0, %v17734_v9 }
 0x101   : > { %1655 = vmatprep.mubr.bf16.mxu0 %v18618_v6 }
 0x108   : > { %13674 = vmatmul.mubr.msk.bf16.gmra.mrb[16].mxu0 %vm1580_vm0, %v17736_v10 }
 0x1bb   : > { %v1521_v17 = vpop.f32.mrb[0].mxu0 }
 0x1bc   : > { %v1523_v19 = vpop.f32.mrb[1].mxu0  ;;  %v16911_v21 = vadd.f32 %v1521_v17, %v1097_v16 }
 0x1bd   : > { %v1525_v20 = vpop.f32.mrb[2].mxu0  ;;  %v16912_v24 = vadd.f32 %v1523_v19, %v1101_v18 }
 0x1be   : > { %v16913_v22 = vadd.f32 %v1525_v20, %v1097_v16  ;;  %v1527_v23 = vpop.f32.mrb[3].mxu0 }
 0x1bf   : > { %v16914_v25 = vadd.f32 %v1527_v23, %v1101_v18 }
 0x1c0   : > { %v1530_v26 = vpack.c.bf16 %v16913_v22, %v16911_v21 }
 0x1c1   : > { %v1531_v27 = vpack.c.bf16 %v16914_v25, %v16912_v24 }
 0x1c3   : > { %1698 = vmatprep.subr.bf16.mxu1 %v1531_v27  ;;  %v1627_v56 = vpop.f32.mrb[4].mxu0 }
 0x1c4   : > { %1699 = vmatpush1.bf16.msra.mxu1 %v1530_v26  ;;  %v1629_v57 = vpop.f32.mrb[5].mxu0 }
 0x1c5   : > { %2025 = vmatprep.subr.bf16.mxu1 %v17740_v28  ;;  %v1631_v58 = vpop.f32.mrb[6].mxu0 }
 0x1c6   : > { %v1633_v59 = vpop.f32.mrb[7].mxu0 }
 0x1c7   : > { %13679 = vmatmul.mubr.msk.bf16.vlgmr.msra.gmra.mrb[0].mxu1 %vm1580_vm0, %v17731_v29 }
 0x1c8   : > { %1740 = vmatprep.mubr.bf16.mxu1 %v18618_v6  ;;  %2026 = vmatpush1.bf16.msra.mxu1 %v17738_v30 }
 0x1c9   : > { %2027 = vmatprep.subr.bf16.mxu1 %v17743_v31 }
 0x1cb   : > { %v1637_v62 = vpop.f32.mrb[8].mxu0 }
 0x1cc   : > { %2028 = vmatpush1.bf16.msra.mxu1 %v17741_v32  ;;  %v1639_v0 = vpop.f32.mrb[9].mxu0 }
 0x1cd   : > { %2029 = vmatprep.subr.bf16.mxu1 %v17746_v33  ;;  %v1641_v2 = vpop.f32.mrb[10].mxu0 }
 0x1ce   : > { %v1643_v3 = vpop.f32.mrb[11].mxu0 }
 0x1cf   : > { %13680 = vmatmul.mubr.msk.bf16.gmra.mrb[4].mxu1 %vm1580_vm0, %v17733_v34 }
 0x1d0   : > { %1750 = vmatprep.mubr.bf16.mxu1 %v18618_v6  ;;  %2030 = vmatpush1.bf16.msra.mxu1 %v17744_v35 }
 0x1d1   : > { %2031 = vmatprep.subr.bf16.mxu1 %v17749_v36 }
 0x1d3   : > { %v1647_v9 = vpop.f32.mrb[12].mxu0 }
 0x1d4   : > { %2032 = vmatpush1.bf16.msra.mxu1 %v17747_v37  ;;  %v1649_v10 = vpop.f32.mrb[13].mxu0 }
 0x1d5   : > { %2033 = vmatprep.subr.bf16.mxu1 %v17752_v38  ;;  %v1651_v11 = vpop.f32.mrb[14].mxu0 }
 0x1d6   : > { %v18974_v16 = vpop.f32.mrb[15].mxu0 }
 0x1d7   : > { %13681 = vmatmul.mubr.msk.bf16.gmra.mrb[8].mxu1 %vm1580_vm0, %v17735_v39 }
 0x1d8   : > { %1760 = vmatprep.mubr.bf16.mxu1 %v18618_v6  ;;  %2034 = vmatpush1.bf16.msra.mxu1 %v17750_v40 }
 0x1d9   : > { %2035 = vmatprep.subr.bf16.mxu1 %v17755_v41 }
 0x1db   : > { %v18976_v17 = vpop.f32.mrb[16].mxu0 }
 0x1dc   : > { %2036 = vmatpush1.bf16.msra.mxu1 %v17753_v42  ;;  %v18978_v18 = vpop.f32.mrb[17].mxu0 }
 0x1dd   : > { %2037 = vmatprep.subr.bf16.mxu1 %v17758_v43  ;;  %v18980_v19 = vpop.f32.mrb[18].mxu0 }
 0x1de   : > { %v18982_v20 = vpop.f32.mrb[19].mxu0 }
 0x1df   : > { %13682 = vmatmul.mubr.msk.bf16.gmra.mrb[12].mxu1 %vm1580_vm0, %v17737_v44 }
 0x1e0   : > { %2038 = vmatpush1.bf16.msra.mxu1 %v17756_v45 }
 0x1e1   : > { %2039 = vmatprep.subr.bf16.mxu1 %v17761_v46 }
 0x1e4   : > { %2040 = vmatpush1.bf16.msra.mxu1 %v17759_v47 }
 0x1e5   : > { %2041 = vmatprep.subr.bf16.mxu1 %v17764_v48 }
 0x1e8   : > { %2042 = vmatpush1.bf16.msra.mxu1 %v17762_v49 }
 0x1e9   : > { %2043 = vmatprep.subr.bf16.mxu1 %v17767_v50 }
 0x1ec   : > { %2044 = vmatpush1.bf16.msra.mxu1 %v17765_v51 }
 0x1ed   : > { %2045 = vmatprep.subr.bf16.mxu1 %v17770_v52 }
 0x1f0   : > { %2046 = vmatpush1.bf16.msra.mxu1 %v17768_v53  ;;  %v17786_v53 = vld [vmem:[%s22290_s3] ss:$8 sps:$4 sm:$0xff]  }
 0x1f1   : > { %2047 = vmatprep.subr.bf16.mxu1 %v17773_v54 }
 0x1f4   : > { %2048 = vmatpush1.bf16.msra.mxu1 %v17771_v55 }
 0x1f5   : > { %2049 = vmatprep.subr.bf16.mxu1 %v17776_v60 }
 0x1f8   : > { %2050 = vmatpush1.bf16.msra.mxu1 %v17774_v61 }
 0x1f9   : > { %2051 = vmatprep.subr.bf16.mxu1 %v17779_v63 }
 0x1fc   : > { %2052 = vmatpush1.bf16.msra.mxu1 %v17777_v1 }
 0x1fd   : > { %2053 = vmatprep.subr.bf16.mxu1 %v17782_v4  ;;  %v17791_v4 = vld [vmem:[%s22290_s3 + $0x14] ss:$8 sps:$4 sm:$0xff]  }
 0x200   : > { %2054 = vmatpush1.bf16.msra.mxu1 %v17780_v5 }
 0x201   : > { %2055 = vmatprep.subr.bf16.mxu1 %v17785_v7 }
 0x204   : > { %2056 = vmatpush1.bf16.msra.mxu1 %v17783_v8 }
 0x205   : > { %2295 = vmatprep.subr.bf16.mxu1 %v17788_v14 }
 0x29a   : > { %v1732_v21 = vpop.f32.mrb[0].mxu1 }
 0x29b   : > { %v1733_v22 = vadd.f32 %v1732_v21, %v1627_v56  ;;  %v1734_v23 = vpop.f32.mrb[1].mxu1 }
 0x29c   : > { %v1735_v24 = vadd.f32 %v1734_v23, %v1629_v57  ;;  %v1736_v25 = vpop.f32.mrb[2].mxu1 }
 0x29d   : > { %v1737_v26 = vadd.f32 %v1736_v25, %v1631_v58  ;;  %v1738_v27 = vpop.f32.mrb[3].mxu1 }
 0x29e   : > { %v1739_v28 = vadd.f32 %v1738_v27, %v1633_v59 }
 0x29f   : > { %v18984_v29 = vpack.c.bf16 %v1737_v26, %v1733_v22  ;;  %v17789_v26 = vld [vmem:[%s22290_s3 + $0x10] ss:$8 sps:$4 sm:$0xff]  }
 0x2a0   : > { %v1772_v30 = vpack.c.bf16 %v1739_v28, %v1735_v24 }
 0x2a1   : > { %v18987_v31 = vshrl.u32 %v18984_v29, 16  ;;  %v2083_v32 = vshll.u32 %v18984_v29, 16 }
 0x2a2   : > { %v18990_v33 = vshrl.u32 %v1772_v30, 16  ;;  %v2100_v34 = vshll.u32 %v1772_v30, 16  ;;  %v1742_v35 = vpop.f32.mrb[4].mxu1  ;;  %v1854_v51 = vrot.slane %v1772_v30, 4 }
 0x2a3   : > { %v2382_v36 = vrot.slane %v18987_v31, 4  ;;  %v2383_v37 = vrot.slane %v2083_v32, 5  ;;  %v1744_v38 = vpop.f32.mrb[5].mxu1  ;;  %v1743_v39 = vadd.f32 %v1742_v35, %v1637_v62  ;;  %v1851_v62 = vrot.slane %v18984_v29, 4 }
 0x2a4   : > { %v1745_v40 = vadd.f32 %v1744_v38, %v1639_v0  ;;  %v1746_v41 = vpop.f32.mrb[6].mxu1  ;;  %v2389_v44 = vrot.slane %v18990_v33, 4  ;;  %v2390_v45 = vrot.slane %v2100_v34, 5  ;;  %v2099_v55 = vrot.slane %v18990_v33, 3 }
 0x2a5   : > { %v1747_v42 = vadd.f32 %v1746_v41, %v1641_v2  ;;  %v1748_v43 = vpop.f32.mrb[7].mxu1  ;;  %v2384_v47 = vor.u32 %v2383_v37, %v2382_v36  ;;  %v2102_v56 = vrot.slane %v2100_v34, 4  ;;  %v2667_v28 = vrot.slane %v18990_v33, 7 }
 0x2a6   : > { %v1749_v46 = vadd.f32 %v1748_v43, %v1643_v3  ;;  %v2391_v49 = vor.u32 %v2390_v45, %v2389_v44  ;;  %v2663_v30 = vrot.slane %v18987_v31, 7 }
 0x2a7   : > { %v18996_v48 = vpack.c.bf16 %v1747_v42, %v1743_v39  ;;  %v2103_v23 = vor.u32 %v2102_v56, %v2099_v55 }
 0x2a8   : > { %v18998_v50 = vpack.c.bf16 %v1749_v46, %v1745_v40 }
 0x2a9   : > { %v19001_v52 = vshrl.u32 %v18996_v48, 16  ;;  %v1852_v54 = vrot.slane %v18996_v48, 4  ;;  %v19007_v57 = vshll.u32 %v18996_v48, 16 }
 0x2aa   : > { %v19010_v58 = vshrl.u32 %v18998_v50, 16  ;;  %v19013_v59 = vshll.u32 %v18998_v50, 16  ;;  %v1752_v60 = vpop.f32.mrb[8].mxu1  ;;  %v1855_v61 = vrot.slane %v18998_v50, 4 }
 0x2ab   : > { %v1753_v63 = vadd.f32 %v1752_v60, %v1647_v9  ;;  %v1754_v0 = vpop.f32.mrb[9].mxu1  ;;  %v1853_v9 = vsel %vm1850_vm1, %v1851_v62, %v1852_v54  ;;  %v2385_v24 = vrot.slane %v19001_v52, 4  ;;  %v2386_v25 = vrot.slane %v19007_v57, 5 }
 0x2ac   : > { %v1755_v1 = vadd.f32 %v1754_v0, %v1649_v10  ;;  %v1756_v2 = vpop.f32.mrb[10].mxu1  ;;  %v1856_v3 = vsel %vm1850_vm1, %v1854_v51, %v1855_v61  ;;  %v2107_v5 = vrot.slane %v19010_v58, 3  ;;  %v2110_v7 = vrot.slane %v19013_v59, 4  ;;  %v17792_v51 = vld [vmem:[%s22290_s3 + $0x20] ss:$8 sps:$4 sm:$0xff]  }
 0x2ad   : > { %v1757_v8 = vadd.f32 %v1756_v2, %v1651_v11  ;;  %v1758_v14 = vpop.f32.mrb[11].mxu1  ;;  %2057 = vmatprep.mubr.bf16.mxu1 %v1856_v3  ;;  %v2392_v21 = vrot.slane %v19010_v58, 4  ;;  %v2393_v10 = vrot.slane %v19013_v59, 5  ;;  %v2387_v36 = vor.u32 %v2386_v25, %v2385_v24 }
 0x2ae   : > { %v1759_v22 = vadd.f32 %v1758_v14, %v18974_v16  ;;  %2058 = vmatmul.mubr.bf16.vlgmr.msra.gmra.mrb[16].mxu1 %v1853_v9  ;;  %v17794_v16 = vld [vmem:[%s22290_s3 + $0x24] ss:$8 sps:$4 sm:$0xff]   ;;  %v19037_v35 = vor.u32 %v2110_v7, %v2107_v5  ;;  %v2668_v37 = vrot.slane %v19010_v58, 7  ;;  %v2664_v60 = vrot.slane %v19001_v52, 7 }
 0x2af   : > { %v19029_v11 = vpack.c.bf16 %v1757_v8, %v1753_v63  ;;  %2296 = vmatpush1.bf16.msra.mxu1 %v17786_v53  ;;  %v2394_v27 = vor.u32 %v2393_v10, %v2392_v21  ;;  %v19058_v46 = vsel %vm2381_vm3, %v2384_v47, %v2387_v36  ;;  %v17797_v63 = vld [vmem:[%s22290_s3 + $0x34] ss:$8 sps:$4 sm:$0xff]  }
 0x2b0   : > { %v19034_v34 = vpack.c.bf16 %v1759_v22, %v1755_v1  ;;  %2297 = vmatprep.subr.bf16.mxu1 %v17791_v4  ;;  %v2112_v5 = vsel %vm2078_vm2, %v2103_v23, %v19037_v35  ;;  %v17800_v22 = vld [vmem:[%s22290_s3 + $0x44] ss:$8 sps:$4 sm:$0xff]   ;;  %v2669_v25 = vor.u32 %v2668_v37, %v19013_v59 }
 0x2b1   : > { %v19041_v38 = vshrl.u32 %v19029_v11, 16  ;;  %v19044_v39 = vshll.u32 %v19029_v11, 16  ;;  %v1857_v40 = vrot.slane %v19029_v11, 4  ;;  %v19048_v41 = vsel %vm2381_vm3, %v2391_v49, %v2394_v27 }
 0x2b2   : > { %v19051_v42 = vshrl.u32 %v19034_v34, 16  ;;  %v19054_v43 = vshll.u32 %v19034_v34, 16  ;;  %v1859_v44 = vrot.slane %v19034_v34, 4  ;;  %v1762_v45 = vpop.f32.mrb[12].mxu1 }
 0x2b3   : > { %2298 = vmatpush1.bf16.msra.mxu1 %v17789_v26  ;;  %v1763_v53 = vadd.f32 %v1762_v45, %v18976_v17  ;;  %v1764_v55 = vpop.f32.mrb[13].mxu1  ;;  %v2116_v49 = vrot.slane %v19041_v38, 3  ;;  %v2119_v56 = vrot.slane %v19044_v39, 4  ;;  %v2396_v8 = vrot.slane %v19041_v38, 4 }
 0x2b4   : > { %v19068_v62 = vsel %vm1850_vm1, %v1855_v61, %v1859_v44  ;;  %2299 = vmatprep.subr.bf16.mxu1 %v17794_v16  ;;  %v1765_v47 = vadd.f32 %v1764_v55, %v18978_v18  ;;  %v1766_v0 = vpop.f32.mrb[14].mxu1  ;;  %v2125_v1 = vrot.slane %v19051_v42, 3  ;;  %v2128_v17 = vrot.slane %v19054_v43, 4 }
 0x2b5   : > { %2067 = vmatprep.mubr.bf16.mxu1 %v19068_v62  ;;  %v19080_v61 = vsel %vm1850_vm1, %v1852_v54, %v1857_v40  ;;  %v1767_v2 = vadd.f32 %v1766_v0, %v18980_v19  ;;  %v1768_v3 = vpop.f32.mrb[15].mxu1  ;;  %v2400_v18 = vrot.slane %v19051_v42, 4  ;;  %v2401_v4 = vrot.slane %v19054_v43, 5  ;;  %v17795_v19 = vld [vmem:[%s22290_s3 + $0x30] ss:$8 sps:$4 sm:$0xff]  }
 0x2b6   : > { %2068 = vmatmul.mubr.bf16.gmra.mrb[20].mxu1 %v19080_v61  ;;  %v1769_v7 = vadd.f32 %v1768_v3, %v18982_v20  ;;  %v2397_v54 = vrot.slane %v19044_v39, 5  ;;  %v19094_v9 = vor.u32 %v2119_v56, %v2116_v49  ;;  %v2674_v10 = vrot.slane %v19051_v42, 7 }
 0x2b7   : > { %2300 = vmatpush1.bf16.msra.mxu1 %v17792_v51  ;;  %2327 = vmatprep.mubr.bf16.mxu1 %v2112_v5  ;;  %v19092_v14 = vpack.c.bf16 %v1767_v2, %v1763_v53  ;;  %v19096_v21 = vor.u32 %v2401_v4, %v2400_v18  ;;  %v19100_v20 = vor.u32 %v2128_v17, %v2125_v1  ;;  %v2671_v0 = vrot.slane %v19041_v38, 7 }
 0x2b8   : > { %2301 = vmatprep.subr.bf16.mxu1 %v17797_v63  ;;  %v1778_v23 = vpack.c.bf16 %v1769_v7, %v1765_v47  ;;  %v2398_v24 = vor.u32 %v2397_v54, %v2396_v8  ;;  %v2665_v51 = vor.u32 %v2664_v60, %v19007_v57  ;;  %v19120_v56 = vsel %vm2662_vm4, %v2667_v28, %v2669_v25  ;;  %v17798_v63 = vld [vmem:[%s22290_s3 + $0x40] ss:$8 sps:$4 sm:$0xff]   ;;  %v17801_v8 = vld [vmem:[%s22290_s3 + $0x50] ss:$8 sps:$4 sm:$0xff]  }
 0x2b9   : > { %v3200_v26 = vshll.u32 %v19092_v14, 16  ;;  %v3468_v16 = vshrl.u32 %v19092_v14, 16  ;;  %v19109_v45 = vsel %vm2381_vm3, %v2394_v27, %v19096_v21  ;;  %v2675_v47 = vor.u32 %v2674_v10, %v19054_v43 }
 0x2ba   : > { %v3206_v53 = vshll.u32 %v1778_v23, 16  ;;  %v3474_v55 = vshrl.u32 %v1778_v23, 16  ;;  %v19115_v49 = vsel %vm2381_vm3, %v2387_v36, %v2398_v24  ;;  %v19126_v27 = vsel %vm2662_vm4, %v2663_v30, %v2665_v51  ;;  %v17803_v36 = vld [vmem:[%s22290_s3 + $0x54] ss:$8 sps:$4 sm:$0xff]  }
 0x2bb   : > { %2302 = vmatpush1.bf16.msra.mxu1 %v17795_v19  ;;  %v3194_v1 = vrot.slane %v19013_v59, 1  ;;  %v3196_v33 = vrot.slane %v19054_v43, 1  ;;  %v3190_v28 = vrot.slane %v19007_v57, 1  ;;  %v3192_v17 = vrot.slane %v19044_v39, 1  ;;  %v17806_v19 = vld [vmem:[%s22290_s3 + $0x64] ss:$8 sps:$4 sm:$0xff]  }
 0x2bc   : > { %2303 = vmatprep.subr.bf16.mxu1 %v17800_v22  ;;  %v3208_v2 = vrot.slane %v3206_v53, 1  ;;  %v19138_v30 = vsel %vm2662_vm4, %v2668_v37, %v2675_v47  ;;  %v2672_v3 = vor.u32 %v2671_v0, %v19044_v39  ;;  %v3202_v18 = vrot.slane %v3200_v26, 1 }
 0x2bd   : > { %v3195_v59 = vor.u32 %v3194_v1, %v19010_v58  ;;  %v3191_v4 = vor.u32 %v3190_v28, %v19001_v52  ;;  %v3204_v43 = vor.u32 %v3196_v33, %v19051_v42  ;;  %v3198_v5 = vor.u32 %v3192_v17, %v19041_v38 }
 0x2be   : > { %v3476_v7 = vrot.slane %v3474_v55, 3  ;;  %v19149_v54 = vsel %vm2662_vm4, %v2664_v60, %v2672_v3  ;;  %v3477_v39 = vrot.slane %v3206_v53, 4  ;;  %v3470_v58 = vrot.slane %v3468_v16, 3  ;;  %v17810_v3 = vld [vmem:[%s22290_s3 + $0x80] ss:$8 sps:$4 sm:$0xff]  }
 0x2bf   : > { %2304 = vmatpush1.bf16.msra.mxu1 %v17798_v63  ;;  %v19152_v37 = vsel %vm3189_vm5, %v3195_v59, %v3196_v33  ;;  %v19156_v42 = vsel %vm3189_vm5, %v3191_v4, %v3192_v17  ;;  %v19159_v38 = vsel %vm3189_vm5, %v3204_v43, %v3208_v2  ;;  %v19162_v10 = vsel %vm3189_vm5, %v3198_v5, %v3202_v18  ;;  %v17804_v33 = vld [vmem:[%s22290_s3 + $0x60] ss:$8 sps:$4 sm:$0xff]   ;;  %v17812_v2 = vld [vmem:[%s22290_s3 + $0x84] ss:$8 sps:$4 sm:$0xff]   ;;  %v17815_v59 = vld [vmem:[%s22290_s3 + $0x94] ss:$8 sps:$4 sm:$0xff]  }
 0x2c0   : > { %2305 = vmatprep.subr.bf16.mxu1 %v17803_v36  ;;  %v3471_v60 = vrot.slane %v3200_v26, 4  ;;  %v3478_v22 = vor.u32 %v3477_v39, %v3476_v7  ;;  %v3740_v25 = vrot.slane %v1778_v23, 4  ;;  %v3738_v51 = vrot.slane %v19092_v14, 4  ;;  %v17813_v18 = vld [vmem:[%s22290_s3 + $0x90] ss:$8 sps:$4 sm:$0xff]  }
 0x2c1   : > { %v4002_v63 = vrot.slane %v3474_v55, 4  ;;  %v4003_v0 = vrot.slane %v3206_v53, 5  ;;  %v3998_v1 = vrot.slane %v3468_v16, 4  ;;  %v3999_v36 = vrot.slane %v3200_v26, 5  ;;  %v17809_v26 = vld [vmem:[%s22290_s3 + $0x74] ss:$8 sps:$4 sm:$0xff]  }
 0x2c2   : > { %v3472_v47 = vor.u32 %v3471_v60, %v3470_v58  ;;  %v19168_v28 = vsel %vm2078_vm2, %v19100_v20, %v3478_v22  ;;  %v19173_v23 = vsel %vm1850_vm1, %v1859_v44, %v3740_v25  ;;  %v19178_v14 = vsel %vm1850_vm1, %v1857_v40, %v3738_v51  ;;  %v17807_v40 = vld [vmem:[%s22290_s3 + $0x70] ss:$8 sps:$4 sm:$0xff]   ;;  %v17821_v4 = vld [vmem:[%s22290_s3 + $0xb4] ss:$8 sps:$4 sm:$0xff]   ;;  %v17824_v5 = vld [vmem:[%s22290_s3 + $0xc4] ss:$8 sps:$4 sm:$0xff]  }
 0x2c3   : > { %2306 = vmatpush1.bf16.msra.mxu1 %v17801_v8  ;;  %v4004_v53 = vor.u32 %v4003_v0, %v4002_v63  ;;  %v4000_v55 = vor.u32 %v3999_v36, %v3998_v1  ;;  %v17819_v43 = vld [vmem:[%s22290_s3 + $0xb0] ss:$8 sps:$4 sm:$0xff]   ;;  %v17822_v7 = vld [vmem:[%s22290_s3 + $0xc0] ss:$8 sps:$4 sm:$0xff]   ;;  %v17827_v8 = vld [vmem:[%s22290_s3 + $0xd4] ss:$8 sps:$4 sm:$0xff]   ;;  %v19221_v29 = vsel %vm2078_vm2, %v19037_v35, %v19100_v20 }
 0x2c4   : > { %2307 = vmatprep.subr.bf16.mxu1 %v17806_v19  ;;  %v19183_v16 = vsel %vm2078_vm2, %v19094_v9, %v3472_v47  ;;  %v17825_v39 = vld [vmem:[%s22290_s3 + $0xd0] ss:$8 sps:$4 sm:$0xff]   ;;  %v17830_v58 = vld [vmem:[%s22290_s3 + $0xe4] ss:$8 sps:$4 sm:$0xff]   ;;  %v17828_v19 = vld [vmem:[%s22290_s3 + $0xe0] ss:$8 sps:$4 sm:$0xff]  }
 0x2c5   : > { %v19187_v44 = vsel %vm2381_vm3, %v19096_v21, %v4004_v53  ;;  %v19190_v17 = vsel %vm2381_vm3, %v2398_v24, %v4000_v55  ;;  %v17818_v21 = vld [vmem:[%s22290_s3 + $0xa4] ss:$8 sps:$4 sm:$0xff]   ;;  %v17816_v24 = vld [vmem:[%s22290_s3 + $0xa0] ss:$8 sps:$4 sm:$0xff]   ;;  %v17833_v60 = vld [vmem:[%s22290_s3 + $0xf4] ss:$8 sps:$4 sm:$0xff]  }
 0x2c6   : > { %v2090_v22 = vrot.slane %v19001_v52, 3  ;;  %v2093_v25 = vrot.slane %v19007_v57, 4  ;;  %v2082_v51 = vrot.slane %v18987_v31, 3  ;;  %v2085_v63 = vrot.slane %v2083_v32, 4  ;;  %v17831_v47 = vld [vmem:[%s22290_s3 + $0xf0] ss:$8 sps:$4 sm:$0xff]  }
 0x2c7   : > { %2308 = vmatpush1.bf16.msra.mxu1 %v17804_v33  ;;  %v17836_v0 = vld [vmem:[%s22290_s3 + $0x204] ss:$8 sps:$4 sm:$0xff]   ;;  %v17834_v33 = vld [vmem:[%s22290_s3 + $0x200] ss:$8 sps:$4 sm:$0xff]   ;;  %v17839_v52 = vld [vmem:[%s22290_s3 + $0x214] ss:$8 sps:$4 sm:$0xff]  }
 0x2c8   : > { %2309 = vmatprep.subr.bf16.mxu1 %v17809_v26  ;;  %v2094_v1 = vor.u32 %v2093_v25, %v2090_v22  ;;  %v2086_v36 = vor.u32 %v2085_v63, %v2082_v51  ;;  %v17837_v31 = vld [vmem:[%s22290_s3 + $0x210] ss:$8 sps:$4 sm:$0xff]   ;;  %v17842_v32 = vld [vmem:[%s22290_s3 + $0x224] ss:$8 sps:$4 sm:$0xff]   ;;  %v17840_v26 = vld [vmem:[%s22290_s3 + $0x220] ss:$8 sps:$4 sm:$0xff]  }
 0x2c9   : > { %v17845_v53 = vld [vmem:[%s22290_s3 + $0x234] ss:$8 sps:$4 sm:$0xff]   ;;  %v17843_v35 = vld [vmem:[%s22290_s3 + $0x230] ss:$8 sps:$4 sm:$0xff]   ;;  %v17848_v20 = vld [vmem:[%s22290_s3 + $0x244] ss:$8 sps:$4 sm:$0xff]  }
 0x2ca   : > { %v2095_v57 = vsel %vm2078_vm2, %v2086_v36, %v2094_v1  ;;  %v19230_v55 = vsel %vm2078_vm2, %v2094_v1, %v19094_v9  ;;  %v17849_v9 = vld [vmem:[%s22290_s3 + $0x250] ss:$8 sps:$4 sm:$0xff]   ;;  %v17878_v25 = vld [vmem:[%s22290_s3 + $0x2e4] ss:$8 sps:$4 sm:$0xff]   ;;  %v17876_v51 = vld [vmem:[%s22290_s3 + $0x2e0] ss:$8 sps:$4 sm:$0xff]  }
 0x2cb   : > { %2310 = vmatpush1.bf16.msra.mxu1 %v17807_v40  ;;  %v17846_v40 = vld [vmem:[%s22290_s3 + $0x240] ss:$8 sps:$4 sm:$0xff]   ;;  %v17873_v22 = vld [vmem:[%s22290_s3 + $0x2d0] ss:$8 sps:$4 sm:$0xff]   ;;  %v17881_v63 = vld [vmem:[%s22290_s3 + $0x2f4] ss:$8 sps:$4 sm:$0xff]  }
 0x2cc   : > { %2311 = vmatprep.subr.bf16.mxu1 %v17812_v2  ;;  %v17851_v2 = vld [vmem:[%s22290_s3 + $0x254] ss:$8 sps:$4 sm:$0xff]   ;;  %v17882_v1 = vld [vmem:[%s22290_s3 + $0x300] ss:$8 sps:$4 sm:$0xff]  }
 0x2cd   : > { %v17887_v36 = vld [vmem:[%s22290_s3 + $0x314] ss:$8 sps:$4 sm:$0xff]  }
 0x2cf   : > { %2312 = vmatpush1.bf16.msra.mxu1 %v17810_v3  ;;  %v17854_v3 = vld [vmem:[%s22290_s3 + $0x264] ss:$8 sps:$4 sm:$0xff]  }
 0x2d0   : > { %2313 = vmatprep.subr.bf16.mxu1 %v17815_v59  ;;  %v17852_v59 = vld [vmem:[%s22290_s3 + $0x260] ss:$8 sps:$4 sm:$0xff]  }
 0x2d3   : > { %2314 = vmatpush1.bf16.msra.mxu1 %v17813_v18  ;;  %v17855_v18 = vld [vmem:[%s22290_s3 + $0x270] ss:$8 sps:$4 sm:$0xff]  }
 0x2d4   : > { %2315 = vmatprep.subr.bf16.mxu1 %v17818_v21  ;;  %v17860_v21 = vld [vmem:[%s22290_s3 + $0x284] ss:$8 sps:$4 sm:$0xff]  }
 0x2d7   : > { %2316 = vmatpush1.bf16.msra.mxu1 %v17816_v24  ;;  %v17858_v24 = vld [vmem:[%s22290_s3 + $0x280] ss:$8 sps:$4 sm:$0xff]  }
 0x2d8   : > { %2317 = vmatprep.subr.bf16.mxu1 %v17821_v4  ;;  %v17863_v4 = vld [vmem:[%s22290_s3 + $0x294] ss:$8 sps:$4 sm:$0xff]  }
 0x2db   : > { %2318 = vmatpush1.bf16.msra.mxu1 %v17819_v43  ;;  %v17861_v43 = vld [vmem:[%s22290_s3 + $0x290] ss:$8 sps:$4 sm:$0xff]  }
 0x2dc   : > { %2319 = vmatprep.subr.bf16.mxu1 %v17824_v5  ;;  %v17866_v5 = vld [vmem:[%s22290_s3 + $0x2a4] ss:$8 sps:$4 sm:$0xff]  }
 0x2df   : > { %2320 = vmatpush1.bf16.msra.mxu1 %v17822_v7  ;;  %v17864_v7 = vld [vmem:[%s22290_s3 + $0x2a0] ss:$8 sps:$4 sm:$0xff]  }
 0x2e0   : > { %2321 = vmatprep.subr.bf16.mxu1 %v17827_v8  ;;  %v17869_v8 = vld [vmem:[%s22290_s3 + $0x2b4] ss:$8 sps:$4 sm:$0xff]  }
 0x2e3   : > { %2322 = vmatpush1.bf16.msra.mxu1 %v17825_v39  ;;  %v17867_v39 = vld [vmem:[%s22290_s3 + $0x2b0] ss:$8 sps:$4 sm:$0xff]  }
 0x2e4   : > { %2323 = vmatprep.subr.bf16.mxu1 %v17830_v58  ;;  %v17872_v58 = vld [vmem:[%s22290_s3 + $0x2c4] ss:$8 sps:$4 sm:$0xff]  }
 0x2e7   : > { %2324 = vmatpush1.bf16.msra.mxu1 %v17828_v19  ;;  %v17870_v19 = vld [vmem:[%s22290_s3 + $0x2c0] ss:$8 sps:$4 sm:$0xff]  }
 0x2e8   : > { %2325 = vmatprep.subr.bf16.mxu1 %v17833_v60  ;;  %v17875_v60 = vld [vmem:[%s22290_s3 + $0x2d4] ss:$8 sps:$4 sm:$0xff]  }
 0x2eb   : > { %2326 = vmatpush1.bf16.msra.mxu1 %v17831_v47  ;;  %v17879_v47 = vld [vmem:[%s22290_s3 + $0x2f0] ss:$8 sps:$4 sm:$0xff]  }
 0x2ec   : > { %2568 = vmatprep.subr.bf16.mxu1 %v17836_v0  ;;  %v17884_v0 = vld [vmem:[%s22290_s3 + $0x304] ss:$8 sps:$4 sm:$0xff]  }
 0x2ee   : > { %2328 = vmatmul.mubr.bf16.vlgmr.msra.gmra.mrb[16].mxu1 %v2095_v57  ;;  %v17888_v57 = vld [vmem:[%s22290_s3 + $0x320] ss:$8 sps:$4 sm:$0xff]  }
 0x2ef   : > { %2337 = vmatprep.mubr.bf16.mxu1 %v19221_v29  ;;  %2569 = vmatpush1.bf16.msra.mxu1 %v17834_v33  ;;  %v17885_v33 = vld [vmem:[%s22290_s3 + $0x310] ss:$8 sps:$4 sm:$0xff]  }
 0x2f0   : > { %2570 = vmatprep.subr.bf16.mxu1 %v17839_v52  ;;  %v17890_v52 = vld [vmem:[%s22290_s3 + $0x324] ss:$8 sps:$4 sm:$0xff]  }
 0x2f3   : > { %2571 = vmatpush1.bf16.msra.mxu1 %v17837_v31  ;;  %v17893_v31 = vld [vmem:[%s22290_s3 + $0x334] ss:$8 sps:$4 sm:$0xff]  }
 0x2f4   : > { %2572 = vmatprep.subr.bf16.mxu1 %v17842_v32  ;;  %v17896_v32 = vld [vmem:[%s22290_s3 + $0x344] ss:$8 sps:$4 sm:$0xff]  }
 0x2f6   : > { %2338 = vmatmul.mubr.bf16.gmra.mrb[20].mxu1 %v19230_v55 }
 0x2f7   : > { %2573 = vmatpush1.bf16.msra.mxu1 %v17840_v26  ;;  %2600 = vmatprep.mubr.bf16.mxu1 %v19048_v41  ;;  %v17857_v41 = vld [vmem:[%s22290_s3 + $0x274] ss:$8 sps:$4 sm:$0xff]   ;;  %v17894_v26 = vld [vmem:[%s22290_s3 + $0x340] ss:$8 sps:$4 sm:$0xff]  }
 0x2f8   : > { %2574 = vmatprep.subr.bf16.mxu1 %v17845_v53  ;;  %v17899_v53 = vld [vmem:[%s22290_s3 + $0x354] ss:$8 sps:$4 sm:$0xff]  }
 0x2fb   : > { %2575 = vmatpush1.bf16.msra.mxu1 %v17843_v35  ;;  %v17897_v35 = vld [vmem:[%s22290_s3 + $0x350] ss:$8 sps:$4 sm:$0xff]  }
 0x2fc   : > { %2576 = vmatprep.subr.bf16.mxu1 %v17848_v20  ;;  %v17902_v20 = vld [vmem:[%s22290_s3 + $0x364] ss:$8 sps:$4 sm:$0xff]  }
 0x2ff   : > { %2577 = vmatpush1.bf16.msra.mxu1 %v17846_v40  ;;  %v17900_v40 = vld [vmem:[%s22290_s3 + $0x360] ss:$8 sps:$4 sm:$0xff]  }
 0x300   : > { %2578 = vmatprep.subr.bf16.mxu1 %v17851_v2  ;;  %v17903_v2 = vld [vmem:[%s22290_s3 + $0x370] ss:$8 sps:$4 sm:$0xff]  }
 0x303   : > { %2579 = vmatpush1.bf16.msra.mxu1 %v17849_v9  ;;  %v17908_v9 = vld [vmem:[%s22290_s3 + $0x384] ss:$8 sps:$4 sm:$0xff]  }
 0x304   : > { %2580 = vmatprep.subr.bf16.mxu1 %v17854_v3  ;;  %v17906_v3 = vld [vmem:[%s22290_s3 + $0x380] ss:$8 sps:$4 sm:$0xff]  }
 0x307   : > { %2581 = vmatpush1.bf16.msra.mxu1 %v17852_v59  ;;  %v17911_v59 = vld [vmem:[%s22290_s3 + $0x394] ss:$8 sps:$4 sm:$0xff]  }
 0x308   : > { %2582 = vmatprep.subr.bf16.mxu1 %v17857_v41  ;;  %v17909_v41 = vld [vmem:[%s22290_s3 + $0x390] ss:$8 sps:$4 sm:$0xff]  }
 0x30b   : > { %2583 = vmatpush1.bf16.msra.mxu1 %v17855_v18  ;;  %v17914_v18 = vld [vmem:[%s22290_s3 + $0x3a4] ss:$8 sps:$4 sm:$0xff]  }
 0x30c   : > { %2584 = vmatprep.subr.bf16.mxu1 %v17860_v21  ;;  %v17912_v21 = vld [vmem:[%s22290_s3 + $0x3a0] ss:$8 sps:$4 sm:$0xff]  }
 0x30f   : > { %2585 = vmatpush1.bf16.msra.mxu1 %v17858_v24  ;;  %v17917_v24 = vld [vmem:[%s22290_s3 + $0x3b4] ss:$8 sps:$4 sm:$0xff]  }
 0x310   : > { %2586 = vmatprep.subr.bf16.mxu1 %v17863_v4  ;;  %v17915_v4 = vld [vmem:[%s22290_s3 + $0x3b0] ss:$8 sps:$4 sm:$0xff]  }
 0x313   : > { %2587 = vmatpush1.bf16.msra.mxu1 %v17861_v43  ;;  %v17920_v43 = vld [vmem:[%s22290_s3 + $0x3c4] ss:$8 sps:$4 sm:$0xff]  }
 0x314   : > { %2588 = vmatprep.subr.bf16.mxu1 %v17866_v5  ;;  %v17918_v5 = vld [vmem:[%s22290_s3 + $0x3c0] ss:$8 sps:$4 sm:$0xff]  }
 0x317   : > { %2589 = vmatpush1.bf16.msra.mxu1 %v17864_v7  ;;  %v17923_v7 = vld [vmem:[%s22290_s3 + $0x3d4] ss:$8 sps:$4 sm:$0xff]  }
 0x318   : > { %2590 = vmatprep.subr.bf16.mxu1 %v17869_v8  ;;  %v17921_v8 = vld [vmem:[%s22290_s3 + $0x3d0] ss:$8 sps:$4 sm:$0xff]  }
 0x31b   : > { %2591 = vmatpush1.bf16.msra.mxu1 %v17867_v39  ;;  %v17926_v39 = vld [vmem:[%s22290_s3 + $0x3e4] ss:$8 sps:$4 sm:$0xff]  }
 0x31c   : > { %2592 = vmatprep.subr.bf16.mxu1 %v17872_v58  ;;  %v17924_v58 = vld [vmem:[%s22290_s3 + $0x3e0] ss:$8 sps:$4 sm:$0xff]  }
 0x31f   : > { %2593 = vmatpush1.bf16.msra.mxu1 %v17870_v19  ;;  %v17929_v19 = vld [vmem:[%s22290_s3 + $0x3f4] ss:$8 sps:$4 sm:$0xff]  }
 0x320   : > { %2594 = vmatprep.subr.bf16.mxu1 %v17875_v60  ;;  %v17927_v60 = vld [vmem:[%s22290_s3 + $0x3f0] ss:$8 sps:$4 sm:$0xff]  }
 0x323   : > { %2595 = vmatpush1.bf16.msra.mxu1 %v17873_v22  ;;  %v17932_v22 = vld [vmem:[%s22290_s3 + $0x404] ss:$8 sps:$4 sm:$0xff]  }
 0x324   : > { %2596 = vmatprep.subr.bf16.mxu1 %v17878_v25  ;;  %v17930_v25 = vld [vmem:[%s22290_s3 + $0x400] ss:$8 sps:$4 sm:$0xff]  }
 0x327   : > { %2597 = vmatpush1.bf16.msra.mxu1 %v17876_v51  ;;  %v17935_v51 = vld [vmem:[%s22290_s3 + $0x414] ss:$8 sps:$4 sm:$0xff]  }
 0x328   : > { %2598 = vmatprep.subr.bf16.mxu1 %v17881_v63  ;;  %v17933_v63 = vld [vmem:[%s22290_s3 + $0x410] ss:$8 sps:$4 sm:$0xff]  }
 0x32b   : > { %2599 = vmatpush1.bf16.msra.mxu1 %v17879_v47  ;;  %v17938_v47 = vld [vmem:[%s22290_s3 + $0x424] ss:$8 sps:$4 sm:$0xff]  }
 0x32c   : > { %2841 = vmatprep.subr.bf16.mxu1 %v17884_v0  ;;  %v17936_v0 = vld [vmem:[%s22290_s3 + $0x420] ss:$8 sps:$4 sm:$0xff]  }
 0x32e   : > { %2601 = vmatmul.mubr.bf16.vlgmr.msra.gmra.mrb[16].mxu1 %v19058_v46  ;;  %v17891_v46 = vld [vmem:[%s22290_s3 + $0x330] ss:$8 sps:$4 sm:$0xff]  }
 0x32f   : > { %2610 = vmatprep.mubr.bf16.mxu1 %v19109_v45  ;;  %2842 = vmatpush1.bf16.msra.mxu1 %v17882_v1  ;;  %v17941_v1 = vld [vmem:[%s22290_s3 + $0x434] ss:$8 sps:$4 sm:$0xff]  }
 0x330   : > { %2843 = vmatprep.subr.bf16.mxu1 %v17887_v36  ;;  %v17942_v36 = vld [vmem:[%s22290_s3 + $0x440] ss:$8 sps:$4 sm:$0xff]  }
 0x333   : > { %2844 = vmatpush1.bf16.msra.mxu1 %v17885_v33  ;;  %v17947_v33 = vld [vmem:[%s22290_s3 + $0x454] ss:$8 sps:$4 sm:$0xff]  }
 0x334   : > { %2845 = vmatprep.subr.bf16.mxu1 %v17890_v52  ;;  %v17945_v52 = vld [vmem:[%s22290_s3 + $0x450] ss:$8 sps:$4 sm:$0xff]  }
 0x336   : > { %2611 = vmatmul.mubr.bf16.gmra.mrb[20].mxu1 %v19115_v49 }
 0x337   : > { %2846 = vmatpush1.bf16.msra.mxu1 %v17888_v57  ;;  %2873 = vmatprep.mubr.bf16.mxu1 %v19120_v56  ;;  %v17905_v56 = vld [vmem:[%s22290_s3 + $0x374] ss:$8 sps:$4 sm:$0xff]   ;;  %v17948_v57 = vld [vmem:[%s22290_s3 + $0x460] ss:$8 sps:$4 sm:$0xff]  }
 0x338   : > { %2847 = vmatprep.subr.bf16.mxu1 %v17893_v31  ;;  %v17951_v31 = vld [vmem:[%s22290_s3 + $0x470] ss:$8 sps:$4 sm:$0xff]  }
 0x33b   : > { %2848 = vmatpush1.bf16.msra.mxu1 %v17891_v46  ;;  %v17956_v46 = vld [vmem:[%s22290_s3 + $0x484] ss:$8 sps:$4 sm:$0xff]  }
 0x33c   : > { %2849 = vmatprep.subr.bf16.mxu1 %v17896_v32  ;;  %v17954_v32 = vld [vmem:[%s22290_s3 + $0x480] ss:$8 sps:$4 sm:$0xff]  }
 0x33f   : > { %2850 = vmatpush1.bf16.msra.mxu1 %v17894_v26  ;;  %v17959_v26 = vld [vmem:[%s22290_s3 + $0x494] ss:$8 sps:$4 sm:$0xff]  }
 0x340   : > { %2851 = vmatprep.subr.bf16.mxu1 %v17899_v53  ;;  %v17957_v53 = vld [vmem:[%s22290_s3 + $0x490] ss:$8 sps:$4 sm:$0xff]  }
 0x343   : > { %2852 = vmatpush1.bf16.msra.mxu1 %v17897_v35  ;;  %v17962_v35 = vld [vmem:[%s22290_s3 + $0x4a4] ss:$8 sps:$4 sm:$0xff]  }
 0x344   : > { %2853 = vmatprep.subr.bf16.mxu1 %v17902_v20  ;;  %v17960_v20 = vld [vmem:[%s22290_s3 + $0x4a0] ss:$8 sps:$4 sm:$0xff]  }
 0x347   : > { %2854 = vmatpush1.bf16.msra.mxu1 %v17900_v40  ;;  %v17965_v40 = vld [vmem:[%s22290_s3 + $0x4b4] ss:$8 sps:$4 sm:$0xff]  }
 0x348   : > { %2855 = vmatprep.subr.bf16.mxu1 %v17905_v56  ;;  %v17963_v56 = vld [vmem:[%s22290_s3 + $0x4b0] ss:$8 sps:$4 sm:$0xff]  }
 0x34b   : > { %2856 = vmatpush1.bf16.msra.mxu1 %v17903_v2  ;;  %v17968_v2 = vld [vmem:[%s22290_s3 + $0x4c4] ss:$8 sps:$4 sm:$0xff]  }
 0x34c   : > { %2857 = vmatprep.subr.bf16.mxu1 %v17908_v9  ;;  %v17966_v9 = vld [vmem:[%s22290_s3 + $0x4c0] ss:$8 sps:$4 sm:$0xff]  }
 0x34f   : > { %2858 = vmatpush1.bf16.msra.mxu1 %v17906_v3  ;;  %v17971_v3 = vld [vmem:[%s22290_s3 + $0x4d4] ss:$8 sps:$4 sm:$0xff]  }
 0x350   : > { %2859 = vmatprep.subr.bf16.mxu1 %v17911_v59  ;;  %v17969_v59 = vld [vmem:[%s22290_s3 + $0x4d0] ss:$8 sps:$4 sm:$0xff]  }
 0x353   : > { %2860 = vmatpush1.bf16.msra.mxu1 %v17909_v41  ;;  %v17974_v41 = vld [vmem:[%s22290_s3 + $0x4e4] ss:$8 sps:$4 sm:$0xff]  }
 0x354   : > { %2861 = vmatprep.subr.bf16.mxu1 %v17914_v18  ;;  %v17972_v18 = vld [vmem:[%s22290_s3 + $0x4e0] ss:$8 sps:$4 sm:$0xff]  }
 0x357   : > { %2862 = vmatpush1.bf16.msra.mxu1 %v17912_v21  ;;  %v17977_v21 = vld [vmem:[%s22290_s3 + $0x4f4] ss:$8 sps:$4 sm:$0xff]  }
 0x358   : > { %2863 = vmatprep.subr.bf16.mxu1 %v17917_v24  ;;  %v17975_v24 = vld [vmem:[%s22290_s3 + $0x4f0] ss:$8 sps:$4 sm:$0xff]  }
 0x35b   : > { %2864 = vmatpush1.bf16.msra.mxu1 %v17915_v4  ;;  %v17980_v4 = vld [vmem:[%s22290_s3 + $0x504] ss:$8 sps:$4 sm:$0xff]  }
 0x35c   : > { %2865 = vmatprep.subr.bf16.mxu1 %v17920_v43  ;;  %v17978_v43 = vld [vmem:[%s22290_s3 + $0x500] ss:$8 sps:$4 sm:$0xff]  }
 0x35f   : > { %2866 = vmatpush1.bf16.msra.mxu1 %v17918_v5  ;;  %v17983_v5 = vld [vmem:[%s22290_s3 + $0x514] ss:$8 sps:$4 sm:$0xff]  }
 0x360   : > { %2867 = vmatprep.subr.bf16.mxu1 %v17923_v7  ;;  %v17981_v7 = vld [vmem:[%s22290_s3 + $0x510] ss:$8 sps:$4 sm:$0xff]  }
 0x363   : > { %2868 = vmatpush1.bf16.msra.mxu1 %v17921_v8  ;;  %v17986_v8 = vld [vmem:[%s22290_s3 + $0x524] ss:$8 sps:$4 sm:$0xff]  }
 0x364   : > { %2869 = vmatprep.subr.bf16.mxu1 %v17926_v39  ;;  %v17984_v39 = vld [vmem:[%s22290_s3 + $0x520] ss:$8 sps:$4 sm:$0xff]  }
 0x367   : > { %2870 = vmatpush1.bf16.msra.mxu1 %v17924_v58  ;;  %v17989_v58 = vld [vmem:[%s22290_s3 + $0x534] ss:$8 sps:$4 sm:$0xff]  }
 0x368   : > { %2871 = vmatprep.subr.bf16.mxu1 %v17929_v19  ;;  %v17990_v19 = vld [vmem:[%s22290_s3 + $0x540] ss:$8 sps:$4 sm:$0xff]  }
 0x36b   : > { %2872 = vmatpush1.bf16.msra.mxu1 %v17927_v60  ;;  %v17995_v60 = vld [vmem:[%s22290_s3 + $0x554] ss:$8 sps:$4 sm:$0xff]  }
 0x36c   : > { %3095 = vmatprep.subr.bf16.mxu1 %v17932_v22  ;;  %v17993_v22 = vld [vmem:[%s22290_s3 + $0x550] ss:$8 sps:$4 sm:$0xff]  }
 0x36e   : > { %2874 = vmatmul.mubr.bf16.vlgmr.msra.gmra.mrb[16].mxu1 %v19126_v27  ;;  %v17939_v27 = vld [vmem:[%s22290_s3 + $0x430] ss:$8 sps:$4 sm:$0xff]  }
 0x36f   : > { %2883 = vmatprep.mubr.bf16.mxu1 %v19138_v30  ;;  %3096 = vmatpush1.bf16.msra.mxu1 %v17930_v25  ;;  %v17944_v30 = vld [vmem:[%s22290_s3 + $0x444] ss:$8 sps:$4 sm:$0xff]   ;;  %v17996_v25 = vld [vmem:[%s22290_s3 + $0x560] ss:$8 sps:$4 sm:$0xff]  }
 0x370   : > { %3097 = vmatprep.subr.bf16.mxu1 %v17935_v51  ;;  %v17999_v51 = vld [vmem:[%s22290_s3 + $0x570] ss:$8 sps:$4 sm:$0xff]  }
 0x373   : > { %3098 = vmatpush1.bf16.msra.mxu1 %v17933_v63  ;;  %v18004_v63 = vld [vmem:[%s22290_s3 + $0x584] ss:$8 sps:$4 sm:$0xff]  }
 0x374   : > { %3099 = vmatprep.subr.bf16.mxu1 %v17938_v47  ;;  %v18002_v47 = vld [vmem:[%s22290_s3 + $0x580] ss:$8 sps:$4 sm:$0xff]  }
 0x376   : > { %2884 = vmatmul.mubr.bf16.gmra.mrb[20].mxu1 %v19149_v54  ;;  %v17950_v54 = vld [vmem:[%s22290_s3 + $0x464] ss:$8 sps:$4 sm:$0xff]  }
 0x377   : > { %3100 = vmatpush1.bf16.msra.mxu1 %v17936_v0  ;;  %3127 = vmatprep.mubr.bf16.mxu1 %v18998_v50  ;;  %v17953_v50 = vld [vmem:[%s22290_s3 + $0x474] ss:$8 sps:$4 sm:$0xff]  }
 0x378   : > { %3101 = vmatprep.subr.bf16.mxu1 %v17941_v1  ;;  %v18007_v0 = vld [vmem:[%s22290_s3 + $0x594] ss:$8 sps:$4 sm:$0xff]   ;;  %v18005_v1 = vld [vmem:[%s22290_s3 + $0x590] ss:$8 sps:$4 sm:$0xff]  }
 0x37b   : > { %3102 = vmatpush1.bf16.msra.mxu1 %v17939_v27  ;;  %v18010_v27 = vld [vmem:[%s22290_s3 + $0x5a4] ss:$8 sps:$4 sm:$0xff]  }
 0x37c   : > { %3103 = vmatprep.subr.bf16.mxu1 %v17944_v30  ;;  %v18008_v30 = vld [vmem:[%s22290_s3 + $0x5a0] ss:$8 sps:$4 sm:$0xff]  }
 0x37f   : > { %3104 = vmatpush1.bf16.msra.mxu1 %v17942_v36  ;;  %v18013_v36 = vld [vmem:[%s22290_s3 + $0x5b4] ss:$8 sps:$4 sm:$0xff]  }
 0x380   : > { %3105 = vmatprep.subr.bf16.mxu1 %v17947_v33  ;;  %v18011_v33 = vld [vmem:[%s22290_s3 + $0x5b0] ss:$8 sps:$4 sm:$0xff]  }
 0x383   : > { %3106 = vmatpush1.bf16.msra.mxu1 %v17945_v52  ;;  %v18016_v52 = vld [vmem:[%s22290_s3 + $0x5c4] ss:$8 sps:$4 sm:$0xff]  }
 0x384   : > { %3107 = vmatprep.subr.bf16.mxu1 %v17950_v54  ;;  %v18014_v54 = vld [vmem:[%s22290_s3 + $0x5c0] ss:$8 sps:$4 sm:$0xff]  }
 0x387   : > { %3108 = vmatpush1.bf16.msra.mxu1 %v17948_v57  ;;  %v18019_v57 = vld [vmem:[%s22290_s3 + $0x5d4] ss:$8 sps:$4 sm:$0xff]  }
 0x388   : > { %3109 = vmatprep.subr.bf16.mxu1 %v17953_v50  ;;  %v18017_v50 = vld [vmem:[%s22290_s3 + $0x5d0] ss:$8 sps:$4 sm:$0xff]  }
 0x38b   : > { %3110 = vmatpush1.bf16.msra.mxu1 %v17951_v31  ;;  %v18022_v31 = vld [vmem:[%s22290_s3 + $0x5e4] ss:$8 sps:$4 sm:$0xff]  }
 0x38c   : > { %3111 = vmatprep.subr.bf16.mxu1 %v17956_v46  ;;  %v18020_v46 = vld [vmem:[%s22290_s3 + $0x5e0] ss:$8 sps:$4 sm:$0xff]  }
 0x38f   : > { %3112 = vmatpush1.bf16.msra.mxu1 %v17954_v32  ;;  %v18025_v32 = vld [vmem:[%s22290_s3 + $0x5f4] ss:$8 sps:$4 sm:$0xff]  }
 0x390   : > { %3113 = vmatprep.subr.bf16.mxu1 %v17959_v26  ;;  %v18023_v26 = vld [vmem:[%s22290_s3 + $0x5f0] ss:$8 sps:$4 sm:$0xff]  }
 0x393   : > { %3114 = vmatpush1.bf16.msra.mxu1 %v17957_v53  ;;  %v18028_v53 = vld [vmem:[%s22290_s3 + $0x604] ss:$8 sps:$4 sm:$0xff]  }
 0x394   : > { %3115 = vmatprep.subr.bf16.mxu1 %v17962_v35  ;;  %v18026_v35 = vld [vmem:[%s22290_s3 + $0x600] ss:$8 sps:$4 sm:$0xff]  }
 0x397   : > { %3116 = vmatpush1.bf16.msra.mxu1 %v17960_v20  ;;  %v18031_v20 = vld [vmem:[%s22290_s3 + $0x614] ss:$8 sps:$4 sm:$0xff]  }
 0x398   : > { %3117 = vmatprep.subr.bf16.mxu1 %v17965_v40  ;;  %v18029_v40 = vld [vmem:[%s22290_s3 + $0x610] ss:$8 sps:$4 sm:$0xff]  }
 0x39b   : > { %3118 = vmatpush1.bf16.msra.mxu1 %v17963_v56  ;;  %v18034_v56 = vld [vmem:[%s22290_s3 + $0x624] ss:$8 sps:$4 sm:$0xff]  }
 0x39c   : > { %3119 = vmatprep.subr.bf16.mxu1 %v17968_v2  ;;  %v18032_v2 = vld [vmem:[%s22290_s3 + $0x620] ss:$8 sps:$4 sm:$0xff]  }
 0x39f   : > { %3120 = vmatpush1.bf16.msra.mxu1 %v17966_v9  ;;  %v18037_v9 = vld [vmem:[%s22290_s3 + $0x634] ss:$8 sps:$4 sm:$0xff]  }
 0x3a0   : > { %3121 = vmatprep.subr.bf16.mxu1 %v17971_v3  ;;  %v18038_v3 = vld [vmem:[%s22290_s3 + $0x640] ss:$8 sps:$4 sm:$0xff]  }
 0x3a3   : > { %3122 = vmatpush1.bf16.msra.mxu1 %v17969_v59  ;;  %v18043_v59 = vld [vmem:[%s22290_s3 + $0x654] ss:$8 sps:$4 sm:$0xff]  }
 0x3a4   : > { %3123 = vmatprep.subr.bf16.mxu1 %v17974_v41  ;;  %v18041_v41 = vld [vmem:[%s22290_s3 + $0x650] ss:$8 sps:$4 sm:$0xff]  }
 0x3a7   : > { %3124 = vmatpush1.bf16.msra.mxu1 %v17972_v18  ;;  %v18044_v18 = vld [vmem:[%s22290_s3 + $0x660] ss:$8 sps:$4 sm:$0xff]  }
 0x3a8   : > { %3125 = vmatprep.subr.bf16.mxu1 %v17977_v21  ;;  %v18047_v21 = vld [vmem:[%s22290_s3 + $0x670] ss:$8 sps:$4 sm:$0xff]  }
 0x3ab   : > { %3126 = vmatpush1.bf16.msra.mxu1 %v17975_v24  ;;  %v18052_v24 = vld [vmem:[%s22290_s3 + $0x684] ss:$8 sps:$4 sm:$0xff]  }
 0x3ac   : > { %3374 = vmatprep.subr.bf16.mxu1 %v17980_v4  ;;  %v18050_v4 = vld [vmem:[%s22290_s3 + $0x680] ss:$8 sps:$4 sm:$0xff]  }
 0x3ae   : > { %3128 = vmatmul.mubr.bf16.vlgmr.msra.gmra.mrb[16].mxu1 %v18996_v48  ;;  %v17987_v48 = vld [vmem:[%s22290_s3 + $0x530] ss:$8 sps:$4 sm:$0xff]  }
 0x3af   : > { %3137 = vmatprep.mubr.bf16.mxu1 %v19034_v34  ;;  %3375 = vmatpush1.bf16.msra.mxu1 %v17978_v43  ;;  %v17992_v34 = vld [vmem:[%s22290_s3 + $0x544] ss:$8 sps:$4 sm:$0xff]   ;;  %v18055_v43 = vld [vmem:[%s22290_s3 + $0x694] ss:$8 sps:$4 sm:$0xff]  }
 0x3b0   : > { %3376 = vmatprep.subr.bf16.mxu1 %v17983_v5  ;;  %v18053_v5 = vld [vmem:[%s22290_s3 + $0x690] ss:$8 sps:$4 sm:$0xff]  }
 0x3b3   : > { %3377 = vmatpush1.bf16.msra.mxu1 %v17981_v7  ;;  %v18058_v7 = vld [vmem:[%s22290_s3 + $0x6a4] ss:$8 sps:$4 sm:$0xff]  }
 0x3b4   : > { %3378 = vmatprep.subr.bf16.mxu1 %v17986_v8  ;;  %v18056_v8 = vld [vmem:[%s22290_s3 + $0x6a0] ss:$8 sps:$4 sm:$0xff]  }
 0x3b6   : > { %3138 = vmatmul.mubr.bf16.gmra.mrb[20].mxu1 %v19029_v11  ;;  %v17998_v11 = vld [vmem:[%s22290_s3 + $0x564] ss:$8 sps:$4 sm:$0xff]  }
 0x3b7   : > { %3379 = vmatpush1.bf16.msra.mxu1 %v17984_v39  ;;  %3406 = vmatprep.mubr.bf16.mxu1 %v19152_v37  ;;  %v18001_v37 = vld [vmem:[%s22290_s3 + $0x574] ss:$8 sps:$4 sm:$0xff]  }
 0x3b8   : > { %3380 = vmatprep.subr.bf16.mxu1 %v17989_v58  ;;  %v18061_v39 = vld [vmem:[%s22290_s3 + $0x6b4] ss:$8 sps:$4 sm:$0xff]   ;;  %v18059_v58 = vld [vmem:[%s22290_s3 + $0x6b0] ss:$8 sps:$4 sm:$0xff]  }
 0x3bb   : > { %3381 = vmatpush1.bf16.msra.mxu1 %v17987_v48  ;;  %v18064_v48 = vld [vmem:[%s22290_s3 + $0x6c4] ss:$8 sps:$4 sm:$0xff]  }
 0x3bc   : > { %3382 = vmatprep.subr.bf16.mxu1 %v17992_v34  ;;  %v18062_v34 = vld [vmem:[%s22290_s3 + $0x6c0] ss:$8 sps:$4 sm:$0xff]  }
 0x3bf   : > { %3383 = vmatpush1.bf16.msra.mxu1 %v17990_v19  ;;  %v18067_v19 = vld [vmem:[%s22290_s3 + $0x6d4] ss:$8 sps:$4 sm:$0xff]  }
 0x3c0   : > { %3384 = vmatprep.subr.bf16.mxu1 %v17995_v60  ;;  %v18065_v60 = vld [vmem:[%s22290_s3 + $0x6d0] ss:$8 sps:$4 sm:$0xff]  }
 0x3c3   : > { %3385 = vmatpush1.bf16.msra.mxu1 %v17993_v22  ;;  %v18070_v22 = vld [vmem:[%s22290_s3 + $0x6e4] ss:$8 sps:$4 sm:$0xff]  }
 0x3c4   : > { %3386 = vmatprep.subr.bf16.mxu1 %v17998_v11  ;;  %v18068_v11 = vld [vmem:[%s22290_s3 + $0x6e0] ss:$8 sps:$4 sm:$0xff]  }
 0x3c7   : > { %3387 = vmatpush1.bf16.msra.mxu1 %v17996_v25  ;;  %v18073_v25 = vld [vmem:[%s22290_s3 + $0x6f4] ss:$8 sps:$4 sm:$0xff]  }
 0x3c8   : > { %3388 = vmatprep.subr.bf16.mxu1 %v18001_v37  ;;  %v18071_v37 = vld [vmem:[%s22290_s3 + $0x6f0] ss:$8 sps:$4 sm:$0xff]  }
 0x3cb   : > { %3389 = vmatpush1.bf16.msra.mxu1 %v17999_v51  ;;  %v18076_v51 = vld [vmem:[%s22290_s3 + $0x704] ss:$8 sps:$4 sm:$0xff]  }
 0x3cc   : > { %3390 = vmatprep.subr.bf16.mxu1 %v18004_v63  ;;  %v18074_v63 = vld [vmem:[%s22290_s3 + $0x700] ss:$8 sps:$4 sm:$0xff]  }
 0x3cf   : > { %3391 = vmatpush1.bf16.msra.mxu1 %v18002_v47  ;;  %v18079_v47 = vld [vmem:[%s22290_s3 + $0x714] ss:$8 sps:$4 sm:$0xff]  }
 0x3d0   : > { %3392 = vmatprep.subr.bf16.mxu1 %v18007_v0  ;;  %v18077_v0 = vld [vmem:[%s22290_s3 + $0x710] ss:$8 sps:$4 sm:$0xff]  }
 0x3d3   : > { %3393 = vmatpush1.bf16.msra.mxu1 %v18005_v1  ;;  %v18082_v1 = vld [vmem:[%s22290_s3 + $0x724] ss:$8 sps:$4 sm:$0xff]  }
 0x3d4   : > { %3394 = vmatprep.subr.bf16.mxu1 %v18010_v27  ;;  %v18080_v27 = vld [vmem:[%s22290_s3 + $0x720] ss:$8 sps:$4 sm:$0xff]  }
 0x3d7   : > { %3395 = vmatpush1.bf16.msra.mxu1 %v18008_v30  ;;  %v18085_v30 = vld [vmem:[%s22290_s3 + $0x734] ss:$8 sps:$4 sm:$0xff]  }
 0x3d8   : > { %3396 = vmatprep.subr.bf16.mxu1 %v18013_v36  ;;  %v18170_v36 = vld [vmem:[%s18684_s24 + $0x40] sm:$0xff]  }
 0x3d9   : > { %14993 = vmatprep.subr.bf16.mxu0 %v18170_v36  ;;  %v18154_v36 = vld [vmem:[%s22290_s3 + $0x8a4] ss:$8 sps:$4 sm:$0xff]  }
 0x3db   : > { %3397 = vmatpush1.bf16.msra.mxu1 %v18011_v33  ;;  %v18172_v33 = vld [vmem:[%s18684_s24 + $0x48] sm:$0xff]  }
 0x3dc   : > { %3398 = vmatprep.subr.bf16.mxu1 %v18016_v52  ;;  %v18088_v52 = vld [vmem:[%s22290_s3 + $0x744] ss:$8 sps:$4 sm:$0xff]  }
 0x3df   : > { %3399 = vmatpush1.bf16.msra.mxu1 %v18014_v54  ;;  %v18173_v54 = vld [vmem:[%s18684_s24 + $0x8] sm:$0xff]  }
 0x3e0   : > { %3400 = vmatprep.subr.bf16.mxu1 %v18019_v57  ;;  %v18086_v57 = vld [vmem:[%s22290_s3 + $0x740] ss:$8 sps:$4 sm:$0xff]  }
 0x3e3   : > { %3401 = vmatpush1.bf16.msra.mxu1 %v18017_v50  ;;  %v18091_v50 = vld [vmem:[%s22290_s3 + $0x754] ss:$8 sps:$4 sm:$0xff]  }
 0x3e4   : > { %3402 = vmatprep.subr.bf16.mxu1 %v18022_v31  ;;  %v18176_v31 = vld [vmem:[%s18684_s24 + $0x58] sm:$0xff]  }
 0x3e7   : > { %3403 = vmatpush1.bf16.msra.mxu1 %v18020_v46  ;;  %v18089_v46 = vld [vmem:[%s22290_s3 + $0x750] ss:$8 sps:$4 sm:$0xff]  }
 0x3e8   : > { %3404 = vmatprep.subr.bf16.mxu1 %v18025_v32  ;;  %v18094_v32 = vld [vmem:[%s22290_s3 + $0x764] ss:$8 sps:$4 sm:$0xff]  }
 0x3eb   : > { %3405 = vmatpush1.bf16.msra.mxu1 %v18023_v26  ;;  %v18177_v26 = vld [vmem:[%s18684_s24 + $0x18] sm:$0xff]  }
 0x3ec   : > { %3642 = vmatprep.subr.bf16.mxu1 %v18028_v53  ;;  %v18178_v53 = vld [vmem:[%s18684_s24 + $0x60] sm:$0xff]  }
 0x3ee   : > { %3407 = vmatmul.mubr.bf16.vlgmr.msra.gmra.mrb[16].mxu1 %v19156_v42  ;;  %v18035_v42 = vld [vmem:[%s22290_s3 + $0x630] ss:$8 sps:$4 sm:$0xff]  }
 0x3ef   : > { %3416 = vmatprep.mubr.bf16.mxu1 %v19159_v38  ;;  %3643 = vmatpush1.bf16.msra.mxu1 %v18026_v35  ;;  %v18040_v38 = vld [vmem:[%s22290_s3 + $0x644] ss:$8 sps:$4 sm:$0xff]   ;;  %v18092_v35 = vld [vmem:[%s22290_s3 + $0x760] ss:$8 sps:$4 sm:$0xff]  }
 0x3f0   : > { %3644 = vmatprep.subr.bf16.mxu1 %v18031_v20  ;;  %v18097_v20 = vld [vmem:[%s22290_s3 + $0x774] ss:$8 sps:$4 sm:$0xff]  }
 0x3f3   : > { %3645 = vmatpush1.bf16.msra.mxu1 %v18029_v40  ;;  %v18179_v40 = vld [vmem:[%s18684_s24 + $0x20] sm:$0xff]  }
 0x3f4   : > { %3646 = vmatprep.subr.bf16.mxu1 %v18034_v56  ;;  %v18180_v56 = vld [vmem:[%s18684_s24 + $0x68] sm:$0xff]  }
 0x3f6   : > { %3417 = vmatmul.mubr.bf16.gmra.mrb[20].mxu1 %v19162_v10  ;;  %v18046_v10 = vld [vmem:[%s22290_s3 + $0x664] ss:$8 sps:$4 sm:$0xff]  }
 0x3f7   : > { %3647 = vmatpush1.bf16.msra.mxu1 %v18032_v2  ;;  %3674 = vmatprep.mubr.bf16.mxu1 %v19221_v29  ;;  %v18049_v29 = vld [vmem:[%s22290_s3 + $0x674] ss:$8 sps:$4 sm:$0xff]   ;;  %v18095_v2 = vld [vmem:[%s22290_s3 + $0x770] ss:$8 sps:$4 sm:$0xff]  }
 0x3f8   : > { %3648 = vmatprep.subr.bf16.mxu1 %v18037_v9  ;;  %v18100_v9 = vld [vmem:[%s22290_s3 + $0x784] ss:$8 sps:$4 sm:$0xff]  }
 0x3fb   : > { %3649 = vmatpush1.bf16.msra.mxu1 %v18035_v42  ;;  %v18181_v42 = vld [vmem:[%s18684_s24 + $0x28] sm:$0xff]  }
 0x3fc   : > { %3650 = vmatprep.subr.bf16.mxu1 %v18040_v38  ;;  %v18098_v38 = vld [vmem:[%s22290_s3 + $0x780] ss:$8 sps:$4 sm:$0xff]  }
 0x3ff   : > { %3651 = vmatpush1.bf16.msra.mxu1 %v18038_v3  ;;  %v18103_v3 = vld [vmem:[%s22290_s3 + $0x794] ss:$8 sps:$4 sm:$0xff]  }
 0x400   : > { %3652 = vmatprep.subr.bf16.mxu1 %v18043_v59  ;;  %v18101_v59 = vld [vmem:[%s22290_s3 + $0x790] ss:$8 sps:$4 sm:$0xff]  }
 0x403   : > { %3653 = vmatpush1.bf16.msra.mxu1 %v18041_v41  ;;  %v18106_v41 = vld [vmem:[%s22290_s3 + $0x7a4] ss:$8 sps:$4 sm:$0xff]  }
 0x404   : > { %3654 = vmatprep.subr.bf16.mxu1 %v18046_v10  ;;  %v18104_v10 = vld [vmem:[%s22290_s3 + $0x7a0] ss:$8 sps:$4 sm:$0xff]  }
 0x407   : > { %3655 = vmatpush1.bf16.msra.mxu1 %v18044_v18  ;;  %v18109_v18 = vld [vmem:[%s22290_s3 + $0x7b4] ss:$8 sps:$4 sm:$0xff]  }
 0x408   : > { %3656 = vmatprep.subr.bf16.mxu1 %v18049_v29  ;;  %v18107_v29 = vld [vmem:[%s22290_s3 + $0x7b0] ss:$8 sps:$4 sm:$0xff]  }
 0x40b   : > { %3657 = vmatpush1.bf16.msra.mxu1 %v18047_v21  ;;  %v18112_v21 = vld [vmem:[%s22290_s3 + $0x7c4] ss:$8 sps:$4 sm:$0xff]  }
 0x40c   : > { %3658 = vmatprep.subr.bf16.mxu1 %v18052_v24  ;;  %v18110_v24 = vld [vmem:[%s22290_s3 + $0x7c0] ss:$8 sps:$4 sm:$0xff]  }
 0x40f   : > { %3659 = vmatpush1.bf16.msra.mxu1 %v18050_v4  ;;  %v18115_v4 = vld [vmem:[%s22290_s3 + $0x7d4] ss:$8 sps:$4 sm:$0xff]  }
 0x410   : > { %3660 = vmatprep.subr.bf16.mxu1 %v18055_v43  ;;  %v18113_v43 = vld [vmem:[%s22290_s3 + $0x7d0] ss:$8 sps:$4 sm:$0xff]  }
 0x413   : > { %3661 = vmatpush1.bf16.msra.mxu1 %v18053_v5  ;;  %v18118_v5 = vld [vmem:[%s22290_s3 + $0x7e4] ss:$8 sps:$4 sm:$0xff]  }
 0x414   : > { %3662 = vmatprep.subr.bf16.mxu1 %v18058_v7  ;;  %v18116_v7 = vld [vmem:[%s22290_s3 + $0x7e0] ss:$8 sps:$4 sm:$0xff]  }
 0x417   : > { %3663 = vmatpush1.bf16.msra.mxu1 %v18056_v8  ;;  %v18121_v8 = vld [vmem:[%s22290_s3 + $0x7f4] ss:$8 sps:$4 sm:$0xff]  }
 0x418   : > { %3664 = vmatprep.subr.bf16.mxu1 %v18061_v39  ;;  %v18119_v39 = vld [vmem:[%s22290_s3 + $0x7f0] ss:$8 sps:$4 sm:$0xff]  }
 0x41b   : > { %3665 = vmatpush1.bf16.msra.mxu1 %v18059_v58  ;;  %v18124_v58 = vld [vmem:[%s22290_s3 + $0x804] ss:$8 sps:$4 sm:$0xff]  }
 0x41c   : > { %3666 = vmatprep.subr.bf16.mxu1 %v18064_v48  ;;  %v18122_v48 = vld [vmem:[%s22290_s3 + $0x800] ss:$8 sps:$4 sm:$0xff]  }
 0x41f   : > { %3667 = vmatpush1.bf16.msra.mxu1 %v18062_v34  ;;  %v18127_v34 = vld [vmem:[%s22290_s3 + $0x814] ss:$8 sps:$4 sm:$0xff]  }
 0x420   : > { %3668 = vmatprep.subr.bf16.mxu1 %v18067_v19  ;;  %v18125_v19 = vld [vmem:[%s22290_s3 + $0x810] ss:$8 sps:$4 sm:$0xff]  }
 0x423   : > { %3669 = vmatpush1.bf16.msra.mxu1 %v18065_v60  ;;  %v18130_v60 = vld [vmem:[%s22290_s3 + $0x824] ss:$8 sps:$4 sm:$0xff]  }
 0x424   : > { %3670 = vmatprep.subr.bf16.mxu1 %v18070_v22  ;;  %v18128_v22 = vld [vmem:[%s22290_s3 + $0x820] ss:$8 sps:$4 sm:$0xff]  }
 0x427   : > { %3671 = vmatpush1.bf16.msra.mxu1 %v18068_v11  ;;  %v18133_v11 = vld [vmem:[%s22290_s3 + $0x834] ss:$8 sps:$4 sm:$0xff]  }
 0x428   : > { %3672 = vmatprep.subr.bf16.mxu1 %v18073_v25  ;;  %v18134_v25 = vld [vmem:[%s22290_s3 + $0x840] ss:$8 sps:$4 sm:$0xff]  }
 0x42b   : > { %3673 = vmatpush1.bf16.msra.mxu1 %v18071_v37  ;;  %v18139_v37 = vld [vmem:[%s22290_s3 + $0x854] ss:$8 sps:$4 sm:$0xff]  }
 0x42c   : > { %3904 = vmatprep.subr.bf16.mxu1 %v18076_v51  ;;  %v18137_v51 = vld [vmem:[%s22290_s3 + $0x850] ss:$8 sps:$4 sm:$0xff]  }
 0x42e   : > { %3675 = vmatmul.mubr.bf16.vlgmr.msra.gmra.mrb[16].mxu1 %v19230_v55  ;;  %v18171_v55 = vld [vmem:[%s18684_s24] sm:$0xff]  }
 0x42f   : > { %3684 = vmatprep.mubr.bf16.mxu1 %v19168_v28  ;;  %3905 = vmatpush1.bf16.msra.mxu1 %v18074_v63  ;;  %v18083_v28 = vld [vmem:[%s22290_s3 + $0x730] ss:$8 sps:$4 sm:$0xff]   ;;  %v18140_v63 = vld [vmem:[%s22290_s3 + $0x860] ss:$8 sps:$4 sm:$0xff]  }
 0x430   : > { %3906 = vmatprep.subr.bf16.mxu1 %v18079_v47  ;;  %14994 = vmatpush3.bf16.msra.mxu0 %v18171_v55  ;;  %v18143_v47 = vld [vmem:[%s22290_s3 + $0x870] ss:$8 sps:$4 sm:$0xff]   ;;  %v18152_v55 = vld [vmem:[%s22290_s3 + $0x8a0] ss:$8 sps:$4 sm:$0xff]  }
 0x431   : > { %14995 = vmatprep.subr.bf16.mxu0 %v18172_v33  ;;  %v18157_v33 = vld [vmem:[%s22290_s3 + $0x8b4] ss:$8 sps:$4 sm:$0xff]  }
 0x433   : > { %3907 = vmatpush1.bf16.msra.mxu1 %v18077_v0  ;;  %v18148_v0 = vld [vmem:[%s22290_s3 + $0x884] ss:$8 sps:$4 sm:$0xff]  }
 0x434   : > { %3908 = vmatprep.subr.bf16.mxu1 %v18082_v1  ;;  %14996 = vmatpush3.bf16.msra.mxu0 %v18173_v54  ;;  %v18146_v1 = vld [vmem:[%s22290_s3 + $0x880] ss:$8 sps:$4 sm:$0xff]  }
 0x435   : > { %v18158_v54 = vld [vmem:[%s22290_s3 + $0x8c0] ss:$8 sps:$4 sm:$0xff]  }
 0x436   : > { %3685 = vmatmul.mubr.bf16.gmra.mrb[20].mxu1 %v19183_v16  ;;  %v18174_v16 = vld [vmem:[%s18684_s24 + $0x50] sm:$0xff]  }
 0x437   : > { %3909 = vmatpush1.bf16.msra.mxu1 %v18080_v27  ;;  %3936 = vmatprep.mubr.bf16.mxu1 %v19068_v62  ;;  %v18175_v62 = vld [vmem:[%s18684_s24 + $0x10] sm:$0xff]  }
 0x438   : > { %3910 = vmatprep.subr.bf16.mxu1 %v18085_v30  ;;  %14997 = vmatprep.subr.bf16.mxu0 %v18174_v16  ;;  %v18151_v27 = vld [vmem:[%s22290_s3 + $0x894] ss:$8 sps:$4 sm:$0xff]   ;;  %v18149_v30 = vld [vmem:[%s22290_s3 + $0x890] ss:$8 sps:$4 sm:$0xff]  }
 0x439   : > { %14998 = vmatpush3.bf16.msra.mxu0 %v18175_v62  ;;  %v18163_v16 = vld [vmem:[%s22290_s3 + $0x8d4] ss:$8 sps:$4 sm:$0xff]   ;;  %v18164_v62 = vld [vmem:[%s22290_s3 + $0x8e0] ss:$8 sps:$4 sm:$0xff]  }
 0x43a   : > { %14999 = vmatprep.subr.bf16.mxu0 %v18176_v31  ;;  %v18169_v31 = vld [vmem:[%s22290_s3 + $0x8f4] ss:$8 sps:$4 sm:$0xff]  }
 0x43b   : > { %3911 = vmatpush1.bf16.msra.mxu1 %v18083_v28  ;;  %v18155_v28 = vld [vmem:[%s22290_s3 + $0x8b0] ss:$8 sps:$4 sm:$0xff]  }
 0x43c   : > { %3912 = vmatprep.subr.bf16.mxu1 %v18088_v52  ;;  %v18160_v52 = vld [vmem:[%s22290_s3 + $0x8c4] ss:$8 sps:$4 sm:$0xff]  }
 0x43d   : > { %15000 = vmatpush3.bf16.msra.mxu0 %v18177_v26  ;;  %v18183_v26 = vld [vmem:[%s18684_s24 + $0x30] sm:$0xff]  }
 0x43e   : > { %15001 = vmatprep.subr.bf16.mxu0 %v18178_v53  ;;  %v18184_v53 = vld [vmem:[%s18684_s24 + $0x78] sm:$0xff]  }
 0x43f   : > { %3913 = vmatpush1.bf16.msra.mxu1 %v18086_v57  ;;  %v18161_v57 = vld [vmem:[%s22290_s3 + $0x8d0] ss:$8 sps:$4 sm:$0xff]  }
 0x440   : > { %3914 = vmatprep.subr.bf16.mxu1 %v18091_v50  ;;  %v18166_v50 = vld [vmem:[%s22290_s3 + $0x8e4] ss:$8 sps:$4 sm:$0xff]  }
 0x441   : > { %15002 = vmatpush3.bf16.msra.mxu0 %v18179_v40  ;;  %v4229_v40 = vld [vmem:[%s22304_s8] sm:$0x3] }
 0x442   : > { %15003 = vmatprep.subr.bf16.mxu0 %v18180_v56 }
 0x443   : > { %3915 = vmatpush1.bf16.msra.mxu1 %v18089_v46  ;;  %v18167_v46 = vld [vmem:[%s22290_s3 + $0x8f0] ss:$8 sps:$4 sm:$0xff]  }
 0x444   : > { %3916 = vmatprep.subr.bf16.mxu1 %v18094_v32  ;;  %v18182_v32 = vld [vmem:[%s18684_s24 + $0x70] sm:$0xff]  }
 0x445   : > { %15004 = vmatpush3.bf16.msra.mxu0 %v18181_v42 }
 0x446   : > { %15005 = vmatprep.subr.bf16.mxu0 %v18182_v32  ;;  %v18212_v32 = vld [vmem:[%s22289_s6 + $0x40] sm:$0xff]  }
 0x447   : > { %3917 = vmatpush1.bf16.msra.mxu1 %v18092_v35  ;;  %v18185_v35 = vld [vmem:[%s18684_s24 + $0x38] sm:$0xff]  }
 0x448   : > { %3918 = vmatprep.subr.bf16.mxu1 %v18097_v20  ;;  %v18619_v20 = vmov 0.0  }
 0x449   : > { %15006 = vmatpush3.bf16.msra.mxu0 %v18183_v26 }
 0x44a   : > { %15007 = vmatprep.subr.bf16.mxu0 %v18184_v53  ;;  %v18201_v53 = vld [vmem:[%s22305_s18] sm:$0xff]  }
 0x44b   : > { %3919 = vmatpush1.bf16.msra.mxu1 %v18095_v2 }
 0x44c   : > { %3920 = vmatprep.subr.bf16.mxu1 %v18100_v9 }
 0x44d   : > { %15008 = vmatpush3.bf16.msra.mxu0 %v18185_v35  ;;  %v18213_v35 = vld [vmem:[%s22289_s6 + $0x48] sm:$0xff]  }
 0x44e   : > { %15723 = vmatprep.subr.bf16.mxu0 %v18619_v20 }
 0x44f   : > { %3921 = vmatpush1.bf16.msra.mxu1 %v18098_v38 }
 0x450   : > { %3922 = vmatprep.subr.bf16.mxu1 %v18103_v3 }
 0x453   : > { %3923 = vmatpush1.bf16.msra.mxu1 %v18101_v59 }
 0x454   : > { %3924 = vmatprep.subr.bf16.mxu1 %v18106_v41 }
 0x457   : > { %3925 = vmatpush1.bf16.msra.mxu1 %v18104_v10 }
 0x458   : > { %3926 = vmatprep.subr.bf16.mxu1 %v18109_v18  ;;  %v18186_v18 = vld [vmem:[%s18898_s2] sm:$0xff]  }
 0x45b   : > { %3927 = vmatpush1.bf16.msra.mxu1 %v18107_v29 }
 0x45c   : > { %3928 = vmatprep.subr.bf16.mxu1 %v18112_v21 }
 0x45f   : > { %3929 = vmatpush1.bf16.msra.mxu1 %v18110_v24 }
 0x460   : > { %3930 = vmatprep.subr.bf16.mxu1 %v18115_v4  ;;  %v18187_v4 = vld [vmem:[%s18898_s2 + $0x8] sm:$0xff]  }
 0x463   : > { %3931 = vmatpush1.bf16.msra.mxu1 %v18113_v43 }
 0x464   : > { %3932 = vmatprep.subr.bf16.mxu1 %v18118_v5 }
 0x467   : > { %3933 = vmatpush1.bf16.msra.mxu1 %v18116_v7 }
 0x468   : > { %3934 = vmatprep.subr.bf16.mxu1 %v18121_v8 }
 0x46b   : > { %3935 = vmatpush1.bf16.msra.mxu1 %v18119_v39 }
 0x46c   : > { %4168 = vmatprep.subr.bf16.mxu1 %v18124_v58 }
 0x46e   : > { %3937 = vmatmul.mubr.bf16.vlgmr.msra.gmra.mrb[16].mxu1 %v19080_v61  ;;  %v18131_v61 = vld [vmem:[%s22290_s3 + $0x830] ss:$8 sps:$4 sm:$0xff]  }
 0x46f   : > { %3946 = vmatprep.mubr.bf16.mxu1 %v19173_v23  ;;  %4169 = vmatpush1.bf16.msra.mxu1 %v18122_v48  ;;  %v18136_v23 = vld [vmem:[%s22290_s3 + $0x844] ss:$8 sps:$4 sm:$0xff]   ;;  %v18188_v48 = vld [vmem:[%s18898_s2 + $0x10] sm:$0xff]  }
 0x470   : > { %4170 = vmatprep.subr.bf16.mxu1 %v18127_v34  ;;  %v18189_v34 = vld [vmem:[%s18898_s2 + $0x18] sm:$0xff]   ;;  %s22311_s2 = sld [smem:[#allocation19_spill]] }
 0x473   : > { %4171 = vmatpush1.bf16.msra.mxu1 %v18125_v19  ;;  %v18190_v19 = vld [vmem:[%s18709_s27] sm:$0xff]  }
 0x474   : > { %4172 = vmatprep.subr.bf16.mxu1 %v18130_v60  ;;  %v18191_v60 = vld [vmem:[%s18709_s27 + $0x8] sm:$0xff]  }
 0x476   : > { %3947 = vmatmul.mubr.bf16.gmra.mrb[20].mxu1 %v19178_v14  ;;  %v18142_v14 = vld [vmem:[%s22290_s3 + $0x864] ss:$8 sps:$4 sm:$0xff]  }
 0x477   : > { %4173 = vmatpush1.bf16.msra.mxu1 %v18128_v22  ;;  %4200 = vmatprep.mubr.bf16.mxu1 %v19109_v45  ;;  %v18145_v45 = vld [vmem:[%s22290_s3 + $0x874] ss:$8 sps:$4 sm:$0xff]   ;;  %s22099_s3 = sld [smem:[#allocation2 + $0x101]] }
 0x478   : > { %4174 = vmatprep.subr.bf16.mxu1 %v18133_v11  ;;  %v18192_v22 = vld [vmem:[%s18709_s27 + $0x10] sm:$0xff]   ;;  %v18193_v11 = vld [vmem:[%s18709_s27 + $0x18] sm:$0xff]  }
 0x47b   : > { %4175 = vmatpush1.bf16.msra.mxu1 %v18131_v61  ;;  %v18194_v61 = vld [vmem:[%s18709_s27 + $0x20] sm:$0xff]  }
 0x47c   : > { %4176 = vmatprep.subr.bf16.mxu1 %v18136_v23  ;;  %v18195_v23 = vld [vmem:[%s18709_s27 + $0x28] sm:$0xff]  }
 0x47f   : > { %4177 = vmatpush1.bf16.msra.mxu1 %v18134_v25  ;;  %v18196_v25 = vld [vmem:[%s18709_s27 + $0x30] sm:$0xff]  }
 0x480   : > { %4178 = vmatprep.subr.bf16.mxu1 %v18139_v37  ;;  %v18197_v37 = vld [vmem:[%s18709_s27 + $0x38] sm:$0xff]  }
 0x483   : > { %4179 = vmatpush1.bf16.msra.mxu1 %v18137_v51  ;;  %v18198_v51 = vld [vmem:[%s18709_s27 + $0x40] sm:$0xff]  }
 0x484   : > { %4180 = vmatprep.subr.bf16.mxu1 %v18142_v14  ;;  %v18199_v14 = vld [vmem:[%s18709_s27 + $0x48] sm:$0xff]  }
 0x487   : > { %4181 = vmatpush1.bf16.msra.mxu1 %v18140_v63  ;;  %v18200_v63 = vld [vmem:[%s18709_s27 + $0x50] sm:$0xff]  }
 0x488   : > { %4182 = vmatprep.subr.bf16.mxu1 %v18145_v45 }
 0x48b   : > { %4183 = vmatpush1.bf16.msra.mxu1 %v18143_v47 }
 0x48c   : > { %4184 = vmatprep.subr.bf16.mxu1 %v18148_v0 }
 0x48f   : > { %4185 = vmatpush1.bf16.msra.mxu1 %v18146_v1 }
 0x490   : > { %4186 = vmatprep.subr.bf16.mxu1 %v18151_v27  ;;  %v14227_v27 = vld [vmem:[%s18689_s30] ss:$0 sm:$0xff] }
 0x493   : > { %4187 = vmatpush1.bf16.msra.mxu1 %v18149_v30 }
 0x494   : > { %4188 = vmatprep.subr.bf16.mxu1 %v18154_v36 }
 0x497   : > { %4189 = vmatpush1.bf16.msra.mxu1 %v18152_v55 }
 0x498   : > { %4190 = vmatprep.subr.bf16.mxu1 %v18157_v33 }
 0x49b   : > { %4191 = vmatpush1.bf16.msra.mxu1 %v18155_v28 }
 0x49c   : > { %4192 = vmatprep.subr.bf16.mxu1 %v18160_v52 }
 0x49f   : > { %4193 = vmatpush1.bf16.msra.mxu1 %v18158_v54 }
 0x4a0   : > { %4194 = vmatprep.subr.bf16.mxu1 %v18163_v16 }
 0x4a3   : > { %4195 = vmatpush1.bf16.msra.mxu1 %v18161_v57 }
 0x4a4   : > { %4196 = vmatprep.subr.bf16.mxu1 %v18166_v50 }
 0x4a7   : > { %4197 = vmatpush1.bf16.msra.mxu1 %v18164_v62 }
 0x4a8   : > { %4198 = vmatprep.subr.bf16.mxu1 %v18169_v31 }
 0x4ab   : > { %4199 = vmatpush1.bf16.msra.mxu1 %v18167_v46 }
 0x4ac   : > { %7445 = vmatprep.subr.bf16.mxu1 %v18618_v6 }
 0x4ae   : > { %4201 = vmatmul.mubr.bf16.vlgmr.msra.gmra.mrb[16].mxu1 %v19115_v49  ;;  %v4238_v49 = vrot.slane %v4229_v40, %v1100_v15 }
 0x4af   : > { %4210 = vmatprep.mubr.bf16.mxu1 %v19187_v44  ;;  %v4234_v44 = vrot.slane %v4229_v40, %v18923_v13  ;;  %v18202_v40 = vld [vmem:[%s22305_s18 + $0x8] sm:$0xff]  }
 0x4b6   : > { %4211 = vmatmul.mubr.bf16.gmra.mrb[20].mxu1 %v19190_v17 }
 0x581   : > { %v4202_v56 = vpop.f32.mrb[16].mxu1 }
 0x582   : > { %v4204_v17 = vpop.f32.mrb[17].mxu1  ;;  %v4241_v42 = vadd.f32 %v4234_v44, %v4202_v56  ;;  %v18205_v56 = vld [vmem:[%s22305_s18 + $0x20] sm:$0xff]  }
 0x583   : > { %v4242_v2 = vadd.f32 %v4238_v49, %v4204_v17  ;;  %v4206_v9 = vpop.f32.mrb[18].mxu1  ;;  %v18206_v17 = vld [vmem:[%s22305_s18 + $0x28] sm:$0xff]  }
 0x584   : > { %v4243_v38 = vadd.f32 %v4234_v44, %v4206_v9  ;;  %v4208_v3 = vpop.f32.mrb[19].mxu1  ;;  %v18208_v9 = vld [vmem:[%s22305_s18 + $0x38] sm:$0xff]  }
 0x585   : > { %v4244_v59 = vadd.f32 %v4238_v49, %v4208_v3  ;;  %v18211_v3 = vld [vmem:[%s22305_s18 + $0x50] sm:$0xff]  }
 0x586   : > { %v4249_v41 = vpack.c.bf16 %v4243_v38, %v4241_v42  ;;  %v18209_v42 = vld [vmem:[%s22305_s18 + $0x40] sm:$0xff]   ;;  %v18210_v38 = vld [vmem:[%s22305_s18 + $0x48] sm:$0xff]  }
 0x587   : > { %v4250_v10 = vpack.c.bf16 %v4244_v59, %v4242_v2  ;;  %v18207_v2 = vld [vmem:[%s22305_s18 + $0x30] sm:$0xff]  }
 0x588   : > { %v18214_v59 = vld [vmem:[%s22289_s6 + $0x50] sm:$0xff]  }
 0x589   : > { %v4212_v29 = vpop.f32.mrb[20].mxu1  ;;  %4420 = vmatprep.mubr.bf16.mxu0 %v4250_v10  ;;  %v18216_v10 = vld [vmem:[%s22289_s6 + $0x60] sm:$0xff]  }
 0x58a   : > { %v4214_v21 = vpop.f32.mrb[21].mxu1  ;;  %4421 = vmatmul.mubr.bf16.vlgmr.msra.gmra.mrb[20].mxu0 %v4249_v41  ;;  %v4245_v43 = vadd.f32 %v4234_v44, %v4212_v29  ;;  %v18215_v41 = vld [vmem:[%s22289_s6 + $0x58] sm:$0xff]   ;;  %v18218_v29 = vld [vmem:[%s22289_s6 + $0x70] sm:$0xff]  }
 0x58b   : > { %v4246_v15 = vadd.f32 %v4238_v49, %v4214_v21  ;;  %v4216_v24 = vpop.f32.mrb[22].mxu1  ;;  %15724 = vmatpush3.bf16.msra.mxu0 %v18186_v18  ;;  %v18217_v18 = vld [vmem:[%s22289_s6 + $0x68] sm:$0xff]   ;;  %v18220_v21 = vld [vmem:[%s22289_s6] sm:$0xff]  }
 0x58c   : > { %v4247_v5 = vadd.f32 %v4234_v44, %v4216_v24  ;;  %v4218_v7 = vpop.f32.mrb[23].mxu1  ;;  %15725 = vmatprep.subr.bf16.mxu0 %v18619_v20  ;;  %v18204_v44 = vld [vmem:[%s22305_s18 + $0x18] sm:$0xff]  }
 0x58d   : > { %v4248_v8 = vadd.f32 %v4238_v49, %v4218_v7  ;;  %v18203_v49 = vld [vmem:[%s22305_s18 + $0x10] sm:$0xff]  }
 0x58e   : > { %v4251_v39 = vpack.c.bf16 %v4247_v5, %v4245_v43 }
 0x58f   : > { %v4252_v58 = vpack.c.bf16 %v4248_v8, %v4246_v15  ;;  %15726 = vmatpush3.bf16.msra.mxu0 %v18187_v4 }
 0x590   : > { %15727 = vmatprep.subr.bf16.mxu0 %v18619_v20 }
 0x591   : > { %4428 = vmatprep.mubr.bf16.mxu0 %v4252_v58 }
 0x592   : > { %4429 = vmatmul.mubr.bf16.gmra.mrb[24].mxu0 %v4251_v39 }
 0x593   : > { %15728 = vmatpush3.bf16.msra.mxu0 %v18188_v48  ;;  %15731 = vmatprep.mubr.msk.bf16.mxu0 %vm18620_vm6, %v18619_v20 }
 0x594   : > { %15729 = vmatprep.subr.bf16.mxu0 %v18619_v20 }
 0x597   : > { %15730 = vmatpush3.bf16.msra.mxu0 %v18189_v34 }
 0x598   : > { %15775 = vmatprep.subr.bf16.mxu0 %v18619_v20 }
 0x59a   : > { %15732 = vmatmul.mubr.msk.bf16.vlgmr.msra.gmra.mrb[28].mxu0 %vm4570_vm7, %v18190_v19 }
 0x59b   : > { %15735 = vmatprep.mubr.msk.bf16.mxu0 %vm18620_vm6, %v18619_v20 }
 0x5a2   : > { %15736 = vmatmul.mubr.msk.bf16.gmra.mrb[32].mxu0 %vm4570_vm7, %v18191_v60 }
 0x5a3   : > { %15739 = vmatprep.mubr.msk.bf16.mxu0 %vm18620_vm6, %v18619_v20 }
 0x5aa   : > { %15740 = vmatmul.mubr.msk.bf16.gmra.mrb[36].mxu0 %vm4570_vm7, %v18192_v22 }
 0x5ab   : > { %15743 = vmatprep.mubr.msk.bf16.mxu0 %vm18620_vm6, %v18619_v20 }
 0x5b2   : > { %15744 = vmatmul.mubr.msk.bf16.gmra.mrb[40].mxu0 %vm4570_vm7, %v18193_v11 }
 0x5b3   : > { %15747 = vmatprep.mubr.msk.bf16.mxu0 %vm18620_vm6, %v18619_v20 }
 0x5ba   : > { %15748 = vmatmul.mubr.msk.bf16.gmra.mrb[44].mxu0 %vm4570_vm7, %v18194_v61 }
 0x5bb   : > { %15751 = vmatprep.mubr.msk.bf16.mxu0 %vm18620_vm6, %v18619_v20 }
 0x5c2   : > { %15752 = vmatmul.mubr.msk.bf16.gmra.mrb[48].mxu0 %vm4570_vm7, %v18195_v23 }
 0x5c3   : > { %15755 = vmatprep.mubr.msk.bf16.mxu0 %vm18620_vm6, %v18619_v20 }
 0x5ca   : > { %15756 = vmatmul.mubr.msk.bf16.gmra.mrb[52].mxu0 %vm4570_vm7, %v18196_v25 }
 0x5cb   : > { %15759 = vmatprep.mubr.msk.bf16.mxu0 %vm18620_vm6, %v18619_v20 }
 0x5d2   : > { %15760 = vmatmul.mubr.msk.bf16.gmra.mrb[56].mxu0 %vm4570_vm7, %v18197_v37 }
 0x5d3   : > { %15763 = vmatprep.mubr.msk.bf16.mxu0 %vm18620_vm6, %v18619_v20 }
 0x5da   : > { %15764 = vmatmul.mubr.msk.bf16.gmra.mrb[60].mxu0 %vm4570_vm7, %v18198_v51 }
 0x5db   : > { %15767 = vmatprep.mubr.msk.bf16.mxu0 %vm18620_vm6, %v18619_v20 }
 0x5e2   : > { %15768 = vmatmul.mubr.msk.bf16.gmra.mrb[64].mxu0 %vm4570_vm7, %v18199_v14 }
 0x5e3   : > { %15771 = vmatprep.mubr.msk.bf16.mxu0 %vm18620_vm6, %v18619_v20 }
 0x5ea   : > { %15772 = vmatmul.mubr.msk.bf16.gmra.mrb[68].mxu0 %vm4570_vm7, %v18200_v63 }
 0x5eb   : > { %15779 = vmatprep.mubr.msk.bf16.mxu0 %vm18620_vm6, %v18619_v20 }
 0x65d   : > { %v15009_v45 = vpop.f32.mrb[20].mxu0 }
 0x65e   : > { %v15010_v47 = vpop.f32.mrb[21].mxu0 }
 0x65f   : > { %v15011_v0 = vadd.f32 %v15010_v47, %v15009_v45  ;;  %v15012_v1 = vpop.f32.mrb[22].mxu0 }
 0x660   : > { %v15013_v30 = vpop.f32.mrb[23].mxu0 }
 0x661   : > { %v15014_v36 = vadd.f32 %v15013_v30, %v15012_v1  ;;  %v4423_v55 = vadd.f32 %v15011_v0, %v14227_v27 }
 0x663   : > { %v4426_v33 = vadd.f32 %v15014_v36, %v14227_v27 }
 0x665   : > { %v4437_v28 = vpack.c.bf16 %v4426_v33, %v4423_v55  ;;  %v15015_v52 = vpop.f32.mrb[24].mxu0 }
 0x666   : > { %v15016_v54 = vpop.f32.mrb[25].mxu0 }
 0x667   : > { %v15017_v16 = vadd.f32 %v15016_v54, %v15015_v52  ;;  %v15018_v57 = vpop.f32.mrb[26].mxu0  ;;  %15776 = vmatpush3.bf16.msra.mxu0 %v4437_v28 }
 0x668   : > { %v15019_v50 = vpop.f32.mrb[27].mxu0  ;;  %15777 = vmatprep.subr.bf16.mxu0 %v18619_v20 }
 0x669   : > { %v15020_v62 = vadd.f32 %v15019_v50, %v15018_v57  ;;  %v4431_v31 = vadd.f32 %v15017_v16, %v14227_v27 }
 0x66b   : > { %v4434_v46 = vadd.f32 %v15020_v62, %v14227_v27 }
 0x66d   : > { %v4438_v26 = vpack.c.bf16 %v4434_v46, %v4431_v31 }
 0x66f   : > { %15778 = vmatpush3.bf16.msra.mxu0 %v4438_v26 }
 0x670   : > { %15823 = vmatprep.subr.bf16.mxu0 %v18212_v32 }
 0x672   : > { %15780 = vmatmul.mubr.msk.bf16.vlgmr.msra.gmra.mrb[28].mxu0 %vm4780_vm8, %v18201_v53 }
 0x673   : > { %15783 = vmatprep.mubr.msk.bf16.mxu0 %vm18620_vm6, %v18619_v20  ;;  %15824 = vmatpush3.bf16.msra.mxu0 %v18212_v32 }
 0x674   : > { %15825 = vmatprep.subr.bf16.mxu0 %v18213_v35 }
 0x677   : > { %15826 = vmatpush3.bf16.msra.mxu0 %v18213_v35  ;;  %v18221_v35 = vld [vmem:[%s22289_s6 + $0x8] sm:$0xff]  }
 0x678   : > { %15827 = vmatprep.subr.bf16.mxu0 %v18214_v59 }
 0x67a   : > { %15784 = vmatmul.mubr.msk.bf16.gmra.mrb[32].mxu0 %vm4780_vm8, %v18202_v40 }
 0x67b   : > { %15787 = vmatprep.mubr.msk.bf16.mxu0 %vm18620_vm6, %v18619_v20  ;;  %15828 = vmatpush3.bf16.msra.mxu0 %v18214_v59 }
 0x67c   : > { %15829 = vmatprep.subr.bf16.mxu0 %v18215_v41 }
 0x67f   : > { %15830 = vmatpush3.bf16.msra.mxu0 %v18215_v41 }
 0x680   : > { %15831 = vmatprep.subr.bf16.mxu0 %v18216_v10 }
 0x682   : > { %15788 = vmatmul.mubr.msk.bf16.gmra.mrb[36].mxu0 %vm4780_vm8, %v18203_v49 }
 0x683   : > { %15791 = vmatprep.mubr.msk.bf16.mxu0 %vm18620_vm6, %v18619_v20  ;;  %15832 = vmatpush3.bf16.msra.mxu0 %v18216_v10 }
 0x684   : > { %15833 = vmatprep.subr.bf16.mxu0 %v18217_v18 }
 0x687   : > { %15834 = vmatpush3.bf16.msra.mxu0 %v18217_v18 }
 0x688   : > { %15835 = vmatprep.subr.bf16.mxu0 %v18218_v29 }
 0x68a   : > { %15792 = vmatmul.mubr.msk.bf16.gmra.mrb[40].mxu0 %vm4780_vm8, %v18204_v44 }
 0x68b   : > { %15795 = vmatprep.mubr.msk.bf16.mxu0 %vm18620_vm6, %v18619_v20  ;;  %15836 = vmatpush3.bf16.msra.mxu0 %v18218_v29 }
 0x692   : > { %15796 = vmatmul.mubr.msk.bf16.gmra.mrb[44].mxu0 %vm4780_vm8, %v18205_v56 }
 0x693   : > { %15799 = vmatprep.mubr.msk.bf16.mxu0 %vm18620_vm6, %v18619_v20 }
 0x69a   : > { %15800 = vmatmul.mubr.msk.bf16.gmra.mrb[48].mxu0 %vm4780_vm8, %v18206_v17 }
 0x69b   : > { %15803 = vmatprep.mubr.msk.bf16.mxu0 %vm18620_vm6, %v18619_v20 }
 0x6a2   : > { %15804 = vmatmul.mubr.msk.bf16.gmra.mrb[52].mxu0 %vm4780_vm8, %v18207_v2 }
 0x6a3   : > { %15807 = vmatprep.mubr.msk.bf16.mxu0 %vm18620_vm6, %v18619_v20 }
 0x6aa   : > { %15808 = vmatmul.mubr.msk.bf16.gmra.mrb[56].mxu0 %vm4780_vm8, %v18208_v9 }
 0x6ab   : > { %15811 = vmatprep.mubr.msk.bf16.mxu0 %vm18620_vm6, %v18619_v20 }
 0x6b2   : > { %15812 = vmatmul.mubr.msk.bf16.gmra.mrb[60].mxu0 %vm4780_vm8, %v18209_v42 }
 0x6b3   : > { %15815 = vmatprep.mubr.msk.bf16.mxu0 %vm18620_vm6, %v18619_v20 }
 0x6ba   : > { %15816 = vmatmul.mubr.msk.bf16.gmra.mrb[64].mxu0 %vm4780_vm8, %v18210_v38  ;;  %v18222_v38 = vld [vmem:[%s22289_s6 + $0x10] sm:$0xff]  }
 0x6bb   : > { %15819 = vmatprep.mubr.msk.bf16.mxu0 %vm18620_vm6, %v18619_v20  ;;  %v18219_v20 = vld [vmem:[%s22289_s6 + $0x78] sm:$0xff]  }
 0x6bc   : > { %15837 = vmatprep.subr.bf16.mxu0 %v18219_v20 }
 0x6bd   : > { %15838 = vmatpush3.bf16.msra.mxu0 %v18219_v20 }
 0x6be   : > { %15855 = vmatprep.subr.bf16.mxu0 %v18220_v21 }
 0x6c2   : > { %15820 = vmatmul.mubr.msk.bf16.gmra.mrb[68].mxu0 %vm4780_vm8, %v18211_v3 }
 0x745   : > { %v4848_v15 = vpop.f32.mrb[28].mxu0 }
 0x746   : > { %v15781_v24 = vpop.f32.mrb[29].mxu0 }
 0x747   : > { %v4851_v4 = vpop.f32.mrb[30].mxu0  ;;  %v18223_v24 = vld [vmem:[%s22289_s6 + $0x18] sm:$0xff]  }
 0x748   : > { %v4935_v43 = vpack.c.bf16 %v4851_v4, %v4848_v15  ;;  %v15782_v5 = vpop.f32.mrb[31].mxu0 }
 0x74a   : > { %v5159_v7 = vshrl.u32 %v4935_v43, 16  ;;  %v5162_v8 = vshll.u32 %v4935_v43, 16  ;;  %v4988_v51 = vrot.slane %v4935_v43, 4 }
 0x74c   : > { %v5161_v60 = vrot.slane %v5159_v7, 3  ;;  %v5164_v22 = vrot.slane %v5162_v8, 4  ;;  %v5408_v11 = vrot.slane %v5159_v7, 4  ;;  %v5409_v61 = vrot.slane %v5162_v8, 5 }
 0x74d   : > { %v4856_v39 = vpop.f32.mrb[32].mxu0 }
 0x74e   : > { %v15785_v58 = vpop.f32.mrb[33].mxu0  ;;  %v5165_v30 = vor.u32 %v5164_v22, %v5161_v60  ;;  %v5410_v55 = vor.u32 %v5409_v61, %v5408_v11 }
 0x74f   : > { %v4859_v48 = vpop.f32.mrb[34].mxu0 }
 0x750   : > { %v4936_v34 = vpack.c.bf16 %v4859_v48, %v4856_v39  ;;  %v15786_v19 = vpop.f32.mrb[35].mxu0 }
 0x752   : > { %v4989_v23 = vrot.slane %v4936_v34, 4  ;;  %v5167_v25 = vshrl.u32 %v4936_v34, 16  ;;  %v5170_v37 = vshll.u32 %v4936_v34, 16  ;;  %v18224_v34 = vld [vmem:[%s22289_s6 + $0x20] sm:$0xff]  }
 0x754   : > { %v5169_v14 = vrot.slane %v5167_v25, 3  ;;  %v5172_v63 = vrot.slane %v5170_v37, 4  ;;  %v5411_v45 = vrot.slane %v5167_v25, 4  ;;  %v5412_v47 = vrot.slane %v5170_v37, 5 }
 0x755   : > { %v4864_v0 = vpop.f32.mrb[36].mxu0  ;;  %v4990_v1 = vsel %vm1850_vm1, %v4988_v51, %v4989_v23 }
 0x756   : > { %15839 = vmatprep.mubr.bf16.mxu0 %v4990_v1  ;;  %v15789_v27 = vpop.f32.mrb[37].mxu0  ;;  %v5173_v36 = vor.u32 %v5172_v63, %v5169_v14  ;;  %v5413_v33 = vor.u32 %v5412_v47, %v5411_v45  ;;  %v18225_v14 = vld [vmem:[%s22289_s6 + $0x28] sm:$0xff]  }
 0x757   : > { %v4867_v28 = vpop.f32.mrb[38].mxu0 }
 0x758   : > { %v4937_v52 = vpack.c.bf16 %v4867_v28, %v4864_v0  ;;  %v15790_v54 = vpop.f32.mrb[39].mxu0  ;;  %v19609_v16 = vsel %vm2078_vm2, %v5165_v30, %v5173_v36  ;;  %v19612_v57 = vsel %vm2381_vm3, %v5410_v55, %v5413_v33  ;;  %v18226_v55 = vld [vmem:[%s22289_s6 + $0x30] sm:$0xff]  }
 0x75a   : > { %v4991_v50 = vrot.slane %v4937_v52, 4  ;;  %v5176_v62 = vshrl.u32 %v4937_v52, 16  ;;  %v5179_v31 = vshll.u32 %v4937_v52, 16 }
 0x75c   : > { %v5178_v46 = vrot.slane %v5176_v62, 3  ;;  %v5181_v32 = vrot.slane %v5179_v31, 4  ;;  %v5415_v26 = vrot.slane %v5176_v62, 4  ;;  %v5416_v53 = vrot.slane %v5179_v31, 5 }
 0x75d   : > { %v4872_v40 = vpop.f32.mrb[40].mxu0  ;;  %v19616_v49 = vsel %vm1850_vm1, %v4989_v23, %v4991_v50 }
 0x75e   : > { %v5182_v44 = vor.u32 %v5181_v32, %v5178_v46  ;;  %v5417_v56 = vor.u32 %v5416_v53, %v5415_v26  ;;  %15840 = vmatmul.mubr.bf16.vlgmr.msra.gmra.mrb[72].mxu0 %v19616_v49  ;;  %v15793_v17 = vpop.f32.mrb[41].mxu0  ;;  %v18227_v26 = vld [vmem:[%s22289_s6 + $0x38] sm:$0xff]  }
 0x75f   : > { %v4875_v2 = vpop.f32.mrb[42].mxu0  ;;  %15856 = vmatpush3.bf16.msra.mxu0 %v18220_v21 }
 0x760   : > { %v4938_v9 = vpack.c.bf16 %v4875_v2, %v4872_v40  ;;  %v15794_v42 = vpop.f32.mrb[43].mxu0  ;;  %15857 = vmatprep.subr.bf16.mxu0 %v18221_v35  ;;  %v19621_v3 = vsel %vm2078_vm2, %v5173_v36, %v5182_v44  ;;  %v19624_v59 = vsel %vm2381_vm3, %v5413_v33, %v5417_v56 }
 0x761   : > { %v19656_v42 = vld [vmem:[%s22289_s6 + $0x80] sm:$0xff]  }
 0x762   : > { %v4993_v41 = vrot.slane %v4938_v9, 4  ;;  %v5185_v10 = vshrl.u32 %v4938_v9, 16  ;;  %v5188_v18 = vshll.u32 %v4938_v9, 16 }
 0x763   : > { %15858 = vmatpush3.bf16.msra.mxu0 %v18221_v35 }
 0x764   : > { %v5187_v29 = vrot.slane %v5185_v10, 3  ;;  %v5190_v20 = vrot.slane %v5188_v18, 4  ;;  %v5419_v15 = vrot.slane %v5185_v10, 4  ;;  %v5420_v21 = vrot.slane %v5188_v18, 5  ;;  %15859 = vmatprep.subr.bf16.mxu0 %v18222_v38 }
 0x765   : > { %v4880_v4 = vpop.f32.mrb[44].mxu0  ;;  %v19628_v43 = vsel %vm1850_vm1, %v4991_v50, %v4993_v41 }
 0x766   : > { %15843 = vmatprep.mubr.bf16.mxu0 %v19628_v43  ;;  %v15797_v5 = vpop.f32.mrb[45].mxu0  ;;  %v5191_v7 = vor.u32 %v5190_v20, %v5187_v29  ;;  %v5421_v8 = vor.u32 %v5420_v21, %v5419_v15 }
 0x767   : > { %v4883_v39 = vpop.f32.mrb[46].mxu0  ;;  %15860 = vmatpush3.bf16.msra.mxu0 %v18222_v38 }
 0x768   : > { %v4939_v58 = vpack.c.bf16 %v4883_v39, %v4880_v4  ;;  %v15798_v48 = vpop.f32.mrb[47].mxu0  ;;  %15861 = vmatprep.subr.bf16.mxu0 %v18223_v24  ;;  %v19633_v19 = vsel %vm2078_vm2, %v5182_v44, %v5191_v7  ;;  %v19636_v60 = vsel %vm2381_vm3, %v5417_v56, %v5421_v8 }
 0x76a   : > { %v4995_v22 = vrot.slane %v4939_v58, 4  ;;  %v5194_v11 = vshrl.u32 %v4939_v58, 16  ;;  %v5197_v61 = vshll.u32 %v4939_v58, 16 }
 0x76b   : > { %15862 = vmatpush3.bf16.msra.mxu0 %v18223_v24 }
 0x76c   : > { %v5196_v23 = vrot.slane %v5194_v11, 3  ;;  %v5199_v25 = vrot.slane %v5197_v61, 4  ;;  %v5423_v37 = vrot.slane %v5194_v11, 4  ;;  %v5424_v51 = vrot.slane %v5197_v61, 5  ;;  %15863 = vmatprep.subr.bf16.mxu0 %v18224_v34 }
 0x76d   : > { %v4888_v63 = vpop.f32.mrb[48].mxu0  ;;  %v19640_v45 = vsel %vm1850_vm1, %v4993_v41, %v4995_v22 }
 0x76e   : > { %15844 = vmatmul.mubr.bf16.gmra.mrb[76].mxu0 %v19640_v45  ;;  %v15801_v47 = vpop.f32.mrb[49].mxu0  ;;  %v5200_v0 = vor.u32 %v5199_v25, %v5196_v23  ;;  %v5425_v1 = vor.u32 %v5424_v51, %v5423_v37 }
 0x76f   : > { %v4891_v27 = vpop.f32.mrb[50].mxu0  ;;  %15864 = vmatpush3.bf16.msra.mxu0 %v18224_v34 }
 0x770   : > { %v4940_v30 = vpack.c.bf16 %v4891_v27, %v4888_v63  ;;  %v15802_v36 = vpop.f32.mrb[51].mxu0  ;;  %15865 = vmatprep.subr.bf16.mxu0 %v18225_v14  ;;  %v19645_v33 = vsel %vm2078_vm2, %v5191_v7, %v5200_v0  ;;  %v19648_v28 = vsel %vm2381_vm3, %v5421_v8, %v5425_v1 }
 0x772   : > { %v4997_v52 = vrot.slane %v4940_v30, 4  ;;  %v5203_v54 = vshrl.u32 %v4940_v30, 16  ;;  %v5206_v50 = vshll.u32 %v4940_v30, 16 }
 0x773   : > { %15866 = vmatpush3.bf16.msra.mxu0 %v18225_v14 }
 0x774   : > { %v5205_v62 = vrot.slane %v5203_v54, 3  ;;  %v5208_v31 = vrot.slane %v5206_v50, 4  ;;  %v5427_v46 = vrot.slane %v5203_v54, 4  ;;  %v5428_v32 = vrot.slane %v5206_v50, 5  ;;  %15867 = vmatprep.subr.bf16.mxu0 %v18226_v55 }
 0x775   : > { %v4896_v53 = vpop.f32.mrb[52].mxu0  ;;  %v19652_v35 = vsel %vm1850_vm1, %v4995_v22, %v4997_v52 }
 0x776   : > { %15847 = vmatprep.mubr.bf16.mxu0 %v19652_v35  ;;  %v15805_v40 = vpop.f32.mrb[53].mxu0  ;;  %v5209_v44 = vor.u32 %v5208_v31, %v5205_v62  ;;  %v5429_v56 = vor.u32 %v5428_v32, %v5427_v46 }
 0x777   : > { %v4899_v17 = vpop.f32.mrb[54].mxu0  ;;  %15868 = vmatpush3.bf16.msra.mxu0 %v18226_v55 }
 0x778   : > { %v4941_v2 = vpack.c.bf16 %v4899_v17, %v4896_v53  ;;  %v15806_v9 = vpop.f32.mrb[55].mxu0  ;;  %15869 = vmatprep.subr.bf16.mxu0 %v18227_v26  ;;  %v19659_v38 = vsel %vm2078_vm2, %v5200_v0, %v5209_v44  ;;  %v19662_v41 = vsel %vm2381_vm3, %v5425_v1, %v5429_v56 }
 0x77a   : > { %v4999_v10 = vrot.slane %v4941_v2, 4  ;;  %v5212_v18 = vshrl.u32 %v4941_v2, 16  ;;  %v5215_v29 = vshll.u32 %v4941_v2, 16 }
 0x77b   : > { %15870 = vmatpush3.bf16.msra.mxu0 %v18227_v26 }
 0x77c   : > { %v5214_v20 = vrot.slane %v5212_v18, 3  ;;  %v5217_v15 = vrot.slane %v5215_v29, 4  ;;  %v5431_v21 = vrot.slane %v5212_v18, 4  ;;  %v5432_v24 = vrot.slane %v5215_v29, 5  ;;  %15887 = vmatprep.subr.bf16.mxu0 %v19656_v42 }
 0x77d   : > { %v4904_v4 = vpop.f32.mrb[56].mxu0  ;;  %v19666_v5 = vsel %vm1850_vm1, %v4997_v52, %v4999_v10 }
 0x77e   : > { %15848 = vmatmul.mubr.bf16.gmra.mrb[80].mxu0 %v19666_v5  ;;  %v15809_v7 = vpop.f32.mrb[57].mxu0  ;;  %v5218_v8 = vor.u32 %v5217_v15, %v5214_v20  ;;  %v5433_v39 = vor.u32 %v5432_v24, %v5431_v21 }
 0x77f   : > { %v4907_v58 = vpop.f32.mrb[58].mxu0 }
 0x780   : > { %v4942_v48 = vpack.c.bf16 %v4907_v58, %v4904_v4  ;;  %v15810_v34 = vpop.f32.mrb[59].mxu0  ;;  %v19670_v22 = vsel %vm2078_vm2, %v5209_v44, %v5218_v8  ;;  %v19673_v11 = vsel %vm2381_vm3, %v5429_v56, %v5433_v39 }
 0x782   : > { %v5001_v61 = vrot.slane %v4942_v48, 4  ;;  %v5221_v23 = vshrl.u32 %v4942_v48, 16  ;;  %v5224_v25 = vshll.u32 %v4942_v48, 16  ;;  %v18229_v48 = vld [vmem:[%s22289_s6 + $0x88] sm:$0xff]  }
 0x784   : > { %v5223_v37 = vrot.slane %v5221_v23, 3  ;;  %v5226_v51 = vrot.slane %v5224_v25, 4  ;;  %v5435_v14 = vrot.slane %v5221_v23, 4  ;;  %v5436_v63 = vrot.slane %v5224_v25, 5 }
 0x785   : > { %v4912_v47 = vpop.f32.mrb[60].mxu0  ;;  %v19676_v0 = vsel %vm1850_vm1, %v4999_v10, %v5001_v61 }
 0x786   : > { %15851 = vmatprep.mubr.bf16.mxu0 %v19676_v0  ;;  %v15813_v1 = vpop.f32.mrb[61].mxu0  ;;  %v5227_v27 = vor.u32 %v5226_v51, %v5223_v37  ;;  %v5437_v30 = vor.u32 %v5436_v63, %v5435_v14  ;;  %v18230_v63 = vld [vmem:[%s22289_s6 + $0x90] sm:$0xff]  }
 0x787   : > { %v4915_v36 = vpop.f32.mrb[62].mxu0 }
 0x788   : > { %v4943_v55 = vpack.c.bf16 %v4915_v36, %v4912_v47  ;;  %v15814_v52 = vpop.f32.mrb[63].mxu0  ;;  %v19680_v54 = vsel %vm2078_vm2, %v5218_v8, %v5227_v27  ;;  %v19683_v50 = vsel %vm2381_vm3, %v5433_v39, %v5437_v30 }
 0x78a   : > { %v5003_v62 = vrot.slane %v4943_v55, 4  ;;  %v5230_v31 = vshrl.u32 %v4943_v55, 16  ;;  %v5233_v46 = vshll.u32 %v4943_v55, 16 }
 0x78c   : > { %v5232_v32 = vrot.slane %v5230_v31, 3  ;;  %v5235_v26 = vrot.slane %v5233_v46, 4  ;;  %v5439_v53 = vrot.slane %v5230_v31, 4  ;;  %v5440_v40 = vrot.slane %v5233_v46, 5  ;;  %v18231_v31 = vld [vmem:[%s22289_s6 + $0x98] sm:$0xff]  }
 0x78d   : > { %v4920_v44 = vpop.f32.mrb[64].mxu0  ;;  %v19686_v56 = vsel %vm1850_vm1, %v5001_v61, %v5003_v62 }
 0x78e   : > { %15852 = vmatmul.mubr.bf16.gmra.mrb[84].mxu0 %v19686_v56  ;;  %v15817_v17 = vpop.f32.mrb[65].mxu0  ;;  %v5236_v2 = vor.u32 %v5235_v26, %v5232_v32  ;;  %v5441_v9 = vor.u32 %v5440_v40, %v5439_v53  ;;  %v18232_v53 = vld [vmem:[%s22289_s6 + $0xa0] sm:$0xff]  }
 0x78f   : > { %15871 = vmatprep.mubr.bf16.mxu0 %v19609_v16  ;;  %v4923_v10 = vpop.f32.mrb[66].mxu0  ;;  %v18233_v17 = vld [vmem:[%s22289_s6 + $0xa8] sm:$0xff]  }
 0x790   : > { %v4944_v18 = vpack.c.bf16 %v4923_v10, %v4920_v44  ;;  %v15818_v29 = vpop.f32.mrb[67].mxu0  ;;  %v19691_v20 = vsel %vm2078_vm2, %v5227_v27, %v5236_v2  ;;  %v19694_v15 = vsel %vm2381_vm3, %v5437_v30, %v5441_v9  ;;  %v18236_v10 = vld [vmem:[%s22289_s6 + $0xc0] sm:$0xff]  }
 0x791   : > { %v18238_v29 = vld [vmem:[%s22289_s6 + $0xd0] sm:$0xff]  }
 0x792   : > { %v5630_v21 = vshrl.u32 %v4944_v18, 16  ;;  %v5633_v24 = vshll.u32 %v4944_v18, 16  ;;  %v5818_v4 = vrot.slane %v4944_v18, 4  ;;  %v18237_v18 = vld [vmem:[%s22289_s6 + $0xc8] sm:$0xff]  }
 0x794   : > { %v5632_v7 = vrot.slane %v5630_v21, 3  ;;  %v5635_v8 = vrot.slane %v5633_v24, 4  ;;  %v5999_v39 = vrot.slane %v5630_v21, 4  ;;  %v6000_v58 = vrot.slane %v5633_v24, 5  ;;  %v18239_v21 = vld [vmem:[%s22289_s6 + $0xd8] sm:$0xff]   ;;  %v18241_v24 = vld [vmem:[%s22289_s6 + $0xe8] sm:$0xff]  }
 0x795   : > { %v4928_v34 = vpop.f32.mrb[68].mxu0  ;;  %v19698_v16 = vsel %vm1850_vm1, %v5003_v62, %v5818_v4 }
 0x796   : > { %15872 = vmatmul.mubr.bf16.vlgmr.msra.gmra.mrb[72].mxu0 %v19621_v3  ;;  %v15821_v61 = vpop.f32.mrb[69].mxu0  ;;  %v5636_v23 = vor.u32 %v5635_v8, %v5632_v7  ;;  %v6001_v25 = vor.u32 %v6000_v58, %v5999_v39  ;;  %v18243_v7 = vld [vmem:[%s22289_s6 + $0xf8] sm:$0xff]   ;;  %v18244_v8 = vld [vmem:[%s22289_s6 + $0x100] sm:$0xff]   ;;  %v18245_v39 = vld [vmem:[%s22289_s6 + $0x108] sm:$0xff]  }
 0x797   : > { %15875 = vmatprep.mubr.bf16.mxu0 %v19633_v19  ;;  %15888 = vmatpush3.bf16.msra.mxu0 %v19656_v42  ;;  %v4931_v37 = vpop.f32.mrb[70].mxu0  ;;  %v18246_v58 = vld [vmem:[%s22289_s6 + $0x110] sm:$0xff]  }
 0x798   : > { %v4945_v51 = vpack.c.bf16 %v4931_v37, %v4928_v34  ;;  %v15822_v14 = vpop.f32.mrb[71].mxu0  ;;  %15889 = vmatprep.subr.bf16.mxu0 %v18229_v48  ;;  %v19705_v47 = vsel %vm2078_vm2, %v5236_v2, %v5636_v23  ;;  %v19708_v1 = vsel %vm2381_vm3, %v5441_v9, %v6001_v25  ;;  %v18234_v2 = vld [vmem:[%s22289_s6 + $0xb0] sm:$0xff]   ;;  %v18235_v9 = vld [vmem:[%s22289_s6 + $0xb8] sm:$0xff]   ;;  %v18249_v34 = vld [vmem:[%s22289_s6 + $0x128] sm:$0xff]  }
 0x799   : > { %v18250_v61 = vld [vmem:[%s22289_s6 + $0x130] sm:$0xff]   ;;  %v18253_v37 = vld [vmem:[%s22289_s6 + $0x148] sm:$0xff]   ;;  %v18255_v14 = vld [vmem:[%s22289_s6 + $0x158] sm:$0xff]  }
 0x79a   : > { %v6183_v27 = vshrl.u32 %v4945_v51, 16  ;;  %v6186_v30 = vshll.u32 %v4945_v51, 16  ;;  %v6371_v36 = vrot.slane %v4945_v51, 4  ;;  %v18254_v51 = vld [vmem:[%s22289_s6 + $0x150] sm:$0xff]  }
 0x79b   : > { %15890 = vmatpush3.bf16.msra.mxu0 %v18229_v48  ;;  %v18247_v48 = vld [vmem:[%s22289_s6 + $0x118] sm:$0xff]  }
 0x79c   : > { %v6185_v55 = vrot.slane %v6183_v27, 3  ;;  %v6188_v52 = vrot.slane %v6186_v30, 4  ;;  %v6552_v42 = vrot.slane %v6183_v27, 4  ;;  %v6553_v62 = vrot.slane %v6186_v30, 5  ;;  %15891 = vmatprep.subr.bf16.mxu0 %v18230_v63  ;;  %v18258_v27 = vld [vmem:[%s22289_s6 + $0x170] sm:$0xff]   ;;  %v18259_v30 = vld [vmem:[%s22289_s6 + $0x178] sm:$0xff]  }
 0x79d   : > { %v19712_v46 = vsel %vm1850_vm1, %v5818_v4, %v6371_v36  ;;  %v18242_v4 = vld [vmem:[%s22289_s6 + $0xf0] sm:$0xff]   ;;  %v18260_v36 = vld [vmem:[%s22289_s6 + $0x180] sm:$0xff]  }
 0x79e   : > { %15876 = vmatmul.mubr.bf16.gmra.mrb[76].mxu0 %v19645_v33  ;;  %v6189_v32 = vor.u32 %v6188_v52, %v6185_v55  ;;  %v6554_v26 = vor.u32 %v6553_v62, %v6552_v42  ;;  %v18261_v55 = vld [vmem:[%s22289_s6 + $0x188] sm:$0xff]   ;;  %v18262_v52 = vld [vmem:[%s22289_s6 + $0x190] sm:$0xff]   ;;  %v18263_v42 = vld [vmem:[%s22289_s6 + $0x198] sm:$0xff]  }
 0x79f   : > { %15879 = vmatprep.mubr.bf16.mxu0 %v19659_v38  ;;  %15892 = vmatpush3.bf16.msra.mxu0 %v18230_v63  ;;  %v18257_v63 = vld [vmem:[%s22289_s6 + $0x168] sm:$0xff]  }
 0x7a0   : > { %15893 = vmatprep.subr.bf16.mxu0 %v18231_v31  ;;  %v19718_v40 = vsel %vm2078_vm2, %v5636_v23, %v6189_v32  ;;  %v19721_v44 = vsel %vm2381_vm3, %v6001_v25, %v6554_v26  ;;  %v18251_v23 = vld [vmem:[%s22289_s6 + $0x138] sm:$0xff]   ;;  %v18252_v25 = vld [vmem:[%s22289_s6 + $0x140] sm:$0xff]   ;;  %v18265_v62 = vld [vmem:[%s22289_s6 + $0x1a8] sm:$0xff]  }
 0x7a1   : > { %v18267_v32 = vld [vmem:[%s22289_s6 + $0x1b8] sm:$0xff]   ;;  %v18268_v26 = vld [vmem:[%s22289_s6 + $0x1c0] sm:$0xff]  }
 0x7a3   : > { %15894 = vmatpush3.bf16.msra.mxu0 %v18231_v31  ;;  %v18266_v31 = vld [vmem:[%s22289_s6 + $0x1b0] sm:$0xff]  }
 0x7a4   : > { %15895 = vmatprep.subr.bf16.mxu0 %v18232_v53 }
 0x7a6   : > { %15880 = vmatmul.mubr.bf16.gmra.mrb[80].mxu0 %v19670_v22 }
 0x7a7   : > { %15883 = vmatprep.mubr.bf16.mxu0 %v19680_v54  ;;  %15896 = vmatpush3.bf16.msra.mxu0 %v18232_v53  ;;  %v18269_v53 = vld [vmem:[%s22289_s6 + $0x1c8] sm:$0xff]  }
 0x7a8   : > { %15897 = vmatprep.subr.bf16.mxu0 %v18233_v17 }
 0x7ab   : > { %15898 = vmatpush3.bf16.msra.mxu0 %v18233_v17  ;;  %v18270_v17 = vld [vmem:[%s22289_s6 + $0x1d0] sm:$0xff]  }
 0x7ac   : > { %15899 = vmatprep.subr.bf16.mxu0 %v18234_v2 }
 0x7ae   : > { %15884 = vmatmul.mubr.bf16.gmra.mrb[84].mxu0 %v19691_v20 }
 0x7af   : > { %15900 = vmatpush3.bf16.msra.mxu0 %v18234_v2  ;;  %15903 = vmatprep.mubr.bf16.mxu0 %v19612_v57  ;;  %v18240_v57 = vld [vmem:[%s22289_s6 + $0xe0] sm:$0xff]   ;;  %v18271_v2 = vld [vmem:[%s22289_s6 + $0x1d8] sm:$0xff]  }
 0x7b0   : > { %15901 = vmatprep.subr.bf16.mxu0 %v18235_v9 }
 0x7b3   : > { %15902 = vmatpush3.bf16.msra.mxu0 %v18235_v9  ;;  %v18294_v9 = vld [vmem:[%s18912_s16 + $0x10] sm:$0xff]  }
 0x7b4   : > { %15919 = vmatprep.subr.bf16.mxu0 %v18236_v10 }
 0x7b6   : > { %15904 = vmatmul.mubr.bf16.vlgmr.msra.gmra.mrb[72].mxu0 %v19624_v59 }
 0x7b7   : > { %15907 = vmatprep.mubr.bf16.mxu0 %v19636_v60  ;;  %15920 = vmatpush3.bf16.msra.mxu0 %v18236_v10  ;;  %v18296_v10 = vld [vmem:[%s18912_s16 + $0x20] sm:$0xff]  }
 0x7b8   : > { %15921 = vmatprep.subr.bf16.mxu0 %v18237_v18 }
 0x7bb   : > { %15922 = vmatpush3.bf16.msra.mxu0 %v18237_v18  ;;  %v18297_v18 = vld [vmem:[%s18912_s16 + $0x28] sm:$0xff]  }
 0x7bc   : > { %15923 = vmatprep.subr.bf16.mxu0 %v18238_v29 }
 0x7be   : > { %15908 = vmatmul.mubr.bf16.gmra.mrb[76].mxu0 %v19648_v28 }
 0x7bf   : > { %15911 = vmatprep.mubr.bf16.mxu0 %v19662_v41  ;;  %15924 = vmatpush3.bf16.msra.mxu0 %v18238_v29  ;;  %v18298_v29 = vld [vmem:[%s18912_s16 + $0x30] sm:$0xff]  }
 0x7c0   : > { %15925 = vmatprep.subr.bf16.mxu0 %v18239_v21 }
 0x7c3   : > { %15926 = vmatpush3.bf16.msra.mxu0 %v18239_v21  ;;  %v18299_v21 = vld [vmem:[%s18912_s16 + $0x38] sm:$0xff]  }
 0x7c4   : > { %15927 = vmatprep.subr.bf16.mxu0 %v18240_v57 }
 0x7c6   : > { %15912 = vmatmul.mubr.bf16.gmra.mrb[80].mxu0 %v19673_v11 }
 0x7c7   : > { %15915 = vmatprep.mubr.bf16.mxu0 %v19683_v50  ;;  %15928 = vmatpush3.bf16.msra.mxu0 %v18240_v57  ;;  %v18300_v57 = vld [vmem:[%s18912_s16 + $0x40] sm:$0xff]  }
 0x7c8   : > { %15929 = vmatprep.subr.bf16.mxu0 %v18241_v24 }
 0x7cb   : > { %15930 = vmatpush3.bf16.msra.mxu0 %v18241_v24  ;;  %v18301_v24 = vld [vmem:[%s18912_s16 + $0x48] sm:$0xff]  }
 0x7cc   : > { %15931 = vmatprep.subr.bf16.mxu0 %v18242_v4 }
 0x7ce   : > { %15916 = vmatmul.mubr.bf16.gmra.mrb[84].mxu0 %v19694_v15 }
 0x7cf   : > { %15932 = vmatpush3.bf16.msra.mxu0 %v18242_v4  ;;  %15935 = vmatprep.mubr.bf16.mxu0 %v19621_v3  ;;  %v18248_v3 = vld [vmem:[%s22289_s6 + $0x120] sm:$0xff]   ;;  %v18302_v4 = vld [vmem:[%s18912_s16 + $0x50] sm:$0xff]  }
 0x7d0   : > { %15933 = vmatprep.subr.bf16.mxu0 %v18243_v7 }
 0x7d3   : > { %15934 = vmatpush3.bf16.msra.mxu0 %v18243_v7  ;;  %v18303_v7 = vld [vmem:[%s18912_s16 + $0x58] sm:$0xff]  }
 0x7d4   : > { %15951 = vmatprep.subr.bf16.mxu0 %v18244_v8 }
 0x7d6   : > { %15936 = vmatmul.mubr.bf16.vlgmr.msra.gmra.mrb[72].mxu0 %v19633_v19 }
 0x7d7   : > { %15939 = vmatprep.mubr.bf16.mxu0 %v19645_v33  ;;  %15952 = vmatpush3.bf16.msra.mxu0 %v18244_v8  ;;  %v18304_v8 = vld [vmem:[%s18912_s16 + $0x60] sm:$0xff]  }
 0x7d8   : > { %15953 = vmatprep.subr.bf16.mxu0 %v18245_v39 }
 0x7db   : > { %15954 = vmatpush3.bf16.msra.mxu0 %v18245_v39  ;;  %v18305_v39 = vld [vmem:[%s18912_s16 + $0x68] sm:$0xff]  }
 0x7dc   : > { %15955 = vmatprep.subr.bf16.mxu0 %v18246_v58 }
 0x7de   : > { %15940 = vmatmul.mubr.bf16.gmra.mrb[76].mxu0 %v19659_v38 }
 0x7df   : > { %15943 = vmatprep.mubr.bf16.mxu0 %v19670_v22  ;;  %15956 = vmatpush3.bf16.msra.mxu0 %v18246_v58  ;;  %v18306_v58 = vld [vmem:[%s18912_s16 + $0x70] sm:$0xff]  }
 0x7e0   : > { %15957 = vmatprep.subr.bf16.mxu0 %v18247_v48 }
 0x7e3   : > { %15958 = vmatpush3.bf16.msra.mxu0 %v18247_v48  ;;  %v18307_v48 = vld [vmem:[%s18912_s16 + $0x78] sm:$0xff]  }
 0x7e4   : > { %15959 = vmatprep.subr.bf16.mxu0 %v18248_v3 }
 0x7e6   : > { %15944 = vmatmul.mubr.bf16.gmra.mrb[80].mxu0 %v19680_v54 }
 0x7e7   : > { %15947 = vmatprep.mubr.bf16.mxu0 %v19691_v20  ;;  %15960 = vmatpush3.bf16.msra.mxu0 %v18248_v3  ;;  %v18308_v3 = vld [vmem:[%s22307_s23] ss:$8 sps:$4 sm:$0xff]  }
 0x7e8   : > { %15961 = vmatprep.subr.bf16.mxu0 %v18249_v34 }
 0x7eb   : > { %15962 = vmatpush3.bf16.msra.mxu0 %v18249_v34  ;;  %v18311_v34 = vld [vmem:[%s22307_s23 + $0x14] ss:$8 sps:$4 sm:$0xff]  }
 0x7ec   : > { %15963 = vmatprep.subr.bf16.mxu0 %v18250_v61 }
 0x7ee   : > { %15948 = vmatmul.mubr.bf16.gmra.mrb[84].mxu0 %v19705_v47 }
 0x7ef   : > { %15964 = vmatpush3.bf16.msra.mxu0 %v18250_v61  ;;  %15967 = vmatprep.mubr.bf16.mxu0 %v19616_v49  ;;  %v18256_v49 = vld [vmem:[%s22289_s6 + $0x160] sm:$0xff]   ;;  %v18313_v61 = vld [vmem:[%s22307_s23 + $0x10] ss:$8 sps:$4 sm:$0xff]  }
 0x7f0   : > { %15965 = vmatprep.subr.bf16.mxu0 %v18251_v23 }
 0x7f3   : > { %15966 = vmatpush3.bf16.msra.mxu0 %v18251_v23  ;;  %v18314_v23 = vld [vmem:[%s22307_s23 + $0x24] ss:$8 sps:$4 sm:$0xff]  }
 0x7f4   : > { %15983 = vmatprep.subr.bf16.mxu0 %v18252_v25 }
 0x7f6   : > { %15968 = vmatmul.mubr.bf16.vlgmr.msra.gmra.mrb[72].mxu0 %v19628_v43 }
 0x7f7   : > { %15971 = vmatprep.mubr.bf16.mxu0 %v19640_v45  ;;  %15984 = vmatpush3.bf16.msra.mxu0 %v18252_v25  ;;  %v18316_v25 = vld [vmem:[%s22307_s23 + $0x20] ss:$8 sps:$4 sm:$0xff]  }
 0x7f8   : > { %15985 = vmatprep.subr.bf16.mxu0 %v18253_v37 }
 0x7fb   : > { %15986 = vmatpush3.bf16.msra.mxu0 %v18253_v37 }
 0x7fc   : > { %15987 = vmatprep.subr.bf16.mxu0 %v18254_v51 }
 0x7fe   : > { %15972 = vmatmul.mubr.bf16.gmra.mrb[76].mxu0 %v19652_v35 }
 0x7ff   : > { %15975 = vmatprep.mubr.bf16.mxu0 %v19666_v5  ;;  %15988 = vmatpush3.bf16.msra.mxu0 %v18254_v51  ;;  %v14492_v51 = vld [vmem:[%s22308_s26] ss:$0 sm:$0xff]  ;;  %s22590_s26 = sld [smem:[#allocation11_spill]] }
 0x800   : > { %15989 = vmatprep.subr.bf16.mxu0 %v18255_v14 }
 0x803   : > { %15990 = vmatpush3.bf16.msra.mxu0 %v18255_v14 }
 0x804   : > { %15991 = vmatprep.subr.bf16.mxu0 %v18256_v49 }
 0x806   : > { %15976 = vmatmul.mubr.bf16.gmra.mrb[80].mxu0 %v19676_v0 }
 0x807   : > { %15979 = vmatprep.mubr.bf16.mxu0 %v19686_v56  ;;  %15992 = vmatpush3.bf16.msra.mxu0 %v18256_v49 }
 0x808   : > { %15993 = vmatprep.subr.bf16.mxu0 %v18257_v63 }
 0x80b   : > { %15994 = vmatpush3.bf16.msra.mxu0 %v18257_v63 }
 0x80c   : > { %15995 = vmatprep.subr.bf16.mxu0 %v18258_v27 }
 0x80e   : > { %15980 = vmatmul.mubr.bf16.gmra.mrb[84].mxu0 %v19698_v16 }
 0x80f   : > { %15996 = vmatpush3.bf16.msra.mxu0 %v18258_v27  ;;  %15999 = vmatprep.mubr.bf16.mxu0 %v19624_v59  ;;  %v18264_v59 = vld [vmem:[%s22289_s6 + $0x1a0] sm:$0xff]  }
 0x810   : > { %15997 = vmatprep.subr.bf16.mxu0 %v18259_v30 }
 0x813   : > { %15998 = vmatpush3.bf16.msra.mxu0 %v18259_v30 }
 0x814   : > { %16015 = vmatprep.subr.bf16.mxu0 %v18260_v36 }
 0x816   : > { %16000 = vmatmul.mubr.bf16.vlgmr.msra.gmra.mrb[72].mxu0 %v19636_v60 }
 0x817   : > { %16003 = vmatprep.mubr.bf16.mxu0 %v19648_v28  ;;  %16016 = vmatpush3.bf16.msra.mxu0 %v18260_v36 }
 0x818   : > { %16017 = vmatprep.subr.bf16.mxu0 %v18261_v55 }
 0x81b   : > { %16018 = vmatpush3.bf16.msra.mxu0 %v18261_v55 }
 0x81c   : > { %16019 = vmatprep.subr.bf16.mxu0 %v18262_v52 }
 0x81e   : > { %16004 = vmatmul.mubr.bf16.gmra.mrb[76].mxu0 %v19662_v41 }
 0x81f   : > { %16007 = vmatprep.mubr.bf16.mxu0 %v19673_v11  ;;  %16020 = vmatpush3.bf16.msra.mxu0 %v18262_v52 }
 0x820   : > { %16021 = vmatprep.subr.bf16.mxu0 %v18263_v42 }
 0x823   : > { %16022 = vmatpush3.bf16.msra.mxu0 %v18263_v42 }
 0x824   : > { %16023 = vmatprep.subr.bf16.mxu0 %v18264_v59 }
 0x826   : > { %16008 = vmatmul.mubr.bf16.gmra.mrb[80].mxu0 %v19683_v50 }
 0x827   : > { %16011 = vmatprep.mubr.bf16.mxu0 %v19694_v15  ;;  %16024 = vmatpush3.bf16.msra.mxu0 %v18264_v59 }
 0x828   : > { %16025 = vmatprep.subr.bf16.mxu0 %v18265_v62 }
 0x82b   : > { %16026 = vmatpush3.bf16.msra.mxu0 %v18265_v62 }
 0x82c   : > { %16027 = vmatprep.subr.bf16.mxu0 %v18266_v31 }
 0x82e   : > { %16012 = vmatmul.mubr.bf16.gmra.mrb[84].mxu0 %v19708_v1 }
 0x82f   : > { %16028 = vmatpush3.bf16.msra.mxu0 %v18266_v31  ;;  %16031 = vmatprep.mubr.bf16.mxu0 %v19633_v19  ;;  %v18272_v19 = vld [vmem:[%s22289_s6 + $0x1e0] sm:$0xff]  }
 0x830   : > { %16029 = vmatprep.subr.bf16.mxu0 %v18267_v32 }
 0x833   : > { %16030 = vmatpush3.bf16.msra.mxu0 %v18267_v32 }
 0x834   : > { %16047 = vmatprep.subr.bf16.mxu0 %v18268_v26 }
 0x836   : > { %16032 = vmatmul.mubr.bf16.vlgmr.msra.gmra.mrb[72].mxu0 %v19645_v33  ;;  %v18273_v33 = vld [vmem:[%s22289_s6 + $0x1e8] sm:$0xff]  }
 0x837   : > { %16035 = vmatprep.mubr.bf16.mxu0 %v19659_v38  ;;  %16048 = vmatpush3.bf16.msra.mxu0 %v18268_v26  ;;  %v18274_v38 = vld [vmem:[%s22289_s6 + $0x1f0] sm:$0xff]  }
 0x838   : > { %16049 = vmatprep.subr.bf16.mxu0 %v18269_v53 }
 0x83b   : > { %16050 = vmatpush3.bf16.msra.mxu0 %v18269_v53 }
 0x83c   : > { %16051 = vmatprep.subr.bf16.mxu0 %v18270_v17 }
 0x83e   : > { %16036 = vmatmul.mubr.bf16.gmra.mrb[76].mxu0 %v19670_v22  ;;  %v18275_v22 = vld [vmem:[%s22289_s6 + $0x1f8] sm:$0xff]  }
 0x83f   : > { %16039 = vmatprep.mubr.bf16.mxu0 %v19680_v54  ;;  %16052 = vmatpush3.bf16.msra.mxu0 %v18270_v17  ;;  %v18276_v54 = vld [vmem:[%s22289_s6 + $0x200] sm:$0xff]  }
 0x840   : > { %16053 = vmatprep.subr.bf16.mxu0 %v18271_v2 }
 0x843   : > { %16054 = vmatpush3.bf16.msra.mxu0 %v18271_v2 }
 0x844   : > { %16055 = vmatprep.subr.bf16.mxu0 %v18272_v19 }
 0x846   : > { %16040 = vmatmul.mubr.bf16.gmra.mrb[80].mxu0 %v19691_v20  ;;  %v18277_v20 = vld [vmem:[%s22289_s6 + $0x208] sm:$0xff]  }
 0x847   : > { %16043 = vmatprep.mubr.bf16.mxu0 %v19705_v47  ;;  %16056 = vmatpush3.bf16.msra.mxu0 %v18272_v19  ;;  %v18278_v47 = vld [vmem:[%s22289_s6 + $0x210] sm:$0xff]  }
 0x848   : > { %16057 = vmatprep.subr.bf16.mxu0 %v18273_v33 }
 0x84b   : > { %16058 = vmatpush3.bf16.msra.mxu0 %v18273_v33 }
 0x84c   : > { %16059 = vmatprep.subr.bf16.mxu0 %v18274_v38 }
 0x84e   : > { %16044 = vmatmul.mubr.bf16.gmra.mrb[84].mxu0 %v19718_v40  ;;  %v18279_v40 = vld [vmem:[%s22289_s6 + $0x218] sm:$0xff]  }
 0x84f   : > { %16060 = vmatpush3.bf16.msra.mxu0 %v18274_v38  ;;  %16063 = vmatprep.mubr.bf16.mxu0 %v19628_v43  ;;  %v18280_v43 = vld [vmem:[%s22289_s6 + $0x220] sm:$0xff]  }
 0x850   : > { %16061 = vmatprep.subr.bf16.mxu0 %v18275_v22 }
 0x853   : > { %16062 = vmatpush3.bf16.msra.mxu0 %v18275_v22 }
 0x854   : > { %16079 = vmatprep.subr.bf16.mxu0 %v18276_v54 }
 0x856   : > { %16064 = vmatmul.mubr.bf16.vlgmr.msra.gmra.mrb[72].mxu0 %v19640_v45  ;;  %v18281_v45 = vld [vmem:[%s22289_s6 + $0x228] sm:$0xff]  }
 0x857   : > { %16067 = vmatprep.mubr.bf16.mxu0 %v19652_v35  ;;  %16080 = vmatpush3.bf16.msra.mxu0 %v18276_v54  ;;  %v18282_v35 = vld [vmem:[%s22289_s6 + $0x230] sm:$0xff]  }
 0x858   : > { %16081 = vmatprep.subr.bf16.mxu0 %v18277_v20 }
 0x85b   : > { %16082 = vmatpush3.bf16.msra.mxu0 %v18277_v20 }
 0x85c   : > { %16083 = vmatprep.subr.bf16.mxu0 %v18278_v47 }
 0x85e   : > { %16068 = vmatmul.mubr.bf16.gmra.mrb[76].mxu0 %v19666_v5  ;;  %v18283_v5 = vld [vmem:[%s22289_s6 + $0x238] sm:$0xff]   ;;  %s22107_s6 = sld [smem:[#allocation2 + $0x100]] }
 0x85f   : > { %16071 = vmatprep.mubr.bf16.mxu0 %v19676_v0  ;;  %16084 = vmatpush3.bf16.msra.mxu0 %v18278_v47  ;;  %v18284_v0 = vld [vmem:[%s22306_s22] sm:$0xff]  }
 0x860   : > { %16085 = vmatprep.subr.bf16.mxu0 %v18279_v40 }
 0x863   : > { %16086 = vmatpush3.bf16.msra.mxu0 %v18279_v40 }
 0x864   : > { %16087 = vmatprep.subr.bf16.mxu0 %v18280_v43 }
 0x866   : > { %16072 = vmatmul.mubr.bf16.gmra.mrb[80].mxu0 %v19686_v56  ;;  %v18285_v56 = vld [vmem:[%s22306_s22 + $0x8] sm:$0xff]  }
 0x867   : > { %16075 = vmatprep.mubr.bf16.mxu0 %v19698_v16  ;;  %16088 = vmatpush3.bf16.msra.mxu0 %v18280_v43  ;;  %v18286_v16 = vld [vmem:[%s22306_s22 + $0x10] sm:$0xff]  }
 0x868   : > { %16089 = vmatprep.subr.bf16.mxu0 %v18281_v45 }
 0x86b   : > { %16090 = vmatpush3.bf16.msra.mxu0 %v18281_v45 }
 0x86c   : > { %16091 = vmatprep.subr.bf16.mxu0 %v18282_v35 }
 0x86e   : > { %16076 = vmatmul.mubr.bf16.gmra.mrb[84].mxu0 %v19712_v46  ;;  %v18287_v46 = vld [vmem:[%s22306_s22 + $0x18] sm:$0xff]  }
 0x86f   : > { %16092 = vmatpush3.bf16.msra.mxu0 %v18282_v35  ;;  %16095 = vmatprep.mubr.bf16.mxu0 %v19636_v60  ;;  %v18288_v60 = vld [vmem:[%s22306_s22 + $0x20] sm:$0xff]  }
 0x870   : > { %16093 = vmatprep.subr.bf16.mxu0 %v18283_v5 }
 0x873   : > { %16094 = vmatpush3.bf16.msra.mxu0 %v18283_v5 }
 0x874   : > { %16111 = vmatprep.subr.bf16.mxu0 %v18284_v0 }
 0x876   : > { %16096 = vmatmul.mubr.bf16.vlgmr.msra.gmra.mrb[72].mxu0 %v19648_v28  ;;  %v18289_v28 = vld [vmem:[%s22306_s22 + $0x28] sm:$0xff]  }
 0x877   : > { %16099 = vmatprep.mubr.bf16.mxu0 %v19662_v41  ;;  %16112 = vmatpush3.bf16.msra.mxu0 %v18284_v0  ;;  %v18290_v41 = vld [vmem:[%s22306_s22 + $0x30] sm:$0xff]  }
 0x878   : > { %16113 = vmatprep.subr.bf16.mxu0 %v18285_v56 }
 0x87b   : > { %16114 = vmatpush3.bf16.msra.mxu0 %v18285_v56 }
 0x87c   : > { %16115 = vmatprep.subr.bf16.mxu0 %v18286_v16 }
 0x87e   : > { %16100 = vmatmul.mubr.bf16.gmra.mrb[76].mxu0 %v19673_v11  ;;  %v18291_v11 = vld [vmem:[%s22306_s22 + $0x38] sm:$0xff]  }
 0x87f   : > { %16103 = vmatprep.mubr.bf16.mxu0 %v19683_v50  ;;  %16116 = vmatpush3.bf16.msra.mxu0 %v18286_v16  ;;  %v18292_v50 = vld [vmem:[%s18912_s16] sm:$0xff]  }
 0x880   : > { %16117 = vmatprep.subr.bf16.mxu0 %v18287_v46  ;;  %7446 = vmatpush1.bf16.msra.mxu1 %v18292_v50 }
 0x881   : > { %7447 = vmatprep.subr.bf16.mxu1 %v18618_v6 }
 0x883   : > { %16118 = vmatpush3.bf16.msra.mxu0 %v18287_v46 }
 0x884   : > { %16119 = vmatprep.subr.bf16.mxu0 %v18288_v60 }
 0x886   : > { %16104 = vmatmul.mubr.bf16.gmra.mrb[80].mxu0 %v19694_v15  ;;  %v18293_v15 = vld [vmem:[%s18912_s16 + $0x8] sm:$0xff]  }
 0x887   : > { %16107 = vmatprep.mubr.bf16.mxu0 %v19708_v1  ;;  %16120 = vmatpush3.bf16.msra.mxu0 %v18288_v60  ;;  %v18310_v1 = vld [vmem:[%s22307_s23 + $0x4] ss:$8 sps:$4 sm:$0xff]  }
 0x888   : > { %16121 = vmatprep.subr.bf16.mxu0 %v18289_v28  ;;  %7448 = vmatpush1.bf16.msra.mxu1 %v18293_v15  ;;  %v18317_v15 = vld [vmem:[%s22307_s23 + $0x34] ss:$8 sps:$4 sm:$0xff]  }
 0x889   : > { %7449 = vmatprep.subr.bf16.mxu1 %v18618_v6  ;;  %7477 = vmatprep.mubr.bf16.mxu1 %v18310_v1  ;;  %v18319_v1 = vld [vmem:[%s22307_s23 + $0x30] ss:$8 sps:$4 sm:$0xff]  }
 0x88b   : > { %16122 = vmatpush3.bf16.msra.mxu0 %v18289_v28 }
 0x88c   : > { %16123 = vmatprep.subr.bf16.mxu0 %v18290_v41  ;;  %7450 = vmatpush1.bf16.msra.mxu1 %v18294_v9  ;;  %v18320_v9 = vld [vmem:[%s22307_s23 + $0x44] ss:$8 sps:$4 sm:$0xff]  }
 0x88d   : > { %7451 = vmatprep.subr.bf16.mxu1 %v18618_v6 }
 0x88e   : > { %16108 = vmatmul.mubr.bf16.gmra.mrb[84].mxu0 %v19721_v44  ;;  %v18295_v44 = vld [vmem:[%s18912_s16 + $0x18] sm:$0xff]   ;;  %s22589_s16 = sld [smem:[#allocation25_spill]] }
 0x88f   : > { %16124 = vmatpush3.bf16.msra.mxu0 %v18290_v41 }
 0x890   : > { %16125 = vmatprep.subr.bf16.mxu0 %v18291_v11  ;;  %7452 = vmatpush1.bf16.msra.mxu1 %v18295_v44  ;;  %v18322_v44 = vld [vmem:[%s22307_s23 + $0x40] ss:$8 sps:$4 sm:$0xff]  }
 0x891   : > { %7453 = vmatprep.subr.bf16.mxu1 %v18618_v6 }
 0x893   : > { %16126 = vmatpush3.bf16.msra.mxu0 %v18291_v11 }
 0x894   : > { %7454 = vmatpush1.bf16.msra.mxu1 %v18296_v10  ;;  %v18323_v10 = vld [vmem:[%s22307_s23 + $0x54] ss:$8 sps:$4 sm:$0xff]  }
 0x895   : > { %7455 = vmatprep.subr.bf16.mxu1 %v18618_v6 }
 0x898   : > { %7456 = vmatpush1.bf16.msra.mxu1 %v18297_v18  ;;  %v18325_v18 = vld [vmem:[%s22307_s23 + $0x50] ss:$8 sps:$4 sm:$0xff]  }
 0x899   : > { %7457 = vmatprep.subr.bf16.mxu1 %v18618_v6 }
 0x89c   : > { %7458 = vmatpush1.bf16.msra.mxu1 %v18298_v29  ;;  %v18326_v29 = vld [vmem:[%s22307_s23 + $0x64] ss:$8 sps:$4 sm:$0xff]  }
 0x89d   : > { %7459 = vmatprep.subr.bf16.mxu1 %v18618_v6 }
 0x8a0   : > { %7460 = vmatpush1.bf16.msra.mxu1 %v18299_v21  ;;  %v18328_v21 = vld [vmem:[%s22307_s23 + $0x60] ss:$8 sps:$4 sm:$0xff]  }
 0x8a1   : > { %7461 = vmatprep.subr.bf16.mxu1 %v18618_v6 }
 0x8a4   : > { %7462 = vmatpush1.bf16.msra.mxu1 %v18300_v57  ;;  %v18329_v57 = vld [vmem:[%s22307_s23 + $0x74] ss:$8 sps:$4 sm:$0xff]  }
 0x8a5   : > { %7463 = vmatprep.subr.bf16.mxu1 %v18618_v6 }
 0x8a8   : > { %7464 = vmatpush1.bf16.msra.mxu1 %v18301_v24  ;;  %v18331_v24 = vld [vmem:[%s22307_s23 + $0x70] ss:$8 sps:$4 sm:$0xff]  }
 0x8a9   : > { %7465 = vmatprep.subr.bf16.mxu1 %v18618_v6 }
 0x8ac   : > { %7466 = vmatpush1.bf16.msra.mxu1 %v18302_v4  ;;  %v18332_v4 = vld [vmem:[%s22309_s28] sm:$0xff]  }
 0x8ad   : > { %7467 = vmatprep.subr.bf16.mxu1 %v18618_v6 }
 0x8b0   : > { %7468 = vmatpush1.bf16.msra.mxu1 %v18303_v7  ;;  %v18333_v7 = vld [vmem:[%s22307_s23 + $0x84] ss:$8 sps:$4 sm:$0xff]  }
 0x8b1   : > { %7469 = vmatprep.subr.bf16.mxu1 %v18618_v6 }
 0x8b4   : > { %7470 = vmatpush1.bf16.msra.mxu1 %v18304_v8  ;;  %v18336_v8 = vld [vmem:[%s22307_s23 + $0x80] ss:$8 sps:$4 sm:$0xff]  }
 0x8b5   : > { %7471 = vmatprep.subr.bf16.mxu1 %v18618_v6 }
 0x8b8   : > { %7472 = vmatpush1.bf16.msra.mxu1 %v18305_v39  ;;  %v18338_v39 = vld [vmem:[%s22307_s23 + $0x94] ss:$8 sps:$4 sm:$0xff]  }
 0x8b9   : > { %7473 = vmatprep.subr.bf16.mxu1 %v18618_v6 }
 0x8bc   : > { %7474 = vmatpush1.bf16.msra.mxu1 %v18306_v58  ;;  %v18341_v58 = vld [vmem:[%s22307_s23 + $0x90] ss:$8 sps:$4 sm:$0xff]  }
 0x8bd   : > { %7475 = vmatprep.subr.bf16.mxu1 %v18618_v6 }
 0x8c0   : > { %7476 = vmatpush1.bf16.msra.mxu1 %v18307_v48  ;;  %v18343_v48 = vld [vmem:[%s22307_s23 + $0xa4] ss:$8 sps:$4 sm:$0xff]  }
 0x8c3   : > { %7478 = vmatmul.mubr.bf16.vlgmr.msra.gmra.mrb[24].mxu1 %v18308_v3  ;;  %v18346_v3 = vld [vmem:[%s22307_s23 + $0xa0] ss:$8 sps:$4 sm:$0xff]  }
 0x8c4   : > { %7485 = vmatprep.mubr.bf16.mxu1 %v18311_v34  ;;  %v18348_v34 = vld [vmem:[%s22307_s23 + $0xb4] ss:$8 sps:$4 sm:$0xff]  }
 0x8cb   : > { %7486 = vmatmul.mubr.bf16.gmra.mrb[28].mxu1 %v18313_v61  ;;  %v18351_v61 = vld [vmem:[%s22307_s23 + $0xb0] ss:$8 sps:$4 sm:$0xff]  }
 0x8cc   : > { %7493 = vmatprep.mubr.bf16.mxu1 %v18314_v23  ;;  %v18353_v23 = vld [vmem:[%s22307_s23 + $0xc4] ss:$8 sps:$4 sm:$0xff]  }
 0x8d3   : > { %7494 = vmatmul.mubr.bf16.gmra.mrb[32].mxu1 %v18316_v25  ;;  %v18356_v25 = vld [vmem:[%s22307_s23 + $0xc0] ss:$8 sps:$4 sm:$0xff]  }
 0x8d4   : > { %7501 = vmatprep.mubr.bf16.mxu1 %v18317_v15  ;;  %v18389_v15 = vld [vmem:[%s22307_s23 + $0x154] ss:$8 sps:$4 sm:$0xff]  }
 0x8db   : > { %7502 = vmatmul.mubr.bf16.gmra.mrb[36].mxu1 %v18319_v1 }
 0x8dc   : > { %7509 = vmatprep.mubr.bf16.mxu1 %v18320_v9 }
 0x8e3   : > { %7510 = vmatmul.mubr.bf16.gmra.mrb[40].mxu1 %v18322_v44 }
 0x8e4   : > { %7517 = vmatprep.mubr.bf16.mxu1 %v18323_v10 }
 0x8eb   : > { %7518 = vmatmul.mubr.bf16.gmra.mrb[44].mxu1 %v18325_v18 }
 0x8ec   : > { %7525 = vmatprep.mubr.bf16.mxu1 %v18326_v29 }
 0x8f3   : > { %7526 = vmatmul.mubr.bf16.gmra.mrb[48].mxu1 %v18328_v21 }
 0x8f4   : > { %7533 = vmatprep.mubr.bf16.mxu1 %v18329_v57 }
 0x8fb   : > { %7534 = vmatmul.mubr.bf16.gmra.mrb[52].mxu1 %v18331_v24 }
 0x8fc   : > { %7541 = vmatprep.mubr.bf16.mxu1 %v18333_v7 }
 0x903   : > { %7542 = vmatmul.mubr.bf16.gmra.mrb[56].mxu1 %v18336_v8  ;;  %v18394_v8 = vld [vmem:[%s22307_s23 + $0x164] ss:$8 sps:$4 sm:$0xff]  }
 0x904   : > { %7549 = vmatprep.mubr.bf16.mxu1 %v18338_v39 }
 0x90b   : > { %7550 = vmatmul.mubr.bf16.gmra.mrb[60].mxu1 %v18341_v58 }
 0x90c   : > { %7557 = vmatprep.mubr.bf16.mxu1 %v18343_v48 }
 0x913   : > { %7558 = vmatmul.mubr.bf16.gmra.mrb[64].mxu1 %v18346_v3 }
 0x914   : > { %7565 = vmatprep.mubr.bf16.mxu1 %v18348_v34 }
 0x91b   : > { %7566 = vmatmul.mubr.bf16.gmra.mrb[68].mxu1 %v18351_v61 }
 0x91c   : > { %7573 = vmatprep.mubr.bf16.mxu1 %v18353_v23 }
 0x923   : > { %7574 = vmatmul.mubr.bf16.gmra.mrb[72].mxu1 %v18356_v25 }
 0x949   : > { %v16097_v37 = vpop.f32.mrb[72].mxu0 }
 0x94a   : > { %v6639_v14 = vpop.f32.mrb[73].mxu0  ;;  %v6727_v63 = vadd.f32 %v16097_v37, %v14492_v51  ;;  %v18358_v37 = vld [vmem:[%s22307_s23 + $0xd4] ss:$8 sps:$4 sm:$0xff]  }
 0x94b   : > { %v16098_v49 = vpop.f32.mrb[74].mxu0  ;;  %v6725_v36 = vadd.f32 %v14492_v51, %v6639_v14  ;;  %7581 = vmatprep.mubr.bf16.mxu1 %v18358_v37  ;;  %v18363_v14 = vld [vmem:[%s22307_s23 + $0xe4] ss:$8 sps:$4 sm:$0xff]  }
 0x94c   : > { %v6728_v27 = vadd.f32 %v16098_v49, %v14492_v51  ;;  %v6642_v30 = vpop.f32.mrb[75].mxu0  ;;  %v18366_v49 = vld [vmem:[%s22307_s23 + $0xe0] ss:$8 sps:$4 sm:$0xff]  }
 0x94d   : > { %v6726_v6 = vadd.f32 %v14492_v51, %v6642_v30  ;;  %v18373_v30 = vld [vmem:[%s22307_s23 + $0x104] ss:$8 sps:$4 sm:$0xff]  }
 0x94e   : > { %v6742_v55 = vpack.c.bf16 %v6728_v27, %v6727_v63  ;;  %v18368_v63 = vld [vmem:[%s22307_s23 + $0xf4] ss:$8 sps:$4 sm:$0xff]   ;;  %v18371_v27 = vld [vmem:[%s22307_s23 + $0xf0] ss:$8 sps:$4 sm:$0xff]  }
 0x94f   : > { %v6741_v52 = vpack.c.bf16 %v6726_v6, %v6725_v36  ;;  %v18376_v36 = vld [vmem:[%s22307_s23 + $0x100] ss:$8 sps:$4 sm:$0xff]   ;;  %v18377_v6 = vld [vmem:[%s22307_s23 + $0x114] ss:$8 sps:$4 sm:$0xff]  }
 0x951   : > { %v16101_v42 = vpop.f32.mrb[76].mxu0  ;;  %16127 = vmatprep.mubr.bf16.mxu0 %v6741_v52 }
 0x952   : > { %v6655_v59 = vpop.f32.mrb[77].mxu0  ;;  %16128 = vmatmul.mubr.bf16.vlgmr.msra.gmra.mrb[88].mxu0 %v6742_v55  ;;  %v6731_v31 = vadd.f32 %v16101_v42, %v14492_v51  ;;  %v18379_v42 = vld [vmem:[%s22307_s23 + $0x110] ss:$8 sps:$4 sm:$0xff]  }
 0x953   : > { %v16102_v62 = vpop.f32.mrb[78].mxu0  ;;  %v6729_v53 = vadd.f32 %v14492_v51, %v6655_v59 }
 0x954   : > { %v6732_v32 = vadd.f32 %v16102_v62, %v14492_v51  ;;  %v6658_v26 = vpop.f32.mrb[79].mxu0  ;;  %v18380_v62 = vld [vmem:[%s22307_s23 + $0x124] ss:$8 sps:$4 sm:$0xff]  }
 0x955   : > { %v6730_v17 = vadd.f32 %v14492_v51, %v6658_v26 }
 0x956   : > { %v6744_v2 = vpack.c.bf16 %v6732_v32, %v6731_v31 }
 0x957   : > { %v6743_v19 = vpack.c.bf16 %v6730_v17, %v6729_v53  ;;  %v18382_v53 = vld [vmem:[%s22307_s23 + $0x120] ss:$8 sps:$4 sm:$0xff]  }
 0x959   : > { %v16105_v33 = vpop.f32.mrb[80].mxu0  ;;  %16131 = vmatprep.mubr.bf16.mxu0 %v6743_v19 }
 0x95a   : > { %v6671_v38 = vpop.f32.mrb[81].mxu0  ;;  %16132 = vmatmul.mubr.bf16.gmra.mrb[92].mxu0 %v6744_v2  ;;  %v6735_v54 = vadd.f32 %v16105_v33, %v14492_v51  ;;  %v18383_v2 = vld [vmem:[%s22307_s23 + $0x134] ss:$8 sps:$4 sm:$0xff]  }
 0x95b   : > { %v16106_v22 = vpop.f32.mrb[82].mxu0  ;;  %v6733_v40 = vadd.f32 %v14492_v51, %v6671_v38 }
 0x95c   : > { %v6736_v20 = vadd.f32 %v16106_v22, %v14492_v51  ;;  %v6674_v47 = vpop.f32.mrb[83].mxu0 }
 0x95d   : > { %v6734_v43 = vadd.f32 %v14492_v51, %v6674_v47 }
 0x95e   : > { %v6746_v45 = vpack.c.bf16 %v6736_v20, %v6735_v54  ;;  %v19924_v54 = vld [vmem:[%s22310_s1] ss:$0 sm:$0xff]  ;;  %v18385_v20 = vld [vmem:[%s22307_s23 + $0x130] ss:$8 sps:$4 sm:$0xff]   ;;  %s22087_s1 = sshll.u32 %s22594_s10, 3  ;;  %s22103_s10 = sld [smem:[#allocation2 + $0x102]] }
 0x95f   : > { %v6745_v35 = vpack.c.bf16 %v6734_v43, %v6733_v40  ;;  %v18386_v43 = vld [vmem:[%s22307_s23 + $0x144] ss:$8 sps:$4 sm:$0xff]   ;;  %s1017_s8 = scalar_lea.vmem %s18769_s20, %s22087_s1 }
 0x961   : > { %v16109_v5 = vpop.f32.mrb[84].mxu0  ;;  %16135 = vmatprep.mubr.bf16.mxu0 %v6745_v35 }
 0x962   : > { %v6687_v0 = vpop.f32.mrb[85].mxu0  ;;  %16136 = vmatmul.mubr.bf16.gmra.mrb[96].mxu0 %v6746_v45  ;;  %v6739_v16 = vadd.f32 %v16109_v5, %v14492_v51 }
 0x963   : > { %v16110_v56 = vpop.f32.mrb[86].mxu0  ;;  %v6737_v28 = vadd.f32 %v14492_v51, %v6687_v0 }
 0x964   : > { %v6740_v46 = vadd.f32 %v16110_v56, %v14492_v51  ;;  %v6690_v60 = vpop.f32.mrb[87].mxu0 }
 0x965   : > { %v6738_v41 = vadd.f32 %v14492_v51, %v6690_v60  ;;  %v18361_v51 = vld [vmem:[%s22307_s23 + $0xd0] ss:$8 sps:$4 sm:$0xff]  }
 0x966   : > { %v6748_v11 = vpack.c.bf16 %v6740_v46, %v6739_v16  ;;  %7582 = vmatmul.mubr.bf16.gmra.mrb[76].mxu1 %v18361_v51  ;;  %v18396_v51 = vld [vmem:[%s22307_s23 + $0x160] ss:$8 sps:$4 sm:$0xff]  }
 0x967   : > { %v6747_v50 = vpack.c.bf16 %v6738_v41, %v6737_v28  ;;  %7589 = vmatprep.mubr.bf16.mxu1 %v18363_v14 }
 0x969   : > { %16139 = vmatprep.mubr.bf16.mxu0 %v6747_v50 }
 0x96a   : > { %16140 = vmatmul.mubr.bf16.gmra.mrb[100].mxu0 %v6748_v11  ;;  %v18388_v11 = vld [vmem:[%s22307_s23 + $0x140] ss:$8 sps:$4 sm:$0xff]  }
 0x96b   : > { %16159 = vmatprep.mubr.bf16.mxu0 %v18332_v4  ;;  %v18391_v4 = vld [vmem:[%s22307_s23 + $0x150] ss:$8 sps:$4 sm:$0xff]  }
 0x96e   : > { %7590 = vmatmul.mubr.bf16.gmra.mrb[80].mxu1 %v18366_v49  ;;  %v18399_v49 = vld [vmem:[%s22307_s23 + $0x174] ss:$8 sps:$4 sm:$0xff]  }
 0x96f   : > { %7597 = vmatprep.mubr.bf16.mxu1 %v18368_v63 }
 0x976   : > { %7598 = vmatmul.mubr.bf16.gmra.mrb[84].mxu1 %v18371_v27 }
 0x977   : > { %7605 = vmatprep.mubr.bf16.mxu1 %v18373_v30 }
 0x97e   : > { %7606 = vmatmul.mubr.bf16.gmra.mrb[88].mxu1 %v18376_v36 }
 0x97f   : > { %7613 = vmatprep.mubr.bf16.mxu1 %v18377_v6 }
 0x986   : > { %7614 = vmatmul.mubr.bf16.gmra.mrb[92].mxu1 %v18379_v42 }
 0x987   : > { %7621 = vmatprep.mubr.bf16.mxu1 %v18380_v62 }
 0x98e   : > { %7622 = vmatmul.mubr.bf16.gmra.mrb[96].mxu1 %v18382_v53  ;;  %v18335_v53 = vld [vmem:[%s22309_s28 + $0x8] sm:$0xff]  }
 0x98f   : > { %7629 = vmatprep.mubr.bf16.mxu1 %v18383_v2  ;;  %v18337_v2 = vld [vmem:[%s22309_s28 + $0x10] sm:$0xff]  }
 0x996   : > { %v19909_v55 = vpop.f32.mrb[24].mxu1  ;;  %7630 = vmatmul.mubr.bf16.gmra.mrb[100].mxu1 %v18385_v20  ;;  %v18411_v20 = vld [vmem:[%s22307_s23 + $0x190] ss:$8 sps:$4 sm:$0xff]  }
 0x997   : > { %v7481_v52 = vpop.f32.mrb[25].mxu1  ;;  %7637 = vmatprep.mubr.bf16.mxu1 %v18386_v43  ;;  %v18345_v43 = vld [vmem:[%s22309_s28 + $0x28] sm:$0xff]  }
 0x998   : > { %v19912_v59 = vpop.f32.mrb[26].mxu1 }
 0x999   : > { %v7484_v31 = vpop.f32.mrb[27].mxu1 }
 0x99a   : > { %v18401_v31 = vld [vmem:[%s22307_s23 + $0x170] ss:$8 sps:$4 sm:$0xff]  }
 0x99e   : > { %v19915_v32 = vpop.f32.mrb[28].mxu1  ;;  %7638 = vmatmul.mubr.bf16.gmra.mrb[104].mxu1 %v18388_v11 }
 0x99f   : > { %v7489_v26 = vpop.f32.mrb[29].mxu1  ;;  %7645 = vmatprep.mubr.bf16.mxu1 %v18389_v15 }
 0x9a0   : > { %v19918_v17 = vpop.f32.mrb[30].mxu1  ;;  %v18404_v26 = vld [vmem:[%s22307_s23 + $0x184] ss:$8 sps:$4 sm:$0xff]  }
 0x9a1   : > { %v7492_v19 = vpop.f32.mrb[31].mxu1 }
 0x9a2   : > { %v18406_v19 = vld [vmem:[%s22307_s23 + $0x180] ss:$8 sps:$4 sm:$0xff]  }
 0x9a6   : > { %v19921_v33 = vpop.f32.mrb[32].mxu1  ;;  %7646 = vmatmul.mubr.bf16.gmra.mrb[108].mxu1 %v18391_v4  ;;  %v18397_v4 = vld [vmem:[%s22309_s28 + $0xa0] sm:$0xff]  }
 0x9a7   : > { %v7497_v38 = vpop.f32.mrb[33].mxu1  ;;  %7653 = vmatprep.mubr.bf16.mxu1 %v18394_v8  ;;  %v18402_v8 = vld [vmem:[%s22309_s28 + $0xb0] sm:$0xff]  }
 0x9a8   : > { %v19927_v47 = vpop.f32.mrb[34].mxu1  ;;  %v18409_v38 = vld [vmem:[%s22307_s23 + $0x194] ss:$8 sps:$4 sm:$0xff]  }
 0x9a9   : > { %v7500_v45 = vpop.f32.mrb[35].mxu1 }
 0x9aa   : > { %v18347_v45 = vld [vmem:[%s22309_s28 + $0x30] sm:$0xff]  }
 0x9ae   : > { %7654 = vmatmul.mubr.bf16.gmra.mrb[112].mxu1 %v18396_v51  ;;  %v18418_v51 = vld [vmem:[%s22311_s2 + $0x28] sm:$0xff]  }
 0x9af   : > { %7661 = vmatprep.mubr.bf16.mxu1 %v18399_v49 }
 0x9b6   : > { %7662 = vmatmul.mubr.bf16.gmra.mrb[116].mxu1 %v18401_v31 }
 0x9b7   : > { %7669 = vmatprep.mubr.bf16.mxu1 %v18404_v26 }
 0x9be   : > { %7670 = vmatmul.mubr.bf16.gmra.mrb[120].mxu1 %v18406_v19 }
 0x9bf   : > { %7677 = vmatprep.mubr.bf16.mxu1 %v18409_v38 }
 0x9c6   : > { %7678 = vmatmul.mubr.bf16.gmra.mrb[124].mxu1 %v18411_v20 }
 0xa25   : > { %v16129_v22 = vpop.f32.mrb[88].mxu0 }
 0xa26   : > { %v6854_v40 = vpop.f32.mrb[89].mxu0  ;;  %v6863_v5 = vadd.f32 %v16129_v22, %v19924_v54  ;;  %v18340_v22 = vld [vmem:[%s22309_s28 + $0x18] sm:$0xff]  }
 0xa27   : > { %v16130_v35 = vpop.f32.mrb[90].mxu0  ;;  %v6855_v16 = vadd.f32 %v19924_v54, %v6854_v40  ;;  %v18413_v40 = vld [vmem:[%s22307_s23 + $0x1a4] ss:$8 sps:$4 sm:$0xff]  }
 0xa28   : > { %v6866_v0 = vadd.f32 %v16130_v35, %v19924_v54  ;;  %v6857_v56 = vpop.f32.mrb[91].mxu0  ;;  %7685 = vmatprep.mubr.bf16.mxu1 %v18413_v40  ;;  %v18350_v35 = vld [vmem:[%s22309_s28 + $0x38] sm:$0xff]  }
 0xa29   : > { %v6858_v46 = vadd.f32 %v19924_v54, %v6857_v56  ;;  %v18357_v56 = vld [vmem:[%s22309_s28 + $0x50] sm:$0xff]  }
 0xa2a   : > { %v6918_v60 = vpack.c.bf16 %v6866_v0, %v6863_v5  ;;  %v18352_v5 = vld [vmem:[%s22309_s28 + $0x40] sm:$0xff]   ;;  %v18355_v0 = vld [vmem:[%s22309_s28 + $0x48] sm:$0xff]  }
 0xa2b   : > { %v6917_v28 = vpack.c.bf16 %v6858_v46, %v6855_v16  ;;  %v18360_v16 = vld [vmem:[%s22309_s28 + $0x58] sm:$0xff]   ;;  %v18362_v46 = vld [vmem:[%s22309_s28 + $0x60] sm:$0xff]  }
 0xa2d   : > { %v16133_v41 = vpop.f32.mrb[92].mxu0  ;;  %16143 = vmatprep.subr.bf16.mxu0 %v6917_v28 }
 0xa2e   : > { %v6870_v50 = vpop.f32.mrb[93].mxu0  ;;  %16144 = vmatpush3.bf16.msra.mxu0 %v6917_v28  ;;  %v6879_v9 = vadd.f32 %v16133_v41, %v19924_v54  ;;  %v18367_v28 = vld [vmem:[%s22309_s28 + $0x70] sm:$0xff]   ;;  %v19972_v41 = vpop.f32.mrb[36].mxu1 }
 0xa2f   : > { %v16134_v1 = vpop.f32.mrb[94].mxu0  ;;  %16145 = vmatprep.subr.bf16.mxu0 %v6918_v60  ;;  %v6871_v18 = vadd.f32 %v19924_v54, %v6870_v50  ;;  %v7505_v11 = vpop.f32.mrb[37].mxu1 }
 0xa30   : > { %v6882_v44 = vadd.f32 %v16134_v1, %v19924_v54  ;;  %v6873_v10 = vpop.f32.mrb[95].mxu0  ;;  %v19974_v50 = vpop.f32.mrb[38].mxu1  ;;  %v18370_v1 = vld [vmem:[%s22309_s28 + $0x78] sm:$0xff]  }
 0xa31   : > { %v6874_v29 = vadd.f32 %v19924_v54, %v6873_v10  ;;  %v7508_v15 = vpop.f32.mrb[39].mxu1 }
 0xa32   : > { %v6920_v21 = vpack.c.bf16 %v6882_v44, %v6879_v9  ;;  %16146 = vmatpush3.bf16.msra.mxu0 %v6918_v60  ;;  %v18365_v60 = vld [vmem:[%s22309_s28 + $0x68] sm:$0xff]   ;;  %v18372_v9 = vld [vmem:[%s22309_s28 + $0x80] sm:$0xff]   ;;  %v19978_v44 = vpop.f32.mrb[40].mxu1 }
 0xa33   : > { %v6919_v57 = vpack.c.bf16 %v6874_v29, %v6871_v18  ;;  %v7513_v10 = vpop.f32.mrb[41].mxu1 }
 0xa34   : > { %v19980_v18 = vpop.f32.mrb[42].mxu1 }
 0xa35   : > { %v16137_v24 = vpop.f32.mrb[96].mxu0  ;;  %16147 = vmatprep.subr.bf16.mxu0 %v6919_v57  ;;  %v7516_v29 = vpop.f32.mrb[43].mxu1 }
 0xa36   : > { %v6886_v7 = vpop.f32.mrb[97].mxu0  ;;  %16148 = vmatpush3.bf16.msra.mxu0 %v6919_v57  ;;  %v6895_v58 = vadd.f32 %v16137_v24, %v19924_v54  ;;  %v18392_v57 = vld [vmem:[%s22309_s28 + $0x90] sm:$0xff]   ;;  %v18393_v24 = vld [vmem:[%s22309_s28 + $0x98] sm:$0xff]  }
 0xa37   : > { %v16138_v39 = vpop.f32.mrb[98].mxu0  ;;  %16149 = vmatprep.subr.bf16.mxu0 %v6920_v21  ;;  %v6887_v34 = vadd.f32 %v19924_v54, %v6886_v7  ;;  %v18398_v7 = vld [vmem:[%s22309_s28 + $0xa8] sm:$0xff]  }
 0xa38   : > { %v6898_v48 = vadd.f32 %v16138_v39, %v19924_v54  ;;  %v6889_v3 = vpop.f32.mrb[99].mxu0  ;;  %v18403_v39 = vld [vmem:[%s22309_s28 + $0xb8] sm:$0xff]  }
 0xa39   : > { %v6890_v61 = vadd.f32 %v19924_v54, %v6889_v3  ;;  %v18408_v3 = vld [vmem:[%s22309_s28 + $0xc8] sm:$0xff]  }
 0xa3a   : > { %v6922_v23 = vpack.c.bf16 %v6898_v48, %v6895_v58  ;;  %16150 = vmatpush3.bf16.msra.mxu0 %v6920_v21  ;;  %v18375_v21 = vld [vmem:[%s22309_s28 + $0x88] sm:$0xff]   ;;  %v18407_v48 = vld [vmem:[%s22309_s28 + $0xc0] sm:$0xff]  }
 0xa3b   : > { %v6921_v25 = vpack.c.bf16 %v6890_v61, %v6887_v34  ;;  %v18416_v58 = vld [vmem:[%s22307_s23 + $0x1a0] ss:$8 sps:$4 sm:$0xff]   ;;  %v18412_v34 = vld [vmem:[%s22309_s28 + $0xd0] sm:$0xff]  }
 0xa3c   : > { %7686 = vmatmul.mubr.bf16.gmra.mrb[128].mxu1 %v18416_v58  ;;  %v18417_v61 = vld [vmem:[%s22311_s2 + $0x20] sm:$0xff]  }
 0xa3d   : > { %v16141_v37 = vpop.f32.mrb[100].mxu0  ;;  %16151 = vmatprep.subr.bf16.mxu0 %v6921_v25  ;;  %16431 = vmatprep.subr.bf16.mxu1 %v18417_v61 }
 0xa3e   : > { %v6902_v14 = vpop.f32.mrb[101].mxu0  ;;  %16152 = vmatpush3.bf16.msra.mxu0 %v6921_v25  ;;  %v6911_v27 = vadd.f32 %v16141_v37, %v19924_v54  ;;  %v18419_v25 = vld [vmem:[%s22307_s23 + $0x1b4] ss:$8 sps:$4 sm:$0xff]   ;;  %16432 = vmatpush3.bf16.msra.mxu1 %v18417_v61 }
 0xa3f   : > { %v16142_v63 = vpop.f32.mrb[102].mxu0  ;;  %16153 = vmatprep.subr.bf16.mxu0 %v6922_v23  ;;  %v6903_v6 = vadd.f32 %v19924_v54, %v6902_v14  ;;  %v18421_v14 = vld [vmem:[%s22307_s23 + $0x1b0] ss:$8 sps:$4 sm:$0xff]   ;;  %7693 = vmatprep.mubr.bf16.mxu1 %v18419_v25 }
 0xa40   : > { %v6914_v30 = vadd.f32 %v16142_v63, %v19924_v54  ;;  %v6905_v36 = vpop.f32.mrb[103].mxu0  ;;  %16433 = vmatprep.subr.bf16.mxu1 %v18418_v51 }
 0xa41   : > { %v6906_v52 = vadd.f32 %v19924_v54, %v6905_v36  ;;  %v18342_v54 = vld [vmem:[%s22309_s28 + $0x20] sm:$0xff]   ;;  %v18415_v36 = vld [vmem:[%s22309_s28 + $0xd8] sm:$0xff]  }
 0xa42   : > { %v6924_v42 = vpack.c.bf16 %v6914_v30, %v6911_v27  ;;  %16154 = vmatpush3.bf16.msra.mxu0 %v6922_v23  ;;  %v19994_v23 = vpop.f32.mrb[44].mxu1  ;;  %v18422_v27 = vld [vmem:[%s22311_s2 + $0x30] sm:$0xff]   ;;  %16434 = vmatpush3.bf16.msra.mxu1 %v18418_v51 }
 0xa43   : > { %v6923_v62 = vpack.c.bf16 %v6906_v52, %v6903_v6  ;;  %v7521_v37 = vpop.f32.mrb[45].mxu1  ;;  %16435 = vmatprep.subr.bf16.mxu1 %v18422_v27 }
 0xa44   : > { %v19999_v49 = vpop.f32.mrb[46].mxu1  ;;  %7694 = vmatmul.mubr.bf16.gmra.mrb[132].mxu1 %v18421_v14 }
 0xa45   : > { %16155 = vmatprep.subr.bf16.mxu0 %v6923_v62  ;;  %v7524_v63 = vpop.f32.mrb[47].mxu1 }
 0xa46   : > { %16156 = vmatpush3.bf16.msra.mxu0 %v6923_v62  ;;  %v20002_v30 = vpop.f32.mrb[48].mxu1  ;;  %16436 = vmatpush3.bf16.msra.mxu1 %v18422_v27 }
 0xa47   : > { %16157 = vmatprep.subr.bf16.mxu0 %v6924_v42  ;;  %v7529_v6 = vpop.f32.mrb[49].mxu1 }
 0xa48   : > { %v20005_v52 = vpop.f32.mrb[50].mxu1 }
 0xa49   : > { %v7532_v62 = vpop.f32.mrb[51].mxu1 }
 0xa4a   : > { %16158 = vmatpush3.bf16.msra.mxu0 %v6924_v42  ;;  %v18423_v42 = vld [vmem:[%s22311_s2 + $0x38] sm:$0xff]   ;;  %v20008_v31 = vpop.f32.mrb[52].mxu1 }
 0xa4b   : > { %16215 = vmatprep.subr.bf16.mxu0 %v18417_v61  ;;  %v7537_v26 = vpop.f32.mrb[53].mxu1  ;;  %16437 = vmatprep.subr.bf16.mxu1 %v18423_v42 }
 0xa4c   : > { %16438 = vmatpush3.bf16.msra.mxu1 %v18423_v42 }
 0xa4d   : > { %16160 = vmatmul.mubr.bf16.vlgmr.msra.gmra.mrb[104].mxu0 %v18335_v53  ;;  %v20010_v53 = vpop.f32.mrb[54].mxu1 }
 0xa4e   : > { %16163 = vmatprep.mubr.bf16.mxu0 %v18337_v2  ;;  %16216 = vmatpush3.bf16.msra.mxu0 %v18417_v61  ;;  %v7540_v2 = vpop.f32.mrb[55].mxu1 }
 0xa4f   : > { %16217 = vmatprep.subr.bf16.mxu0 %v18418_v51  ;;  %v20012_v19 = vpop.f32.mrb[56].mxu1 }
 0xa50   : > { %v7545_v38 = vpop.f32.mrb[57].mxu1 }
 0xa52   : > { %16218 = vmatpush3.bf16.msra.mxu0 %v18418_v51 }
 0xa53   : > { %16219 = vmatprep.subr.bf16.mxu0 %v18422_v27 }
 0xa55   : > { %16164 = vmatmul.mubr.bf16.gmra.mrb[108].mxu0 %v18340_v22  ;;  %v20014_v22 = vpop.f32.mrb[58].mxu1 }
 0xa56   : > { %16167 = vmatprep.mubr.bf16.mxu0 %v18342_v54  ;;  %16220 = vmatpush3.bf16.msra.mxu0 %v18422_v27  ;;  %v7548_v54 = vpop.f32.mrb[59].mxu1 }
 0xa57   : > { %16221 = vmatprep.subr.bf16.mxu0 %v18423_v42  ;;  %v20016_v20 = vpop.f32.mrb[60].mxu1 }
 0xa58   : > { %v7553_v40 = vpop.f32.mrb[61].mxu1 }
 0xa5a   : > { %16222 = vmatpush3.bf16.msra.mxu0 %v18423_v42 }
 0xa5d   : > { %16168 = vmatmul.mubr.bf16.gmra.mrb[112].mxu0 %v18345_v43  ;;  %v20018_v43 = vpop.f32.mrb[62].mxu1 }
 0xa5e   : > { %16171 = vmatprep.mubr.bf16.mxu0 %v18347_v45  ;;  %v7556_v45 = vpop.f32.mrb[63].mxu1 }
 0xa65   : > { %16172 = vmatmul.mubr.bf16.gmra.mrb[116].mxu0 %v18350_v35  ;;  %v20021_v35 = vld [vmem:[%s22311_s2] sm:$0xff]  }
 0xa66   : > { %16175 = vmatprep.mubr.bf16.mxu0 %v18352_v5  ;;  %v20023_v5 = vpop.f32.mrb[64].mxu1  ;;  %16239 = vmatprep.subr.bf16.mxu0 %v20021_v35 }
 0xa67   : > { %16455 = vmatprep.subr.bf16.mxu1 %v20021_v35 }
 0xa6d   : > { %16176 = vmatmul.mubr.bf16.gmra.mrb[120].mxu0 %v18355_v0  ;;  %v7561_v0 = vpop.f32.mrb[65].mxu1 }
 0xa6e   : > { %16179 = vmatprep.mubr.bf16.mxu0 %v18357_v56  ;;  %v20026_v56 = vpop.f32.mrb[66].mxu1 }
 0xa75   : > { %16180 = vmatmul.mubr.bf16.gmra.mrb[124].mxu0 %v18360_v16  ;;  %v7564_v16 = vpop.f32.mrb[67].mxu1 }
 0xa76   : > { %16183 = vmatprep.mubr.bf16.mxu0 %v18362_v46  ;;  %v20029_v46 = vpop.f32.mrb[68].mxu1 }
 0xa7d   : > { %16184 = vmatmul.mubr.bf16.gmra.mrb[128].mxu0 %v18365_v60  ;;  %v7569_v60 = vpop.f32.mrb[69].mxu1 }
 0xa7e   : > { %16187 = vmatprep.mubr.bf16.mxu0 %v18367_v28  ;;  %v20031_v28 = vpop.f32.mrb[70].mxu1 }
 0xa7f   : > { %v7572_v11 = vpop.f32.mrb[71].mxu1 }
 0xa80   : > { %v20033_v15 = vpop.f32.mrb[72].mxu1 }
 0xa85   : > { %16188 = vmatmul.mubr.bf16.gmra.mrb[132].mxu0 %v18370_v1  ;;  %v7577_v1 = vpop.f32.mrb[73].mxu1 }
 0xa86   : > { %16191 = vmatprep.mubr.bf16.mxu0 %v18372_v9  ;;  %v20035_v9 = vpop.f32.mrb[74].mxu1 }
 0xa87   : > { %v7580_v10 = vpop.f32.mrb[75].mxu1 }
 0xa88   : > { %v20037_v29 = vpop.f32.mrb[76].mxu1 }
 0xa8d   : > { %16192 = vmatmul.mubr.bf16.gmra.mrb[136].mxu0 %v18375_v21  ;;  %v7585_v21 = vpop.f32.mrb[77].mxu1 }
 0xa8e   : > { %16195 = vmatprep.mubr.bf16.mxu0 %v18392_v57  ;;  %v20039_v57 = vpop.f32.mrb[78].mxu1 }
 0xa95   : > { %16196 = vmatmul.mubr.bf16.gmra.mrb[140].mxu0 %v18393_v24  ;;  %v7588_v24 = vpop.f32.mrb[79].mxu1 }
 0xa96   : > { %16199 = vmatprep.mubr.bf16.mxu0 %v18397_v4  ;;  %v20041_v4 = vpop.f32.mrb[80].mxu1 }
 0xa9d   : > { %16200 = vmatmul.mubr.bf16.gmra.mrb[144].mxu0 %v18398_v7  ;;  %v7593_v7 = vpop.f32.mrb[81].mxu1 }
 0xa9e   : > { %16203 = vmatprep.mubr.bf16.mxu0 %v18402_v8  ;;  %v20043_v8 = vpop.f32.mrb[82].mxu1 }
 0xaa5   : > { %16204 = vmatmul.mubr.bf16.gmra.mrb[148].mxu0 %v18403_v39  ;;  %v7596_v39 = vpop.f32.mrb[83].mxu1 }
 0xaa6   : > { %16207 = vmatprep.mubr.bf16.mxu0 %v18407_v48  ;;  %v20045_v58 = vpop.f32.mrb[84].mxu1 }
 0xaa7   : > { %v7601_v48 = vpop.f32.mrb[85].mxu1 }
 0xaad   : > { %16208 = vmatmul.mubr.bf16.gmra.mrb[152].mxu0 %v18408_v3  ;;  %v20047_v3 = vpop.f32.mrb[86].mxu1 }
 0xaae   : > { %16211 = vmatprep.mubr.bf16.mxu0 %v18412_v34  ;;  %v7604_v34 = vpop.f32.mrb[87].mxu1 }
 0xaaf   : > { %v20049_v61 = vpop.f32.mrb[88].mxu1 }
 0xab0   : > { %v7609_v25 = vpop.f32.mrb[89].mxu1 }
 0xab1   : > { %v20051_v37 = vpop.f32.mrb[90].mxu1 }
 0xab2   : > { %v7612_v51 = vpop.f32.mrb[91].mxu1 }
 0xab5   : > { %16212 = vmatmul.mubr.bf16.gmra.mrb[156].mxu0 %v18415_v36 }
 0xb20   : > { %v16161_v14 = vpop.f32.mrb[104].mxu0 }
 0xb21   : > { %v7913_v63 = vadd.f32 %v16161_v14, %v19915_v32  ;;  %v7904_v27 = vpop.f32.mrb[105].mxu0 }
 0xb22   : > { %v7905_v36 = vadd.f32 %v7904_v27, %v19909_v55  ;;  %v16162_v6 = vpop.f32.mrb[106].mxu0 }
 0xb23   : > { %v7916_v42 = vadd.f32 %v16162_v6, %v19918_v17  ;;  %v7907_v62 = vpop.f32.mrb[107].mxu0 }
 0xb24   : > { %v7908_v26 = vadd.f32 %v7907_v62, %v19912_v59 }
 0xb25   : > { %v8128_v2 = vpack.c.bf16 %v7916_v42, %v7913_v63 }
 0xb26   : > { %v8127_v38 = vpack.c.bf16 %v7908_v26, %v7905_v36 }
 0xb27   : > { %v8182_v54 = vrot.slane %v8128_v2, 4  ;;  %v20057_v40 = vshrl.u32 %v8128_v2, 16  ;;  %v8355_v45 = vshll.u32 %v8128_v2, 16 }
 0xb28   : > { %v8181_v0 = vrot.slane %v8127_v38, 4  ;;  %v8344_v16 = vshrl.u32 %v8127_v38, 16  ;;  %v8347_v60 = vshll.u32 %v8127_v38, 16  ;;  %v16165_v11 = vpop.f32.mrb[108].mxu0 }
 0xb29   : > { %22312 = vst [vmem:[#allocation29_spill] sm:$0xff] %v20057_v40  ;;  %v8357_v32 = vrot.slane %v8355_v45, 4  ;;  %v8581_v1 = vrot.slane %v8355_v45, 5  ;;  %v7929_v55 = vadd.f32 %v16165_v11, %v19972_v41  ;;  %v7920_v10 = vpop.f32.mrb[109].mxu0  ;;  %v8354_v17 = vrot.slane %v20057_v40, 3 }
 0xb2a   : > { %v8346_v21 = vrot.slane %v8344_v16, 3  ;;  %v8349_v24 = vrot.slane %v8347_v60, 4  ;;  %v8577_v59 = vrot.slane %v8344_v16, 4  ;;  %v8578_v7 = vrot.slane %v8347_v60, 5  ;;  %v16166_v39 = vpop.f32.mrb[110].mxu0 }
 0xb2b   : > { %v7921_v48 = vadd.f32 %v7920_v10, %v19921_v33  ;;  %v7932_v34 = vadd.f32 %v16166_v39, %v19974_v50  ;;  %v7923_v25 = vpop.f32.mrb[111].mxu0  ;;  %v8183_v51 = vsel %vm1850_vm1, %v8181_v0, %v8182_v54  ;;  %v20064_v14 = vor.u32 %v8357_v32, %v8354_v17  ;;  %v20087_v0 = vld [vmem:[%s22311_s2 + $0x8] sm:$0xff]  }
 0xb2c   : > { %v7924_v41 = vadd.f32 %v7923_v25, %v19927_v47  ;;  %16223 = vmatprep.mubr.msk.bf16.mxu0 %vm4570_vm7, %v8183_v51  ;;  %v8350_v63 = vor.u32 %v8349_v24, %v8346_v21  ;;  %v8579_v27 = vor.u32 %v8578_v7, %v8577_v59  ;;  %v8580_v36 = vrot.slane %v20057_v40, 4  ;;  %v20111_v59 = vld [vmem:[%s22311_s2 + $0x18] sm:$0xff]  }
 0xb2d   : > { %v20069_v6 = vpack.c.bf16 %v7932_v34, %v7929_v55 }
 0xb2e   : > { %v20071_v42 = vpack.c.bf16 %v7924_v41, %v7921_v48  ;;  %v20075_v33 = vsel %vm2078_vm2, %v8350_v63, %v20064_v14  ;;  %v20077_v50 = vor.u32 %v8581_v1, %v8580_v36  ;;  %v20133_v63 = vld [vmem:[%s22311_s2 + $0x40] sm:$0xff]  }
 0xb2f   : > { %22313 = vst [vmem:[#allocation30_spill] sm:$0xff] %v20069_v6  ;;  %v8186_v62 = vrot.slane %v20069_v6, 4 }
 0xb30   : > { %22314 = vst [vmem:[#allocation31_spill] sm:$0xff] %v20071_v42  ;;  %v8184_v47 = vrot.slane %v20071_v42, 4  ;;  %v16169_v26 = vpop.f32.mrb[112].mxu0  ;;  %v20083_v2 = vsel %vm2381_vm3, %v8579_v27, %v20077_v50 }
 0xb31   : > { %v7945_v38 = vadd.f32 %v16169_v26, %v19994_v23  ;;  %v7936_v45 = vpop.f32.mrb[113].mxu0 }
 0xb32   : > { %v7937_v16 = vadd.f32 %v7936_v45, %v19978_v44  ;;  %v16170_v60 = vpop.f32.mrb[114].mxu0  ;;  %v8185_v11 = vsel %vm1850_vm1, %v8182_v54, %v8184_v47  ;;  %v8187_v32 = vsel %vm1850_vm1, %v8184_v47, %v8186_v62  ;;  %v20101_v44 = vld [vmem:[%s22311_s2 + $0x10] sm:$0xff]  }
 0xb33   : > { %v7948_v1 = vadd.f32 %v16170_v60, %v19999_v49  ;;  %v7939_v55 = vpop.f32.mrb[115].mxu0  ;;  %16224 = vmatmul.mubr.msk.bf16.vlgmr.msra.gmra.mrb[160].mxu0 %vm4570_vm7, %v8185_v11 }
 0xb34   : > { %v7940_v10 = vadd.f32 %v7939_v55, %v19980_v18  ;;  %16227 = vmatprep.mubr.msk.bf16.mxu0 %vm4570_vm7, %v8187_v32  ;;  %16240 = vmatpush3.bf16.msra.mxu0 %v20021_v35 }
 0xb35   : > { %v20097_v23 = vpack.c.bf16 %v7948_v1, %v7945_v38  ;;  %16241 = vmatprep.subr.bf16.mxu0 %v20087_v0 }
 0xb36   : > { %v20103_v54 = vpack.c.bf16 %v7940_v10, %v7937_v16  ;;  %v20161_v10 = vshll.u32 %v20071_v42, 16 }
 0xb37   : > { %22315 = vst [vmem:[#allocation32_spill] sm:$0xff] %v20097_v23  ;;  %v8190_v49 = vrot.slane %v20097_v23, 4 }
 0xb38   : > { %22316 = vst [vmem:[#allocation33_spill] sm:$0xff] %v20103_v54  ;;  %v16173_v17 = vpop.f32.mrb[116].mxu0  ;;  %v8188_v21 = vrot.slane %v20103_v54, 4  ;;  %16242 = vmatpush3.bf16.msra.mxu0 %v20087_v0 }
 0xb39   : > { %v7961_v18 = vadd.f32 %v16173_v17, %v20008_v31  ;;  %v7952_v24 = vpop.f32.mrb[117].mxu0  ;;  %16243 = vmatprep.subr.bf16.mxu0 %v20101_v44 }
 0xb3a   : > { %v7953_v7 = vadd.f32 %v7952_v24, %v20002_v30  ;;  %v16174_v39 = vpop.f32.mrb[118].mxu0  ;;  %v20115_v48 = vsel %vm1850_vm1, %v8186_v62, %v8188_v21  ;;  %v20118_v34 = vsel %vm1850_vm1, %v8188_v21, %v8190_v49  ;;  %v20127_v30 = vpop.f32.mrb[92].mxu1  ;;  %v20171_v21 = vshll.u32 %v20069_v6, 16 }
 0xb3b   : > { %22317 = vst [vmem:[#allocation34_spill] sm:$0xff] %v20115_v48  ;;  %22318 = vst [vmem:[#allocation35_spill] sm:$0xff] %v20118_v34  ;;  %v7964_v25 = vadd.f32 %v16174_v39, %v20010_v53  ;;  %v7955_v51 = vpop.f32.mrb[119].mxu0  ;;  %16228 = vmatmul.mubr.msk.bf16.gmra.mrb[164].mxu0 %vm4570_vm7, %v20115_v48  ;;  %v7617_v53 = vpop.f32.mrb[93].mxu1 }
 0xb3c   : > { %v7956_v31 = vadd.f32 %v7955_v51, %v20005_v52  ;;  %16231 = vmatprep.mubr.msk.bf16.mxu0 %vm4570_vm7, %v20118_v34  ;;  %16244 = vmatpush3.bf16.msra.mxu0 %v20101_v44  ;;  %v20137_v36 = vpop.f32.mrb[94].mxu1  ;;  %22326 = vst [vmem:[#allocation43_spill] sm:$0xff] %v20171_v21  ;;  %v8366_v51 = vrot.slane %v20161_v10, 4 }
 0xb3d   : > { %v20129_v41 = vpack.c.bf16 %v7964_v25, %v7961_v18  ;;  %16245 = vmatprep.subr.bf16.mxu0 %v20111_v59  ;;  %v7620_v62 = vpop.f32.mrb[95].mxu1 }
 0xb3e   : > { %v20135_v27 = vpack.c.bf16 %v7956_v31, %v7953_v7 }
 0xb3f   : > { %22319 = vst [vmem:[#allocation36_spill] sm:$0xff] %v20129_v41  ;;  %v8194_v52 = vrot.slane %v20129_v41, 4 }
 0xb40   : > { %22320 = vst [vmem:[#allocation37_spill] sm:$0xff] %v20135_v27  ;;  %v16177_v47 = vpop.f32.mrb[120].mxu0  ;;  %v8192_v26 = vrot.slane %v20135_v27, 4  ;;  %16246 = vmatpush3.bf16.msra.mxu0 %v20111_v59  ;;  %v20244_v13 = vshll.u32 %v20135_v27, 16 }
 0xb41   : > { %v7977_v38 = vadd.f32 %v16177_v47, %v20016_v20  ;;  %v7968_v45 = vpop.f32.mrb[121].mxu0  ;;  %16263 = vmatprep.subr.bf16.mxu0 %v20133_v63 }
 0xb42   : > { %v7969_v16 = vadd.f32 %v7968_v45, %v20012_v19  ;;  %v16178_v60 = vpop.f32.mrb[122].mxu0  ;;  %v20146_v11 = vsel %vm1850_vm1, %v8190_v49, %v8192_v26  ;;  %v20149_v32 = vsel %vm1850_vm1, %v8192_v26, %v8194_v52  ;;  %v20158_v19 = vshrl.u32 %v20071_v42, 16  ;;  %22333 = vst [vmem:[#allocation50_spill] sm:$0xff] %v20244_v13 }
 0xb43   : > { %22321 = vst [vmem:[#allocation38_spill] sm:$0xff] %v20146_v11  ;;  %22322 = vst [vmem:[#allocation39_spill] sm:$0xff] %v20149_v32  ;;  %v7980_v1 = vadd.f32 %v16178_v60, %v20018_v43  ;;  %v7971_v55 = vpop.f32.mrb[123].mxu0  ;;  %16232 = vmatmul.mubr.msk.bf16.gmra.mrb[168].mxu0 %vm4570_vm7, %v20146_v11  ;;  %v20168_v43 = vshrl.u32 %v20069_v6, 16  ;;  %v20201_v60 = vshll.u32 %v20103_v54, 16 }
 0xb44   : > { %v7972_v20 = vadd.f32 %v7971_v55, %v20014_v22  ;;  %16235 = vmatprep.mubr.msk.bf16.mxu0 %vm4570_vm7, %v20149_v32  ;;  %v8363_v25 = vrot.slane %v20158_v19, 3 }
 0xb45   : > { %v20163_v49 = vpack.c.bf16 %v7980_v1, %v7977_v38  ;;  %22325 = vst [vmem:[#allocation42_spill] sm:$0xff] %v20168_v43  ;;  %v8372_v38 = vrot.slane %v20168_v43, 3 }
 0xb46   : > { %v20165_v17 = vpack.c.bf16 %v7972_v20, %v7969_v16  ;;  %v20198_v16 = vshrl.u32 %v20103_v54, 16  ;;  %v20206_v20 = vshrl.u32 %v20097_v23, 16 }
 0xb47   : > { %22323 = vst [vmem:[#allocation40_spill] sm:$0xff] %v20163_v49  ;;  %v9519_v22 = vrot.slane %v20163_v49, 4 }
 0xb48   : > { %22324 = vst [vmem:[#allocation41_spill] sm:$0xff] %v20165_v17  ;;  %v16181_v18 = vpop.f32.mrb[124].mxu0  ;;  %v8196_v24 = vrot.slane %v20165_v17, 4  ;;  %v20328_v48 = vshrl.u32 %v20165_v17, 16 }
 0xb49   : > { %v7984_v7 = vpop.f32.mrb[125].mxu0  ;;  %v7993_v39 = vadd.f32 %v16181_v18, %v20029_v46 }
 0xb4a   : > { %v7985_v31 = vadd.f32 %v7984_v7, %v20023_v5  ;;  %v16182_v53 = vpop.f32.mrb[126].mxu0  ;;  %v20180_v62 = vsel %vm1850_vm1, %v8194_v52, %v8196_v24  ;;  %v20183_v47 = vsel %vm1850_vm1, %v8196_v24, %v9519_v22  ;;  %v8375_v5 = vrot.slane %v20171_v21, 4  ;;  %v20195_v52 = vpop.f32.mrb[96].mxu1 }
 0xb4b   : > { %22327 = vst [vmem:[#allocation44_spill] sm:$0xff] %v20180_v62  ;;  %22328 = vst [vmem:[#allocation45_spill] sm:$0xff] %v20183_v47  ;;  %v7987_v26 = vpop.f32.mrb[127].mxu0  ;;  %16236 = vmatmul.mubr.msk.bf16.gmra.mrb[172].mxu0 %vm4570_vm7, %v20180_v62  ;;  %16439 = vmatprep.mubr.msk.bf16.mxu1 %vm4570_vm7, %v20183_v47  ;;  %v7996_v46 = vadd.f32 %v16182_v53, %v20031_v28  ;;  %v8367_v28 = vor.u32 %v8366_v51, %v8363_v25  ;;  %v7625_v55 = vpop.f32.mrb[97].mxu1  ;;  %v8381_v51 = vrot.slane %v20198_v16, 3 }
 0xb4c   : > { %v7988_v45 = vadd.f32 %v7987_v26, %v20026_v56  ;;  %16247 = vmatprep.mubr.msk.bf16.mxu0 %vm4570_vm7, %v20075_v33  ;;  %v20211_v33 = vshll.u32 %v20097_v23, 16  ;;  %v8376_v18 = vor.u32 %v8375_v5, %v8372_v38  ;;  %v20228_v55 = vld [vmem:[%s22311_s2 + $0x48] sm:$0xff]  }
 0xb4d   : > { %v20203_v1 = vpack.c.bf16 %v7996_v46, %v7993_v39  ;;  %v8368_v39 = vsel %vm2078_vm2, %v20064_v14, %v8367_v28 }
 0xb4e   : > { %v20208_v56 = vpack.c.bf16 %v7988_v45, %v7985_v31  ;;  %v8384_v31 = vrot.slane %v20201_v60, 4 }
 0xb4f   : > { %22329 = vst [vmem:[#allocation46_spill] sm:$0xff] %v20203_v1  ;;  %v9523_v24 = vrot.slane %v20203_v1, 4  ;;  %v20373_v42 = vshrl.u32 %v20203_v1, 16 }
 0xb50   : > { %22330 = vst [vmem:[#allocation47_spill] sm:$0xff] %v20208_v56  ;;  %v9521_v7 = vrot.slane %v20208_v56, 4  ;;  %v16185_v53 = vpop.f32.mrb[128].mxu0 }
 0xb51   : > { %v8000_v26 = vpop.f32.mrb[129].mxu0  ;;  %v8009_v25 = vadd.f32 %v16185_v53, %v20037_v29  ;;  %v8377_v29 = vsel %vm2078_vm2, %v8367_v28, %v8376_v18  ;;  %v8393_v53 = vrot.slane %v20211_v33, 4 }
 0xb52   : > { %v8001_v46 = vadd.f32 %v8000_v26, %v20033_v15  ;;  %v16186_v45 = vpop.f32.mrb[130].mxu0  ;;  %v20222_v38 = vsel %vm1850_vm1, %v9519_v22, %v9521_v7  ;;  %v20225_v5 = vsel %vm1850_vm1, %v9521_v7, %v9523_v24  ;;  %v8390_v22 = vrot.slane %v20206_v20, 3  ;;  %v20238_v7 = vpop.f32.mrb[98].mxu1 }
 0xb53   : > { %22331 = vst [vmem:[#allocation48_spill] sm:$0xff] %v20222_v38  ;;  %22332 = vst [vmem:[#allocation49_spill] sm:$0xff] %v20225_v5  ;;  %v8003_v14 = vpop.f32.mrb[131].mxu0  ;;  %16248 = vmatmul.mubr.msk.bf16.vlgmr.msra.gmra.mrb[160].mxu0 %vm4570_vm7, %v8368_v39  ;;  %16440 = vmatmul.mubr.msk.bf16.vlgmr.msra.gmra.mrb[136].mxu1 %vm4570_vm7, %v20222_v38  ;;  %v8012_v15 = vadd.f32 %v16186_v45, %v20039_v57  ;;  %v20241_v26 = vshrl.u32 %v20135_v27, 16  ;;  %v7628_v57 = vpop.f32.mrb[99].mxu1  ;;  %v8385_v45 = vor.u32 %v8384_v31, %v8381_v51 }
 0xb54   : > { %v8004_v39 = vadd.f32 %v8003_v14, %v20035_v9  ;;  %16251 = vmatprep.mubr.msk.bf16.mxu0 %vm4570_vm7, %v8377_v29  ;;  %16443 = vmatprep.mubr.msk.bf16.mxu1 %vm4570_vm7, %v20225_v5  ;;  %v20254_v12 = vpop.f32.mrb[100].mxu1  ;;  %v20261_v9 = vld [vmem:[%s22311_s2 + $0x50] sm:$0xff]   ;;  %v22337_v14 = vrot.slane %v20206_v20, 7  ;;  %v20269_v31 = vshrl.u32 %v20129_v41, 16 }
 0xb55   : > { %v20250_v28 = vpack.c.bf16 %v8012_v15, %v8009_v25  ;;  %16264 = vmatpush3.bf16.msra.mxu0 %v20133_v63  ;;  %16456 = vmatpush3.bf16.msra.mxu1 %v20021_v35  ;;  %22336 = vst [vmem:[#allocation53_spill] sm:$0xff] %v20261_v9  ;;  %v7633_v51 = vpop.f32.mrb[101].mxu1  ;;  %v20272_v35 = vshll.u32 %v20129_v41, 16  ;;  %v8399_v5 = vrot.slane %v20241_v26, 3  ;;  %v20281_v62 = vsel %vm2078_vm2, %v8376_v18, %v8385_v45 }
 0xb56   : > { %v20256_v38 = vpack.c.bf16 %v8004_v39, %v8001_v46  ;;  %16265 = vmatprep.subr.bf16.mxu0 %v20228_v55  ;;  %16457 = vmatprep.subr.bf16.mxu1 %v20087_v0  ;;  %v20266_v25 = vor.u32 %v22337_v14, %v20211_v33  ;;  %22339 = vst [vmem:[#allocation55_spill] sm:$0xff] %v20269_v31  ;;  %v20275_v15 = vpop.f32.mrb[102].mxu1  ;;  %v8402_v14 = vrot.slane %v20244_v13, 4  ;;  %22340 = vst [vmem:[#allocation56_spill] sm:$0xff] %v20281_v62 }
 0xb57   : > { %22334 = vst [vmem:[#allocation51_spill] sm:$0xff] %v20250_v28  ;;  %v8394_v46 = vor.u32 %v8393_v53, %v8390_v22  ;;  %v7636_v51 = vpop.f32.mrb[103].mxu1 }
 0xb58   : > { %22335 = vst [vmem:[#allocation52_spill] sm:$0xff] %v20256_v38  ;;  %22338 = vst [vmem:[#allocation54_spill] sm:$0xff] %v20266_v25  ;;  %v16189_v39 = vpop.f32.mrb[132].mxu0  ;;  %v9874_v57 = vrot.slane %v20256_v38, 4  ;;  %v20286_v22 = vpop.f32.mrb[104].mxu1  ;;  %v22342_v51 = vrot.slane %v20250_v28, 4 }
 0xb59   : > { %v8016_v47 = vpop.f32.mrb[133].mxu0  ;;  %v8025_v32 = vadd.f32 %v16189_v39, %v20045_v58  ;;  %16266 = vmatpush3.bf16.msra.mxu0 %v20228_v55  ;;  %16458 = vmatpush3.bf16.msra.mxu1 %v20087_v0  ;;  %v20300_v58 = vld [vmem:[%s22311_s2 + $0x58] sm:$0xff]   ;;  %v7641_v18 = vpop.f32.mrb[105].mxu1 }
 0xb5a   : > { %v8017_v53 = vadd.f32 %v8016_v47, %v20041_v4  ;;  %v16190_v29 = vpop.f32.mrb[134].mxu0  ;;  %v20290_v11 = vsel %vm1850_vm1, %v9523_v24, %v9874_v57  ;;  %v20295_v34 = vsel %vm1850_vm1, %v9874_v57, %v22342_v51  ;;  %16267 = vmatprep.subr.bf16.mxu0 %v20261_v9  ;;  %16459 = vmatprep.subr.bf16.mxu1 %v20101_v44  ;;  %v8408_v24 = vrot.slane %v20269_v31, 3  ;;  %v20313_v51 = vpop.f32.mrb[106].mxu1 }
 0xb5b   : > { %22341 = vst [vmem:[#allocation57_spill] sm:$0xff] %v20290_v11  ;;  %22343 = vst [vmem:[#allocation58_spill] sm:$0xff] %v20295_v34  ;;  %v8019_v39 = vpop.f32.mrb[135].mxu0  ;;  %16252 = vmatmul.mubr.msk.bf16.gmra.mrb[164].mxu0 %vm4570_vm7, %v20281_v62  ;;  %16444 = vmatmul.mubr.msk.bf16.gmra.mrb[140].mxu1 %vm4570_vm7, %v20290_v11  ;;  %v20308_v4 = vsel %vm2078_vm2, %v8385_v45, %v8394_v46  ;;  %v8028_v47 = vadd.f32 %v16190_v29, %v20047_v3  ;;  %v8411_v57 = vrot.slane %v20272_v35, 4  ;;  %v7644_v29 = vpop.f32.mrb[107].mxu1 }
 0xb5c   : > { %22344 = vst [vmem:[#allocation59_spill] sm:$0xff] %v20300_v58  ;;  %22345 = vst [vmem:[#allocation60_spill] sm:$0xff] %v20308_v4  ;;  %v20316_v18 = vshrl.u32 %v20163_v49, 16  ;;  %v8020_v0 = vadd.f32 %v8019_v39, %v20043_v8  ;;  %16255 = vmatprep.mubr.msk.bf16.mxu0 %vm4570_vm7, %v20308_v4  ;;  %16447 = vmatprep.mubr.msk.bf16.mxu1 %vm4570_vm7, %v20295_v34  ;;  %v8403_v45 = vor.u32 %v8402_v14, %v8399_v5  ;;  %v20337_v39 = vpop.f32.mrb[108].mxu1  ;;  %v20346_v34 = vld [vmem:[%s22311_s2 + $0x60] sm:$0xff]  }
 0xb5d   : > { %v8584_v3 = vrot.slane %v20158_v19, 4  ;;  %v20325_v11 = vshll.u32 %v20163_v49, 16  ;;  %v20331_v62 = vshll.u32 %v20165_v17, 16  ;;  %v20333_v8 = vpack.c.bf16 %v8028_v47, %v8025_v32  ;;  %16268 = vmatpush3.bf16.msra.mxu0 %v20261_v9  ;;  %16460 = vmatpush3.bf16.msra.mxu1 %v20101_v44  ;;  %v7649_v47 = vpop.f32.mrb[109].mxu1 }
 0xb5e   : > { %22346 = vst [vmem:[#allocation61_spill] sm:$0xff] %v20316_v18  ;;  %v20339_v5 = vpack.c.bf16 %v8020_v0, %v8017_v53  ;;  %16269 = vmatprep.subr.bf16.mxu0 %v20300_v58  ;;  %16461 = vmatprep.subr.bf16.mxu1 %v20111_v59  ;;  %v8585_v14 = vrot.slane %v20161_v10, 5  ;;  %v8589_v29 = vrot.slane %v20171_v21, 5  ;;  %v20349_v4 = vor.u32 %v8411_v57, %v8408_v24  ;;  %v20354_v49 = vpop.f32.mrb[110].mxu1 }
 0xb5f   : > { %22347 = vst [vmem:[#allocation62_spill] sm:$0xff] %v20325_v11  ;;  %22348 = vst [vmem:[#allocation63_spill] sm:$0xff] %v20333_v8  ;;  %v8592_v53 = vrot.slane %v20198_v16, 4  ;;  %v8593_v0 = vrot.slane %v20201_v60, 5  ;;  %v20359_v41 = vsel %vm2078_vm2, %v8394_v46, %v8403_v45  ;;  %v8596_v32 = vrot.slane %v20206_v20, 4  ;;  %v7652_v57 = vpop.f32.mrb[111].mxu1 }
 0xb60   : > { %22349 = vst [vmem:[#allocation64_spill] sm:$0xff] %v20339_v5  ;;  %v20356_v17 = vpop.f32.mrb[136].mxu0  ;;  %22350 = vst [vmem:[#allocation65_spill] sm:$0xff] %v20359_v41  ;;  %v9878_v27 = vrot.slane %v20339_v5, 4  ;;  %v8597_v24 = vrot.slane %v20211_v33, 5  ;;  %v8417_v44 = vrot.slane %v20328_v48, 3 }
 0xb61   : > { %v8032_v47 = vpop.f32.mrb[137].mxu0  ;;  %v8420_v23 = vrot.slane %v20331_v62, 4  ;;  %v9342_v54 = vrot.slane %v20316_v18, 3  ;;  %v9343_v6 = vrot.slane %v20325_v11, 4  ;;  %16270 = vmatpush3.bf16.msra.mxu0 %v20300_v58  ;;  %16462 = vmatpush3.bf16.msra.mxu1 %v20111_v59  ;;  %v20370_v46 = vpop.f32.mrb[112].mxu1  ;;  %v22352_v21 = vrot.slane %v20250_v28, 4 }
 0xb62   : > { %22351 = vst [vmem:[#allocation66_spill] sm:$0xff] %v20370_v46  ;;  %v8033_v57 = vadd.f32 %v8032_v47, %v20049_v61  ;;  %v20376_v25 = vpop.f32.mrb[138].mxu0  ;;  %v22354_v9 = vrot.slane %v20333_v8, 4  ;;  %16287 = vmatprep.subr.bf16.mxu0 %v20346_v34  ;;  %16479 = vmatprep.subr.bf16.mxu1 %v20133_v63  ;;  %v7657_v59 = vpop.f32.mrb[113].mxu1  ;;  %v20391_v46 = vshll.u32 %v20203_v1, 16  ;;  %v20439_v1 = vshrl.u32 %v20250_v28, 16 }
 0xb63   : > { %v20381_v40 = vsel %vm1850_vm1, %v22352_v21, %v9878_v27  ;;  %v8035_v61 = vpop.f32.mrb[139].mxu0  ;;  %16256 = vmatmul.mubr.msk.bf16.gmra.mrb[168].mxu0 %vm4570_vm7, %v20359_v41  ;;  %v20399_v21 = vsel %vm2078_vm2, %v8403_v45, %v20349_v4  ;;  %v20404_v47 = vpop.f32.mrb[114].mxu1  ;;  %v20415_v45 = vor.u32 %v8593_v0, %v8592_v53  ;;  %v8421_v53 = vor.u32 %v8420_v23, %v8417_v44 }
 0xb64   : > { %22353 = vst [vmem:[#allocation67_spill] sm:$0xff] %v20381_v40  ;;  %v20386_v58 = vsel %vm1850_vm1, %v9878_v27, %v22354_v9  ;;  %16448 = vmatmul.mubr.msk.bf16.gmra.mrb[144].mxu1 %vm4570_vm7, %v20381_v40  ;;  %22356 = vst [vmem:[#allocation69_spill] sm:$0xff] %v20399_v21  ;;  %v20401_v27 = vor.u32 %v8585_v14, %v8584_v3  ;;  %v8036_v59 = vadd.f32 %v8035_v61, %v20051_v37  ;;  %v7660_v14 = vpop.f32.mrb[115].mxu1 }
 0xb65   : > { %22355 = vst [vmem:[#allocation68_spill] sm:$0xff] %v20386_v58  ;;  %22357 = vst [vmem:[#allocation70_spill] sm:$0xff] %v20404_v47  ;;  %16259 = vmatprep.mubr.msk.bf16.mxu0 %vm4570_vm7, %v20399_v21  ;;  %16451 = vmatprep.mubr.msk.bf16.mxu1 %vm4570_vm7, %v20386_v58  ;;  %v22358_v40 = vrot.slane %v20168_v43, 4  ;;  %v20419_v9 = vshll.u32 %v20208_v56, 16  ;;  %v20422_v37 = vshrl.u32 %v20208_v56, 16  ;;  %v20424_v61 = vor.u32 %v8597_v24, %v8596_v32 }
 0xb66   : > { %v22361_v58 = vrot.slane %v20269_v31, 7  ;;  %v20435_v0 = vor.u32 %v9343_v6, %v9342_v54  ;;  %v9355_v14 = vrot.slane %v20373_v42, 3  ;;  %v20442_v32 = vshll.u32 %v20250_v28, 16 }
 0xb67   : > { %v20413_v41 = vor.u32 %v8589_v29, %v22358_v40  ;;  %22359 = vst [vmem:[#allocation71_spill] sm:$0xff] %v20419_v9  ;;  %22360 = vst [vmem:[#allocation72_spill] sm:$0xff] %v20422_v37  ;;  %v20431_v40 = vpop.f32.mrb[116].mxu1  ;;  %v20433_v29 = vpack.c.bf16 %v8036_v59, %v8033_v57  ;;  %v9358_v24 = vrot.slane %v20391_v46, 4  ;;  %v20449_v57 = vshrl.u32 %v20256_v38, 16 }
 0xb68   : > { %v20429_v21 = vor.u32 %v22361_v58, %v20272_v35  ;;  %22363 = vst [vmem:[#allocation74_spill] sm:$0xff] %v20431_v40  ;;  %v7665_v3 = vpop.f32.mrb[117].mxu1  ;;  %v20452_v6 = vshll.u32 %v20256_v38, 16  ;;  %v8600_v54 = vrot.slane %v20241_v26, 4  ;;  %v20456_v44 = vpop.f32.mrb[140].mxu0  ;;  %v9349_v28 = vrot.slane %v20419_v9, 4 }
 0xb69   : > { %22364 = vst [vmem:[#allocation75_spill] sm:$0xff] %v20433_v29  ;;  %v20446_v56 = vpop.f32.mrb[118].mxu1  ;;  %22366 = vst [vmem:[#allocation77_spill] sm:$0xff] %v20449_v57  ;;  %v9348_v3 = vrot.slane %v20422_v37, 3  ;;  %v8601_v58 = vrot.slane %v20244_v13, 5  ;;  %v8048_v38 = vpop.f32.mrb[141].mxu0  ;;  %v20470_v23 = vsel %vm2078_vm2, %v20349_v4, %v8421_v53  ;;  %v20489_v4 = vsel %vm2078_vm2, %v8421_v53, %v20435_v0 }
 0xb6a   : > { %22362 = vst [vmem:[#allocation73_spill] sm:$0xff] %v20429_v21  ;;  %22365 = vst [vmem:[#allocation76_spill] sm:$0xff] %v20446_v56  ;;  %v7668_v59 = vpop.f32.mrb[119].mxu1  ;;  %v22367_v21 = vrot.slane %v20316_v18, 7  ;;  %v22372_v37 = vrot.slane %v20333_v8, 4  ;;  %v8604_v40 = vrot.slane %v20269_v31, 4 }
 0xb6b   : > { %v20466_v56 = vpop.f32.mrb[120].mxu1  ;;  %22370 = vst [vmem:[#allocation80_spill] sm:$0xff] %v20470_v23  ;;  %v22371_v59 = vrot.slane %v20433_v29, 4  ;;  %v8605_v47 = vrot.slane %v20272_v35, 5  ;;  %16260 = vmatmul.mubr.msk.bf16.gmra.mrb[172].mxu0 %vm4570_vm7, %v20470_v23  ;;  %22374 = vst [vmem:[#allocation82_spill] sm:$0xff] %v20489_v4  ;;  %v20504_v23 = vshrl.u32 %v20333_v8, 16  ;;  %v9350_v18 = vor.u32 %v9349_v28, %v9348_v3 }
 0xb6c   : > { %v20464_v43 = vor.u32 %v20325_v11, %v22367_v21  ;;  %22369 = vst [vmem:[#allocation79_spill] sm:$0xff] %v20466_v56  ;;  %v20481_v21 = vpop.f32.mrb[142].mxu0  ;;  %v9359_v56 = vor.u32 %v9358_v24, %v9355_v14  ;;  %16271 = vmatprep.mubr.msk.bf16.mxu0 %vm4570_vm7, %v20083_v2  ;;  %v8044_v2 = vadd.f32 %v20376_v25, %v20137_v36  ;;  %v22378_v28 = vrot.slane %v20439_v1, 7 }
 0xb6d   : > { %v20477_v9 = vsel %vm1850_vm1, %v22372_v37, %v22371_v59  ;;  %v10008_v37 = vrot.slane %v20439_v1, 3  ;;  %v10011_v59 = vrot.slane %v20442_v32, 4  ;;  %v8051_v11 = vpop.f32.mrb[143].mxu0  ;;  %v8602_v53 = vor.u32 %v8601_v58, %v8600_v54 }
 0xb6e   : > { %22368 = vst [vmem:[#allocation78_spill] sm:$0xff] %v20464_v43  ;;  %22373 = vst [vmem:[#allocation81_spill] sm:$0xff] %v20477_v9  ;;  %v7673_v43 = vpop.f32.mrb[121].mxu1  ;;  %16452 = vmatmul.mubr.msk.bf16.gmra.mrb[148].mxu1 %vm4570_vm7, %v20477_v9  ;;  %v10002_v9 = vrot.slane %v20452_v6, 4  ;;  %v20523_v3 = vor.u32 %v22378_v28, %v20442_v32  ;;  %v20526_v36 = vshll.u32 %v20333_v8, 16  ;;  %v8591_v54 = vsel %vm2381_vm3, %v20401_v27, %v20413_v41 }
 0xb6f   : > { %v20493_v31 = vpop.f32.mrb[122].mxu1  ;;  %16463 = vmatprep.mubr.msk.bf16.mxu1 %vm4570_vm7, %v20489_v4  ;;  %v9999_v43 = vrot.slane %v20449_v57, 3  ;;  %v8587_v57 = vsel %vm2381_vm3, %v20077_v50, %v20401_v27  ;;  %v22202_v50 = vrot.slane %v20504_v23, 7  ;;  %v20555_v27 = vsel %vm2381_vm3, %v20415_v45, %v20424_v61 }
 0xb70   : > { %22375 = vst [vmem:[#allocation83_spill] sm:$0xff] %v20493_v31  ;;  %v7676_v24 = vpop.f32.mrb[123].mxu1  ;;  %v8041_v31 = vadd.f32 %v20356_v17, %v20127_v30  ;;  %22379 = vst [vmem:[#allocation85_spill] sm:$0xff] %v20523_v3  ;;  %v20528_v17 = vor.u32 %v8605_v47, %v8604_v40  ;;  %v16201_v47 = vpop.f32.mrb[144].mxu0  ;;  %v20547_v40 = vsel %vm2078_vm2, %v20435_v0, %v9350_v18  ;;  %v20566_v0 = vshll.u32 %v20339_v5, 16 }
 0xb71   : > { %v20510_v4 = vpop.f32.mrb[124].mxu1  ;;  %v22376_v24 = vrot.slane %v20373_v42, 7  ;;  %v10003_v28 = vor.u32 %v10002_v9, %v9999_v43  ;;  %22382 = vst [vmem:[#allocation88_spill] sm:$0xff] %v20547_v40  ;;  %22384 = vst [vmem:[#allocation90_spill] sm:$0xff] %v20555_v27  ;;  %v8064_v9 = vpop.f32.mrb[145].mxu0  ;;  %v9158_v3 = vrot.slane %v20272_v35, 1  ;;  %v8073_v35 = vadd.f32 %v16201_v47, %v20337_v39 }
 0xb72   : > { %v7681_v30 = vpop.f32.mrb[125].mxu1  ;;  %v20530_v25 = vpack.c.bf16 %v8044_v2, %v8041_v31  ;;  %v20550_v2 = vsel %vm2078_vm2, %v9350_v18, %v9359_v56  ;;  %v22386_v18 = vrot.slane %v20161_v10, 1  ;;  %v20586_v8 = vsel %vm2381_vm3, %v8602_v53, %v20528_v17 }
 0xb73   : > { %v20518_v14 = vor.u32 %v22376_v24, %v20391_v46  ;;  %v20533_v58 = vpop.f32.mrb[126].mxu1  ;;  %v20541_v24 = vsel %vm2381_vm3, %v20413_v41, %v20415_v45  ;;  %v20543_v30 = vor.u32 %v10011_v59, %v10008_v37  ;;  %22383 = vst [vmem:[#allocation89_spill] sm:$0xff] %v20550_v2  ;;  %v20560_v41 = vor.u32 %v22202_v50, %v20526_v36  ;;  %v20569_v59 = vld [vmem:[%s22311_s2 + $0x68] sm:$0xff]  }
 0xb74   : > { %22380 = vst [vmem:[#allocation86_spill] sm:$0xff] %v20530_v25  ;;  %22381 = vst [vmem:[#allocation87_spill] sm:$0xff] %v20541_v24  ;;  %v7684_v31 = vpop.f32.mrb[127].mxu1  ;;  %v20563_v37 = vshrl.u32 %v20339_v5, 16  ;;  %v20574_v43 = vor.u32 %v22386_v18, %v20158_v19  ;;  %v8049_v45 = vadd.f32 %v8048_v38, %v20195_v52  ;;  %16272 = vmatmul.mubr.msk.bf16.vlgmr.msra.gmra.mrb[160].mxu0 %vm4570_vm7, %v8587_v57  ;;  %v22206_v18 = vrot.slane %v20201_v60, 1 }
 0xb75   : > { %22377 = vst [vmem:[#allocation84_spill] sm:$0xff] %v20518_v14  ;;  %22385 = vst [vmem:[#allocation91_spill] sm:$0xff] %v20560_v41  ;;  %v16202_v31 = vpop.f32.mrb[146].mxu0  ;;  %v20582_v50 = vsel %vm2381_vm3, %v20424_v61, %v8602_v53  ;;  %16275 = vmatprep.mubr.msk.bf16.mxu0 %vm4570_vm7, %v8591_v54  ;;  %v20594_v52 = vsel %vm2078_vm2, %v9359_v56, %v10003_v28  ;;  %v20598_v38 = vsel %vm2078_vm2, %v10003_v28, %v20543_v30 }
 0xb76   : > { %22387 = vst [vmem:[#allocation92_spill] sm:$0xff] %v20574_v43  ;;  %16464 = vmatmul.mubr.msk.bf16.vlgmr.msra.gmra.mrb[136].mxu1 %vm4570_vm7, %v20547_v40  ;;  %22388 = vst [vmem:[#allocation93_spill] sm:$0xff] %v20582_v50  ;;  %v8067_v43 = vpop.f32.mrb[147].mxu0  ;;  %v10026_v61 = vrot.slane %v20504_v23, 3  ;;  %v9152_v57 = vrot.slane %v20211_v33, 1  ;;  %16288 = vmatpush3.bf16.msra.mxu0 %v20346_v34  ;;  %v10029_v53 = vrot.slane %v20526_v36, 4  ;;  %v8052_v54 = vadd.f32 %v8051_v11, %v20238_v7 }
 0xb77   : > { %22389 = vst [vmem:[#allocation94_spill] sm:$0xff] %v20586_v8  ;;  %16467 = vmatprep.mubr.msk.bf16.mxu1 %vm4570_vm7, %v20550_v2  ;;  %22390 = vst [vmem:[#allocation95_spill] sm:$0xff] %v20594_v52  ;;  %16480 = vmatpush3.bf16.msra.mxu1 %v20133_v63  ;;  %v9151_v56 = vor.u32 %v22206_v18, %v20198_v16  ;;  %v9155_v5 = vrot.slane %v20244_v13, 1  ;;  %v10017_v28 = vrot.slane %v20563_v37, 3  ;;  %v10020_v2 = vrot.slane %v20566_v0, 4  ;;  %v20615_v33 = vld [vmem:[%s22311_s2 + $0x70] sm:$0xff]  }
 0xb78   : > { %22391 = vst [vmem:[#allocation96_spill] sm:$0xff] %v20598_v38  ;;  %16289 = vmatprep.subr.bf16.mxu0 %v20569_v59  ;;  %16481 = vmatprep.subr.bf16.mxu1 %v20228_v55  ;;  %v8057_v63 = vadd.f32 %v20456_v44, %v20254_v12  ;;  %v8060_v11 = vadd.f32 %v20481_v21, %v20275_v15  ;;  %v20621_v7 = vpop.f32.mrb[128].mxu1  ;;  %v16205_v44 = vpop.f32.mrb[148].mxu0 }
 0xb79   : > { %v20623_v18 = vpack.c.bf16 %v8052_v54, %v8049_v45  ;;  %v20626_v40 = vsel %vm3189_vm5, %v9151_v56, %v9152_v57  ;;  %v8065_v41 = vadd.f32 %v8064_v9, %v20286_v22  ;;  %v7689_v14 = vpop.f32.mrb[129].mxu1  ;;  %v9154_v13 = vor.u32 %v9152_v57, %v20206_v20  ;;  %v22393_v54 = vld [vmem:[#allocation53_spill] sm:$0xff]  ;;  %v20653_v56 = vld [vmem:[%s22311_s2 + $0x78] sm:$0xff]  }
 0xb7a   : > { %22392 = vst [vmem:[#allocation97_spill] sm:$0xff] %v20626_v40  ;;  %v20630_v25 = vpack.c.bf16 %v8060_v11, %v8057_v63  ;;  %v8068_v12 = vadd.f32 %v8067_v43, %v20313_v51  ;;  %v9157_v15 = vor.u32 %v9155_v5, %v20241_v26  ;;  %v20635_v21 = vpop.f32.mrb[130].mxu1  ;;  %v20638_v45 = vshrl.u32 %v20433_v29, 16  ;;  %16290 = vmatpush3.bf16.msra.mxu0 %v20569_v59  ;;  %v8080_v14 = vpop.f32.mrb[149].mxu0  ;;  %v22400_v57 = vld [vmem:[#allocation62_spill] sm:$0xff] }
 0xb7b   : > { %v20641_v22 = vshll.u32 %v20433_v29, 16  ;;  %16482 = vmatpush3.bf16.msra.mxu1 %v20228_v55  ;;  %v8076_v51 = vadd.f32 %v16202_v31, %v20354_v49  ;;  %v7692_v9 = vpop.f32.mrb[131].mxu1  ;;  %v20647_v43 = vor.u32 %v10029_v53, %v10026_v61  ;;  %16291 = vmatprep.subr.bf16.mxu0 %v20615_v33  ;;  %v20656_v63 = vsel %vm3189_vm5, %v9154_v13, %v9155_v5  ;;  %v16206_v39 = vpop.f32.mrb[150].mxu0  ;;  %v22396_v31 = vld [vmem:[#allocation66_spill] sm:$0xff] }
 0xb7c   : > { %16483 = vmatprep.subr.bf16.mxu1 %v22393_v54  ;;  %22394 = vst [vmem:[#allocation53_spill] sm:$0xff] %v20656_v63  ;;  %v20658_v55 = vpack.c.bf16 %v8068_v12, %v8065_v41  ;;  %16276 = vmatmul.mubr.msk.bf16.gmra.mrb[164].mxu0 %vm4570_vm7, %v20541_v24  ;;  %v20665_v49 = vsel %vm3189_vm5, %v9157_v15, %v9158_v3  ;;  %v9161_v53 = vrot.slane %v20331_v62, 1  ;;  %v8083_v13 = vpop.f32.mrb[151].mxu0  ;;  %v22397_v41 = vld [vmem:[#allocation61_spill] sm:$0xff]  ;;  %v22398_v12 = vld [vmem:[#allocation55_spill] sm:$0xff]  ;;  %v22399_v9 = vld [vmem:[#allocation70_spill] sm:$0xff] }
 0xb7d   : > { %22395 = vst [vmem:[#allocation98_spill] sm:$0xff] %v20665_v49  ;;  %v20667_v47 = vpack.c.bf16 %v8076_v51, %v8073_v35  ;;  %v8081_v61 = vadd.f32 %v8080_v14, %v22396_v31  ;;  %16279 = vmatprep.mubr.msk.bf16.mxu0 %vm4570_vm7, %v20555_v27  ;;  %v10021_v5 = vor.u32 %v10020_v2, %v10017_v28  ;;  %v10035_v51 = vrot.slane %v20638_v45, 3  ;;  %v22401_v2 = vld [vmem:[#allocation59_spill] sm:$0xff] }
 0xb7e   : > { %16468 = vmatmul.mubr.msk.bf16.gmra.mrb[140].mxu1 %vm4570_vm7, %v20594_v52  ;;  %v9160_v15 = vor.u32 %v9158_v3, %v22398_v12  ;;  %v8084_v35 = vadd.f32 %v8083_v13, %v22399_v9  ;;  %v10038_v14 = vrot.slane %v20641_v22, 4  ;;  %16292 = vmatpush3.bf16.msra.mxu0 %v20615_v33  ;;  %v9163_v31 = vor.u32 %v9161_v53, %v20328_v48  ;;  %v20687_v28 = vld [vmem:[%s22311_s2 + $0x80] sm:$0xff]   ;;  %v22404_v9 = vld [vmem:[#allocation74_spill] sm:$0xff]  ;;  %v22407_v52 = vld [vmem:[#allocation76_spill] sm:$0xff] }
 0xb7f   : > { %16471 = vmatprep.mubr.msk.bf16.mxu1 %vm4570_vm7, %v20598_v38  ;;  %16484 = vmatpush3.bf16.msra.mxu1 %v22393_v54  ;;  %v9164_v27 = vrot.slane %v22400_v57, 1  ;;  %v8089_v11 = vadd.f32 %v16205_v44, %v22404_v9  ;;  %v22405_v24 = vld [vmem:[#allocation71_spill] sm:$0xff]  ;;  %v8092_v29 = vadd.f32 %v16206_v39, %v22407_v52  ;;  %v10597_v63 = vrot.slane %v20391_v46, 1 }
 0xb80   : > { %16293 = vmatprep.subr.bf16.mxu0 %v20653_v56  ;;  %16485 = vmatprep.subr.bf16.mxu1 %v22401_v2  ;;  %v20690_v3 = vsel %vm3189_vm5, %v9160_v15, %v9161_v53  ;;  %v20692_v13 = vpack.c.bf16 %v8084_v35, %v8081_v61  ;;  %v9170_v38 = vrot.slane %v22405_v24, 1  ;;  %v20704_v40 = vsel %vm2078_vm2, %v20543_v30, %v10021_v5  ;;  %v16209_v44 = vpop.f32.mrb[152].mxu0  ;;  %v22410_v53 = vld [vmem:[#allocation72_spill] sm:$0xff] }
 0xb81   : > { %22402 = vst [vmem:[#allocation66_spill] sm:$0xff] %v20690_v3  ;;  %v20697_v54 = vsel %vm3189_vm5, %v9163_v31, %v9164_v27  ;;  %v9166_v49 = vor.u32 %v9164_v27, %v22397_v41  ;;  %22408 = vst [vmem:[#allocation70_spill] sm:$0xff] %v20704_v40  ;;  %v20708_v61 = vsel %vm2078_vm2, %v10021_v5, %v20647_v43  ;;  %v10600_v35 = vrot.slane %v20452_v6, 1  ;;  %v7695_v31 = vpop.f32.mrb[132].mxu1  ;;  %v8096_v52 = vpop.f32.mrb[153].mxu0 }
 0xb82   : > { %22403 = vst [vmem:[#allocation61_spill] sm:$0xff] %v20692_v13  ;;  %22406 = vst [vmem:[#allocation55_spill] sm:$0xff] %v20697_v54  ;;  %v10596_v15 = vor.u32 %v22410_v53, %v9170_v38  ;;  %16294 = vmatpush3.bf16.msra.mxu0 %v20653_v56  ;;  %v20714_v27 = vpack.c.bf16 %v8092_v29, %v8089_v11  ;;  %v10599_v39 = vor.u32 %v10597_v63, %v20373_v42  ;;  %v7697_v9 = vpop.f32.mrb[133].mxu1  ;;  %v22411_v54 = vld [vmem:[#allocation79_spill] sm:$0xff]  ;;  %v16210_v13 = vpop.f32.mrb[154].mxu0 }
 0xb83   : > { %22409 = vst [vmem:[#allocation62_spill] sm:$0xff] %v20708_v61  ;;  %16486 = vmatpush3.bf16.msra.mxu1 %v22401_v2  ;;  %v20717_v30 = vsel %vm3189_vm5, %v9166_v49, %v9170_v38  ;;  %v10603_v5 = vrot.slane %v20442_v32, 1  ;;  %16311 = vmatprep.subr.bf16.mxu0 %v20687_v28  ;;  %v8097_v3 = vadd.f32 %v8096_v52, %v22411_v54  ;;  %v10606_v38 = vrot.slane %v20566_v0, 1  ;;  %v7698_v49 = vpop.f32.mrb[134].mxu1  ;;  %v8099_v54 = vpop.f32.mrb[155].mxu0 }
 0xb84   : > { %16503 = vmatprep.subr.bf16.mxu1 %v20346_v34  ;;  %v20725_v2 = vsel %vm3189_vm5, %v10596_v15, %v10597_v63  ;;  %v8105_v29 = vadd.f32 %v16209_v44, %v20510_v4  ;;  %16280 = vmatmul.mubr.msk.bf16.gmra.mrb[168].mxu0 %vm4570_vm7, %v20582_v50  ;;  %v20733_v11 = vor.u32 %v10038_v14, %v10035_v51  ;;  %v9681_v9 = vrot.slane %v22400_v57, 5  ;;  %v7700_v4 = vpop.f32.mrb[135].mxu1  ;;  %v22413_v44 = vld [vmem:[#allocation83_spill] sm:$0xff]  ;;  %v22414_v50 = vld [vmem:[#allocation77_spill] sm:$0xff] }
 0xb85   : > { %v8108_v52 = vadd.f32 %v16210_v13, %v20533_v58  ;;  %v20738_v63 = vsel %vm3189_vm5, %v10599_v39, %v10600_v35  ;;  %16283 = vmatprep.mubr.msk.bf16.mxu0 %vm4570_vm7, %v20586_v8  ;;  %v8100_v15 = vadd.f32 %v8099_v54, %v22413_v44  ;;  %v10602_v51 = vor.u32 %v10600_v35, %v22414_v50 }
 0xb86   : > { %16472 = vmatmul.mubr.msk.bf16.gmra.mrb[144].mxu1 %vm4570_vm7, %v20704_v40  ;;  %22412 = vst [vmem:[#allocation59_spill] sm:$0xff] %v20738_v63  ;;  %v10605_v14 = vor.u32 %v10603_v5, %v20439_v1  ;;  %v10609_v57 = vrot.slane %v20526_v36, 1  ;;  %v22415_v58 = vrot.slane %v20328_v48, 4  ;;  %v22416_v13 = vrot.slane %v20331_v62, 5 }
 0xb87   : > { %16475 = vmatprep.mubr.msk.bf16.mxu1 %vm4570_vm7, %v20708_v61  ;;  %v20752_v4 = vpack.c.bf16 %v8108_v52, %v8105_v29  ;;  %v10608_v8 = vor.u32 %v10606_v38, %v20563_v37  ;;  %v10612_v40 = vrot.slane %v20641_v22, 1  ;;  %v20756_v61 = vpack.c.bf16 %v8100_v15, %v8097_v3 }
 0xb88   : > { %v8610_v39 = vor.u32 %v22416_v13, %v22415_v58  ;;  %v20759_v54 = vsel %vm3189_vm5, %v10602_v51, %v10603_v5  ;;  %v20762_v35 = vsel %vm3189_vm5, %v10605_v14, %v10606_v38  ;;  %v10611_v44 = vor.u32 %v10609_v57, %v20504_v23  ;;  %v22423_v38 = vld [vmem:[#allocation29_spill] sm:$0xff]  ;;  %v16213_v51 = vpop.f32.mrb[156].mxu0 }
 0xb89   : > { %22417 = vst [vmem:[#allocation74_spill] sm:$0xff] %v20752_v4  ;;  %v22418_v63 = vrot.slane %v20158_v19, 7  ;;  %v22419_v29 = vrot.slane %v22397_v41, 4  ;;  %v20771_v13 = vsel %vm3189_vm5, %v10608_v8, %v10609_v57  ;;  %v20774_v3 = vor.u32 %v10612_v40, %v20638_v45  ;;  %v8112_v57 = vpop.f32.mrb[157].mxu0 }
 0xb8a   : > { %22420 = vst [vmem:[#allocation71_spill] sm:$0xff] %v20771_v13  ;;  %v20779_v5 = vsel %vm2078_vm2, %v20647_v43, %v20733_v11  ;;  %v8782_v15 = vrot.slane %v22423_v38, 7  ;;  %v20783_v14 = vsel %vm3189_vm5, %v10611_v44, %v10612_v40  ;;  %v9689_v8 = vrot.slane %v20391_v46, 5  ;;  %v16214_v40 = vpop.f32.mrb[158].mxu0 }
 0xb8b   : > { %v8784_v58 = vor.u32 %v22418_v63, %v20161_v10  ;;  %v9682_v52 = vor.u32 %v9681_v9, %v22419_v29  ;;  %22421 = vst [vmem:[#allocation76_spill] sm:$0xff] %v20774_v3  ;;  %22422 = vst [vmem:[#allocation72_spill] sm:$0xff] %v20779_v5  ;;  %v22424_v10 = vld [vmem:[#allocation42_spill] sm:$0xff]  ;;  %v9688_v9 = vrot.slane %v20373_v42, 4  ;;  %v8121_v29 = vadd.f32 %v16213_v51, %v7695_v31  ;;  %v8115_v44 = vpop.f32.mrb[159].mxu0 }
 0xb8c   : > { %v8786_v63 = vrot.slane %v22424_v10, 7  ;;  %v20790_v3 = vsel %vm2381_vm3, %v20528_v17, %v8610_v39  ;;  %v9684_v43 = vrot.slane %v22410_v53, 4  ;;  %v9685_v38 = vrot.slane %v22405_v24, 5 }
 0xb8d   : > { %22425 = vst [vmem:[#allocation79_spill] sm:$0xff] %v20790_v3  ;;  %v8113_v13 = vadd.f32 %v8112_v57, %v20621_v7  ;;  %16284 = vmatmul.mubr.msk.bf16.gmra.mrb[172].mxu0 %vm4570_vm7, %v20790_v3  ;;  %v8785_v46 = vsel %vm2662_vm4, %v8782_v15, %v8784_v58  ;;  %v20801_v31 = vsel %vm2381_vm3, %v8610_v39, %v9682_v52  ;;  %v8789_v17 = vrot.slane %v20198_v16, 7 }
 0xb8e   : > { %16476 = vmatmul.mubr.msk.bf16.gmra.mrb[148].mxu1 %vm4570_vm7, %v20779_v5  ;;  %22426 = vst [vmem:[#allocation83_spill] sm:$0xff] %v20801_v31  ;;  %v8124_v51 = vadd.f32 %v16214_v40, %v7698_v49  ;;  %16295 = vmatprep.mubr.msk.bf16.mxu0 %vm4570_vm7, %v8785_v46  ;;  %v8116_v7 = vadd.f32 %v8115_v44, %v20635_v21  ;;  %v22427_v5 = vld [vmem:[#allocation43_spill] sm:$0xff]  ;;  %v10153_v49 = vrot.slane %v22414_v50, 4  ;;  %v10154_v40 = vrot.slane %v20452_v6, 5  ;;  %v20844_v44 = vld [vmem:[%s22311_s2 + $0x90] sm:$0xff]  }
 0xb8f   : > { %16487 = vmatprep.mubr.msk.bf16.mxu1 %vm4570_vm7, %v20801_v31  ;;  %v9690_v57 = vor.u32 %v9689_v8, %v9688_v9  ;;  %v8787_v58 = vor.u32 %v8786_v63, %v22427_v5  ;;  %v9686_v15 = vor.u32 %v9685_v38, %v9684_v43  ;;  %v8790_v16 = vor.u32 %v8789_v17, %v20201_v60  ;;  %v20829_v43 = vld [vmem:[%s22311_s2 + $0x88] sm:$0xff]  }
 0xb90   : > { %v20808_v3 = vpack.c.bf16 %v8124_v51, %v8121_v29  ;;  %v20811_v39 = vpack.c.bf16 %v8116_v7, %v8113_v13  ;;  %v10157_v31 = vrot.slane %v20439_v1, 4  ;;  %v10158_v21 = vrot.slane %v20442_v32, 5  ;;  %22432 = vst [vmem:[#allocation43_spill] sm:$0xff] %v20829_v43 }
 0xb91   : > { %v20817_v46 = vsel %vm2381_vm3, %v9686_v15, %v9690_v57  ;;  %v22430_v9 = vrot.slane %v20158_v19, 7  ;;  %v20825_v13 = vsel %vm2381_vm3, %v9682_v52, %v9686_v15  ;;  %v8795_v29 = vrot.slane %v20241_v26, 7  ;;  %v22433_v26 = vld [vmem:[#allocation50_spill] sm:$0xff] }
 0xb92   : > { %22428 = vst [vmem:[#allocation77_spill] sm:$0xff] %v20811_v39  ;;  %22429 = vst [vmem:[#allocation29_spill] sm:$0xff] %v20817_v46  ;;  %v8791_v38 = vsel %vm2662_vm4, %v8786_v63, %v8790_v16  ;;  %v10155_v19 = vor.u32 %v10154_v40, %v10153_v49  ;;  %v10159_v32 = vor.u32 %v10158_v21, %v10157_v31  ;;  %v10161_v63 = vrot.slane %v20563_v37, 4  ;;  %v22437_v16 = vld [vmem:[#allocation54_spill] sm:$0xff] }
 0xb93   : > { %v8788_v8 = vsel %vm2662_vm4, %v22430_v9, %v8787_v58  ;;  %22431 = vst [vmem:[#allocation42_spill] sm:$0xff] %v20825_v13  ;;  %v8796_v52 = vor.u32 %v8795_v29, %v22433_v26  ;;  %22434 = vst [vmem:[#allocation50_spill] sm:$0xff] %v20844_v44  ;;  %v10162_v51 = vrot.slane %v20566_v0, 5  ;;  %v10165_v7 = vrot.slane %v20504_v23, 4  ;;  %v22439_v9 = vld [vmem:[#allocation86_spill] sm:$0xff] }
 0xb94   : > { %v10166_v31 = vrot.slane %v20526_v36, 5  ;;  %v20851_v58 = vsel %vm2381_vm3, %v9690_v57, %v10155_v19  ;;  %v20859_v15 = vshrl.u32 %v20623_v18, 16  ;;  %v8794_v49 = vsel %vm2662_vm4, %v8789_v17, %v22437_v16  ;;  %v20867_v36 = vld [vmem:[%s22311_s2 + $0x98] sm:$0xff]  }
 0xb95   : > { %16296 = vmatmul.mubr.msk.bf16.vlgmr.msra.gmra.mrb[160].mxu0 %vm4570_vm7, %v8788_v8  ;;  %22435 = vst [vmem:[#allocation99_spill] sm:$0xff] %v20851_v58  ;;  %v22224_v40 = vrot.slane %v20328_v48, 7  ;;  %v10163_v21 = vor.u32 %v10162_v51, %v10161_v63  ;;  %v20879_v8 = vshrl.u32 %v22439_v9, 16  ;;  %v10170_v26 = vrot.slane %v20641_v22, 5  ;;  %v22440_v63 = vld [vmem:[#allocation73_spill] sm:$0xff] }
 0xb96   : > { %16488 = vmatmul.mubr.msk.bf16.vlgmr.msra.gmra.mrb[136].mxu1 %vm4570_vm7, %v20825_v13  ;;  %16299 = vmatprep.mubr.msk.bf16.mxu0 %vm4570_vm7, %v8791_v38  ;;  %v10167_v17 = vor.u32 %v10166_v31, %v10165_v7  ;;  %v20882_v38 = vshll.u32 %v22439_v9, 16  ;;  %v8800_v51 = vsel %vm2662_vm4, %v8795_v29, %v22440_v63  ;;  %v20900_v31 = vld [vmem:[%s22311_s2 + $0xa0] sm:$0xff]   ;;  %v10301_v13 = vrot.slane %v22410_v53, 7 }
 0xb97   : > { %16491 = vmatprep.mubr.msk.bf16.mxu1 %vm4570_vm7, %v20817_v46  ;;  %16312 = vmatpush3.bf16.msra.mxu0 %v20687_v28  ;;  %v8802_v7 = vor.u32 %v22224_v40, %v20331_v62  ;;  %v10760_v16 = vrot.slane %v20879_v8, 3  ;;  %v11032_v29 = vrot.slane %v20879_v8, 4  ;;  %v11036_v40 = vrot.slane %v20859_v15, 4 }
 0xb98   : > { %16504 = vmatpush3.bf16.msra.mxu1 %v20346_v34  ;;  %16313 = vmatprep.subr.bf16.mxu0 %v20829_v43  ;;  %v20854_v34 = vsel %vm2381_vm3, %v10155_v19, %v10159_v32  ;;  %v20885_v19 = vshll.u32 %v20623_v18, 16  ;;  %v11033_v62 = vrot.slane %v20882_v38, 5  ;;  %v22442_v53 = vrot.slane %v22398_v12, 7 }
 0xb99   : > { %16505 = vmatprep.subr.bf16.mxu1 %v20569_v59  ;;  %22436 = vst [vmem:[#allocation100_spill] sm:$0xff] %v20854_v34 }
 0xb9b   : > { %16314 = vmatpush3.bf16.msra.mxu0 %v20829_v43 }
 0xb9c   : > { %16506 = vmatpush3.bf16.msra.mxu1 %v20569_v59  ;;  %16315 = vmatprep.subr.bf16.mxu0 %v20844_v44  ;;  %v22438_v59 = vrot.slane %v20206_v20, 7  ;;  %v10169_v20 = vrot.slane %v20638_v45, 4 }
 0xb9d   : > { %16507 = vmatprep.subr.bf16.mxu1 %v20615_v33  ;;  %16300 = vmatmul.mubr.msk.bf16.gmra.mrb[164].mxu0 %vm4570_vm7, %v8794_v49  ;;  %v10761_v49 = vrot.slane %v20882_v38, 4 }
 0xb9e   : > { %16492 = vmatmul.mubr.msk.bf16.gmra.mrb[140].mxu1 %vm4570_vm7, %v20851_v58  ;;  %v8797_v57 = vsel %vm2662_vm4, %v22438_v59, %v8796_v52  ;;  %v11622_v52 = vrot.slane %v20859_v15, 7  ;;  %v20908_v59 = vsel %vm2381_vm3, %v10163_v21, %v10167_v17  ;;  %v10171_v58 = vor.u32 %v10170_v26, %v10169_v20 }
 0xb9f   : > { %16303 = vmatprep.mubr.msk.bf16.mxu0 %vm4570_vm7, %v8797_v57  ;;  %16495 = vmatprep.mubr.msk.bf16.mxu1 %vm4570_vm7, %v20854_v34  ;;  %22441 = vst [vmem:[#allocation54_spill] sm:$0xff] %v20908_v59  ;;  %v20913_v57 = vshrl.u32 %v20630_v25, 16  ;;  %v20915_v63 = vor.u32 %v10761_v49, %v10760_v16  ;;  %v11037_v34 = vrot.slane %v20885_v19, 5  ;;  %v20927_v16 = vshll.u32 %v20630_v25, 16 }
 0xba0   : > { %16316 = vmatpush3.bf16.msra.mxu0 %v20844_v44  ;;  %16508 = vmatpush3.bf16.msra.mxu1 %v20615_v33  ;;  %v20905_v33 = vsel %vm2381_vm3, %v10159_v32, %v10163_v21  ;;  %v22229_v32 = vrot.slane %v20879_v8, 7  ;;  %v11034_v21 = vor.u32 %v11033_v62, %v11032_v29  ;;  %v11623_v46 = vor.u32 %v11622_v52, %v20885_v19 }
 0xba1   : > { %16317 = vmatprep.subr.bf16.mxu0 %v20867_v36  ;;  %16509 = vmatprep.subr.bf16.mxu1 %v20653_v56  ;;  %v20932_v20 = vsel %vm2078_vm2, %v20733_v11, %v20915_v63  ;;  %v8803_v26 = vsel %vm2662_vm4, %v22442_v53, %v8802_v7  ;;  %v22233_v12 = vrot.slane %v20913_v57, 7  ;;  %v11040_v7 = vrot.slane %v20913_v57, 4 }
 0xba2   : > { %v20941_v49 = vsel %vm2381_vm3, %v10171_v58, %v11034_v21  ;;  %v20946_v29 = vsel %vm2662_vm4, %v22229_v32, %v11623_v46  ;;  %v22234_v46 = vrot.slane %v20885_v19, 1  ;;  %v11041_v62 = vrot.slane %v20927_v16, 5 }
 0xba3   : > { %22443 = vst [vmem:[#allocation86_spill] sm:$0xff] %v20941_v49  ;;  %22444 = vst [vmem:[#allocation73_spill] sm:$0xff] %v20946_v29  ;;  %v20964_v53 = vsel %vm2381_vm3, %v10167_v17, %v10171_v58  ;;  %v22450_v49 = vrot.slane %v20328_v48, 7  ;;  %v20983_v17 = vshll.u32 %v20667_v47, 16 }
 0xba4   : > { %16318 = vmatpush3.bf16.msra.mxu0 %v20867_v36  ;;  %16510 = vmatpush3.bf16.msra.mxu1 %v20653_v56  ;;  %v11038_v56 = vor.u32 %v11037_v34, %v11036_v40  ;;  %v10302_v34 = vor.u32 %v10301_v13, %v22405_v24  ;;  %v11918_v40 = vrot.slane %v20927_v16, 1  ;;  %v11626_v24 = vor.u32 %v22233_v12, %v20927_v16 }
 0xba5   : > { %16335 = vmatprep.subr.bf16.mxu0 %v20900_v31  ;;  %16527 = vmatprep.subr.bf16.mxu1 %v20687_v28  ;;  %v20973_v32 = vor.u32 %v11041_v62, %v11040_v7  ;;  %v11917_v29 = vor.u32 %v20859_v15, %v22234_v46  ;;  %v21021_v46 = vshrl.u32 %v20714_v27, 16 }
 0xba6   : > { %16304 = vmatmul.mubr.msk.bf16.gmra.mrb[168].mxu0 %vm4570_vm7, %v8800_v51  ;;  %16496 = vmatmul.mubr.msk.bf16.gmra.mrb[144].mxu1 %vm4570_vm7, %v20905_v33  ;;  %v20952_v11 = vsel %vm2381_vm3, %v11034_v21, %v11038_v56  ;;  %v20958_v51 = vshll.u32 %v20658_v55, 16  ;;  %v20967_v21 = vshrl.u32 %v20667_v47, 16  ;;  %v11920_v12 = vor.u32 %v11918_v40, %v20913_v57 }
 0xba7   : > { %16307 = vmatprep.mubr.msk.bf16.mxu0 %vm4570_vm7, %v8803_v26  ;;  %16499 = vmatprep.mubr.msk.bf16.mxu1 %vm4570_vm7, %v20908_v59  ;;  %22445 = vst [vmem:[#allocation101_spill] sm:$0xff] %v20952_v11  ;;  %v10307_v26 = vrot.slane %v22414_v50, 7  ;;  %22448 = vst [vmem:[#allocation104_spill] sm:$0xff] %v20973_v32  ;;  %v22449_v11 = vld [vmem:[#allocation78_spill] sm:$0xff]  ;;  %v20986_v59 = vsel %vm2662_vm4, %v11622_v52, %v11626_v24  ;;  %v22453_v50 = vrot.slane %v22397_v41, 7  ;;  %v21013_v24 = vshrl.u32 %v20658_v55, 16 }
 0xba8   : > { %22446 = vst [vmem:[#allocation102_spill] sm:$0xff] %v20958_v51  ;;  %22447 = vst [vmem:[#allocation103_spill] sm:$0xff] %v20967_v21  ;;  %v8811_v58 = vsel %vm2662_vm4, %v22450_v49, %v22449_v11  ;;  %v20997_v48 = vsel %vm2381_vm3, %v11038_v56, %v20973_v32  ;;  %v11921_v49 = vrot.slane %v20958_v51, 1  ;;  %v22455_v11 = vld [vmem:[#allocation31_spill] sm:$0xff]  ;;  %v22235_v52 = vrot.slane %v20967_v21, 7 }
 0xba9   : > { %22451 = vst [vmem:[#allocation78_spill] sm:$0xff] %v20983_v17  ;;  %22452 = vst [vmem:[#allocation105_spill] sm:$0xff] %v20986_v59  ;;  %v10303_v7 = vsel %vm2662_vm4, %v22453_v50, %v10302_v34  ;;  %v10308_v62 = vor.u32 %v10307_v26, %v20452_v6  ;;  %v21006_v41 = vsel %vm3189_vm5, %v11917_v29, %v11918_v40  ;;  %v11924_v56 = vrot.slane %v20983_v17, 1  ;;  %v22465_v59 = vld [vmem:[#allocation30_spill] sm:$0xff] }
 0xbaa   : > { %22454 = vst [vmem:[#allocation106_spill] sm:$0xff] %v20997_v48  ;;  %22456 = vst [vmem:[#allocation31_spill] sm:$0xff] %v21006_v41  ;;  %v21009_v34 = vsel %vm3189_vm5, %v11920_v12, %v11921_v49  ;;  %v21026_v6 = vor.u32 %v22235_v52, %v20983_v17  ;;  %v22464_v29 = vrot.slane %v20373_v42, 7  ;;  %v10313_v40 = vrot.slane %v20563_v37, 7  ;;  %v21034_v41 = vld [vmem:[%s22311_s2 + $0xa8] sm:$0xff]   ;;  %v22466_v52 = vld [vmem:[#allocation33_spill] sm:$0xff] }
 0xbab   : > { %22457 = vst [vmem:[#allocation107_spill] sm:$0xff] %v21009_v34  ;;  %22458 = vst [vmem:[#allocation108_spill] sm:$0xff] %v21013_v24  ;;  %v11923_v34 = vor.u32 %v11921_v49, %v21013_v24  ;;  %v21046_v37 = vshll.u32 %v20714_v27, 16  ;;  %v22237_v49 = vrot.slane %v21021_v46, 7 }
 0xbac   : > { %22463 = vst [vmem:[#allocation109_spill] sm:$0xff] %v21026_v6  ;;  %v10309_v12 = vsel %vm2662_vm4, %v22464_v29, %v10308_v62  ;;  %v10314_v62 = vor.u32 %v10313_v40, %v20566_v0  ;;  %v21064_v0 = vld [vmem:[%s22311_s2 + $0xb0] sm:$0xff]   ;;  %v21067_v29 = vshll.u32 %v20756_v61, 16  ;;  %v12092_v6 = vshrl.u32 %v20808_v3, 16 }
 0xbad   : > { %22467 = vst [vmem:[#allocation30_spill] sm:$0xff] %v21046_v37 }
 0xbae   : > { %16308 = vmatmul.mubr.msk.bf16.gmra.mrb[172].mxu0 %vm4570_vm7, %v8811_v58  ;;  %16500 = vmatmul.mubr.msk.bf16.gmra.mrb[148].mxu1 %vm4570_vm7, %v20964_v53  ;;  %v22459_v58 = vld [vmem:[#allocation61_spill] sm:$0xff]  ;;  %22470 = vst [vmem:[#allocation111_spill] sm:$0xff] %v21067_v29 }
 0xbaf   : > { %16319 = vmatprep.mubr.msk.bf16.mxu0 %vm4570_vm7, %v22455_v11  ;;  %16511 = vmatprep.mubr.msk.bf16.mxu1 %vm4570_vm7, %v10303_v7  ;;  %v21016_v50 = vshll.u32 %v22459_v58, 16  ;;  %v22461_v11 = vld [vmem:[#allocation84_spill] sm:$0xff] }
 0xbb0   : > { %v10306_v7 = vsel %vm2662_vm4, %v10301_v13, %v22461_v11  ;;  %22462 = vst [vmem:[#allocation84_spill] sm:$0xff] %v21021_v46  ;;  %v22236_v13 = vrot.slane %v20638_v45, 7  ;;  %v11926_v11 = vor.u32 %v11924_v56, %v20967_v21 }
 0xbb1   : > { %22460 = vst [vmem:[#allocation61_spill] sm:$0xff] %v21016_v50  ;;  %v11927_v42 = vrot.slane %v21016_v50, 1 }
 0xbb6   : > { %16320 = vmatmul.mubr.msk.bf16.vlgmr.msra.gmra.mrb[160].mxu0 %vm4570_vm7, %v22465_v59  ;;  %16512 = vmatmul.mubr.msk.bf16.vlgmr.msra.gmra.mrb[136].mxu1 %vm4570_vm7, %v10306_v7  ;;  %v21053_v59 = vsel %vm3189_vm5, %v11923_v34, %v11924_v56  ;;  %v21056_v7 = vsel %vm3189_vm5, %v11926_v11, %v11927_v42  ;;  %v12085_v56 = vshrl.u32 %v20811_v39, 16  ;;  %v11930_v11 = vrot.slane %v21046_v37, 1 }
 0xbb7   : > { %16323 = vmatprep.mubr.msk.bf16.mxu0 %vm4570_vm7, %v22466_v52  ;;  %16515 = vmatprep.mubr.msk.bf16.mxu1 %vm4570_vm7, %v10309_v12  ;;  %22468 = vst [vmem:[#allocation33_spill] sm:$0xff] %v21053_v59  ;;  %22469 = vst [vmem:[#allocation110_spill] sm:$0xff] %v21056_v7  ;;  %v10320_v52 = vor.u32 %v22236_v13, %v20641_v22  ;;  %v21075_v12 = vor.u32 %v22237_v49, %v21046_v37  ;;  %v22473_v7 = vrot.slane %v20439_v1, 7  ;;  %v22474_v13 = vld [vmem:[#allocation91_spill] sm:$0xff]  ;;  %v21094_v1 = vld [vmem:[%s22311_s2 + $0xb8] sm:$0xff]  }
 0xbb8   : > { %16336 = vmatpush3.bf16.msra.mxu0 %v20900_v31  ;;  %16528 = vmatpush3.bf16.msra.mxu1 %v20687_v28  ;;  %v22471_v28 = vld [vmem:[#allocation85_spill] sm:$0xff]  ;;  %v10318_v59 = vsel %vm2662_vm4, %v10313_v40, %v22474_v13  ;;  %v11940_v40 = vshll.u32 %v20811_v39, 16  ;;  %v11933_v13 = vrot.slane %v21067_v29, 1  ;;  %v11359_v37 = vrot.slane %v21067_v29, 4 }
 0xbb9   : > { %16337 = vmatprep.subr.bf16.mxu0 %v21034_v41  ;;  %16529 = vmatprep.subr.bf16.mxu1 %v20829_v43  ;;  %v10312_v34 = vsel %vm2662_vm4, %v10307_v26, %v22471_v28  ;;  %22472 = vst [vmem:[#allocation85_spill] sm:$0xff] %v21075_v12  ;;  %v10315_v22 = vsel %vm2662_vm4, %v22473_v7, %v10314_v62  ;;  %v21086_v26 = vshll.u32 %v20752_v4, 16  ;;  %v22475_v28 = vrot.slane %v20504_v23, 7  ;;  %v22477_v7 = vld [vmem:[#allocation32_spill] sm:$0xff] }
 0xbba   : > { %v21097_v62 = vshrl.u32 %v22459_v58, 16  ;;  %v22478_v23 = vrot.slane %v20879_v8, 7  ;;  %v21111_v12 = vshrl.u32 %v20752_v4, 16  ;;  %v12357_v48 = vrot.slane %v12085_v56, 4 }
 0xbbb   : > { %v10321_v49 = vsel %vm2662_vm4, %v22475_v28, %v10320_v52  ;;  %v21108_v28 = vshrl.u32 %v20756_v61, 16  ;;  %v12082_v24 = vrot.slane %v21086_v26, 4 }
 0xbbc   : > { %16338 = vmatpush3.bf16.msra.mxu0 %v21034_v41  ;;  %16530 = vmatpush3.bf16.msra.mxu1 %v20829_v43  ;;  %22476 = vst [vmem:[#allocation91_spill] sm:$0xff] %v21097_v62  ;;  %v10328_v52 = vor.u32 %v20882_v38, %v22478_v23  ;;  %v22479_v43 = vld [vmem:[#allocation37_spill] sm:$0xff]  ;;  %v11929_v32 = vor.u32 %v11927_v42, %v21097_v62  ;;  %v11491_v42 = vrot.slane %v21067_v29, 5  ;;  %v11942_v62 = vrot.slane %v11940_v40, 1 }
 0xbbd   : > { %16339 = vmatprep.subr.bf16.mxu0 %v21064_v0  ;;  %16531 = vmatprep.subr.bf16.mxu1 %v20844_v44  ;;  %v11932_v23 = vor.u32 %v11930_v11, %v21021_v46  ;;  %v11356_v4 = vrot.slane %v21108_v28, 3  ;;  %v11490_v50 = vrot.slane %v21108_v28, 4  ;;  %v21139_v17 = vor.u32 %v11933_v13, %v21108_v28 }
 0xbbe   : > { %16324 = vmatmul.mubr.msk.bf16.gmra.mrb[164].mxu0 %vm4570_vm7, %v22477_v7  ;;  %16516 = vmatmul.mubr.msk.bf16.gmra.mrb[140].mxu1 %vm4570_vm7, %v10312_v34  ;;  %v12087_v7 = vrot.slane %v12085_v56, 3  ;;  %v12095_v34 = vshll.u32 %v20808_v3, 16  ;;  %v21133_v46 = vsel %vm3189_vm5, %v11929_v32, %v11930_v11  ;;  %v12081_v51 = vrot.slane %v21111_v12, 3 }
 0xbbf   : > { %16327 = vmatprep.mubr.msk.bf16.mxu0 %vm4570_vm7, %v22479_v43  ;;  %16519 = vmatprep.mubr.msk.bf16.mxu1 %vm4570_vm7, %v10315_v22  ;;  %v22263_v43 = vrot.slane %v21086_v26, 1  ;;  %v21129_v22 = vld [vmem:[%s22311_s2 + $0xc0] sm:$0xff]   ;;  %22480 = vst [vmem:[#allocation32_spill] sm:$0xff] %v21133_v46  ;;  %22482 = vst [vmem:[#allocation112_spill] sm:$0xff] %v21139_v17  ;;  %v12229_v32 = vrot.slane %v20808_v3, 4  ;;  %v12088_v11 = vrot.slane %v11940_v40, 4 }
 0xbc0   : > { %16340 = vmatpush3.bf16.msra.mxu0 %v21064_v0  ;;  %16532 = vmatpush3.bf16.msra.mxu1 %v20844_v44  ;;  %v21136_v44 = vsel %vm3189_vm5, %v11932_v23, %v11933_v13  ;;  %v21150_v13 = vor.u32 %v11359_v37, %v11356_v4  ;;  %v12353_v17 = vrot.slane %v21111_v12, 4  ;;  %v12094_v56 = vrot.slane %v12092_v6, 3  ;;  %v22483_v46 = vld [vmem:[#allocation36_spill] sm:$0xff] }
 0xbc1   : > { %16341 = vmatprep.subr.bf16.mxu0 %v21094_v1  ;;  %16533 = vmatprep.subr.bf16.mxu1 %v20867_v36  ;;  %22481 = vst [vmem:[#allocation37_spill] sm:$0xff] %v21136_v44  ;;  %v11938_v21 = vor.u32 %v22263_v43, %v21111_v12  ;;  %v12083_v43 = vor.u32 %v12082_v24, %v12081_v51  ;;  %v12354_v3 = vrot.slane %v21086_v26, 5  ;;  %v12358_v44 = vrot.slane %v11940_v40, 5  ;;  %v22484_v24 = vld [vmem:[#allocation41_spill] sm:$0xff] }
 0xbc2   : > { %v12089_v29 = vor.u32 %v12088_v11, %v12087_v7  ;;  %v12097_v4 = vrot.slane %v12095_v34, 4  ;;  %v21162_v37 = vor.u32 %v11491_v42, %v11490_v50  ;;  %v22491_v11 = vld [vmem:[#allocation40_spill] sm:$0xff] }
 0xbc3   : > { %v21153_v23 = vsel %vm3189_vm5, %v11938_v21, %v11942_v62  ;;  %v12361_v21 = vrot.slane %v12092_v6, 4  ;;  %v21166_v51 = vsel %vm2078_vm2, %v21150_v13, %v12083_v43  ;;  %v12362_v62 = vrot.slane %v12095_v34, 5 }
 0xbc4   : > { %16342 = vmatpush3.bf16.msra.mxu0 %v21094_v1  ;;  %16534 = vmatpush3.bf16.msra.mxu1 %v20867_v36  ;;  %v21172_v40 = vsel %vm2078_vm2, %v12083_v43, %v12089_v29  ;;  %v12359_v7 = vor.u32 %v12358_v44, %v12357_v48  ;;  %v12098_v43 = vor.u32 %v12097_v4, %v12094_v56  ;;  %v9146_v44 = vrot.slane %v22427_v5, 1  ;;  %v21209_v4 = vld [vmem:[%s22311_s2 + $0xc8] sm:$0xff]  }
 0xbc5   : > { %16359 = vmatprep.subr.bf16.mxu0 %v21129_v22  ;;  %16551 = vmatprep.subr.bf16.mxu1 %v20900_v31 }
 0xbc6   : > { %16328 = vmatmul.mubr.msk.bf16.gmra.mrb[168].mxu0 %vm4570_vm7, %v22483_v46  ;;  %16520 = vmatmul.mubr.msk.bf16.gmra.mrb[144].mxu1 %vm4570_vm7, %v10318_v59  ;;  %v12355_v46 = vor.u32 %v12354_v3, %v12353_v17  ;;  %v22485_v59 = vrot.slane %v20811_v39, 4  ;;  %v12363_v17 = vor.u32 %v12362_v62, %v12361_v21  ;;  %v21191_v48 = vsel %vm2078_vm2, %v12089_v29, %v12098_v43  ;;  %v22492_v3 = vld [vmem:[#allocation92_spill] sm:$0xff]  ;;  %v22495_v21 = vld [vmem:[#allocation46_spill] sm:$0xff] }
 0xbc7   : > { %16331 = vmatprep.mubr.msk.bf16.mxu0 %vm4570_vm7, %v22484_v24  ;;  %16523 = vmatprep.mubr.msk.bf16.mxu1 %vm4570_vm7, %v10321_v49  ;;  %v22489_v49 = vrot.slane %v20638_v45, 7  ;;  %v9147_v45 = vsel %vm3189_vm5, %v22492_v3, %v9146_v44  ;;  %v9148_v5 = vor.u32 %v9146_v44, %v22424_v10  ;;  %v22494_v29 = vrot.slane %v20201_v60, 1  ;;  %v22496_v24 = vld [vmem:[#allocation97_spill] sm:$0xff]  ;;  %v22497_v62 = vld [vmem:[#allocation52_spill] sm:$0xff]  ;;  %v21230_v10 = vld [vmem:[%s22311_s2 + $0xd8] sm:$0xff]  }
 0xbc8   : > { %v21177_v50 = vsel %vm1850_vm1, %v22485_v59, %v12229_v32  ;;  %v21181_v6 = vsel %vm2381_vm3, %v21162_v37, %v12355_v46  ;;  %v21184_v42 = vsel %vm2381_vm3, %v12355_v46, %v12359_v7  ;;  %v21194_v32 = vsel %vm2381_vm3, %v12359_v7, %v12363_v17  ;;  %v21223_v60 = vld [vmem:[%s22311_s2 + $0xd0] sm:$0xff]   ;;  %v22499_v7 = vld [vmem:[#allocation51_spill] sm:$0xff]  ;;  %v22500_v59 = vld [vmem:[#allocation98_spill] sm:$0xff] }
 0xbc9   : > { %22486 = vst [vmem:[#allocation36_spill] sm:$0xff] %v21177_v50  ;;  %22487 = vst [vmem:[#allocation41_spill] sm:$0xff] %v21181_v6  ;;  %v10329_v34 = vsel %vm2662_vm4, %v22489_v49, %v10328_v52  ;;  %v22493_v52 = vld [vmem:[#allocation47_spill] sm:$0xff]  ;;  %v9150_v56 = vsel %vm3189_vm5, %v9148_v5, %v22494_v29  ;;  %v22498_v46 = vld [vmem:[#allocation53_spill] sm:$0xff] }
 0xbca   : > { %22488 = vst [vmem:[#allocation113_spill] sm:$0xff] %v21184_v42  ;;  %22490 = vst [vmem:[#allocation114_spill] sm:$0xff] %v21194_v32  ;;  %v22501_v49 = vld [vmem:[#allocation64_spill] sm:$0xff]  ;;  %v22502_v43 = vld [vmem:[#allocation66_spill] sm:$0xff] }
 0xbcb   : > { %v22503_v17 = vld [vmem:[#allocation63_spill] sm:$0xff]  ;;  %v22506_v3 = vld [vmem:[#allocation56_spill] sm:$0xff]  ;;  %v22509_v29 = vld [vmem:[#allocation65_spill] sm:$0xff] }
 0xbcc   : > { %v22504_v44 = vld [vmem:[#allocation55_spill] sm:$0xff]  ;;  %v22556_v42 = vld [vmem:[#allocation61_spill] sm:$0xff] }
 0xbcd   : > { %v22508_v5 = vld [vmem:[#allocation59_spill] sm:$0xff]  ;;  %v11341_v6 = vrot.slane %v22556_v42, 4 }
 0xbce   : > { %16332 = vmatmul.mubr.msk.bf16.gmra.mrb[172].mxu0 %vm4570_vm7, %v22491_v11  ;;  %16524 = vmatmul.mubr.msk.bf16.gmra.mrb[148].mxu1 %vm4570_vm7, %v10329_v34  ;;  %v21245_v34 = vld [vmem:[%s22311_s2 + $0xe0] sm:$0xff]  }
 0xbcf   : > { %16343 = vmatprep.mubr.msk.bf16.mxu0 %vm4570_vm7, %v9147_v45  ;;  %16535 = vmatprep.mubr.msk.bf16.mxu1 %vm4570_vm7, %v22493_v52  ;;  %v22505_v11 = vld [vmem:[#allocation75_spill] sm:$0xff]  ;;  %v21268_v45 = vld [vmem:[%s22311_s2 + $0xe8] sm:$0xff]  }
 0xbd0   : > { %v22507_v52 = vld [vmem:[#allocation60_spill] sm:$0xff]  ;;  %v18536_v50 = vld [vmem:[%s22311_s2 + $0x60] sm:$0xff]  }
 0xbd6   : > { %16344 = vmatmul.mubr.msk.bf16.vlgmr.msra.gmra.mrb[160].mxu0 %vm4570_vm7, %v9150_v56  ;;  %16536 = vmatmul.mubr.msk.bf16.vlgmr.msra.gmra.mrb[136].mxu1 %vm4570_vm7, %v22495_v21  ;;  %v22511_v56 = vld [vmem:[#allocation80_spill] sm:$0xff]  ;;  %v22512_v21 = vld [vmem:[#allocation71_spill] sm:$0xff] }
 0xbd7   : > { %16347 = vmatprep.mubr.msk.bf16.mxu0 %vm4570_vm7, %v22496_v24  ;;  %16539 = vmatprep.mubr.msk.bf16.mxu1 %vm4570_vm7, %v22497_v62  ;;  %v21305_v24 = vld [vmem:[%s22311_s2 + $0x100] sm:$0xff]   ;;  %v10615_v62 = vrot.slane %v20882_v38, 1 }
 0xbd8   : > { %16360 = vmatpush3.bf16.msra.mxu0 %v21129_v22  ;;  %16552 = vmatpush3.bf16.msra.mxu1 %v20900_v31 }
 0xbd9   : > { %16361 = vmatprep.subr.bf16.mxu0 %v21209_v4  ;;  %16553 = vmatprep.subr.bf16.mxu1 %v21034_v41  ;;  %v10617_v38 = vor.u32 %v10615_v62, %v20879_v8  ;;  %v22521_v8 = vld [vmem:[#allocation96_spill] sm:$0xff] }
 0xbdc   : > { %16362 = vmatpush3.bf16.msra.mxu0 %v21209_v4  ;;  %16554 = vmatpush3.bf16.msra.mxu1 %v21034_v41 }
 0xbdd   : > { %16363 = vmatprep.subr.bf16.mxu0 %v21223_v60  ;;  %16555 = vmatprep.subr.bf16.mxu1 %v21064_v0 }
 0xbde   : > { %16348 = vmatmul.mubr.msk.bf16.gmra.mrb[164].mxu0 %vm4570_vm7, %v22498_v46  ;;  %16540 = vmatmul.mubr.msk.bf16.gmra.mrb[140].mxu1 %vm4570_vm7, %v22499_v7  ;;  %v22514_v46 = vld [vmem:[#allocation76_spill] sm:$0xff] }
 0xbdf   : > { %16351 = vmatprep.mubr.msk.bf16.mxu0 %vm4570_vm7, %v22500_v59  ;;  %16543 = vmatprep.mubr.msk.bf16.mxu1 %vm4570_vm7, %v22501_v49  ;;  %v10616_v7 = vsel %vm3189_vm5, %v22514_v46, %v10615_v62  ;;  %v22515_v59 = vld [vmem:[#allocation88_spill] sm:$0xff]  ;;  %v22516_v49 = vrot.slane %v20885_v19, 1  ;;  %v22525_v62 = vld [vmem:[#allocation62_spill] sm:$0xff]  ;;  %v10767_v46 = vrot.slane %v20885_v19, 4  ;;  %v10776_v19 = vrot.slane %v20927_v16, 4 }
 0xbe0   : > { %16364 = vmatpush3.bf16.msra.mxu0 %v21223_v60  ;;  %16556 = vmatpush3.bf16.msra.mxu1 %v21064_v0 }
 0xbe1   : > { %16365 = vmatprep.subr.bf16.mxu0 %v21230_v10  ;;  %16557 = vmatprep.subr.bf16.mxu1 %v21094_v1 }
 0xbe4   : > { %16366 = vmatpush3.bf16.msra.mxu0 %v21230_v10  ;;  %16558 = vmatpush3.bf16.msra.mxu1 %v21094_v1 }
 0xbe5   : > { %16383 = vmatprep.subr.bf16.mxu0 %v21245_v34  ;;  %16575 = vmatprep.subr.bf16.mxu1 %v21129_v22 }
 0xbe6   : > { %16352 = vmatmul.mubr.msk.bf16.gmra.mrb[168].mxu0 %vm4570_vm7, %v22502_v43  ;;  %16544 = vmatmul.mubr.msk.bf16.gmra.mrb[144].mxu1 %vm4570_vm7, %v22503_v17  ;;  %v10622_v43 = vsel %vm3189_vm5, %v10617_v38, %v22516_v49  ;;  %v22517_v17 = vld [vmem:[#allocation89_spill] sm:$0xff]  ;;  %v18524_v49 = vld [vmem:[%s22311_s2 + $0x20] sm:$0xff]  }
 0xbe7   : > { %16355 = vmatprep.mubr.msk.bf16.mxu0 %vm4570_vm7, %v22504_v44  ;;  %16547 = vmatprep.mubr.msk.bf16.mxu1 %vm4570_vm7, %v22505_v11  ;;  %v22519_v44 = vld [vmem:[#allocation95_spill] sm:$0xff] }
 0xbee   : > { %16356 = vmatmul.mubr.msk.bf16.gmra.mrb[172].mxu0 %vm4570_vm7, %v20717_v30  ;;  %16548 = vmatmul.mubr.msk.bf16.gmra.mrb[148].mxu1 %vm4570_vm7, %v22439_v9  ;;  %v21283_v30 = vld [vmem:[%s22311_s2 + $0xf0] sm:$0xff]  }
 0xbef   : > { %16367 = vmatprep.mubr.msk.bf16.mxu0 %vm4570_vm7, %v22506_v3  ;;  %16559 = vmatprep.mubr.msk.bf16.mxu1 %vm4570_vm7, %v20725_v2  ;;  %v21290_v2 = vld [vmem:[%s22311_s2 + $0xf8] sm:$0xff]   ;;  %v21333_v3 = vld [vmem:[%s22311_s2 + $0x108] sm:$0xff]  }
 0xbf6   : > { %16368 = vmatmul.mubr.msk.bf16.vlgmr.msra.gmra.mrb[160].mxu0 %vm4570_vm7, %v22507_v52  ;;  %16560 = vmatmul.mubr.msk.bf16.vlgmr.msra.gmra.mrb[136].mxu1 %vm4570_vm7, %v22508_v5  ;;  %v22520_v52 = vld [vmem:[#allocation35_spill] sm:$0xff]  ;;  %v22522_v5 = vld [vmem:[#allocation38_spill] sm:$0xff] }
 0xbf7   : > { %16371 = vmatprep.mubr.msk.bf16.mxu0 %vm4570_vm7, %v22509_v29  ;;  %16563 = vmatprep.mubr.msk.bf16.mxu1 %vm4570_vm7, %v20759_v54  ;;  %v22510_v54 = vld [vmem:[#allocation69_spill] sm:$0xff]  ;;  %v22523_v29 = vld [vmem:[#allocation70_spill] sm:$0xff] }
 0xbf8   : > { %16384 = vmatpush3.bf16.msra.mxu0 %v21245_v34  ;;  %16576 = vmatpush3.bf16.msra.mxu1 %v21129_v22 }
 0xbf9   : > { %16385 = vmatprep.subr.bf16.mxu0 %v21268_v45  ;;  %16577 = vmatprep.subr.bf16.mxu1 %v21209_v4 }
 0xbfc   : > { %16386 = vmatpush3.bf16.msra.mxu0 %v21268_v45  ;;  %16578 = vmatpush3.bf16.msra.mxu1 %v21209_v4 }
 0xbfd   : > { %16387 = vmatprep.subr.bf16.mxu0 %v21283_v30  ;;  %16579 = vmatprep.subr.bf16.mxu1 %v21223_v60 }
 0xbfe   : > { %16372 = vmatmul.mubr.msk.bf16.gmra.mrb[164].mxu0 %vm4570_vm7, %v22510_v54  ;;  %16564 = vmatmul.mubr.msk.bf16.gmra.mrb[140].mxu1 %vm4570_vm7, %v20762_v35  ;;  %v22513_v35 = vld [vmem:[#allocation82_spill] sm:$0xff]  ;;  %v21348_v54 = vld [vmem:[%s22311_s2 + $0x110] sm:$0xff]  }
 0xbff   : > { %16375 = vmatprep.mubr.msk.bf16.mxu0 %vm4570_vm7, %v22511_v56  ;;  %16567 = vmatprep.mubr.msk.bf16.mxu1 %vm4570_vm7, %v22512_v21  ;;  %v21355_v56 = vld [vmem:[%s22311_s2 + $0x118] sm:$0xff]   ;;  %v22524_v21 = vld [vmem:[#allocation39_spill] sm:$0xff] }
 0xc00   : > { %16388 = vmatpush3.bf16.msra.mxu0 %v21283_v30  ;;  %16580 = vmatpush3.bf16.msra.mxu1 %v21223_v60 }
 0xc01   : > { %16389 = vmatprep.subr.bf16.mxu0 %v21290_v2  ;;  %16581 = vmatprep.subr.bf16.mxu1 %v21230_v10 }
 0xc04   : > { %16390 = vmatpush3.bf16.msra.mxu0 %v21290_v2  ;;  %16582 = vmatpush3.bf16.msra.mxu1 %v21230_v10 }
 0xc05   : > { %16407 = vmatprep.subr.bf16.mxu0 %v21305_v24  ;;  %16599 = vmatprep.subr.bf16.mxu1 %v21245_v34 }
 0xc06   : > { %16376 = vmatmul.mubr.msk.bf16.gmra.mrb[168].mxu0 %vm4570_vm7, %v22513_v35  ;;  %16568 = vmatmul.mubr.msk.bf16.gmra.mrb[144].mxu1 %vm4570_vm7, %v20783_v14  ;;  %v22518_v14 = vld [vmem:[#allocation34_spill] sm:$0xff]  ;;  %v10766_v35 = vrot.slane %v20859_v15, 3  ;;  %v10773_v15 = vrot.slane %v20913_v57, 3 }
 0xc07   : > { %16379 = vmatprep.mubr.msk.bf16.mxu0 %vm4570_vm7, %v22515_v59  ;;  %16571 = vmatprep.mubr.msk.bf16.mxu1 %vm4570_vm7, %v10616_v7  ;;  %v22526_v7 = vld [vmem:[#allocation44_spill] sm:$0xff] }
 0xc08   : > { %v22527_v59 = vld [vmem:[#allocation72_spill] sm:$0xff]  ;;  %v10768_v38 = vor.u32 %v10767_v46, %v10766_v35  ;;  %v21389_v16 = vor.u32 %v10776_v19, %v10773_v15  ;;  %v18526_v46 = vld [vmem:[%s22311_s2 + $0x30] sm:$0xff]   ;;  %v10904_v19 = vrot.slane %v22439_v9, 4 }
 0xc09   : > { %v18525_v35 = vld [vmem:[%s22311_s2 + $0x28] sm:$0xff]   ;;  %v22540_v15 = vld [vmem:[#allocation81_spill] sm:$0xff] }
 0xc0e   : > { %16380 = vmatmul.mubr.msk.bf16.gmra.mrb[172].mxu0 %vm4570_vm7, %v22517_v17  ;;  %16572 = vmatmul.mubr.msk.bf16.gmra.mrb[148].mxu1 %vm4570_vm7, %v10622_v43  ;;  %v22528_v43 = vld [vmem:[#allocation45_spill] sm:$0xff]  ;;  %v21383_v17 = vsel %vm2078_vm2, %v20915_v63, %v10768_v38  ;;  %v22531_v63 = vld [vmem:[#allocation87_spill] sm:$0xff] }
 0xc0f   : > { %16391 = vmatprep.mubr.msk.bf16.mxu0 %vm4570_vm7, %v22518_v14  ;;  %16583 = vmatprep.mubr.msk.bf16.mxu1 %vm4570_vm7, %v22519_v44  ;;  %v22529_v14 = vld [vmem:[#allocation48_spill] sm:$0xff]  ;;  %v21393_v44 = vsel %vm2078_vm2, %v10768_v38, %v21389_v16  ;;  %v22539_v38 = vld [vmem:[#allocation79_spill] sm:$0xff] }
 0xc16   : > { %16392 = vmatmul.mubr.msk.bf16.vlgmr.msra.gmra.mrb[160].mxu0 %vm4570_vm7, %v22520_v52  ;;  %16584 = vmatmul.mubr.msk.bf16.vlgmr.msra.gmra.mrb[136].mxu1 %vm4570_vm7, %v22521_v8  ;;  %v22530_v52 = vld [vmem:[#allocation49_spill] sm:$0xff] }
 0xc17   : > { %16395 = vmatprep.mubr.msk.bf16.mxu0 %vm4570_vm7, %v22522_v5  ;;  %16587 = vmatprep.mubr.msk.bf16.mxu1 %vm4570_vm7, %v22523_v29  ;;  %v22532_v8 = vld [vmem:[#allocation57_spill] sm:$0xff]  ;;  %v22533_v5 = vld [vmem:[#allocation90_spill] sm:$0xff] }
 0xc18   : > { %16408 = vmatpush3.bf16.msra.mxu0 %v21305_v24  ;;  %16600 = vmatpush3.bf16.msra.mxu1 %v21245_v34  ;;  %v22534_v29 = vld [vmem:[#allocation58_spill] sm:$0xff] }
 0xc19   : > { %16409 = vmatprep.subr.bf16.mxu0 %v21333_v3  ;;  %16601 = vmatprep.subr.bf16.mxu1 %v21268_v45 }
 0xc1c   : > { %16410 = vmatpush3.bf16.msra.mxu0 %v21333_v3  ;;  %16602 = vmatpush3.bf16.msra.mxu1 %v21268_v45 }
 0xc1d   : > { %16411 = vmatprep.subr.bf16.mxu0 %v21348_v54  ;;  %16603 = vmatprep.subr.bf16.mxu1 %v21283_v30 }
 0xc1e   : > { %16396 = vmatmul.mubr.msk.bf16.gmra.mrb[164].mxu0 %vm4570_vm7, %v22524_v21  ;;  %16588 = vmatmul.mubr.msk.bf16.gmra.mrb[140].mxu1 %vm4570_vm7, %v22525_v62  ;;  %v22535_v21 = vld [vmem:[#allocation93_spill] sm:$0xff]  ;;  %v22536_v62 = vld [vmem:[#allocation67_spill] sm:$0xff] }
 0xc1f   : > { %16399 = vmatprep.mubr.msk.bf16.mxu0 %vm4570_vm7, %v22526_v7  ;;  %16591 = vmatprep.mubr.msk.bf16.mxu1 %vm4570_vm7, %v22527_v59  ;;  %v22537_v7 = vld [vmem:[#allocation94_spill] sm:$0xff]  ;;  %v22538_v59 = vld [vmem:[#allocation68_spill] sm:$0xff] }
 0xc20   : > { %16412 = vmatpush3.bf16.msra.mxu0 %v21348_v54  ;;  %16604 = vmatpush3.bf16.msra.mxu1 %v21283_v30 }
 0xc21   : > { %16413 = vmatprep.subr.bf16.mxu0 %v21355_v56  ;;  %16605 = vmatprep.subr.bf16.mxu1 %v21290_v2 }
 0xc24   : > { %16414 = vmatpush3.bf16.msra.mxu0 %v21355_v56  ;;  %16606 = vmatpush3.bf16.msra.mxu1 %v21290_v2 }
 0xc25   : > { %16623 = vmatprep.subr.bf16.mxu1 %v21305_v24  ;;  %16647 = vmatprep.subr.bf16.mxu0 %v18524_v49 }
 0xc26   : > { %16400 = vmatmul.mubr.msk.bf16.gmra.mrb[168].mxu0 %vm4570_vm7, %v22528_v43  ;;  %16592 = vmatmul.mubr.msk.bf16.gmra.mrb[144].mxu1 %vm4570_vm7, %v20932_v20  ;;  %v10906_v43 = vrot.slane %v20623_v18, 4 }
 0xc27   : > { %16403 = vmatprep.mubr.msk.bf16.mxu0 %vm4570_vm7, %v22529_v14  ;;  %16595 = vmatprep.mubr.msk.bf16.mxu1 %vm4570_vm7, %v21383_v17  ;;  %v22541_v14 = vrot.slane %v22505_v11, 4 }
 0xc28   : > { %v10907_v9 = vsel %vm1850_vm1, %v10904_v19, %v10906_v43 }
 0xc2e   : > { %16404 = vmatmul.mubr.msk.bf16.gmra.mrb[172].mxu0 %vm4570_vm7, %v22530_v52  ;;  %16596 = vmatmul.mubr.msk.bf16.gmra.mrb[148].mxu1 %vm4570_vm7, %v21393_v44  ;;  %v10905_v52 = vsel %vm1850_vm1, %v22541_v14, %v10904_v19  ;;  %v22547_v19 = vld [vmem:[#allocation54_spill] sm:$0xff]  ;;  %v11201_v14 = vrot.slane %v20714_v27, 4 }
 0xc2f   : > { %16415 = vmatprep.mubr.msk.bf16.mxu0 %vm4570_vm7, %v22531_v63  ;;  %16607 = vmatprep.mubr.msk.bf16.mxu1 %vm4570_vm7, %v22532_v8  ;;  %v18528_v63 = vld [vmem:[%s22311_s2] sm:$0xff]  }
 0xc30   : > { %v22542_v8 = vld [vmem:[#allocation83_spill] sm:$0xff] }
 0xc36   : > { %16416 = vmatmul.mubr.msk.bf16.vlgmr.msra.gmra.mrb[160].mxu0 %vm4570_vm7, %v22533_v5  ;;  %16608 = vmatmul.mubr.msk.bf16.vlgmr.msra.gmra.mrb[136].mxu1 %vm4570_vm7, %v22534_v29  ;;  %v22543_v5 = vld [vmem:[#allocation42_spill] sm:$0xff]  ;;  %v10908_v29 = vrot.slane %v20630_v25, 4 }
 0xc37   : > { %16419 = vmatprep.mubr.msk.bf16.mxu0 %vm4570_vm7, %v22535_v21  ;;  %16611 = vmatprep.mubr.msk.bf16.mxu1 %vm4570_vm7, %v22536_v62  ;;  %v22544_v21 = vld [vmem:[#allocation29_spill] sm:$0xff]  ;;  %v22545_v62 = vld [vmem:[#allocation99_spill] sm:$0xff] }
 0xc38   : > { %16624 = vmatpush3.bf16.msra.mxu1 %v21305_v24  ;;  %16648 = vmatpush3.bf16.msra.mxu0 %v18524_v49  ;;  %v18527_v49 = vld [vmem:[%s22311_s2 + $0x38] sm:$0xff]   ;;  %v10909_v11 = vsel %vm1850_vm1, %v10906_v43, %v10908_v29 }
 0xc39   : > { %16625 = vmatprep.subr.bf16.mxu1 %v21333_v3  ;;  %16649 = vmatprep.subr.bf16.mxu0 %v18525_v35  ;;  %v18531_v43 = vld [vmem:[%s22311_s2 + $0x18] sm:$0xff]  }
 0xc3c   : > { %16626 = vmatpush3.bf16.msra.mxu1 %v21333_v3  ;;  %16650 = vmatpush3.bf16.msra.mxu0 %v18525_v35  ;;  %v22546_v35 = vld [vmem:[#allocation100_spill] sm:$0xff] }
 0xc3d   : > { %16627 = vmatprep.subr.bf16.mxu1 %v21348_v54  ;;  %16651 = vmatprep.subr.bf16.mxu0 %v18526_v46 }
 0xc3e   : > { %16420 = vmatmul.mubr.msk.bf16.gmra.mrb[164].mxu0 %vm4570_vm7, %v22537_v7  ;;  %16612 = vmatmul.mubr.msk.bf16.gmra.mrb[140].mxu1 %vm4570_vm7, %v22538_v59  ;;  %v18529_v7 = vld [vmem:[%s22311_s2 + $0x8] sm:$0xff]   ;;  %v11197_v59 = vrot.slane %v20667_v47, 4 }
 0xc3f   : > { %16423 = vmatprep.mubr.msk.bf16.mxu0 %vm4570_vm7, %v22539_v38  ;;  %16615 = vmatprep.mubr.msk.bf16.mxu1 %vm4570_vm7, %v22540_v15  ;;  %v18530_v15 = vld [vmem:[%s22311_s2 + $0x10] sm:$0xff]  }
 0xc40   : > { %16628 = vmatpush3.bf16.msra.mxu1 %v21348_v54  ;;  %16652 = vmatpush3.bf16.msra.mxu0 %v18526_v46  ;;  %v11195_v46 = vrot.slane %v20658_v55, 4 }
 0xc41   : > { %16629 = vmatprep.subr.bf16.mxu1 %v21355_v56  ;;  %16653 = vmatprep.subr.bf16.mxu0 %v18527_v49 }
 0xc42   : > { %v21460_v38 = vsel %vm1850_vm1, %v10908_v29, %v11195_v46 }
 0xc44   : > { %16630 = vmatpush3.bf16.msra.mxu1 %v21355_v56  ;;  %16654 = vmatpush3.bf16.msra.mxu0 %v18527_v49  ;;  %v11199_v49 = vrot.slane %v22459_v58, 4 }
 0xc45   : > { %16671 = vmatprep.subr.bf16.mxu0 %v18528_v63 }
 0xc46   : > { %16424 = vmatmul.mubr.msk.bf16.gmra.mrb[168].mxu0 %vm4570_vm7, %v22542_v8  ;;  %16616 = vmatmul.mubr.msk.bf16.gmra.mrb[144].mxu1 %vm4570_vm7, %v10905_v52  ;;  %v22548_v8 = vld [vmem:[#allocation86_spill] sm:$0xff] }
 0xc47   : > { %16427 = vmatprep.mubr.msk.bf16.mxu0 %vm4570_vm7, %v22543_v5  ;;  %16619 = vmatprep.mubr.msk.bf16.mxu1 %vm4570_vm7, %v10907_v9  ;;  %v22264_v5 = vrot.slane %v20756_v61, 4 }
 0xc49   : > { %v21496_v29 = vsel %vm1850_vm1, %v11201_v14, %v22264_v5  ;;  %v22555_v5 = vld [vmem:[#allocation91_spill] sm:$0xff] }
 0xc4a   : > { %v11338_v32 = vrot.slane %v22555_v5, 3 }
 0xc4e   : > { %16428 = vmatmul.mubr.msk.bf16.gmra.mrb[172].mxu0 %vm4570_vm7, %v22544_v21  ;;  %16620 = vmatmul.mubr.msk.bf16.gmra.mrb[148].mxu1 %vm4570_vm7, %v10909_v11  ;;  %v22551_v21 = vld [vmem:[#allocation108_spill] sm:$0xff] }
 0xc4f   : > { %16631 = vmatprep.mubr.msk.bf16.mxu1 %vm4570_vm7, %v22545_v62  ;;  %16655 = vmatprep.mubr.msk.bf16.mxu0 %vm4570_vm7, %v10905_v52  ;;  %v21478_v52 = vsel %vm1850_vm1, %v11197_v59, %v11199_v49  ;;  %v11320_v62 = vrot.slane %v22551_v21, 3 }
 0xc56   : > { %16632 = vmatmul.mubr.msk.bf16.vlgmr.msra.gmra.mrb[136].mxu1 %vm4570_vm7, %v22546_v35  ;;  %16656 = vmatmul.mubr.msk.bf16.vlgmr.msra.gmra.mrb[176].mxu0 %vm4570_vm7, %v10907_v9  ;;  %v22549_v9 = vld [vmem:[#allocation101_spill] sm:$0xff]  ;;  %v22552_v35 = vld [vmem:[#allocation102_spill] sm:$0xff] }
 0xc57   : > { %16635 = vmatprep.mubr.msk.bf16.mxu1 %vm4570_vm7, %v20905_v33  ;;  %16659 = vmatprep.mubr.msk.bf16.mxu0 %vm4570_vm7, %v10909_v11  ;;  %v21468_v33 = vsel %vm1850_vm1, %v11195_v46, %v11197_v59  ;;  %v22550_v11 = vld [vmem:[#allocation106_spill] sm:$0xff]  ;;  %v11323_v46 = vrot.slane %v22552_v35, 4 }
 0xc58   : > { %16672 = vmatpush3.bf16.msra.mxu0 %v18528_v63  ;;  %v18532_v63 = vld [vmem:[%s22311_s2 + $0x40] sm:$0xff]  }
 0xc59   : > { %16673 = vmatprep.subr.bf16.mxu0 %v18529_v7 }
 0xc5c   : > { %16674 = vmatpush3.bf16.msra.mxu0 %v18529_v7  ;;  %v22553_v7 = vld [vmem:[#allocation103_spill] sm:$0xff] }
 0xc5d   : > { %16675 = vmatprep.subr.bf16.mxu0 %v18530_v15  ;;  %v11329_v59 = vrot.slane %v22553_v7, 3 }
 0xc5e   : > { %16636 = vmatmul.mubr.msk.bf16.gmra.mrb[140].mxu1 %vm4570_vm7, %v22547_v19  ;;  %16660 = vmatmul.mubr.msk.bf16.gmra.mrb[180].mxu0 %vm4570_vm7, %v21460_v38 }
 0xc5f   : > { %16639 = vmatprep.mubr.msk.bf16.mxu1 %vm4570_vm7, %v20964_v53  ;;  %16663 = vmatprep.mubr.msk.bf16.mxu0 %vm4570_vm7, %v21468_v33  ;;  %v21486_v53 = vsel %vm1850_vm1, %v11199_v49, %v11201_v14  ;;  %v18533_v49 = vld [vmem:[%s22311_s2 + $0x48] sm:$0xff]   ;;  %v18534_v14 = vld [vmem:[%s22311_s2 + $0x50] sm:$0xff]  }
 0xc60   : > { %16676 = vmatpush3.bf16.msra.mxu0 %v18530_v15  ;;  %v22554_v15 = vld [vmem:[#allocation78_spill] sm:$0xff] }
 0xc61   : > { %16677 = vmatprep.subr.bf16.mxu0 %v18531_v43  ;;  %v11332_v19 = vrot.slane %v22554_v15, 4 }
 0xc64   : > { %16678 = vmatpush3.bf16.msra.mxu0 %v18531_v43  ;;  %v11324_v43 = vor.u32 %v11323_v46, %v11320_v62  ;;  %v22558_v46 = vld [vmem:[#allocation30_spill] sm:$0xff] }
 0xc65   : > { %16695 = vmatprep.subr.bf16.mxu0 %v18532_v63 }
 0xc66   : > { %16640 = vmatmul.mubr.msk.bf16.gmra.mrb[144].mxu1 %vm4570_vm7, %v22548_v8  ;;  %16664 = vmatmul.mubr.msk.bf16.gmra.mrb[184].mxu0 %vm4570_vm7, %v21478_v52 }
 0xc67   : > { %16643 = vmatprep.mubr.msk.bf16.mxu1 %vm4570_vm7, %v22549_v9  ;;  %16667 = vmatprep.mubr.msk.bf16.mxu0 %vm4570_vm7, %v21486_v53 }
 0xc6e   : > { %16644 = vmatmul.mubr.msk.bf16.gmra.mrb[148].mxu1 %vm4570_vm7, %v22550_v11  ;;  %16668 = vmatmul.mubr.msk.bf16.gmra.mrb[188].mxu0 %vm4570_vm7, %v21496_v29 }
 0xc6f   : > { %16679 = vmatprep.mubr.msk.bf16.mxu0 %vm4570_vm7, %v20932_v20  ;;  %v11333_v20 = vor.u32 %v11332_v19, %v11329_v59  ;;  %v11350_v59 = vrot.slane %v22558_v46, 4  ;;  %v11342_v19 = vor.u32 %v11341_v6, %v11338_v32  ;;  %v11474_v32 = vrot.slane %v22551_v21, 4 }
 0xc71   : > { %v21532_v39 = vsel %vm2078_vm2, %v11333_v20, %v11342_v19 }
 0xc76   : > { %16680 = vmatmul.mubr.msk.bf16.vlgmr.msra.gmra.mrb[176].mxu0 %vm4570_vm7, %v21383_v17  ;;  %v21516_v17 = vsel %vm2078_vm2, %v21389_v16, %v11324_v43  ;;  %v18535_v16 = vld [vmem:[%s22311_s2 + $0x58] sm:$0xff]  }
 0xc77   : > { %16683 = vmatprep.mubr.msk.bf16.mxu0 %vm4570_vm7, %v21393_v44  ;;  %16696 = vmatpush3.bf16.msra.mxu0 %v18532_v63  ;;  %v21523_v44 = vsel %vm2078_vm2, %v11324_v43, %v11333_v20  ;;  %v22557_v63 = vld [vmem:[#allocation84_spill] sm:$0xff]  ;;  %v11475_v20 = vrot.slane %v22552_v35, 5 }
 0xc78   : > { %16697 = vmatprep.subr.bf16.mxu0 %v18533_v49  ;;  %v11347_v62 = vrot.slane %v22557_v63, 3 }
 0xc7b   : > { %16698 = vmatpush3.bf16.msra.mxu0 %v18533_v49  ;;  %v11351_v49 = vor.u32 %v11350_v59, %v11347_v62  ;;  %v11479_v62 = vrot.slane %v22554_v15, 5  ;;  %v11476_v59 = vor.u32 %v11475_v20, %v11474_v32  ;;  %v11483_v15 = vrot.slane %v22556_v42, 5  ;;  %v18539_v20 = vld [vmem:[%s22311_s2 + $0x78] sm:$0xff]  }
 0xc7c   : > { %16699 = vmatprep.subr.bf16.mxu0 %v18534_v14  ;;  %v11487_v32 = vrot.slane %v22558_v46, 5 }
 0xc7d   : > { %v21537_v43 = vsel %vm2078_vm2, %v11342_v19, %v11351_v49  ;;  %v21543_v6 = vsel %vm2078_vm2, %v11351_v49, %v21150_v13  ;;  %v18537_v13 = vld [vmem:[%s22311_s2 + $0x68] sm:$0xff]   ;;  %v11482_v49 = vrot.slane %v22555_v5, 4 }
 0xc7e   : > { %16684 = vmatmul.mubr.msk.bf16.gmra.mrb[180].mxu0 %vm4570_vm7, %v21516_v17  ;;  %v22559_v19 = vld [vmem:[#allocation104_spill] sm:$0xff] }
 0xc7f   : > { %16687 = vmatprep.mubr.msk.bf16.mxu0 %vm4570_vm7, %v21523_v44  ;;  %16700 = vmatpush3.bf16.msra.mxu0 %v18534_v14  ;;  %v11478_v14 = vrot.slane %v22553_v7, 4 }
 0xc80   : > { %16701 = vmatprep.subr.bf16.mxu0 %v18535_v16 }
 0xc83   : > { %16702 = vmatpush3.bf16.msra.mxu0 %v18535_v16  ;;  %v18538_v16 = vld [vmem:[%s22311_s2 + $0x70] sm:$0xff]  }
 0xc84   : > { %16719 = vmatprep.subr.bf16.mxu0 %v18536_v50 }
 0xc86   : > { %16688 = vmatmul.mubr.msk.bf16.gmra.mrb[184].mxu0 %vm4570_vm7, %v21532_v39 }
 0xc87   : > { %16691 = vmatprep.mubr.msk.bf16.mxu0 %vm4570_vm7, %v21537_v43 }
 0xc8e   : > { %16692 = vmatmul.mubr.msk.bf16.gmra.mrb[188].mxu0 %vm4570_vm7, %v21543_v6 }
 0xc8f   : > { %16703 = vmatprep.mubr.msk.bf16.mxu0 %vm4570_vm7, %v22548_v8  ;;  %v11480_v8 = vor.u32 %v11479_v62, %v11478_v14  ;;  %v11484_v14 = vor.u32 %v11483_v15, %v11482_v49  ;;  %v22561_v15 = vld [vmem:[#allocation105_spill] sm:$0xff] }
 0xc96   : > { %16704 = vmatmul.mubr.msk.bf16.vlgmr.msra.gmra.mrb[176].mxu0 %vm4570_vm7, %v22549_v9  ;;  %v21561_v9 = vsel %vm2381_vm3, %v22559_v19, %v11476_v59  ;;  %v21577_v19 = vsel %vm2381_vm3, %v11480_v8, %v11484_v14 }
 0xc97   : > { %16707 = vmatprep.mubr.msk.bf16.mxu0 %vm4570_vm7, %v22550_v11  ;;  %16720 = vmatpush3.bf16.msra.mxu0 %v18536_v50  ;;  %v21568_v50 = vsel %vm2381_vm3, %v11476_v59, %v11480_v8  ;;  %v11486_v11 = vrot.slane %v22557_v63, 4  ;;  %v22560_v8 = vld [vmem:[#allocation73_spill] sm:$0xff] }
 0xc98   : > { %16721 = vmatprep.subr.bf16.mxu0 %v18537_v13 }
 0xc99   : > { %v11488_v62 = vor.u32 %v11487_v32, %v11486_v11  ;;  %v22562_v11 = vrot.slane %v20913_v57, 7  ;;  %v22566_v57 = vrot.slane %v22553_v7, 7  ;;  %v11646_v7 = vrot.slane %v21111_v12, 7 }
 0xc9b   : > { %16722 = vmatpush3.bf16.msra.mxu0 %v18537_v13  ;;  %v18540_v13 = vld [vmem:[%s22311_s2 + $0x80] sm:$0xff]   ;;  %v21582_v59 = vsel %vm2381_vm3, %v11484_v14, %v11488_v62  ;;  %v21588_v46 = vsel %vm2381_vm3, %v11488_v62, %v21162_v37  ;;  %v11634_v37 = vrot.slane %v22555_v5, 7  ;;  %v22564_v14 = vld [vmem:[#allocation50_spill] sm:$0xff]  ;;  %s22097_s2 = sld [smem:[#allocation2 + $0x82]] }
 0xc9c   : > { %16723 = vmatprep.subr.bf16.mxu0 %v18538_v16 }
 0xc9e   : > { %16708 = vmatmul.mubr.msk.bf16.gmra.mrb[180].mxu0 %vm4570_vm7, %v21561_v9 }
 0xc9f   : > { %16711 = vmatprep.mubr.msk.bf16.mxu0 %vm4570_vm7, %v21568_v50  ;;  %16724 = vmatpush3.bf16.msra.mxu0 %v18538_v16  ;;  %v11628_v16 = vrot.slane %v22551_v21, 7  ;;  %v11635_v21 = vor.u32 %v11634_v37, %v22556_v42  ;;  %v22567_v42 = vld [vmem:[#allocation111_spill] sm:$0xff] }
 0xca0   : > { %16725 = vmatprep.subr.bf16.mxu0 %v18539_v20 }
 0xca1   : > { %v11629_v49 = vor.u32 %v11628_v16, %v22552_v35  ;;  %v22565_v35 = vld [vmem:[#allocation109_spill] sm:$0xff]  ;;  %v11636_v5 = vsel %vm2662_vm4, %v22566_v57, %v11635_v21 }
 0xca2   : > { %v11633_v62 = vsel %vm2662_vm4, %v11628_v16, %v22565_v35  ;;  %v22568_v16 = vld [vmem:[#allocation85_spill] sm:$0xff] }
 0xca3   : > { %16726 = vmatpush3.bf16.msra.mxu0 %v18539_v20  ;;  %v11630_v32 = vsel %vm2662_vm4, %v22562_v11, %v11629_v49  ;;  %v22563_v20 = vld [vmem:[#allocation43_spill] sm:$0xff]  ;;  %v11639_v49 = vsel %vm2662_vm4, %v11634_v37, %v22568_v16  ;;  %v11649_v11 = vor.u32 %v21086_v26, %v11646_v7 }
 0xca4   : > { %16743 = vmatprep.subr.bf16.mxu0 %v18540_v13 }
 0xca6   : > { %16712 = vmatmul.mubr.msk.bf16.gmra.mrb[184].mxu0 %vm4570_vm7, %v21577_v19 }
 0xca7   : > { %16715 = vmatprep.mubr.msk.bf16.mxu0 %vm4570_vm7, %v21582_v59 }
 0xcae   : > { %16716 = vmatmul.mubr.msk.bf16.gmra.mrb[188].mxu0 %vm4570_vm7, %v21588_v46 }
 0xcaf   : > { %16727 = vmatprep.mubr.msk.bf16.mxu0 %vm4570_vm7, %v22560_v8  ;;  %v11640_v8 = vrot.slane %v21108_v28, 7  ;;  %v22569_v28 = vrot.slane %v22557_v63, 7 }
 0xcb6   : > { %16728 = vmatmul.mubr.msk.bf16.vlgmr.msra.gmra.mrb[176].mxu0 %vm4570_vm7, %v22561_v15 }
 0xcb7   : > { %16731 = vmatprep.mubr.msk.bf16.mxu0 %vm4570_vm7, %v11630_v32  ;;  %16744 = vmatpush3.bf16.msra.mxu0 %v18540_v13  ;;  %v11641_v13 = vor.u32 %v11640_v8, %v22567_v42  ;;  %v11650_v32 = vsel %vm2662_vm4, %v11640_v8, %v11649_v11 }
 0xcb8   : > { %16745 = vmatprep.subr.bf16.mxu0 %v22563_v20 }
 0xcb9   : > { %v11642_v15 = vsel %vm2662_vm4, %v22569_v28, %v11641_v13 }
 0xcbb   : > { %16746 = vmatpush3.bf16.msra.mxu0 %v22563_v20 }
 0xcbc   : > { %16747 = vmatprep.subr.bf16.mxu0 %v22564_v14 }
 0xcbe   : > { %16732 = vmatmul.mubr.msk.bf16.gmra.mrb[180].mxu0 %vm4570_vm7, %v11633_v62 }
 0xcbf   : > { %16735 = vmatprep.mubr.msk.bf16.mxu0 %vm4570_vm7, %v11636_v5  ;;  %16748 = vmatpush3.bf16.msra.mxu0 %v22564_v14 }
 0xcc0   : > { %16749 = vmatprep.subr.bf16.mxu0 %v20867_v36 }
 0xcc3   : > { %16750 = vmatpush3.bf16.msra.mxu0 %v20867_v36  ;;  %v22574_v36 = vld [vmem:[#allocation33_spill] sm:$0xff] }
 0xcc4   : > { %16767 = vmatprep.subr.bf16.mxu0 %v20900_v31 }
 0xcc6   : > { %16736 = vmatmul.mubr.msk.bf16.gmra.mrb[184].mxu0 %vm4570_vm7, %v11639_v49 }
 0xcc7   : > { %16739 = vmatprep.mubr.msk.bf16.mxu0 %vm4570_vm7, %v11642_v15 }
 0xcce   : > { %16740 = vmatmul.mubr.msk.bf16.gmra.mrb[188].mxu0 %vm4570_vm7, %v11650_v32 }
 0xccf   : > { %16751 = vmatprep.mubr.msk.bf16.mxu0 %vm4570_vm7, %v20623_v18  ;;  %v18458_v18 = vld [vmem:[%s22570_s0 + $0x4] ss:$12 sps:$4 sm:$0xff]  }
 0xcd0   : > { %12863 = vmatprep.mubr.bf16.mxu1 %v18458_v18 }
 0xcd6   : > { %16752 = vmatmul.mubr.msk.bf16.vlgmr.msra.gmra.mrb[176].mxu0 %vm4570_vm7, %v20630_v25  ;;  %v22571_v25 = vld [vmem:[#allocation74_spill] sm:$0xff] }
 0xcd7   : > { %16755 = vmatprep.mubr.msk.bf16.mxu0 %vm4570_vm7, %v20658_v55  ;;  %16768 = vmatpush3.bf16.msra.mxu0 %v20900_v31  ;;  %v22572_v55 = vld [vmem:[#allocation31_spill] sm:$0xff]  ;;  %v22577_v31 = vld [vmem:[#allocation32_spill] sm:$0xff] }
 0xcd8   : > { %16769 = vmatprep.subr.bf16.mxu0 %v21034_v41 }
 0xcdb   : > { %16770 = vmatpush3.bf16.msra.mxu0 %v21034_v41  ;;  %v22578_v41 = vld [vmem:[#allocation37_spill] sm:$0xff] }
 0xcdc   : > { %16771 = vmatprep.subr.bf16.mxu0 %v21064_v0 }
 0xcde   : > { %16756 = vmatmul.mubr.msk.bf16.gmra.mrb[180].mxu0 %vm4570_vm7, %v20667_v47  ;;  %v22573_v47 = vld [vmem:[#allocation107_spill] sm:$0xff] }
 0xcdf   : > { %16759 = vmatprep.mubr.msk.bf16.mxu0 %vm4570_vm7, %v22459_v58  ;;  %16772 = vmatpush3.bf16.msra.mxu0 %v21064_v0  ;;  %v22579_v58 = vrot.slane %v21086_v26, 1  ;;  %v22580_v0 = vld [vmem:[#allocation112_spill] sm:$0xff] }
 0xce0   : > { %16773 = vmatprep.subr.bf16.mxu0 %v21094_v1 }
 0xce1   : > { %v11937_v12 = vsel %vm3189_vm5, %v22580_v0, %v22579_v58 }
 0xce3   : > { %16774 = vmatpush3.bf16.msra.mxu0 %v21094_v1 }
 0xce4   : > { %16791 = vmatprep.subr.bf16.mxu0 %v21129_v22 }
 0xce6   : > { %16760 = vmatmul.mubr.msk.bf16.gmra.mrb[184].mxu0 %vm4570_vm7, %v20714_v27  ;;  %v22576_v27 = vld [vmem:[#allocation110_spill] sm:$0xff] }
 0xce7   : > { %16763 = vmatprep.mubr.msk.bf16.mxu0 %vm4570_vm7, %v20756_v61 }
 0xcee   : > { %16764 = vmatmul.mubr.msk.bf16.gmra.mrb[188].mxu0 %vm4570_vm7, %v22571_v25 }
 0xcef   : > { %16775 = vmatprep.mubr.msk.bf16.mxu0 %vm4570_vm7, %v22572_v55 }
 0xcf6   : > { %16776 = vmatmul.mubr.msk.bf16.vlgmr.msra.gmra.mrb[176].mxu0 %vm4570_vm7, %v22573_v47 }
 0xcf7   : > { %16779 = vmatprep.mubr.msk.bf16.mxu0 %vm4570_vm7, %v22574_v36  ;;  %16792 = vmatpush3.bf16.msra.mxu0 %v21129_v22  ;;  %v21682_v22 = vld [vmem:[%s22575_s11] ss:$0 sm:$0xff]  ;;  %s1012_s11 = scalar_lea.vmem %s22590_s26, %s22087_s1  ;;  %s22105_s26 = sld [smem:[#allocation2 + $0x80]] }
 0xcf8   : > { %16793 = vmatprep.subr.bf16.mxu0 %v21209_v4 }
 0xcfb   : > { %16794 = vmatpush3.bf16.msra.mxu0 %v21209_v4 }
 0xcfc   : > { %16795 = vmatprep.subr.bf16.mxu0 %v21223_v60 }
 0xcfe   : > { %16780 = vmatmul.mubr.msk.bf16.gmra.mrb[180].mxu0 %vm4570_vm7, %v22576_v27 }
 0xcff   : > { %16783 = vmatprep.mubr.msk.bf16.mxu0 %vm4570_vm7, %v22577_v31  ;;  %16796 = vmatpush3.bf16.msra.mxu0 %v21223_v60 }
 0xd00   : > { %16797 = vmatprep.subr.bf16.mxu0 %v21230_v10 }
 0xd03   : > { %16798 = vmatpush3.bf16.msra.mxu0 %v21230_v10 }
 0xd04   : > { %16815 = vmatprep.subr.bf16.mxu0 %v21245_v34 }
 0xd06   : > { %16784 = vmatmul.mubr.msk.bf16.gmra.mrb[184].mxu0 %vm4570_vm7, %v22578_v41 }
 0xd07   : > { %16787 = vmatprep.mubr.msk.bf16.mxu0 %vm4570_vm7, %v11937_v12 }
 0xd09   : > { %v16417_v1 = vpop.f32.mrb[160].mxu0 }
 0xd0a   : > { %v9759_v4 = vpop.f32.mrb[161].mxu0  ;;  %v21685_v63 = vadd.f32 %v16417_v1, %v21682_v22 }
 0xd0b   : > { %v16418_v60 = vpop.f32.mrb[162].mxu0  ;;  %v21691_v20 = vadd.f32 %v21682_v22, %v9759_v4 }
 0xd0c   : > { %v21688_v10 = vadd.f32 %v16418_v60, %v21682_v22  ;;  %v9762_v37 = vpop.f32.mrb[163].mxu0 }
 0xd0d   : > { %v21694_v26 = vadd.f32 %v21682_v22, %v9762_v37 }
 0xd0e   : > { %v9862_v21 = vpack.c.bf16 %v21688_v10, %v21685_v63  ;;  %16788 = vmatmul.mubr.msk.bf16.gmra.mrb[188].mxu0 %vm4570_vm7, %v21153_v23 }
 0xd0f   : > { %v9861_v14 = vpack.c.bf16 %v21694_v26, %v21691_v20  ;;  %16799 = vmatprep.mubr.msk.bf16.mxu0 %vm4570_vm7, %v21516_v17 }
 0xd11   : > { %v16421_v35 = vpop.f32.mrb[164].mxu0 }
 0xd12   : > { %v9775_v62 = vpop.f32.mrb[165].mxu0  ;;  %v21705_v5 = vadd.f32 %v16421_v35, %v21682_v22 }
 0xd13   : > { %v16422_v57 = vpop.f32.mrb[166].mxu0  ;;  %v21711_v13 = vadd.f32 %v21682_v22, %v9775_v62 }
 0xd14   : > { %v21708_v8 = vadd.f32 %v16422_v57, %v21682_v22  ;;  %v9778_v42 = vpop.f32.mrb[167].mxu0 }
 0xd15   : > { %v21714_v23 = vadd.f32 %v21682_v22, %v9778_v42 }
 0xd16   : > { %v9864_v16 = vpack.c.bf16 %v21708_v8, %v21705_v5  ;;  %16800 = vmatmul.mubr.msk.bf16.vlgmr.msra.gmra.mrb[176].mxu0 %vm4570_vm7, %v21523_v44 }
 0xd17   : > { %v9863_v17 = vpack.c.bf16 %v21714_v23, %v21711_v13  ;;  %16803 = vmatprep.mubr.msk.bf16.mxu0 %vm4570_vm7, %v21532_v39  ;;  %16816 = vmatpush3.bf16.msra.mxu0 %v21245_v34  ;;  %v12225_v23 = vrot.slane %v22571_v25, 4 }
 0xd18   : > { %16817 = vmatprep.subr.bf16.mxu0 %v21268_v45 }
 0xd19   : > { %v16425_v49 = vpop.f32.mrb[168].mxu0 }
 0xd1a   : > { %v9791_v7 = vpop.f32.mrb[169].mxu0  ;;  %v21728_v15 = vadd.f32 %v16425_v49, %v21682_v22 }
 0xd1b   : > { %v16426_v28 = vpop.f32.mrb[170].mxu0  ;;  %16818 = vmatpush3.bf16.msra.mxu0 %v21268_v45  ;;  %v21735_v39 = vadd.f32 %v21682_v22, %v9791_v7 }
 0xd1c   : > { %v21731_v44 = vadd.f32 %v16426_v28, %v21682_v22  ;;  %v9794_v11 = vpop.f32.mrb[171].mxu0  ;;  %16819 = vmatprep.subr.bf16.mxu0 %v21283_v30 }
 0xd1d   : > { %v21738_v34 = vadd.f32 %v21682_v22, %v9794_v11 }
 0xd1e   : > { %v9866_v32 = vpack.c.bf16 %v21731_v44, %v21728_v15  ;;  %16804 = vmatmul.mubr.msk.bf16.gmra.mrb[180].mxu0 %vm4570_vm7, %v21537_v43  ;;  %v18459_v15 = vld [vmem:[%s22570_s0 + $0x1c] ss:$12 sps:$4 sm:$0xff]   ;;  %v18461_v44 = vld [vmem:[%s22570_s0 + $0x18] ss:$12 sps:$4 sm:$0xff]  }
 0xd1f   : > { %v9865_v45 = vpack.c.bf16 %v21738_v34, %v21735_v39  ;;  %16807 = vmatprep.mubr.msk.bf16.mxu0 %vm4570_vm7, %v21543_v6  ;;  %16820 = vmatpush3.bf16.msra.mxu0 %v21283_v30 }
 0xd20   : > { %16821 = vmatprep.subr.bf16.mxu0 %v21290_v2 }
 0xd21   : > { %v16429_v18 = vpop.f32.mrb[172].mxu0 }
 0xd22   : > { %v9807_v55 = vpop.f32.mrb[173].mxu0  ;;  %v21752_v36 = vadd.f32 %v16429_v18, %v21682_v22 }
 0xd23   : > { %v16430_v47 = vpop.f32.mrb[174].mxu0  ;;  %16822 = vmatpush3.bf16.msra.mxu0 %v21290_v2  ;;  %v21759_v6 = vadd.f32 %v21682_v22, %v9807_v55 }
 0xd24   : > { %v21755_v43 = vadd.f32 %v16430_v47, %v21682_v22  ;;  %v9810_v27 = vpop.f32.mrb[175].mxu0  ;;  %16839 = vmatprep.subr.bf16.mxu0 %v21305_v24  ;;  %v22584_v47 = vld [vmem:[#allocation36_spill] sm:$0xff] }
 0xd25   : > { %v21762_v30 = vadd.f32 %v21682_v22, %v9810_v27  ;;  %v22586_v27 = vld [vmem:[#allocation113_spill] sm:$0xff] }
 0xd26   : > { %v9868_v31 = vpack.c.bf16 %v21755_v43, %v21752_v36  ;;  %16808 = vmatmul.mubr.msk.bf16.gmra.mrb[184].mxu0 %vm4570_vm7, %v21166_v51  ;;  %v18464_v36 = vld [vmem:[%s22570_s0 + $0x30] ss:$12 sps:$4 sm:$0xff]  }
 0xd27   : > { %v9867_v2 = vpack.c.bf16 %v21762_v30, %v21759_v6  ;;  %16811 = vmatprep.mubr.msk.bf16.mxu0 %vm4570_vm7, %v21172_v40  ;;  %v22585_v43 = vld [vmem:[#allocation41_spill] sm:$0xff]  ;;  %v22587_v6 = vld [vmem:[#allocation114_spill] sm:$0xff] }
 0xd28   : > { %v18473_v30 = vld [vmem:[%s22570_s0 + $0x78] ss:$12 sps:$4 sm:$0xff]  }
 0xd29   : > { %v16633_v41 = vpop.f32.mrb[136].mxu1 }
 0xd2a   : > { %v11087_v58 = vpop.f32.mrb[137].mxu1  ;;  %v11168_v12 = vadd.f32 %v16633_v41, %v21682_v22  ;;  %v18477_v41 = vld [vmem:[%s22570_s0 + $0xac] ss:$12 sps:$4 sm:$0xff]  }
 0xd2b   : > { %v16634_v0 = vpop.f32.mrb[138].mxu1  ;;  %v11166_v60 = vadd.f32 %v21682_v22, %v11087_v58  ;;  %v18479_v58 = vld [vmem:[%s22570_s0 + $0xa8] ss:$12 sps:$4 sm:$0xff]  }
 0xd2c   : > { %v11169_v1 = vadd.f32 %v16634_v0, %v21682_v22  ;;  %v11090_v4 = vpop.f32.mrb[139].mxu1  ;;  %v18480_v0 = vld [vmem:[%s22570_s0 + $0xc4] ss:$12 sps:$4 sm:$0xff]  }
 0xd2d   : > { %v11167_v37 = vadd.f32 %v21682_v22, %v11090_v4  ;;  %v18485_v4 = vld [vmem:[%s22570_s0 + $0xd8] ss:$12 sps:$4 sm:$0xff]  }
 0xd2e   : > { %v11183_v20 = vpack.c.bf16 %v11169_v1, %v11168_v12  ;;  %16812 = vmatmul.mubr.msk.bf16.gmra.mrb[188].mxu0 %vm4570_vm7, %v21191_v48  ;;  %v18482_v12 = vld [vmem:[%s22570_s0 + $0xc0] ss:$12 sps:$4 sm:$0xff]   ;;  %v18483_v1 = vld [vmem:[%s22570_s0 + $0xdc] ss:$12 sps:$4 sm:$0xff]  }
 0xd2f   : > { %v11182_v51 = vpack.c.bf16 %v11167_v37, %v11166_v60  ;;  %16823 = vmatprep.mubr.msk.bf16.mxu0 %vm4570_vm7, %v21460_v38  ;;  %v18486_v60 = vld [vmem:[%s22570_s0 + $0xf4] ss:$12 sps:$4 sm:$0xff]   ;;  %v18488_v37 = vld [vmem:[%s22570_s0 + $0xf0] ss:$12 sps:$4 sm:$0xff]  }
 0xd31   : > { %v16637_v40 = vpop.f32.mrb[140].mxu1  ;;  %15569 = vmatprep.subr.bf16.mxu1 %v11182_v51  ;;  %v18491_v51 = vld [vmem:[%s22570_s0 + $0x108] ss:$12 sps:$4 sm:$0xff]  }
 0xd32   : > { %v11103_v26 = vpop.f32.mrb[141].mxu1  ;;  %15570 = vmatpush3.bf16.msra.mxu1 %v9861_v14  ;;  %v11172_v62 = vadd.f32 %v16637_v40, %v21682_v22  ;;  %v18492_v40 = vld [vmem:[%s22570_s0 + $0x124] ss:$12 sps:$4 sm:$0xff]  }
 0xd33   : > { %v16638_v35 = vpop.f32.mrb[142].mxu1  ;;  %15571 = vmatprep.subr.bf16.mxu1 %v11183_v20  ;;  %v11170_v49 = vadd.f32 %v21682_v22, %v11103_v26  ;;  %v18489_v20 = vld [vmem:[%s22570_s0 + $0x10c] ss:$12 sps:$4 sm:$0xff]  }
 0xd34   : > { %v11173_v57 = vadd.f32 %v16638_v35, %v21682_v22  ;;  %v11106_v42 = vpop.f32.mrb[143].mxu1  ;;  %v18494_v26 = vld [vmem:[%s22570_s0 + $0x120] ss:$12 sps:$4 sm:$0xff]   ;;  %v18495_v35 = vld [vmem:[%s22570_s0 + $0x13c] ss:$12 sps:$4 sm:$0xff]  }
 0xd35   : > { %v11171_v7 = vadd.f32 %v21682_v22, %v11106_v42  ;;  %v18500_v42 = vld [vmem:[%s22570_s0 + $0x150] ss:$12 sps:$4 sm:$0xff]  }
 0xd36   : > { %v11185_v48 = vpack.c.bf16 %v11173_v57, %v11172_v62  ;;  %16824 = vmatmul.mubr.msk.bf16.vlgmr.msra.gmra.mrb[176].mxu0 %vm4570_vm7, %v21468_v33  ;;  %15572 = vmatpush3.bf16.msra.mxu1 %v9862_v21  ;;  %v18497_v62 = vld [vmem:[%s22570_s0 + $0x138] ss:$12 sps:$4 sm:$0xff]   ;;  %v18498_v57 = vld [vmem:[%s22570_s0 + $0x154] ss:$12 sps:$4 sm:$0xff]  }
 0xd37   : > { %v11184_v38 = vpack.c.bf16 %v11171_v7, %v11170_v49  ;;  %16827 = vmatprep.mubr.msk.bf16.mxu0 %vm4570_vm7, %v21478_v52  ;;  %16840 = vmatpush3.bf16.msra.mxu0 %v21305_v24  ;;  %v18501_v49 = vld [vmem:[%s22570_s0 + $0x16c] ss:$12 sps:$4 sm:$0xff]   ;;  %v18503_v7 = vld [vmem:[%s22570_s0 + $0x168] ss:$12 sps:$4 sm:$0xff]  }
 0xd38   : > { %16841 = vmatprep.subr.bf16.mxu0 %v21333_v3 }
 0xd39   : > { %v16641_v14 = vpop.f32.mrb[144].mxu1  ;;  %15573 = vmatprep.subr.bf16.mxu1 %v11184_v38 }
 0xd3a   : > { %v11119_v28 = vpop.f32.mrb[145].mxu1  ;;  %15574 = vmatpush3.bf16.msra.mxu1 %v9863_v17  ;;  %v11176_v63 = vadd.f32 %v16641_v14, %v21682_v22 }
 0xd3b   : > { %v16642_v33 = vpop.f32.mrb[146].mxu1  ;;  %15575 = vmatprep.subr.bf16.mxu1 %v11185_v48  ;;  %16842 = vmatpush3.bf16.msra.mxu0 %v21333_v3  ;;  %v11174_v24 = vadd.f32 %v21682_v22, %v11119_v28  ;;  %v18504_v48 = vld [vmem:[%s22570_s0 + $0x8] ss:$12 sps:$4 sm:$0xff]  }
 0xd3c   : > { %v11177_v10 = vadd.f32 %v16642_v33, %v21682_v22  ;;  %v11122_v52 = vpop.f32.mrb[147].mxu1  ;;  %16843 = vmatprep.subr.bf16.mxu0 %v21348_v54 }
 0xd3d   : > { %v11175_v21 = vadd.f32 %v21682_v22, %v11122_v52 }
 0xd3e   : > { %v11187_v11 = vpack.c.bf16 %v11177_v10, %v11176_v63  ;;  %16828 = vmatmul.mubr.msk.bf16.gmra.mrb[180].mxu0 %vm4570_vm7, %v21486_v53  ;;  %15576 = vmatpush3.bf16.msra.mxu1 %v9864_v16  ;;  %v22581_v16 = vrot.slane %v20756_v61, 4  ;;  %v18456_v61 = vld [vmem:[%s22570_s0] ss:$12 sps:$4 sm:$0xff]  }
 0xd3f   : > { %v11186_v3 = vpack.c.bf16 %v11175_v21, %v11174_v24  ;;  %16831 = vmatprep.mubr.msk.bf16.mxu0 %vm4570_vm7, %v21496_v29  ;;  %16844 = vmatpush3.bf16.msra.mxu0 %v21348_v54 }
 0xd40   : > { %16845 = vmatprep.subr.bf16.mxu0 %v21355_v56  ;;  %v12226_v39 = vsel %vm1850_vm1, %v22581_v16, %v12225_v23 }
 0xd41   : > { %v16645_v13 = vpop.f32.mrb[148].mxu1  ;;  %15577 = vmatprep.subr.bf16.mxu1 %v11186_v3 }
 0xd42   : > { %v11135_v17 = vpop.f32.mrb[149].mxu1  ;;  %15578 = vmatpush3.bf16.msra.mxu1 %v9865_v45  ;;  %v11180_v29 = vadd.f32 %v16645_v13, %v21682_v22 }
 0xd43   : > { %v16646_v53 = vpop.f32.mrb[150].mxu1  ;;  %15579 = vmatprep.subr.bf16.mxu1 %v11187_v11  ;;  %16846 = vmatpush3.bf16.msra.mxu0 %v21355_v56  ;;  %v11178_v8 = vadd.f32 %v21682_v22, %v11135_v17  ;;  %v22582_v56 = vld [vmem:[#allocation77_spill] sm:$0xff] }
 0xd44   : > { %v11181_v54 = vadd.f32 %v16646_v53, %v21682_v22  ;;  %v11138_v5 = vpop.f32.mrb[151].mxu1  ;;  %v22583_v45 = vrot.slane %v22582_v56, 4 }
 0xd45   : > { %v11179_v25 = vadd.f32 %v21682_v22, %v11138_v5 }
 0xd46   : > { %v11189_v34 = vpack.c.bf16 %v11181_v54, %v11180_v29  ;;  %16832 = vmatmul.mubr.msk.bf16.gmra.mrb[184].mxu0 %vm4570_vm7, %v12226_v39  ;;  %15580 = vmatpush3.bf16.msra.mxu1 %v9866_v32  ;;  %v12228_v18 = vsel %vm1850_vm1, %v12225_v23, %v22583_v45  ;;  %v18462_v32 = vld [vmem:[%s22570_s0 + $0x34] ss:$12 sps:$4 sm:$0xff]  }
 0xd47   : > { %v11188_v55 = vpack.c.bf16 %v11179_v25, %v11178_v8  ;;  %16835 = vmatprep.mubr.msk.bf16.mxu0 %vm4570_vm7, %v12228_v18 }
 0xd49   : > { %15581 = vmatprep.subr.bf16.mxu1 %v11188_v55 }
 0xd4a   : > { %15582 = vmatpush3.bf16.msra.mxu1 %v9867_v2  ;;  %v18476_v2 = vld [vmem:[%s22570_s0 + $0x90] ss:$12 sps:$4 sm:$0xff]  }
 0xd4b   : > { %15583 = vmatprep.subr.bf16.mxu1 %v11189_v34 }
 0xd4e   : > { %16836 = vmatmul.mubr.msk.bf16.gmra.mrb[188].mxu0 %vm4570_vm7, %v22584_v47  ;;  %15584 = vmatpush3.bf16.msra.mxu1 %v9868_v31  ;;  %v18474_v31 = vld [vmem:[%s22570_s0 + $0x94] ss:$12 sps:$4 sm:$0xff]  }
 0xd4f   : > { %16847 = vmatprep.mubr.msk.bf16.mxu0 %vm4570_vm7, %v21561_v9  ;;  %v18465_v9 = vld [vmem:[%s22570_s0 + $0x4c] ss:$12 sps:$4 sm:$0xff]  }
 0xd51   : > { %12864 = vmatmul.mubr.bf16.vlgmr.msra.gmra.mrb[152].mxu1 %v18456_v61 }
 0xd52   : > { %12871 = vmatprep.mubr.bf16.mxu1 %v18459_v15 }
 0xd56   : > { %16848 = vmatmul.mubr.msk.bf16.vlgmr.msra.gmra.mrb[176].mxu0 %vm4570_vm7, %v21568_v50  ;;  %v18467_v50 = vld [vmem:[%s22570_s0 + $0x48] ss:$12 sps:$4 sm:$0xff]  }
 0xd57   : > { %16851 = vmatprep.mubr.msk.bf16.mxu0 %vm4570_vm7, %v21577_v19  ;;  %v18468_v19 = vld [vmem:[%s22570_s0 + $0x64] ss:$12 sps:$4 sm:$0xff]  }
 0xd59   : > { %12872 = vmatmul.mubr.bf16.gmra.mrb[156].mxu1 %v18461_v44 }
 0xd5a   : > { %12879 = vmatprep.mubr.bf16.mxu1 %v18462_v32 }
 0xd5e   : > { %16852 = vmatmul.mubr.msk.bf16.gmra.mrb[180].mxu0 %vm4570_vm7, %v21582_v59  ;;  %v18470_v59 = vld [vmem:[%s22570_s0 + $0x60] ss:$12 sps:$4 sm:$0xff]  }
 0xd5f   : > { %16855 = vmatprep.mubr.msk.bf16.mxu0 %vm4570_vm7, %v21588_v46  ;;  %v18471_v46 = vld [vmem:[%s22570_s0 + $0x7c] ss:$12 sps:$4 sm:$0xff]  }
 0xd61   : > { %12880 = vmatmul.mubr.bf16.gmra.mrb[160].mxu1 %v18464_v36 }
 0xd62   : > { %12887 = vmatprep.mubr.bf16.mxu1 %v18465_v9 }
 0xd66   : > { %16856 = vmatmul.mubr.msk.bf16.gmra.mrb[184].mxu0 %vm4570_vm7, %v22585_v43 }
 0xd67   : > { %16859 = vmatprep.mubr.msk.bf16.mxu0 %vm4570_vm7, %v22586_v27 }
 0xd69   : > { %12888 = vmatmul.mubr.bf16.gmra.mrb[164].mxu1 %v18467_v50 }
 0xd6a   : > { %12895 = vmatprep.mubr.bf16.mxu1 %v18468_v19 }
 0xd6e   : > { %16860 = vmatmul.mubr.msk.bf16.gmra.mrb[188].mxu0 %vm4570_vm7, %v22587_v6 }
 0xd71   : > { %12896 = vmatmul.mubr.bf16.gmra.mrb[168].mxu1 %v18470_v59 }
 0xd72   : > { %12903 = vmatprep.mubr.bf16.mxu1 %v18471_v46 }
 0xd79   : > { %12904 = vmatmul.mubr.bf16.gmra.mrb[172].mxu1 %v18473_v30 }
 0xd7a   : > { %12911 = vmatprep.mubr.bf16.mxu1 %v18474_v31 }
 0xd81   : > { %12912 = vmatmul.mubr.bf16.gmra.mrb[176].mxu1 %v18476_v2 }
 0xd82   : > { %12919 = vmatprep.mubr.bf16.mxu1 %v18477_v41 }
 0xd89   : > { %12920 = vmatmul.mubr.bf16.gmra.mrb[180].mxu1 %v18479_v58 }
 0xd8a   : > { %12927 = vmatprep.mubr.bf16.mxu1 %v18480_v0 }
 0xd91   : > { %12928 = vmatmul.mubr.bf16.gmra.mrb[184].mxu1 %v18482_v12 }
 0xd92   : > { %12935 = vmatprep.mubr.bf16.mxu1 %v18483_v1 }
 0xd99   : > { %12936 = vmatmul.mubr.bf16.gmra.mrb[188].mxu1 %v18485_v4 }
 0xd9a   : > { %12943 = vmatprep.mubr.bf16.mxu1 %v18486_v60 }
 0xda1   : > { %12944 = vmatmul.mubr.bf16.gmra.mrb[192].mxu1 %v18488_v37 }
 0xda2   : > { %12951 = vmatprep.mubr.bf16.mxu1 %v18489_v20 }
 0xda9   : > { %12952 = vmatmul.mubr.bf16.gmra.mrb[196].mxu1 %v18491_v51 }
 0xdaa   : > { %12959 = vmatprep.mubr.bf16.mxu1 %v18492_v40 }
 0xdb1   : > { %12960 = vmatmul.mubr.bf16.gmra.mrb[200].mxu1 %v18494_v26 }
 0xdb2   : > { %12967 = vmatprep.mubr.bf16.mxu1 %v18495_v35 }
 0xdb9   : > { %12968 = vmatmul.mubr.bf16.gmra.mrb[204].mxu1 %v18497_v62 }
 0xdba   : > { %12975 = vmatprep.mubr.bf16.mxu1 %v18498_v57 }
 0xdc1   : > { %12976 = vmatmul.mubr.bf16.gmra.mrb[208].mxu1 %v18500_v42 }
 0xdc2   : > { %12983 = vmatprep.mubr.bf16.mxu1 %v18501_v49 }
 0xdc9   : > { %12984 = vmatmul.mubr.bf16.gmra.mrb[212].mxu1 %v18503_v7 }
 0xdca   : > { %16879 = vmatprep.mubr.bf16.mxu1 %v18504_v48 }
 0xe24   : > { %v15585_v38 = vpop.f32.mrb[152].mxu1 }
 0xe25   : > { %v15586_v14 = vpop.f32.mrb[153].mxu1 }
 0xe26   : > { %v21887_v28 = vadd.f32 %v15586_v14, %v15585_v38  ;;  %v15588_v33 = vpop.f32.mrb[154].mxu1 }
 0xe27   : > { %v15589_v63 = vpop.f32.mrb[155].mxu1 }
 0xe28   : > { %v21889_v10 = vadd.f32 %v15589_v63, %v15588_v33 }
 0xe29   : > { %v16849_v52 = vpop.f32.mrb[176].mxu0 }
 0xe2a   : > { %v12408_v24 = vpop.f32.mrb[177].mxu0  ;;  %v12489_v11 = vadd.f32 %v16849_v52, %v21682_v22 }
 0xe2b   : > { %v16850_v21 = vpop.f32.mrb[178].mxu0  ;;  %v12487_v17 = vadd.f32 %v21682_v22, %v12408_v24 }
 0xe2c   : > { %v12490_v3 = vadd.f32 %v16850_v21, %v21682_v22  ;;  %v12411_v13 = vpop.f32.mrb[179].mxu0  ;;  %v15591_v23 = vpop.f32.mrb[156].mxu1 }
 0xe2d   : > { %v12488_v53 = vadd.f32 %v21682_v22, %v12411_v13  ;;  %v15592_v29 = vpop.f32.mrb[157].mxu1 }
 0xe2e   : > { %v12504_v54 = vpack.c.bf16 %v12490_v3, %v12489_v11  ;;  %v21895_v5 = vadd.f32 %v15592_v29, %v15591_v23  ;;  %v15594_v8 = vpop.f32.mrb[158].mxu1  ;;  %v18505_v3 = vld [vmem:[%s22570_s0 + $0x20] ss:$12 sps:$4 sm:$0xff]  }
 0xe2f   : > { %v12503_v25 = vpack.c.bf16 %v12488_v53, %v12487_v17  ;;  %v15595_v16 = vpop.f32.mrb[159].mxu1 }
 0xe30   : > { %v21897_v39 = vadd.f32 %v15595_v16, %v15594_v8  ;;  %v18507_v8 = vld [vmem:[%s22570_s0 + $0x50] ss:$12 sps:$4 sm:$0xff]   ;;  %v18508_v16 = vld [vmem:[%s22570_s0 + $0x68] ss:$12 sps:$4 sm:$0xff]  }
 0xe31   : > { %v16853_v34 = vpop.f32.mrb[180].mxu0  ;;  %16863 = vmatprep.subr.bf16.mxu1 %v12503_v25 }
 0xe32   : > { %v12424_v56 = vpop.f32.mrb[181].mxu0  ;;  %16864 = vmatpush3.bf16.msra.mxu1 %v12503_v25  ;;  %v12493_v18 = vadd.f32 %v16853_v34, %v21682_v22 }
 0xe33   : > { %v16854_v45 = vpop.f32.mrb[182].mxu0  ;;  %16865 = vmatprep.subr.bf16.mxu1 %v12504_v54  ;;  %v12491_v15 = vadd.f32 %v21682_v22, %v12424_v56 }
 0xe34   : > { %v12494_v55 = vadd.f32 %v16854_v45, %v21682_v22  ;;  %v12427_v61 = vpop.f32.mrb[183].mxu0  ;;  %v15597_v47 = vpop.f32.mrb[160].mxu1 }
 0xe35   : > { %v12492_v44 = vadd.f32 %v21682_v22, %v12427_v61  ;;  %v15598_v32 = vpop.f32.mrb[161].mxu1  ;;  %v18509_v61 = vld [vmem:[%s22570_s0 + $0x80] ss:$12 sps:$4 sm:$0xff]  }
 0xe36   : > { %v12506_v36 = vpack.c.bf16 %v12494_v55, %v12493_v18  ;;  %16866 = vmatpush3.bf16.msra.mxu1 %v12504_v54  ;;  %v21903_v9 = vadd.f32 %v15598_v32, %v15597_v47  ;;  %v15600_v50 = vpop.f32.mrb[162].mxu1 }
 0xe37   : > { %v12505_v43 = vpack.c.bf16 %v12492_v44, %v12491_v15  ;;  %v15601_v19 = vpop.f32.mrb[163].mxu1  ;;  %v18510_v15 = vld [vmem:[%s22570_s0 + $0x98] ss:$12 sps:$4 sm:$0xff]  }
 0xe38   : > { %v21905_v27 = vadd.f32 %v15601_v19, %v15600_v50  ;;  %v18511_v19 = vld [vmem:[%s22570_s0 + $0xb0] ss:$12 sps:$4 sm:$0xff]  }
 0xe39   : > { %v16857_v59 = vpop.f32.mrb[184].mxu0  ;;  %16867 = vmatprep.subr.bf16.mxu1 %v12505_v43 }
 0xe3a   : > { %v12440_v6 = vpop.f32.mrb[185].mxu0  ;;  %16868 = vmatpush3.bf16.msra.mxu1 %v12505_v43  ;;  %v12497_v30 = vadd.f32 %v16857_v59, %v21682_v22 }
 0xe3b   : > { %v16858_v46 = vpop.f32.mrb[186].mxu0  ;;  %16869 = vmatprep.subr.bf16.mxu1 %v12506_v36  ;;  %v12495_v58 = vadd.f32 %v21682_v22, %v12440_v6  ;;  %v18512_v6 = vld [vmem:[%s22570_s0 + $0xc8] ss:$12 sps:$4 sm:$0xff]  }
 0xe3c   : > { %v12498_v31 = vadd.f32 %v16858_v46, %v21682_v22  ;;  %v12443_v2 = vpop.f32.mrb[187].mxu0  ;;  %v15603_v41 = vpop.f32.mrb[164].mxu1 }
 0xe3d   : > { %v12496_v0 = vadd.f32 %v21682_v22, %v12443_v2  ;;  %v15604_v12 = vpop.f32.mrb[165].mxu1 }
 0xe3e   : > { %v12508_v1 = vpack.c.bf16 %v12498_v31, %v12497_v30  ;;  %16870 = vmatpush3.bf16.msra.mxu1 %v12506_v36  ;;  %v21911_v4 = vadd.f32 %v15604_v12, %v15603_v41  ;;  %v15606_v60 = vpop.f32.mrb[166].mxu1  ;;  %v18514_v12 = vld [vmem:[%s22570_s0 + $0xf8] ss:$12 sps:$4 sm:$0xff]  }
 0xe3f   : > { %v12507_v37 = vpack.c.bf16 %v12496_v0, %v12495_v58  ;;  %v15607_v20 = vpop.f32.mrb[167].mxu1  ;;  %v18513_v58 = vld [vmem:[%s22570_s0 + $0xe0] ss:$12 sps:$4 sm:$0xff]  }
 0xe40   : > { %v21913_v51 = vadd.f32 %v15607_v20, %v15606_v60 }
 0xe41   : > { %v16861_v40 = vpop.f32.mrb[188].mxu0  ;;  %16871 = vmatprep.subr.bf16.mxu1 %v12507_v37 }
 0xe42   : > { %v12456_v26 = vpop.f32.mrb[189].mxu0  ;;  %16872 = vmatpush3.bf16.msra.mxu1 %v12507_v37  ;;  %v12501_v62 = vadd.f32 %v16861_v40, %v21682_v22 }
 0xe43   : > { %v16862_v35 = vpop.f32.mrb[190].mxu0  ;;  %16873 = vmatprep.subr.bf16.mxu1 %v12508_v1  ;;  %v12499_v7 = vadd.f32 %v21682_v22, %v12456_v26  ;;  %v18515_v26 = vld [vmem:[%s22570_s0 + $0x110] ss:$12 sps:$4 sm:$0xff]  }
 0xe44   : > { %v12502_v57 = vadd.f32 %v16862_v35, %v21682_v22  ;;  %v12459_v42 = vpop.f32.mrb[191].mxu0  ;;  %v15609_v49 = vpop.f32.mrb[168].mxu1 }
 0xe45   : > { %v12500_v48 = vadd.f32 %v21682_v22, %v12459_v42  ;;  %v15610_v38 = vpop.f32.mrb[169].mxu1  ;;  %v18506_v22 = vld [vmem:[%s22570_s0 + $0x38] ss:$12 sps:$4 sm:$0xff]  }
 0xe46   : > { %v12510_v14 = vpack.c.bf16 %v12502_v57, %v12501_v62  ;;  %16874 = vmatpush3.bf16.msra.mxu1 %v12508_v1  ;;  %v21919_v33 = vadd.f32 %v15610_v38, %v15609_v49  ;;  %v15612_v63 = vpop.f32.mrb[170].mxu1  ;;  %v18516_v62 = vld [vmem:[%s22570_s0 + $0x128] ss:$12 sps:$4 sm:$0xff]   ;;  %v18518_v38 = vld [vmem:[%s22570_s0 + $0x158] ss:$12 sps:$4 sm:$0xff]  }
 0xe47   : > { %v12509_v52 = vpack.c.bf16 %v12500_v48, %v12499_v7  ;;  %v15613_v24 = vpop.f32.mrb[171].mxu1  ;;  %v18517_v48 = vld [vmem:[%s22570_s0 + $0x140] ss:$12 sps:$4 sm:$0xff]  }
 0xe48   : > { %v21921_v21 = vadd.f32 %v15613_v24, %v15612_v63 }
 0xe49   : > { %16875 = vmatprep.subr.bf16.mxu1 %v12509_v52 }
 0xe4a   : > { %16876 = vmatpush3.bf16.msra.mxu1 %v12509_v52 }
 0xe4b   : > { %16877 = vmatprep.subr.bf16.mxu1 %v12510_v14 }
 0xe4c   : > { %v15615_v11 = vpop.f32.mrb[172].mxu1 }
 0xe4d   : > { %v15616_v13 = vpop.f32.mrb[173].mxu1 }
 0xe4e   : > { %16878 = vmatpush3.bf16.msra.mxu1 %v12510_v14  ;;  %v21925_v23 = vadd.f32 %v15616_v13, %v15615_v11  ;;  %v15618_v17 = vpop.f32.mrb[174].mxu1  ;;  %v18519_v13 = vld [vmem:[%s22570_s0 + $0x170] ss:$12 sps:$4 sm:$0xff]   ;;  %s22095_s0 = sld [smem:[#allocation2 + $0x81]] }
 0xe4f   : > { %v15619_v53 = vpop.f32.mrb[175].mxu1 }
 0xe50   : > { %v21927_v29 = vadd.f32 %v15619_v53, %v15618_v17 }
 0xe51   : > { %16880 = vmatmul.mubr.bf16.vlgmr.msra.gmra.mrb[216].mxu1 %v18505_v3 }
 0xe52   : > { %16883 = vmatprep.mubr.bf16.mxu1 %v18506_v22 }
 0xe54   : > { %v15621_v54 = vpop.f32.mrb[176].mxu1 }
 0xe55   : > { %v15622_v25 = vpop.f32.mrb[177].mxu1 }
 0xe56   : > { %v21931_v34 = vadd.f32 %v15622_v25, %v15621_v54  ;;  %v15624_v56 = vpop.f32.mrb[178].mxu1 }
 0xe57   : > { %v15625_v45 = vpop.f32.mrb[179].mxu1 }
 0xe58   : > { %v21933_v18 = vadd.f32 %v15625_v45, %v15624_v56 }
 0xe59   : > { %16884 = vmatmul.mubr.bf16.gmra.mrb[220].mxu1 %v18507_v8 }
 0xe5a   : > { %16887 = vmatprep.mubr.bf16.mxu1 %v18508_v16 }
 0xe5c   : > { %v15627_v55 = vpop.f32.mrb[180].mxu1 }
 0xe5d   : > { %v15628_v47 = vpop.f32.mrb[181].mxu1 }
 0xe5e   : > { %v21937_v44 = vadd.f32 %v15628_v47, %v15627_v55  ;;  %v15630_v32 = vpop.f32.mrb[182].mxu1 }
 0xe5f   : > { %v15631_v36 = vpop.f32.mrb[183].mxu1 }
 0xe60   : > { %v21939_v50 = vadd.f32 %v15631_v36, %v15630_v32 }
 0xe61   : > { %16888 = vmatmul.mubr.bf16.gmra.mrb[224].mxu1 %v18509_v61 }
 0xe62   : > { %16891 = vmatprep.mubr.bf16.mxu1 %v18510_v15 }
 0xe64   : > { %v15633_v43 = vpop.f32.mrb[184].mxu1 }
 0xe65   : > { %v15634_v59 = vpop.f32.mrb[185].mxu1 }
 0xe66   : > { %v21943_v46 = vadd.f32 %v15634_v59, %v15633_v43  ;;  %v15636_v30 = vpop.f32.mrb[186].mxu1 }
 0xe67   : > { %v15637_v31 = vpop.f32.mrb[187].mxu1 }
 0xe68   : > { %v21945_v2 = vadd.f32 %v15637_v31, %v15636_v30 }
 0xe69   : > { %16892 = vmatmul.mubr.bf16.gmra.mrb[228].mxu1 %v18511_v19 }
 0xe6a   : > { %16895 = vmatprep.mubr.bf16.mxu1 %v18512_v6 }
 0xe6c   : > { %v15639_v41 = vpop.f32.mrb[188].mxu1 }
 0xe6d   : > { %v15640_v0 = vpop.f32.mrb[189].mxu1 }
 0xe6e   : > { %v21949_v1 = vadd.f32 %v15640_v0, %v15639_v41  ;;  %v15642_v60 = vpop.f32.mrb[190].mxu1 }
 0xe6f   : > { %v15643_v37 = vpop.f32.mrb[191].mxu1 }
 0xe70   : > { %v21951_v20 = vadd.f32 %v15643_v37, %v15642_v60  ;;  %v13170_v60 = vld [vmem:[%s22589_s16] sm:$0xff]  ;;  %s22093_s16 = sld [smem:[#allocation2 + $0x2]] }
 0xe71   : > { %16896 = vmatmul.mubr.bf16.gmra.mrb[232].mxu1 %v18513_v58  ;;  %13173 = vperm.xlu0 %17624, %v13170_v60  }
 0xe72   : > { %16899 = vmatprep.mubr.bf16.mxu1 %v18514_v12  ;;  %v21983_v12 = vld [vmem:[%s22588_s15] sm:$0xf]  ;;  %s22091_s15 = sld [smem:[#allocation2 + $0x1]] }
 0xe74   : > { %v15645_v40 = vpop.f32.mrb[192].mxu1 }
 0xe75   : > { %v15646_v35 = vpop.f32.mrb[193].mxu1 }
 0xe76   : > { %v21955_v57 = vadd.f32 %v15646_v35, %v15645_v40  ;;  %v15648_v42 = vpop.f32.mrb[194].mxu1 }
 0xe77   : > { %v15649_v49 = vpop.f32.mrb[195].mxu1 }
 0xe78   : > { %v21957_v7 = vadd.f32 %v15649_v49, %v15648_v42 }
 0xe79   : > { %16900 = vmatmul.mubr.bf16.gmra.mrb[236].mxu1 %v18515_v26 }
 0xe7a   : > { %16903 = vmatprep.mubr.bf16.mxu1 %v18516_v62 }
 0xe7c   : > { %v15651_v14 = vpop.f32.mrb[196].mxu1 }
 0xe7d   : > { %v15652_v63 = vpop.f32.mrb[197].mxu1 }
 0xe7e   : > { %v21961_v52 = vadd.f32 %v15652_v63, %v15651_v14  ;;  %v15654_v24 = vpop.f32.mrb[198].mxu1 }
 0xe7f   : > { %v15655_v11 = vpop.f32.mrb[199].mxu1 }
 0xe80   : > { %v21963_v3 = vadd.f32 %v15655_v11, %v15654_v24 }
 0xe81   : > { %16904 = vmatmul.mubr.bf16.gmra.mrb[240].mxu1 %v18517_v48 }
 0xe82   : > { %16907 = vmatprep.mubr.bf16.mxu1 %v18518_v38 }
 0xe84   : > { %v15657_v22 = vpop.f32.mrb[200].mxu1 }
 0xe85   : > { %v15658_v17 = vpop.f32.mrb[201].mxu1 }
 0xe86   : > { %v21966_v53 = vadd.f32 %v15658_v17, %v15657_v22  ;;  %v15660_v54 = vpop.f32.mrb[202].mxu1 }
 0xe87   : > { %v15661_v8 = vpop.f32.mrb[203].mxu1 }
 0xe88   : > { %v21968_v25 = vadd.f32 %v15661_v8, %v15660_v54 }
 0xe89   : > { %16908 = vmatmul.mubr.bf16.gmra.mrb[244].mxu1 %v18519_v13 }
 0xe8a   : > { %15721 = vmatprep.mubr.msk.bf16.mxu1 %vm4570_vm7, %v21983_v12 }
 0xe8c   : > { %v15663_v16 = vpop.f32.mrb[204].mxu1 }
 0xe8d   : > { %v15664_v56 = vpop.f32.mrb[205].mxu1 }
 0xe8e   : > { %v21970_v45 = vadd.f32 %v15664_v56, %v15663_v16  ;;  %v15666_v55 = vpop.f32.mrb[206].mxu1 }
 0xe8f   : > { %v15667_v61 = vpop.f32.mrb[207].mxu1 }
 0xe90   : > { %v21972_v47 = vadd.f32 %v15667_v61, %v15666_v55 }
 0xe94   : > { %v15669_v15 = vpop.f32.mrb[208].mxu1 }
 0xe95   : > { %v15670_v32 = vpop.f32.mrb[209].mxu1 }
 0xe96   : > { %v21974_v36 = vadd.f32 %v15670_v32, %v15669_v15  ;;  %v15672_v43 = vpop.f32.mrb[210].mxu1 }
 0xe97   : > { %v15673_v19 = vpop.f32.mrb[211].mxu1 }
 0xe98   : > { %v21976_v59 = vadd.f32 %v15673_v19, %v15672_v43 }
 0xe9c   : > { %v15675_v6 = vpop.f32.mrb[212].mxu1 }
 0xe9d   : > { %v15676_v30 = vpop.f32.mrb[213].mxu1 }
 0xe9e   : > { %v21978_v31 = vadd.f32 %v15676_v30, %v15675_v6  ;;  %v15678_v41 = vpop.f32.mrb[214].mxu1 }
 0xe9f   : > { %v15679_v58 = vpop.f32.mrb[215].mxu1 }
 0xea0   : > { %v21980_v0 = vadd.f32 %v15679_v58, %v15678_v41 }
 0xf24   : > { %v16881_v37 = vpop.f32.mrb[216].mxu1 }
 0xf25   : > { %v21989_v40 = vadd.f32 %v16881_v37, %v21895_v5  ;;  %v13026_v26 = vpop.f32.mrb[217].mxu1 }
 0xf26   : > { %v13027_v35 = vadd.f32 %v21887_v28, %v13026_v26  ;;  %v16882_v62 = vpop.f32.mrb[218].mxu1 }
 0xf27   : > { %v13038_v42 = vadd.f32 %v16882_v62, %v21897_v39  ;;  %v13029_v49 = vpop.f32.mrb[219].mxu1 }
 0xf28   : > { %v13030_v48 = vadd.f32 %v21889_v10, %v13029_v49 }
 0xf29   : > { %v13154_v38 = vpack.c.bf16 %v13038_v42, %v21989_v40 }
 0xf2a   : > { %v13153_v14 = vpack.c.bf16 %v13030_v48, %v13027_v35 }
 0xf2c   : > { %v16885_v63 = vpop.f32.mrb[220].mxu1  ;;  %v13180_v35 = vsel %vm4570_vm7, %v13153_v14, 0 }
 0xf2d   : > { %v21996_v24 = vadd.f32 %v16885_v63, %v21911_v4  ;;  %v13042_v11 = vpop.f32.mrb[221].mxu1 }
 0xf2e   : > { %v21999_v5 = vadd.f32 %v21903_v9, %v13042_v11  ;;  %v16886_v13 = vpop.f32.mrb[222].mxu1 }
 0xf2f   : > { %v22002_v28 = vadd.f32 %v16886_v13, %v21913_v51  ;;  %v13045_v22 = vpop.f32.mrb[223].mxu1 }
 0xf30   : > { %v13046_v39 = vadd.f32 %v21905_v27, %v13045_v22 }
 0xf31   : > { %v13156_v10 = vpack.c.bf16 %v22002_v28, %v21996_v24  ;;  %v13174_v24 = vpop.permute.xlu0 %13173 }
 0xf32   : > { %v13155_v17 = vpack.c.bf16 %v13046_v39, %v21999_v5  ;;  %v13183_v5 = vsel %vm4570_vm7, %v13154_v38, 0 }
 0xf34   : > { %v16889_v54 = vpop.f32.mrb[224].mxu1 }
 0xf35   : > { %v22009_v4 = vadd.f32 %v16889_v54, %v21925_v23  ;;  %v13058_v8 = vpop.f32.mrb[225].mxu1 }
 0xf36   : > { %v22012_v9 = vadd.f32 %v21919_v33, %v13058_v8  ;;  %v16890_v16 = vpop.f32.mrb[226].mxu1 }
 0xf37   : > { %v22015_v51 = vadd.f32 %v16890_v16, %v21927_v29  ;;  %v13061_v56 = vpop.f32.mrb[227].mxu1  ;;  %v13186_v16 = vsel %vm4570_vm7, %v13155_v17, 0  ;;  %v13189_v17 = vsel %vm4570_vm7, %v13156_v10, 0 }
 0xf38   : > { %v22018_v27 = vadd.f32 %v21921_v21, %v13061_v56 }
 0xf39   : > { %v13158_v55 = vpack.c.bf16 %v22015_v51, %v22009_v4  ;;  %v13273_v51 = vld [vmem:[%s1012_s11] sm:$0x77] }
 0xf3a   : > { %v13157_v61 = vpack.c.bf16 %v22018_v27, %v22012_v9 }
 0xf3c   : > { %v16893_v23 = vpop.f32.mrb[228].mxu1 }
 0xf3d   : > { %v22025_v15 = vadd.f32 %v16893_v23, %v21937_v44  ;;  %v13074_v33 = vpop.f32.mrb[229].mxu1 }
 0xf3e   : > { %v22028_v32 = vadd.f32 %v21931_v34, %v13074_v33  ;;  %v16894_v29 = vpop.f32.mrb[230].mxu1 }
 0xf3f   : > { %v22031_v43 = vadd.f32 %v16894_v29, %v21939_v50  ;;  %v13077_v21 = vpop.f32.mrb[231].mxu1 }
 0xf40   : > { %v22034_v19 = vadd.f32 %v21933_v18, %v13077_v21  ;;  %v13301_v21 = vstv %s22095_s0 }
 0xf41   : > { %v13160_v6 = vpack.c.bf16 %v22031_v43, %v22025_v15  ;;  %v13287_v15 = vstv %s22093_s16 }
 0xf42   : > { %v13159_v30 = vpack.c.bf16 %v22034_v19, %v22028_v32  ;;  %v13309_v19 = vstv %s22097_s2 }
 0xf44   : > { %v16897_v44 = vpop.f32.mrb[232].mxu1 }
 0xf45   : > { %v13099_v41 = vadd.f32 %v16897_v44, %v21949_v1  ;;  %v13090_v58 = vpop.f32.mrb[233].mxu1  ;;  %v13331_v44 = vstv %s22103_s10 }
 0xf46   : > { %v13091_v34 = vadd.f32 %v21943_v46, %v13090_v58  ;;  %v16898_v60 = vpop.f32.mrb[234].mxu1 }
 0xf47   : > { %v13102_v50 = vadd.f32 %v16898_v60, %v21951_v20  ;;  %v13093_v37 = vpop.f32.mrb[235].mxu1  ;;  %v13320_v60 = vstv %s22107_s6 }
 0xf48   : > { %v13094_v40 = vadd.f32 %v21945_v2, %v13093_v37 }
 0xf49   : > { %v13162_v18 = vpack.c.bf16 %v13102_v50, %v13099_v41 }
 0xf4a   : > { %v13161_v26 = vpack.c.bf16 %v13094_v40, %v13091_v34  ;;  %v13298_v34 = vstv %s22105_s26 }
 0xf4c   : > { %17555 = vmatprep.subr.msk.bf16.mxu1 %vm4570_vm7, %v13161_v26  ;;  %v16901_v62 = vpop.f32.mrb[236].mxu1 }
 0xf4d   : > { %15706 = vmatpush3.bf16.xpose.msra.mxu1 %v13180_v35  ;;  %v13115_v42 = vadd.f32 %v16901_v62, %v21961_v52  ;;  %v13106_v1 = vpop.f32.mrb[237].mxu1 }
 0xf4e   : > { %17556 = vmatprep.subr.msk.bf16.mxu1 %vm4570_vm7, %v13162_v18  ;;  %v13107_v46 = vadd.f32 %v21955_v57, %v13106_v1  ;;  %v16902_v49 = vpop.f32.mrb[238].mxu1 }
 0xf4f   : > { %v13118_v20 = vadd.f32 %v16902_v49, %v21963_v3  ;;  %v13109_v48 = vpop.f32.mrb[239].mxu1 }
 0xf50   : > { %v13110_v2 = vadd.f32 %v21957_v7, %v13109_v48  ;;  %v13295_v48 = vstv %s22111_s9 }
 0xf51   : > { %v13164_v63 = vpack.c.bf16 %v13118_v20, %v13115_v42 }
 0xf52   : > { %v13163_v11 = vpack.c.bf16 %v13110_v2, %v13107_v46 }
 0xf54   : > { %v16905_v14 = vpop.f32.mrb[240].mxu1 }
 0xf55   : > { %15708 = vmatpush3.bf16.xpose.msra.mxu1 %v13183_v5  ;;  %v13131_v13 = vadd.f32 %v16905_v14, %v21970_v45  ;;  %v13122_v52 = vpop.f32.mrb[241].mxu1  ;;  %v22591_v14 = vld [vmem:[#allocation27_spill] sm:$0xff] }
 0xf56   : > { %17557 = vmatprep.subr.msk.bf16.mxu1 %vm4570_vm7, %v13163_v11  ;;  %v13123_v22 = vadd.f32 %v21966_v53, %v13122_v52  ;;  %v16906_v57 = vpop.f32.mrb[242].mxu1 }
 0xf57   : > { %v13134_v39 = vadd.f32 %v16906_v57, %v21972_v47  ;;  %v13125_v3 = vpop.f32.mrb[243].mxu1  ;;  %v13339_v57 = vstv %s22120_s13 }
 0xf58   : > { %v13126_v54 = vadd.f32 %v21968_v25, %v13125_v3 }
 0xf59   : > { %v13166_v7 = vpack.c.bf16 %v13134_v39, %v13131_v13  ;;  %v13348_v13 = vsub.s32 4, %v22591_v14 }
 0xf5a   : > { %v13165_v8 = vpack.c.bf16 %v13126_v54, %v13123_v22  ;;  %v13317_v22 = vstv %s22117_s12 }
 0xf5c   : > { %v16909_v38 = vpop.f32.mrb[244].mxu1 }
 0xf5d   : > { %15710 = vmatpush3.bf16.xpose.msra.mxu1 %v13186_v16  ;;  %v13147_v56 = vadd.f32 %v16909_v38, %v21978_v31  ;;  %v13138_v45 = vpop.f32.mrb[245].mxu1  ;;  %v13198_v31 = vsel %vm4570_vm7, %v13159_v30, 0  ;;  %v13276_v30 = vstv %s22101_s5  ;;  %v22592_v16 = vld [vmem:[#allocation28_spill] sm:$0xff]  ;;  %s1022_s5 = scalar_lea.vmem %s18774_s4, %s22087_s1 }
 0xf5e   : > { %17558 = vmatprep.subr.msk.bf16.mxu1 %vm4570_vm7, %v13164_v63  ;;  %v13139_v23 = vadd.f32 %v21974_v36, %v13138_v45  ;;  %v16910_v53 = vpop.f32.mrb[246].mxu1  ;;  %v13192_v36 = vsel %vm4570_vm7, %v13157_v61, 0  ;;  %v13279_v61 = vstv %s22091_s15 }
 0xf5f   : > { %v13150_v33 = vadd.f32 %v16910_v53, %v21980_v0  ;;  %v13141_v47 = vpop.f32.mrb[247].mxu1  ;;  %v13201_v0 = vsel %vm4570_vm7, %v13160_v6, 0  ;;  %v13323_v6 = vstv %s22099_s3 }
 0xf60   : > { %v13142_v32 = vadd.f32 %v21976_v59, %v13141_v47  ;;  %v13195_v59 = vsel %vm4570_vm7, %v13158_v55, 0 }
 0xf61   : > { %v13168_v25 = vpack.c.bf16 %v13150_v33, %v13147_v56 }
 0xf62   : > { %v13167_v29 = vpack.c.bf16 %v13142_v32, %v13139_v23 }
 0xf65   : > { %15712 = vmatpush3.bf16.xpose.msra.mxu1 %v13189_v17 }
 0xf66   : > { %17559 = vmatprep.subr.msk.bf16.mxu1 %vm4570_vm7, %v13165_v8 }
 0xf6d   : > { %15714 = vmatpush3.bf16.xpose.msra.mxu1 %v13192_v36 }
 0xf6e   : > { %17560 = vmatprep.subr.msk.bf16.mxu1 %vm4570_vm7, %v13166_v7 }
 0xf75   : > { %15716 = vmatpush3.bf16.xpose.msra.mxu1 %v13195_v59 }
 0xf76   : > { %17561 = vmatprep.subr.msk.bf16.mxu1 %vm4570_vm7, %v13167_v29 }
 0xf7d   : > { %15718 = vmatpush3.bf16.xpose.msra.mxu1 %v13198_v31 }
 0xf7e   : > { %17562 = vmatprep.subr.msk.bf16.mxu1 %vm4570_vm7, %v13168_v25 }
 0xf85   : > { %15720 = vmatpush3.bf16.xpose.msra.mxu1 %v13201_v0 }
 0xf8c   : > { %15722 = vmatmul.mubr.msk.bf16.vlgmr.msra.gmra.mrb[248].mxu1 %vm4570_vm7, %v21983_v12 }
0x105f   : > { %v13261_v12 = vpop.f32.mrb[248].mxu1 }
0x1060   : > { %v13262_v28 = vadd.f32 %v13261_v12, %v13174_v24  ;;  %v13263_v10 = vpop.f32.mrb[249].mxu1 }
0x1061   : > { %v13264_v4 = vadd.f32 %v13263_v10, %v13174_v24  ;;  %v13265_v9 = vpop.f32.mrb[250].mxu1 }
0x1062   : > { %v13266_v27 = vpop.f32.mrb[251].mxu1 }
0x1063   : > { %v13270_v55 = vcombine.low %v13262_v28, %v13264_v4 }
0x1065   : > { %13272 = vst [vmem:[%s1017_s8] sm:$0x77] %v13270_v55  ;;  %v13274_v43 = vadd.f32 %v13273_v51, %v13270_v55 }
0x1067   : > { %v13280_v41 = vmul.f32 %v13279_v61, %v13274_v43  ;;  %v13288_v58 = vmul.f32 %v13287_v15, %v13274_v43  ;;  %v13302_v50 = vmul.f32 %v13301_v21, %v13274_v43  ;;  %v13310_v37 = vmul.f32 %v13309_v19, %v13274_v43 }
0x1068   : > { %v13324_v40 = vmul.f32 %v13323_v6, %v13274_v43  ;;  %v13277_v18 = vmul.f32 %v13276_v30, %v13274_v43  ;;  %v13332_v35 = vmul.f32 %v13331_v44, %v13274_v43  ;;  %v13299_v62 = vmul.f32 %v13298_v34, %v13274_v43 }
0x1069   : > { %v14969_v26 = vrot.slane %v13280_v41, 9  ;;  %v14974_v42 = vrot.slane %v13302_v50, 9  ;;  %v13321_v1 = vmul.f32 %v13320_v60, %v13274_v43  ;;  %v14971_v20 = vrot.slane %v13288_v58, 10 }
0x106a   : > { %v14980_v46 = vrot.slane %v13324_v40, 9  ;;  %v14976_v63 = vrot.slane %v13310_v37, 10  ;;  %v14982_v5 = vrot.slane %v13332_v35, 10 }
0x106b   : > { %v13285_v49 = vadd.f32 %v14969_v26, %v13277_v18  ;;  %v13307_v2 = vadd.f32 %v14974_v42, %v13299_v62 }
0x106c   : > { %v13329_v11 = vadd.f32 %v14980_v46, %v13321_v1 }
0x106d   : > { %v13293_v52 = vadd.f32 %v14971_v20, %v13285_v49  ;;  %v13315_v39 = vadd.f32 %v14976_v63, %v13307_v2 }
0x106e   : > { %v13337_v3 = vadd.f32 %v14982_v5, %v13329_v11 }
0x106f   : > { %v13296_v54 = vadd.f32 %v13295_v48, %v13293_v52  ;;  %v13318_v7 = vadd.f32 %v13317_v22, %v13315_v39 }
0x1070   : > { %v13340_v8 = vadd.f32 %v13339_v57, %v13337_v3 }
0x1071   : > { %v13345_v38 = vrot.slane %v13296_v54, %v22592_v16  ;;  %v13349_v56 = vrot.slane %v13296_v54, %v13348_v13  ;;  %v13356_v45 = vrot.slane %v13318_v7, %v22592_v16  ;;  %v13360_v23 = vrot.slane %v13318_v7, %v13348_v13 }
0x1072   : > { %v13367_v53 = vrot.slane %v13340_v8, %v22592_v16  ;;  %v13371_v33 = vrot.slane %v13340_v8, %v13348_v13 }
0x1073   : > { %v13375_v47 = vsel %vm13374_vm9, %v13345_v38, %v13356_v45  ;;  %v13376_v32 = vsel %vm13374_vm9, %v13349_v56, %v13360_v23 }
0x1074   : > { %v13378_v25 = vsel %vm13377_vm10, %v13375_v47, %v13367_v53  ;;  %v13379_v29 = vsel %vm13377_vm10, %v13376_v32, %v13371_v33 }
0x1075   : > { %18520 = vtanh.f32 %v13378_v25 }
0x1076   : > { %18522 = vtanh.f32 %v13379_v29 }
0x107f   : > { %v18521_v17 = vpop.eup %18520 }
0x1080   : > { %v18523_v36 = vpop.eup %18522 }
0x1081   : > { %v13384_v59 = vcombine.low %v18521_v17, %v18523_v36 }
0x1083   : > { %13386 = vst [vmem:[%s1022_s5] sm:$0x77] %v13384_v59 }
0x1084 PF: > { %s72_s7 = sadd.s32 1, %s18585_s7  }
0x1085   : > { %p69_p5 = scmp.ge.s32.totalorder %s72_s7, 4  }
0x1087   :  { %71 = sbr.rel (!%p69_p5) target bundleno = 54 (0x36), region = 248 }
0x108e   :  { %13424 = vsyncpa [#allocation3], 1 }
0x108f   :  { %13426 = vsyncpa [#allocation3 + $0x1], 1 }
0x1090   :  { %13427 = vsyncpa [#allocation5], 1 }

</bundles_post_ra>
